<compile_context>
chip_gen: v6e
topology: v6e:2x2x1
jax: 0.10.0
libtpu: 0.0.40
codegen_flags: <defaults>
</compile_context>

<pallas_src>
import functools

import jax
import jax.numpy as jnp
from jax.experimental import pallas as pl
from jax.experimental.pallas import tpu as pltpu

PAD = 3        # max dilation -> common zero-pad halo for the three branches
MARGIN = 128   # 128-aligned in-kernel halo (must be >= PAD*Wp + PAD)


def _round_up(v, m):
    return (v + m - 1) // m * m


# ---------------------------------------------------------------------------
# Fused RFEG_2 kernel (whole forward pass for one image per grid step)
# ---------------------------------------------------------------------------
def _make_rfeg_kernel(C, H, W):
    Hp, Wp = H + 2 * PAD, W + 2 * PAD
    LP = Hp * Wp                      # flattened padded-image length
    LPE = _round_up(LP, 128)          # lane-dense activation width
    assert MARGIN >= PAD * Wp + PAD, "halo margin too small for dilation 3"
    assert C % 16 == 0, "C must be a multiple of 16 (bf16 sublane tile)"

    # Tap order (dilation-major, then ki, kj) must match the block-diagonal
    # weight packing done in the wrapper.
    offsets = tuple((ki - 1) * d * Wp + (kj - 1) * d
                    for d in (1, 2, 3) for ki in range(3) for kj in range(3))

    def kernel(x_ref, mask_ref, w_bd_ref, w_ra_ref, w_c_ref, w_b_ref,
               out_ref, outm_ref,
               ext_ref, patch_ref, acc_m, acc_a, acc_h):
        x = x_ref[0]                 # (C, LPE) flat zero-padded image (f32)
        mask = mask_ref[...]         # (1, LPE) 1.0 on valid pixels else 0.0

        # Re-zero just the halo strips of the persistent extend buffer; cheap
        # (2 x (C, 128) stores) and correct under 'parallel' grid splitting.
        halo = jnp.zeros((C, MARGIN), jnp.float32)
        ext_ref[:, :MARGIN] = halo
        ext_ref[:, MARGIN + LPE:] = halo

        def rfem(act, i):
            # Masked activation into the halo-extended scratch center.
            ext_ref[:, MARGIN:MARGIN + LPE] = act * mask
            ext = ext_ref[...]                              # (C, LPE + 2*MARGIN)

            # im2col: 27 lane-shifted taps (3 dilations x 3x3) written directly
            # into their sublane slots of the bf16 patch stack (27C, LPE).
            for t, off in enumerate(offsets):
                s = MARGIN + off
                patch_ref[t * C:(t + 1) * C, :] = (
                    ext[:, s:s + LPE].astype(jnp.bfloat16))

            # Fused dilated convs: block-diag (3C, 27C) @ (27C, LPE) on the MXU.
            A = jnp.maximum(
                jnp.dot(w_bd_ref[i], patch_ref[...],
                        preferred_element_type=jnp.float32), 0.0)   # (3C, LPE)
            A_bf = A.astype(jnp.bfloat16)

            # Fused [RFEM 1x1 reduce ; attention-bank partial]: (2C,3C)@(3C,LPE)
            y = jnp.dot(w_ra_ref[i], A_bf, preferred_element_type=jnp.float32)
            c = jnp.maximum(y[:C], 0.0)                     # (C, LPE)
            att_inc = y[C:]                                 # (C, LPE), pre-ReLU
            b = c + act                                     # residual

            mult_inc = jnp.dot(w_c_ref[i], c.astype(jnp.bfloat16),
                               preferred_element_type=jnp.float32)
            high_inc = jnp.dot(w_b_ref[i], b.astype(jnp.bfloat16),
                               preferred_element_type=jnp.float32)

            # Streamed final reductions (ReLU is applied after the full sums).
            if i == 0:
                acc_m[...] = mult_inc
                acc_a[...] = att_inc
                acc_h[...] = high_inc
            else:
                acc_m[...] += mult_inc
                acc_a[...] += att_inc
                acc_h[...] += high_inc
            return b

        b = x
        for i in range(3):
            b = rfem(b, i)

        mult = jnp.maximum(acc_m[...], 0.0)
        att = jnp.maximum(acc_a[...], 0.0)
        high = jnp.maximum(acc_h[...], 0.0)
        out_mult = mult + att
        outm_ref[0] = out_mult
        out_ref[0] = out_mult + high

    return kernel, LP, LPE


def rfeg_2_forward(x, params):
    """x: (N, C, H, W) float32 (NCHW, like the PyTorch module)."""
    N, C, H, W = x.shape
    kernel, LP, LPE = _make_rfeg_kernel(C, H, W)
    Hp, Wp = H + 2 * PAD, W + 2 * PAD

    # Flat zero-padded, lane-dense input: (N, C, LPE).
    x_pf = jnp.pad(x, ((0, 0), (0, 0), (PAD, PAD), (PAD, PAD))).reshape(N, C, LP)
    x_pf = jnp.pad(x_pf, ((0, 0), (0, 0), (0, LPE - LP)))

    # Valid-pixel mask in the flat padded frame (zeros on pad + dead columns).
    p = jnp.arange(LPE)
    r, c = p // Wp, p % Wp
    mask = ((p < LP) & (r >= PAD) & (r < PAD + H) &
            (c >= PAD) & (c < PAD + W)).astype(jnp.float32).reshape(1, LPE)

    def conv_w(w):   # (3,3,Cin,Cout) -> (Cout, 9*Cin), tap-major columns
        return jnp.transpose(w, (3, 0, 1, 2)).reshape(w.shape[3], 9 * w.shape[2])

    wredc_t = params["red1"].T       # (C, 3C)
    wreda_t = params["red2"].T       # (C, 9C)
    wredb_t = params["red3"].T       # (C, 3C)

    w_bd, w_ra, w_c, w_b = [], [], [], []
    for i, blk in enumerate(("rb1", "rb2", "rb3")):
        wa, wb, wc, wr = params[blk]
        bd = jnp.zeros((3 * C, 27 * C), jnp.float32)
        bd = bd.at[0 * C:1 * C, 0 * C:9 * C].set(conv_w(wa))    # dilation 1
        bd = bd.at[1 * C:2 * C, 9 * C:18 * C].set(conv_w(wb))   # dilation 2
        bd = bd.at[2 * C:3 * C, 18 * C:27 * C].set(conv_w(wc))  # dilation 3
        w_bd.append(bd)
        w_ra.append(jnp.concatenate(
            [wr.T, wreda_t[:, i * 3 * C:(i + 1) * 3 * C]], axis=0))  # (2C, 3C)
        w_c.append(wredc_t[:, i * C:(i + 1) * C])                     # (C, C)
        w_b.append(wredb_t[:, i * C:(i + 1) * C])                     # (C, C)

    w_bd = jnp.stack(w_bd).astype(jnp.bfloat16)   # (3, 3C, 27C)
    w_ra = jnp.stack(w_ra).astype(jnp.bfloat16)   # (3, 2C, 3C)
    w_c = jnp.stack(w_c).astype(jnp.bfloat16)     # (3, C, C)
    w_b = jnp.stack(w_b).astype(jnp.bfloat16)     # (3, C, C)

    act_spec = pl.BlockSpec((1, C, LPE), lambda n: (n, 0, 0))
    w3_map = lambda n: (0, 0, 0)
    in_specs = [act_spec,
                pl.BlockSpec(mask.shape, lambda n: (0, 0)),
                pl.BlockSpec(w_bd.shape, w3_map),
                pl.BlockSpec(w_ra.shape, w3_map),
                pl.BlockSpec(w_c.shape, w3_map),
                pl.BlockSpec(w_b.shape, w3_map)]
    out_specs = (act_spec, act_spec)

    out_pf, outm_pf = pl.pallas_call(
        kernel,
        out_shape=(jax.ShapeDtypeStruct((N, C, LPE), jnp.float32),
                   jax.ShapeDtypeStruct((N, C, LPE), jnp.float32)),
        grid_spec=pltpu.PrefetchScalarGridSpec(
            num_scalar_prefetch=0,
            grid=(N,),
            in_specs=in_specs,
            out_specs=out_specs,
            scratch_shapes=[
                pltpu.VMEM((C, LPE + 2 * MARGIN), jnp.float32),  # extend buffer
                pltpu.VMEM((27 * C, LPE), jnp.bfloat16),         # im2col stack
                pltpu.VMEM((C, LPE), jnp.float32),               # mult acc
                pltpu.VMEM((C, LPE), jnp.float32),               # att acc
                pltpu.VMEM((C, LPE), jnp.float32),               # high acc
            ]),
        # Images spread across TensorCores on multi-TC parts (v7x); on
        # single-TC parts this is just a sequential grid.
        compiler_params=pltpu.CompilerParams(
            dimension_semantics=("parallel",)),
    )(x_pf, mask, w_bd, w_ra, w_c, w_b)

    def unflatten(y):   # (N, C, LPE) padded-flat -> (N, C, H, W)
        return y[:, :, :LP].reshape(N, C, Hp, Wp)[:, :, PAD:PAD + H, PAD:PAD + W]

    return unflatten(out_pf), unflatten(outm_pf)


# ---------------------------------------------------------------------------
# Pure-JAX reference (same math, no Pallas) for a correctness check
# ---------------------------------------------------------------------------
def _ref_rfem(x, w1, w2, w3, wr):
    N, C, H, W = x.shape
    xpad = jnp.pad(x, ((0, 0), (0, 0), (PAD, PAD), (PAD, PAD)))

    def branch(w, d):
        acc = jnp.zeros((N, w.shape[3], H, W), jnp.float32)
        for ki in range(3):
            for kj in range(3):
                oi = PAD + (ki - 1) * d
                oj = PAD + (kj - 1) * d
                patch = xpad[:, :, oi:oi + H, oj:oj + W]
                acc = acc + jnp.einsum("nchw,co->nohw", patch, w[ki, kj])
        return jnp.maximum(acc, 0.0)

    A = jnp.concatenate([branch(w1, 1), branch(w2, 2), branch(w3, 3)], axis=1)
    c = jnp.maximum(jnp.einsum("nchw,co->nohw", A, wr), 0.0)
    return c + x, A, c


def _ref_forward(x, params):
    b1, a1, c1 = _ref_rfem(x, *params["rb1"])
    b2, a2, c2 = _ref_rfem(b1, *params["rb2"])
    b3, a3, c3 = _ref_rfem(b2, *params["rb3"])
    conv1 = lambda t, w: jnp.maximum(jnp.einsum("nchw,co->nohw", t, w), 0.0)
    mult = conv1(jnp.concatenate([c1, c2, c3], 1), params["red1"])
    att = conv1(jnp.concatenate([a1, a2, a3], 1), params["red2"])
    high = conv1(jnp.concatenate([b1, b2, b3], 1), params["red3"])
    out_mult = mult + att
    return out_mult + high, out_mult


# ---------------------------------------------------------------------------
def make_params(key, C):
    ks = jax.random.split(key, 15)

    def init(k, shape, fan_in):
        return (jax.random.normal(k, shape, jnp.float32) /
                jnp.sqrt(jnp.float32(fan_in)))

    def rfem_w(k4):
        a, b, c, d = k4
        return (init(a, (3, 3, C, C), 9 * C),
                init(b, (3, 3, C, C), 9 * C),
                init(c, (3, 3, C, C), 9 * C),
                init(d, (3 * C, C), 3 * C))

    return {
        "rb1": rfem_w(ks[0:4]),
        "rb2": rfem_w(ks[4:8]),
        "rb3": rfem_w(ks[8:12]),
        "red1": init(ks[12], (3 * C, C), 3 * C),
        "red2": init(ks[13], (9 * C, C), 9 * C),
        "red3": init(ks[14], (3 * C, C), 3 * C),
    }


if __name__ == "__main__":
    N, C, H, W = 2, 16, 16, 16          # in_channels == out_channels == 16
    key = jax.random.PRNGKey(0)
    kx, kp = jax.random.split(key)
    x = jax.random.normal(kx, (N, C, H, W), jnp.float32)
    params = make_params(kp, C)

    fwd = jax.jit(functools.partial(rfeg_2_forward, params=params))
    out, out_mult = fwd(x)
    jax.block_until_ready((out, out_mult))

    out_ref, out_mult_ref = _ref_forward(x, params)
    assert out.shape == (N, C, H, W) and out_mult.shape == (N, C, H, W)

    def rel_err(a, b):
        return float(jnp.max(jnp.abs(a - b)) / (jnp.max(jnp.abs(b)) + 1e-6))

    # Kernel uses bf16 MXU operands (per perf review) vs. the default-precision
    # f32 reference: a couple percent normalized error is expected; a
    # structural bug would show up as O(1) error.
    assert rel_err(out, out_ref) < 5e-2
    assert rel_err(out_mult, out_mult_ref) < 5e-2
    print("KERNEL_OK")
</pallas_src>

<mosaic_0001>
module attributes {stable_mosaic.version = 11 : i64} {
  func.func @kernel(%arg0: i32, %arg1: memref<1x16x512xf32, #tpu.memory_space<vmem>>, %arg2: memref<1x512xf32, #tpu.memory_space<vmem>>, %arg3: memref<3x48x432xbf16, #tpu.memory_space<vmem>>, %arg4: memref<3x32x48xbf16, #tpu.memory_space<vmem>>, %arg5: memref<3x16x16xbf16, #tpu.memory_space<vmem>>, %arg6: memref<3x16x16xbf16, #tpu.memory_space<vmem>>, %arg7: memref<1x16x512xf32, #tpu.memory_space<vmem>>, %arg8: memref<1x16x512xf32, #tpu.memory_space<vmem>>, %arg9: memref<16x768xf32, #tpu.memory_space<vmem>>, %arg10: memref<432x512xbf16, #tpu.memory_space<vmem>>, %arg11: memref<16x512xf32, #tpu.memory_space<vmem>>, %arg12: memref<16x512xf32, #tpu.memory_space<vmem>>, %arg13: memref<16x512xf32, #tpu.memory_space<vmem>>) attributes {dimension_semantics = [#tpu.dimension_semantics<parallel>], iteration_bounds = array<i64: 2>, scalar_prefetch = 0 : i64, scratch_operands = 5 : i64, tpu.core_type = #tpu.core_type<tc>, window_params = [{transform_indices = @transform_0, window_bounds = array<i64: 1, 16, 512>}, {pipeline_mode = #tpu.pipeline_mode<synchronous>, transform_indices = @transform_1, window_bounds = array<i64: 1, 512>}, {pipeline_mode = #tpu.pipeline_mode<synchronous>, transform_indices = @transform_2, window_bounds = array<i64: 3, 48, 432>}, {pipeline_mode = #tpu.pipeline_mode<synchronous>, transform_indices = @transform_3, window_bounds = array<i64: 3, 32, 48>}, {pipeline_mode = #tpu.pipeline_mode<synchronous>, transform_indices = @transform_4, window_bounds = array<i64: 3, 16, 16>}, {pipeline_mode = #tpu.pipeline_mode<synchronous>, transform_indices = @transform_5, window_bounds = array<i64: 3, 16, 16>}, {transform_indices = @transform_6, window_bounds = array<i64: 1, 16, 512>}, {transform_indices = @transform_7, window_bounds = array<i64: 1, 16, 512>}]} {
    %c0 = arith.constant 0 : index
    %c0_0 = arith.constant 0 : index
    %c0_1 = arith.constant 0 : index
    %0 = vector.load %arg1[%c0, %c0_0, %c0_1] : memref<1x16x512xf32, #tpu.memory_space<vmem>>, vector<1x16x512xf32>
    %1 = vector.shape_cast %0 : vector<1x16x512xf32> to vector<16x512xf32>
    %c0_2 = arith.constant 0 : index
    %c0_3 = arith.constant 0 : index
    %2 = vector.load %arg2[%c0_2, %c0_3] : memref<1x512xf32, #tpu.memory_space<vmem>>, vector<1x512xf32>
    %cst = arith.constant 0.000000e+00 : f32
    %3 = vector.broadcast %cst : f32 to vector<16x128xf32>
    %c0_4 = arith.constant 0 : index
    %c0_5 = arith.constant 0 : index
    %4 = vector.load %arg9[%c0_4, %c0_5] : memref<16x768xf32, #tpu.memory_space<vmem>>, vector<16x128xf32>
    tpu.vector_store %arg9[%c0_4, %c0_5], %3 {strides = array<i32>} : memref<16x768xf32, #tpu.memory_space<vmem>>, vector<16x128xf32>,
    %c0_6 = arith.constant 0 : index
    %c640 = arith.constant 640 : index
    %5 = vector.load %arg9[%c0_6, %c640] : memref<16x768xf32, #tpu.memory_space<vmem>>, vector<16x128xf32>
    tpu.vector_store %arg9[%c0_6, %c640], %3 {strides = array<i32>} : memref<16x768xf32, #tpu.memory_space<vmem>>, vector<16x128xf32>,
    %6 = vector.broadcast %2 : vector<1x512xf32> to vector<16x512xf32>
    %7 = arith.mulf %1, %6 : vector<16x512xf32>
    %c0_7 = arith.constant 0 : index
    %c128 = arith.constant 128 : index
    %8 = vector.load %arg9[%c0_7, %c128] : memref<16x768xf32, #tpu.memory_space<vmem>>, vector<16x512xf32>
    tpu.vector_store %arg9[%c0_7, %c128], %7 {strides = array<i32>} : memref<16x768xf32, #tpu.memory_space<vmem>>, vector<16x512xf32>,
    %c0_8 = arith.constant 0 : index
    %c0_9 = arith.constant 0 : index
    %9 = vector.load %arg9[%c0_8, %c0_9] : memref<16x768xf32, #tpu.memory_space<vmem>>, vector<16x768xf32>
    %10 = vector.extract_strided_slice %9 {offsets = [0, 105], sizes = [16, 512], strides = [1, 1]} : vector<16x768xf32> to vector<16x512xf32>
    %11 = arith.truncf %10 : vector<16x512xf32> to vector<16x512xbf16>
    %c0_10 = arith.constant 0 : index
    %c0_11 = arith.constant 0 : index
    %12 = vector.load %arg10[%c0_10, %c0_11] : memref<432x512xbf16, #tpu.memory_space<vmem>>, vector<16x512xbf16>
    tpu.vector_store %arg10[%c0_10, %c0_11], %11 {strides = array<i32>} : memref<432x512xbf16, #tpu.memory_space<vmem>>, vector<16x512xbf16>,
    %13 = vector.extract_strided_slice %9 {offsets = [0, 106], sizes = [16, 512], strides = [1, 1]} : vector<16x768xf32> to vector<16x512xf32>
    %14 = arith.truncf %13 : vector<16x512xf32> to vector<16x512xbf16>
    %c16 = arith.constant 16 : index
    %c0_12 = arith.constant 0 : index
    %15 = vector.load %arg10[%c16, %c0_12] : memref<432x512xbf16, #tpu.memory_space<vmem>>, vector<16x512xbf16>
    tpu.vector_store %arg10[%c16, %c0_12], %14 {strides = array<i32>} : memref<432x512xbf16, #tpu.memory_space<vmem>>, vector<16x512xbf16>,
    %16 = vector.extract_strided_slice %9 {offsets = [0, 107], sizes = [16, 512], strides = [1, 1]} : vector<16x768xf32> to vector<16x512xf32>
    %17 = arith.truncf %16 : vector<16x512xf32> to vector<16x512xbf16>
    %c32 = arith.constant 32 : index
    %c0_13 = arith.constant 0 : index
    %18 = vector.load %arg10[%c32, %c0_13] : memref<432x512xbf16, #tpu.memory_space<vmem>>, vector<16x512xbf16>
    tpu.vector_store %arg10[%c32, %c0_13], %17 {strides = array<i32>} : memref<432x512xbf16, #tpu.memory_space<vmem>>, vector<16x512xbf16>,
    %19 = vector.extract_strided_slice %9 {offsets = [0, 127], sizes = [16, 512], strides = [1, 1]} : vector<16x768xf32> to vector<16x512xf32>
    %20 = arith.truncf %19 : vector<16x512xf32> to vector<16x512xbf16>
    %c48 = arith.constant 48 : index
    %c0_14 = arith.constant 0 : index
    %21 = vector.load %arg10[%c48, %c0_14] : memref<432x512xbf16, #tpu.memory_space<vmem>>, vector<16x512xbf16>
    tpu.vector_store %arg10[%c48, %c0_14], %20 {strides = array<i32>} : memref<432x512xbf16, #tpu.memory_space<vmem>>, vector<16x512xbf16>,
    %22 = vector.extract_strided_slice %9 {offsets = [0, 128], sizes = [16, 512], strides = [1, 1]} : vector<16x768xf32> to vector<16x512xf32>
    %23 = arith.truncf %22 : vector<16x512xf32> to vector<16x512xbf16>
    %c64 = arith.constant 64 : index
    %c0_15 = arith.constant 0 : index
    %24 = vector.load %arg10[%c64, %c0_15] : memref<432x512xbf16, #tpu.memory_space<vmem>>, vector<16x512xbf16>
    tpu.vector_store %arg10[%c64, %c0_15], %23 {strides = array<i32>} : memref<432x512xbf16, #tpu.memory_space<vmem>>, vector<16x512xbf16>,
    %25 = vector.extract_strided_slice %9 {offsets = [0, 129], sizes = [16, 512], strides = [1, 1]} : vector<16x768xf32> to vector<16x512xf32>
    %26 = arith.truncf %25 : vector<16x512xf32> to vector<16x512xbf16>
    %c80 = arith.constant 80 : index
    %c0_16 = arith.constant 0 : index
    %27 = vector.load %arg10[%c80, %c0_16] : memref<432x512xbf16, #tpu.memory_space<vmem>>, vector<16x512xbf16>
    tpu.vector_store %arg10[%c80, %c0_16], %26 {strides = array<i32>} : memref<432x512xbf16, #tpu.memory_space<vmem>>, vector<16x512xbf16>,
    %28 = vector.extract_strided_slice %9 {offsets = [0, 149], sizes = [16, 512], strides = [1, 1]} : vector<16x768xf32> to vector<16x512xf32>
    %29 = arith.truncf %28 : vector<16x512xf32> to vector<16x512xbf16>
    %c96 = arith.constant 96 : index
    %c0_17 = arith.constant 0 : index
    %30 = vector.load %arg10[%c96, %c0_17] : memref<432x512xbf16, #tpu.memory_space<vmem>>, vector<16x512xbf16>
    tpu.vector_store %arg10[%c96, %c0_17], %29 {strides = array<i32>} : memref<432x512xbf16, #tpu.memory_space<vmem>>, vector<16x512xbf16>,
    %31 = vector.extract_strided_slice %9 {offsets = [0, 150], sizes = [16, 512], strides = [1, 1]} : vector<16x768xf32> to vector<16x512xf32>
    %32 = arith.truncf %31 : vector<16x512xf32> to vector<16x512xbf16>
    %c112 = arith.constant 112 : index
    %c0_18 = arith.constant 0 : index
    %33 = vector.load %arg10[%c112, %c0_18] : memref<432x512xbf16, #tpu.memory_space<vmem>>, vector<16x512xbf16>
    tpu.vector_store %arg10[%c112, %c0_18], %32 {strides = array<i32>} : memref<432x512xbf16, #tpu.memory_space<vmem>>, vector<16x512xbf16>,
    %34 = vector.extract_strided_slice %9 {offsets = [0, 151], sizes = [16, 512], strides = [1, 1]} : vector<16x768xf32> to vector<16x512xf32>
    %35 = arith.truncf %34 : vector<16x512xf32> to vector<16x512xbf16>
    %c128_19 = arith.constant 128 : index
    %c0_20 = arith.constant 0 : index
    %36 = vector.load %arg10[%c128_19, %c0_20] : memref<432x512xbf16, #tpu.memory_space<vmem>>, vector<16x512xbf16>
    tpu.vector_store %arg10[%c128_19, %c0_20], %35 {strides = array<i32>} : memref<432x512xbf16, #tpu.memory_space<vmem>>, vector<16x512xbf16>,
    %37 = vector.extract_strided_slice %9 {offsets = [0, 82], sizes = [16, 512], strides = [1, 1]} : vector<16x768xf32> to vector<16x512xf32>
    %38 = arith.truncf %37 : vector<16x512xf32> to vector<16x512xbf16>
    %c144 = arith.constant 144 : index
    %c0_21 = arith.constant 0 : index
    %39 = vector.load %arg10[%c144, %c0_21] : memref<432x512xbf16, #tpu.memory_space<vmem>>, vector<16x512xbf16>
    tpu.vector_store %arg10[%c144, %c0_21], %38 {strides = array<i32>} : memref<432x512xbf16, #tpu.memory_space<vmem>>, vector<16x512xbf16>,
    %40 = vector.extract_strided_slice %9 {offsets = [0, 84], sizes = [16, 512], strides = [1, 1]} : vector<16x768xf32> to vector<16x512xf32>
    %41 = arith.truncf %40 : vector<16x512xf32> to vector<16x512xbf16>
    %c160 = arith.constant 160 : index
    %c0_22 = arith.constant 0 : index
    %42 = vector.load %arg10[%c160, %c0_22] : memref<432x512xbf16, #tpu.memory_space<vmem>>, vector<16x512xbf16>
    tpu.vector_store %arg10[%c160, %c0_22], %41 {strides = array<i32>} : memref<432x512xbf16, #tpu.memory_space<vmem>>, vector<16x512xbf16>,
    %43 = vector.extract_strided_slice %9 {offsets = [0, 86], sizes = [16, 512], strides = [1, 1]} : vector<16x768xf32> to vector<16x512xf32>
    %44 = arith.truncf %43 : vector<16x512xf32> to vector<16x512xbf16>
    %c176 = arith.constant 176 : index
    %c0_23 = arith.constant 0 : index
    %45 = vector.load %arg10[%c176, %c0_23] : memref<432x512xbf16, #tpu.memory_space<vmem>>, vector<16x512xbf16>
    tpu.vector_store %arg10[%c176, %c0_23], %44 {strides = array<i32>} : memref<432x512xbf16, #tpu.memory_space<vmem>>, vector<16x512xbf16>,
    %46 = vector.extract_strided_slice %9 {offsets = [0, 126], sizes = [16, 512], strides = [1, 1]} : vector<16x768xf32> to vector<16x512xf32>
    %47 = arith.truncf %46 : vector<16x512xf32> to vector<16x512xbf16>
    %c192 = arith.constant 192 : index
    %c0_24 = arith.constant 0 : index
    %48 = vector.load %arg10[%c192, %c0_24] : memref<432x512xbf16, #tpu.memory_space<vmem>>, vector<16x512xbf16>
    tpu.vector_store %arg10[%c192, %c0_24], %47 {strides = array<i32>} : memref<432x512xbf16, #tpu.memory_space<vmem>>, vector<16x512xbf16>,
    %49 = vector.extract_strided_slice %9 {offsets = [0, 128], sizes = [16, 512], strides = [1, 1]} : vector<16x768xf32> to vector<16x512xf32>
    %50 = arith.truncf %49 : vector<16x512xf32> to vector<16x512xbf16>
    %c208 = arith.constant 208 : index
    %c0_25 = arith.constant 0 : index
    %51 = vector.load %arg10[%c208, %c0_25] : memref<432x512xbf16, #tpu.memory_space<vmem>>, vector<16x512xbf16>
    tpu.vector_store %arg10[%c208, %c0_25], %50 {strides = array<i32>} : memref<432x512xbf16, #tpu.memory_space<vmem>>, vector<16x512xbf16>,
    %52 = vector.extract_strided_slice %9 {offsets = [0, 130], sizes = [16, 512], strides = [1, 1]} : vector<16x768xf32> to vector<16x512xf32>
    %53 = arith.truncf %52 : vector<16x512xf32> to vector<16x512xbf16>
    %c224 = arith.constant 224 : index
    %c0_26 = arith.constant 0 : index
    %54 = vector.load %arg10[%c224, %c0_26] : memref<432x512xbf16, #tpu.memory_space<vmem>>, vector<16x512xbf16>
    tpu.vector_store %arg10[%c224, %c0_26], %53 {strides = array<i32>} : memref<432x512xbf16, #tpu.memory_space<vmem>>, vector<16x512xbf16>,
    %55 = vector.extract_strided_slice %9 {offsets = [0, 170], sizes = [16, 512], strides = [1, 1]} : vector<16x768xf32> to vector<16x512xf32>
    %56 = arith.truncf %55 : vector<16x512xf32> to vector<16x512xbf16>
    %c240 = arith.constant 240 : index
    %c0_27 = arith.constant 0 : index
    %57 = vector.load %arg10[%c240, %c0_27] : memref<432x512xbf16, #tpu.memory_space<vmem>>, vector<16x512xbf16>
    tpu.vector_store %arg10[%c240, %c0_27], %56 {strides = array<i32>} : memref<432x512xbf16, #tpu.memory_space<vmem>>, vector<16x512xbf16>,
    %58 = vector.extract_strided_slice %9 {offsets = [0, 172], sizes = [16, 512], strides = [1, 1]} : vector<16x768xf32> to vector<16x512xf32>
    %59 = arith.truncf %58 : vector<16x512xf32> to vector<16x512xbf16>
    %c256 = arith.constant 256 : index
    %c0_28 = arith.constant 0 : index
    %60 = vector.load %arg10[%c256, %c0_28] : memref<432x512xbf16, #tpu.memory_space<vmem>>, vector<16x512xbf16>
    tpu.vector_store %arg10[%c256, %c0_28], %59 {strides = array<i32>} : memref<432x512xbf16, #tpu.memory_space<vmem>>, vector<16x512xbf16>,
    %61 = vector.extract_strided_slice %9 {offsets = [0, 174], sizes = [16, 512], strides = [1, 1]} : vector<16x768xf32> to vector<16x512xf32>
    %62 = arith.truncf %61 : vector<16x512xf32> to vector<16x512xbf16>
    %c272 = arith.constant 272 : index
    %c0_29 = arith.constant 0 : index
    %63 = vector.load %arg10[%c272, %c0_29] : memref<432x512xbf16, #tpu.memory_space<vmem>>, vector<16x512xbf16>
    tpu.vector_store %arg10[%c272, %c0_29], %62 {strides = array<i32>} : memref<432x512xbf16, #tpu.memory_space<vmem>>, vector<16x512xbf16>,
    %64 = vector.extract_strided_slice %9 {offsets = [0, 59], sizes = [16, 512], strides = [1, 1]} : vector<16x768xf32> to vector<16x512xf32>
    %65 = arith.truncf %64 : vector<16x512xf32> to vector<16x512xbf16>
    %c288 = arith.constant 288 : index
    %c0_30 = arith.constant 0 : index
    %66 = vector.load %arg10[%c288, %c0_30] : memref<432x512xbf16, #tpu.memory_space<vmem>>, vector<16x512xbf16>
    tpu.vector_store %arg10[%c288, %c0_30], %65 {strides = array<i32>} : memref<432x512xbf16, #tpu.memory_space<vmem>>, vector<16x512xbf16>,
    %67 = vector.extract_strided_slice %9 {offsets = [0, 62], sizes = [16, 512], strides = [1, 1]} : vector<16x768xf32> to vector<16x512xf32>
    %68 = arith.truncf %67 : vector<16x512xf32> to vector<16x512xbf16>
    %c304 = arith.constant 304 : index
    %c0_31 = arith.constant 0 : index
    %69 = vector.load %arg10[%c304, %c0_31] : memref<432x512xbf16, #tpu.memory_space<vmem>>, vector<16x512xbf16>
    tpu.vector_store %arg10[%c304, %c0_31], %68 {strides = array<i32>} : memref<432x512xbf16, #tpu.memory_space<vmem>>, vector<16x512xbf16>,
    %70 = vector.extract_strided_slice %9 {offsets = [0, 65], sizes = [16, 512], strides = [1, 1]} : vector<16x768xf32> to vector<16x512xf32>
    %71 = arith.truncf %70 : vector<16x512xf32> to vector<16x512xbf16>
    %c320 = arith.constant 320 : index
    %c0_32 = arith.constant 0 : index
    %72 = vector.load %arg10[%c320, %c0_32] : memref<432x512xbf16, #tpu.memory_space<vmem>>, vector<16x512xbf16>
    tpu.vector_store %arg10[%c320, %c0_32], %71 {strides = array<i32>} : memref<432x512xbf16, #tpu.memory_space<vmem>>, vector<16x512xbf16>,
    %73 = vector.extract_strided_slice %9 {offsets = [0, 125], sizes = [16, 512], strides = [1, 1]} : vector<16x768xf32> to vector<16x512xf32>
    %74 = arith.truncf %73 : vector<16x512xf32> to vector<16x512xbf16>
    %c336 = arith.constant 336 : index
    %c0_33 = arith.constant 0 : index
    %75 = vector.load %arg10[%c336, %c0_33] : memref<432x512xbf16, #tpu.memory_space<vmem>>, vector<16x512xbf16>
    tpu.vector_store %arg10[%c336, %c0_33], %74 {strides = array<i32>} : memref<432x512xbf16, #tpu.memory_space<vmem>>, vector<16x512xbf16>,
    %76 = vector.extract_strided_slice %9 {offsets = [0, 128], sizes = [16, 512], strides = [1, 1]} : vector<16x768xf32> to vector<16x512xf32>
    %77 = arith.truncf %76 : vector<16x512xf32> to vector<16x512xbf16>
    %c352 = arith.constant 352 : index
    %c0_34 = arith.constant 0 : index
    %78 = vector.load %arg10[%c352, %c0_34] : memref<432x512xbf16, #tpu.memory_space<vmem>>, vector<16x512xbf16>
    tpu.vector_store %arg10[%c352, %c0_34], %77 {strides = array<i32>} : memref<432x512xbf16, #tpu.memory_space<vmem>>, vector<16x512xbf16>,
    %79 = vector.extract_strided_slice %9 {offsets = [0, 131], sizes = [16, 512], strides = [1, 1]} : vector<16x768xf32> to vector<16x512xf32>
    %80 = arith.truncf %79 : vector<16x512xf32> to vector<16x512xbf16>
    %c368 = arith.constant 368 : index
    %c0_35 = arith.constant 0 : index
    %81 = vector.load %arg10[%c368, %c0_35] : memref<432x512xbf16, #tpu.memory_space<vmem>>, vector<16x512xbf16>
    tpu.vector_store %arg10[%c368, %c0_35], %80 {strides = array<i32>} : memref<432x512xbf16, #tpu.memory_space<vmem>>, vector<16x512xbf16>,
    %82 = vector.extract_strided_slice %9 {offsets = [0, 191], sizes = [16, 512], strides = [1, 1]} : vector<16x768xf32> to vector<16x512xf32>
    %83 = arith.truncf %82 : vector<16x512xf32> to vector<16x512xbf16>
    %c384 = arith.constant 384 : index
    %c0_36 = arith.constant 0 : index
    %84 = vector.load %arg10[%c384, %c0_36] : memref<432x512xbf16, #tpu.memory_space<vmem>>, vector<16x512xbf16>
    tpu.vector_store %arg10[%c384, %c0_36], %83 {strides = array<i32>} : memref<432x512xbf16, #tpu.memory_space<vmem>>, vector<16x512xbf16>,
    %85 = vector.extract_strided_slice %9 {offsets = [0, 194], sizes = [16, 512], strides = [1, 1]} : vector<16x768xf32> to vector<16x512xf32>
    %86 = arith.truncf %85 : vector<16x512xf32> to vector<16x512xbf16>
    %c400 = arith.constant 400 : index
    %c0_37 = arith.constant 0 : index
    %87 = vector.load %arg10[%c400, %c0_37] : memref<432x512xbf16, #tpu.memory_space<vmem>>, vector<16x512xbf16>
    tpu.vector_store %arg10[%c400, %c0_37], %86 {strides = array<i32>} : memref<432x512xbf16, #tpu.memory_space<vmem>>, vector<16x512xbf16>,
    %88 = vector.extract_strided_slice %9 {offsets = [0, 197], sizes = [16, 512], strides = [1, 1]} : vector<16x768xf32> to vector<16x512xf32>
    %89 = arith.truncf %88 : vector<16x512xf32> to vector<16x512xbf16>
    %c416 = arith.constant 416 : index
    %c0_38 = arith.constant 0 : index
    %90 = vector.load %arg10[%c416, %c0_38] : memref<432x512xbf16, #tpu.memory_space<vmem>>, vector<16x512xbf16>
    tpu.vector_store %arg10[%c416, %c0_38], %89 {strides = array<i32>} : memref<432x512xbf16, #tpu.memory_space<vmem>>, vector<16x512xbf16>,
    %c0_39 = arith.constant 0 : index
    %c0_40 = arith.constant 0 : index
    %c0_41 = arith.constant 0 : index
    %91 = vector.load %arg3[%c0_39, %c0_40, %c0_41] : memref<3x48x432xbf16, #tpu.memory_space<vmem>>, vector<1x48x432xbf16>
    %92 = vector.shape_cast %91 : vector<1x48x432xbf16> to vector<48x432xbf16>
    %c0_42 = arith.constant 0 : index
    %c0_43 = arith.constant 0 : index
    %93 = vector.load %arg10[%c0_42, %c0_43] : memref<432x512xbf16, #tpu.memory_space<vmem>>, vector<432x512xbf16>
    %cst_44 = arith.constant dense<0.000000e+00> : vector<48x512xf32>
    %94 = tpu.matmul %92, %93, %cst_44 {dimension_numbers = #tpu.dot_dimension_numbers<[1], [0], [0], [1], [0, 0, 1, 1], [], []>} : vector<48x432xbf16>, vector<432x512xbf16>, vector<48x512xf32> -> vector<48x512xf32>
    %cst_45 = arith.constant 0.000000e+00 : f32
    %95 = vector.broadcast %cst_45 : f32 to vector<48x512xf32>
    %96 = arith.maximumf %94, %95 : vector<48x512xf32>
    %97 = arith.truncf %96 : vector<48x512xf32> to vector<48x512xbf16>
    %c0_46 = arith.constant 0 : index
    %c0_47 = arith.constant 0 : index
    %c0_48 = arith.constant 0 : index
    %98 = vector.load %arg4[%c0_46, %c0_47, %c0_48] : memref<3x32x48xbf16, #tpu.memory_space<vmem>>, vector<1x32x48xbf16>
    %99 = vector.shape_cast %98 : vector<1x32x48xbf16> to vector<32x48xbf16>
    %cst_49 = arith.constant dense<0.000000e+00> : vector<32x512xf32>
    %100 = tpu.matmul %99, %97, %cst_49 {dimension_numbers = #tpu.dot_dimension_numbers<[1], [0], [0], [1], [0, 0, 1, 1], [], []>} : vector<32x48xbf16>, vector<48x512xbf16>, vector<32x512xf32> -> vector<32x512xf32>
    %101 = vector.extract_strided_slice %100 {offsets = [0, 0], sizes = [16, 512], strides = [1, 1]} : vector<32x512xf32> to vector<16x512xf32>
    %cst_50 = arith.constant 0.000000e+00 : f32
    %102 = vector.broadcast %cst_50 : f32 to vector<16x512xf32>
    %103 = arith.maximumf %101, %102 : vector<16x512xf32>
    %104 = vector.extract_strided_slice %100 {offsets = [16, 0], sizes = [16, 512], strides = [1, 1]} : vector<32x512xf32> to vector<16x512xf32>
    %105 = arith.addf %103, %1 : vector<16x512xf32>
    %c0_51 = arith.constant 0 : index
    %c0_52 = arith.constant 0 : index
    %c0_53 = arith.constant 0 : index
    %106 = vector.load %arg5[%c0_51, %c0_52, %c0_53] : memref<3x16x16xbf16, #tpu.memory_space<vmem>>, vector<1x16x16xbf16>
    %107 = vector.shape_cast %106 : vector<1x16x16xbf16> to vector<16x16xbf16>
    %108 = arith.truncf %103 : vector<16x512xf32> to vector<16x512xbf16>
    %cst_54 = arith.constant dense<0.000000e+00> : vector<16x512xf32>
    %109 = tpu.matmul %107, %108, %cst_54 {dimension_numbers = #tpu.dot_dimension_numbers<[1], [0], [0], [1], [0, 0, 1, 1], [], []>} : vector<16x16xbf16>, vector<16x512xbf16>, vector<16x512xf32> -> vector<16x512xf32>
    %c0_55 = arith.constant 0 : index
    %c0_56 = arith.constant 0 : index
    %c0_57 = arith.constant 0 : index
    %110 = vector.load %arg6[%c0_55, %c0_56, %c0_57] : memref<3x16x16xbf16, #tpu.memory_space<vmem>>, vector<1x16x16xbf16>
    %111 = vector.shape_cast %110 : vector<1x16x16xbf16> to vector<16x16xbf16>
    %112 = arith.truncf %105 : vector<16x512xf32> to vector<16x512xbf16>
    %cst_58 = arith.constant dense<0.000000e+00> : vector<16x512xf32>
    %113 = tpu.matmul %111, %112, %cst_58 {dimension_numbers = #tpu.dot_dimension_numbers<[1], [0], [0], [1], [0, 0, 1, 1], [], []>} : vector<16x16xbf16>, vector<16x512xbf16>, vector<16x512xf32> -> vector<16x512xf32>
    %c0_59 = arith.constant 0 : index
    %c0_60 = arith.constant 0 : index
    %114 = vector.load %arg11[%c0_59, %c0_60] : memref<16x512xf32, #tpu.memory_space<vmem>>, vector<16x512xf32>
    tpu.vector_store %arg11[%c0_59, %c0_60], %109 {strides = array<i32>} : memref<16x512xf32, #tpu.memory_space<vmem>>, vector<16x512xf32>,
    %c0_61 = arith.constant 0 : index
    %c0_62 = arith.constant 0 : index
    %115 = vector.load %arg12[%c0_61, %c0_62] : memref<16x512xf32, #tpu.memory_space<vmem>>, vector<16x512xf32>
    tpu.vector_store %arg12[%c0_61, %c0_62], %104 {strides = array<i32>} : memref<16x512xf32, #tpu.memory_space<vmem>>, vector<16x512xf32>,
    %c0_63 = arith.constant 0 : index
    %c0_64 = arith.constant 0 : index
    %116 = vector.load %arg13[%c0_63, %c0_64] : memref<16x512xf32, #tpu.memory_space<vmem>>, vector<16x512xf32>
    tpu.vector_store %arg13[%c0_63, %c0_64], %113 {strides = array<i32>} : memref<16x512xf32, #tpu.memory_space<vmem>>, vector<16x512xf32>,
    %117 = vector.broadcast %2 : vector<1x512xf32> to vector<16x512xf32>
    %118 = arith.mulf %105, %117 : vector<16x512xf32>
    %c0_65 = arith.constant 0 : index
    %c128_66 = arith.constant 128 : index
    %119 = vector.load %arg9[%c0_65, %c128_66] : memref<16x768xf32, #tpu.memory_space<vmem>>, vector<16x512xf32>
    tpu.vector_store %arg9[%c0_65, %c128_66], %118 {strides = array<i32>} : memref<16x768xf32, #tpu.memory_space<vmem>>, vector<16x512xf32>,
    %c0_67 = arith.constant 0 : index
    %c0_68 = arith.constant 0 : index
    %120 = vector.load %arg9[%c0_67, %c0_68] : memref<16x768xf32, #tpu.memory_space<vmem>>, vector<16x768xf32>
    %121 = vector.extract_strided_slice %120 {offsets = [0, 105], sizes = [16, 512], strides = [1, 1]} : vector<16x768xf32> to vector<16x512xf32>
    %122 = arith.truncf %121 : vector<16x512xf32> to vector<16x512xbf16>
    %c0_69 = arith.constant 0 : index
    %c0_70 = arith.constant 0 : index
    %123 = vector.load %arg10[%c0_69, %c0_70] : memref<432x512xbf16, #tpu.memory_space<vmem>>, vector<16x512xbf16>
    tpu.vector_store %arg10[%c0_69, %c0_70], %122 {strides = array<i32>} : memref<432x512xbf16, #tpu.memory_space<vmem>>, vector<16x512xbf16>,
    %124 = vector.extract_strided_slice %120 {offsets = [0, 106], sizes = [16, 512], strides = [1, 1]} : vector<16x768xf32> to vector<16x512xf32>
    %125 = arith.truncf %124 : vector<16x512xf32> to vector<16x512xbf16>
    %c16_71 = arith.constant 16 : index
    %c0_72 = arith.constant 0 : index
    %126 = vector.load %arg10[%c16_71, %c0_72] : memref<432x512xbf16, #tpu.memory_space<vmem>>, vector<16x512xbf16>
    tpu.vector_store %arg10[%c16_71, %c0_72], %125 {strides = array<i32>} : memref<432x512xbf16, #tpu.memory_space<vmem>>, vector<16x512xbf16>,
    %127 = vector.extract_strided_slice %120 {offsets = [0, 107], sizes = [16, 512], strides = [1, 1]} : vector<16x768xf32> to vector<16x512xf32>
    %128 = arith.truncf %127 : vector<16x512xf32> to vector<16x512xbf16>
    %c32_73 = arith.constant 32 : index
    %c0_74 = arith.constant 0 : index
    %129 = vector.load %arg10[%c32_73, %c0_74] : memref<432x512xbf16, #tpu.memory_space<vmem>>, vector<16x512xbf16>
    tpu.vector_store %arg10[%c32_73, %c0_74], %128 {strides = array<i32>} : memref<432x512xbf16, #tpu.memory_space<vmem>>, vector<16x512xbf16>,
    %130 = vector.extract_strided_slice %120 {offsets = [0, 127], sizes = [16, 512], strides = [1, 1]} : vector<16x768xf32> to vector<16x512xf32>
    %131 = arith.truncf %130 : vector<16x512xf32> to vector<16x512xbf16>
    %c48_75 = arith.constant 48 : index
    %c0_76 = arith.constant 0 : index
    %132 = vector.load %arg10[%c48_75, %c0_76] : memref<432x512xbf16, #tpu.memory_space<vmem>>, vector<16x512xbf16>
    tpu.vector_store %arg10[%c48_75, %c0_76], %131 {strides = array<i32>} : memref<432x512xbf16, #tpu.memory_space<vmem>>, vector<16x512xbf16>,
    %133 = vector.extract_strided_slice %120 {offsets = [0, 128], sizes = [16, 512], strides = [1, 1]} : vector<16x768xf32> to vector<16x512xf32>
    %134 = arith.truncf %133 : vector<16x512xf32> to vector<16x512xbf16>
    %c64_77 = arith.constant 64 : index
    %c0_78 = arith.constant 0 : index
    %135 = vector.load %arg10[%c64_77, %c0_78] : memref<432x512xbf16, #tpu.memory_space<vmem>>, vector<16x512xbf16>
    tpu.vector_store %arg10[%c64_77, %c0_78], %134 {strides = array<i32>} : memref<432x512xbf16, #tpu.memory_space<vmem>>, vector<16x512xbf16>,
    %136 = vector.extract_strided_slice %120 {offsets = [0, 129], sizes = [16, 512], strides = [1, 1]} : vector<16x768xf32> to vector<16x512xf32>
    %137 = arith.truncf %136 : vector<16x512xf32> to vector<16x512xbf16>
    %c80_79 = arith.constant 80 : index
    %c0_80 = arith.constant 0 : index
    %138 = vector.load %arg10[%c80_79, %c0_80] : memref<432x512xbf16, #tpu.memory_space<vmem>>, vector<16x512xbf16>
    tpu.vector_store %arg10[%c80_79, %c0_80], %137 {strides = array<i32>} : memref<432x512xbf16, #tpu.memory_space<vmem>>, vector<16x512xbf16>,
    %139 = vector.extract_strided_slice %120 {offsets = [0, 149], sizes = [16, 512], strides = [1, 1]} : vector<16x768xf32> to vector<16x512xf32>
    %140 = arith.truncf %139 : vector<16x512xf32> to vector<16x512xbf16>
    %c96_81 = arith.constant 96 : index
    %c0_82 = arith.constant 0 : index
    %141 = vector.load %arg10[%c96_81, %c0_82] : memref<432x512xbf16, #tpu.memory_space<vmem>>, vector<16x512xbf16>
    tpu.vector_store %arg10[%c96_81, %c0_82], %140 {strides = array<i32>} : memref<432x512xbf16, #tpu.memory_space<vmem>>, vector<16x512xbf16>,
    %142 = vector.extract_strided_slice %120 {offsets = [0, 150], sizes = [16, 512], strides = [1, 1]} : vector<16x768xf32> to vector<16x512xf32>
    %143 = arith.truncf %142 : vector<16x512xf32> to vector<16x512xbf16>
    %c112_83 = arith.constant 112 : index
    %c0_84 = arith.constant 0 : index
    %144 = vector.load %arg10[%c112_83, %c0_84] : memref<432x512xbf16, #tpu.memory_space<vmem>>, vector<16x512xbf16>
    tpu.vector_store %arg10[%c112_83, %c0_84], %143 {strides = array<i32>} : memref<432x512xbf16, #tpu.memory_space<vmem>>, vector<16x512xbf16>,
    %145 = vector.extract_strided_slice %120 {offsets = [0, 151], sizes = [16, 512], strides = [1, 1]} : vector<16x768xf32> to vector<16x512xf32>
    %146 = arith.truncf %145 : vector<16x512xf32> to vector<16x512xbf16>
    %c128_85 = arith.constant 128 : index
    %c0_86 = arith.constant 0 : index
    %147 = vector.load %arg10[%c128_85, %c0_86] : memref<432x512xbf16, #tpu.memory_space<vmem>>, vector<16x512xbf16>
    tpu.vector_store %arg10[%c128_85, %c0_86], %146 {strides = array<i32>} : memref<432x512xbf16, #tpu.memory_space<vmem>>, vector<16x512xbf16>,
    %148 = vector.extract_strided_slice %120 {offsets = [0, 82], sizes = [16, 512], strides = [1, 1]} : vector<16x768xf32> to vector<16x512xf32>
    %149 = arith.truncf %148 : vector<16x512xf32> to vector<16x512xbf16>
    %c144_87 = arith.constant 144 : index
    %c0_88 = arith.constant 0 : index
    %150 = vector.load %arg10[%c144_87, %c0_88] : memref<432x512xbf16, #tpu.memory_space<vmem>>, vector<16x512xbf16>
    tpu.vector_store %arg10[%c144_87, %c0_88], %149 {strides = array<i32>} : memref<432x512xbf16, #tpu.memory_space<vmem>>, vector<16x512xbf16>,
    %151 = vector.extract_strided_slice %120 {offsets = [0, 84], sizes = [16, 512], strides = [1, 1]} : vector<16x768xf32> to vector<16x512xf32>
    %152 = arith.truncf %151 : vector<16x512xf32> to vector<16x512xbf16>
    %c160_89 = arith.constant 160 : index
    %c0_90 = arith.constant 0 : index
    %153 = vector.load %arg10[%c160_89, %c0_90] : memref<432x512xbf16, #tpu.memory_space<vmem>>, vector<16x512xbf16>
    tpu.vector_store %arg10[%c160_89, %c0_90], %152 {strides = array<i32>} : memref<432x512xbf16, #tpu.memory_space<vmem>>, vector<16x512xbf16>,
    %154 = vector.extract_strided_slice %120 {offsets = [0, 86], sizes = [16, 512], strides = [1, 1]} : vector<16x768xf32> to vector<16x512xf32>
    %155 = arith.truncf %154 : vector<16x512xf32> to vector<16x512xbf16>
    %c176_91 = arith.constant 176 : index
    %c0_92 = arith.constant 0 : index
    %156 = vector.load %arg10[%c176_91, %c0_92] : memref<432x512xbf16, #tpu.memory_space<vmem>>, vector<16x512xbf16>
    tpu.vector_store %arg10[%c176_91, %c0_92], %155 {strides = array<i32>} : memref<432x512xbf16, #tpu.memory_space<vmem>>, vector<16x512xbf16>,
    %157 = vector.extract_strided_slice %120 {offsets = [0, 126], sizes = [16, 512], strides = [1, 1]} : vector<16x768xf32> to vector<16x512xf32>
    %158 = arith.truncf %157 : vector<16x512xf32> to vector<16x512xbf16>
    %c192_93 = arith.constant 192 : index
    %c0_94 = arith.constant 0 : index
    %159 = vector.load %arg10[%c192_93, %c0_94] : memref<432x512xbf16, #tpu.memory_space<vmem>>, vector<16x512xbf16>
    tpu.vector_store %arg10[%c192_93, %c0_94], %158 {strides = array<i32>} : memref<432x512xbf16, #tpu.memory_space<vmem>>, vector<16x512xbf16>,
    %160 = vector.extract_strided_slice %120 {offsets = [0, 128], sizes = [16, 512], strides = [1, 1]} : vector<16x768xf32> to vector<16x512xf32>
    %161 = arith.truncf %160 : vector<16x512xf32> to vector<16x512xbf16>
    %c208_95 = arith.constant 208 : index
    %c0_96 = arith.constant 0 : index
    %162 = vector.load %arg10[%c208_95, %c0_96] : memref<432x512xbf16, #tpu.memory_space<vmem>>, vector<16x512xbf16>
    tpu.vector_store %arg10[%c208_95, %c0_96], %161 {strides = array<i32>} : memref<432x512xbf16, #tpu.memory_space<vmem>>, vector<16x512xbf16>,
    %163 = vector.extract_strided_slice %120 {offsets = [0, 130], sizes = [16, 512], strides = [1, 1]} : vector<16x768xf32> to vector<16x512xf32>
    %164 = arith.truncf %163 : vector<16x512xf32> to vector<16x512xbf16>
    %c224_97 = arith.constant 224 : index
    %c0_98 = arith.constant 0 : index
    %165 = vector.load %arg10[%c224_97, %c0_98] : memref<432x512xbf16, #tpu.memory_space<vmem>>, vector<16x512xbf16>
    tpu.vector_store %arg10[%c224_97, %c0_98], %164 {strides = array<i32>} : memref<432x512xbf16, #tpu.memory_space<vmem>>, vector<16x512xbf16>,
    %166 = vector.extract_strided_slice %120 {offsets = [0, 170], sizes = [16, 512], strides = [1, 1]} : vector<16x768xf32> to vector<16x512xf32>
    %167 = arith.truncf %166 : vector<16x512xf32> to vector<16x512xbf16>
    %c240_99 = arith.constant 240 : index
    %c0_100 = arith.constant 0 : index
    %168 = vector.load %arg10[%c240_99, %c0_100] : memref<432x512xbf16, #tpu.memory_space<vmem>>, vector<16x512xbf16>
    tpu.vector_store %arg10[%c240_99, %c0_100], %167 {strides = array<i32>} : memref<432x512xbf16, #tpu.memory_space<vmem>>, vector<16x512xbf16>,
    %169 = vector.extract_strided_slice %120 {offsets = [0, 172], sizes = [16, 512], strides = [1, 1]} : vector<16x768xf32> to vector<16x512xf32>
    %170 = arith.truncf %169 : vector<16x512xf32> to vector<16x512xbf16>
    %c256_101 = arith.constant 256 : index
    %c0_102 = arith.constant 0 : index
    %171 = vector.load %arg10[%c256_101, %c0_102] : memref<432x512xbf16, #tpu.memory_space<vmem>>, vector<16x512xbf16>
    tpu.vector_store %arg10[%c256_101, %c0_102], %170 {strides = array<i32>} : memref<432x512xbf16, #tpu.memory_space<vmem>>, vector<16x512xbf16>,
    %172 = vector.extract_strided_slice %120 {offsets = [0, 174], sizes = [16, 512], strides = [1, 1]} : vector<16x768xf32> to vector<16x512xf32>
    %173 = arith.truncf %172 : vector<16x512xf32> to vector<16x512xbf16>
    %c272_103 = arith.constant 272 : index
    %c0_104 = arith.constant 0 : index
    %174 = vector.load %arg10[%c272_103, %c0_104] : memref<432x512xbf16, #tpu.memory_space<vmem>>, vector<16x512xbf16>
    tpu.vector_store %arg10[%c272_103, %c0_104], %173 {strides = array<i32>} : memref<432x512xbf16, #tpu.memory_space<vmem>>, vector<16x512xbf16>,
    %175 = vector.extract_strided_slice %120 {offsets = [0, 59], sizes = [16, 512], strides = [1, 1]} : vector<16x768xf32> to vector<16x512xf32>
    %176 = arith.truncf %175 : vector<16x512xf32> to vector<16x512xbf16>
    %c288_105 = arith.constant 288 : index
    %c0_106 = arith.constant 0 : index
    %177 = vector.load %arg10[%c288_105, %c0_106] : memref<432x512xbf16, #tpu.memory_space<vmem>>, vector<16x512xbf16>
    tpu.vector_store %arg10[%c288_105, %c0_106], %176 {strides = array<i32>} : memref<432x512xbf16, #tpu.memory_space<vmem>>, vector<16x512xbf16>,
    %178 = vector.extract_strided_slice %120 {offsets = [0, 62], sizes = [16, 512], strides = [1, 1]} : vector<16x768xf32> to vector<16x512xf32>
    %179 = arith.truncf %178 : vector<16x512xf32> to vector<16x512xbf16>
    %c304_107 = arith.constant 304 : index
    %c0_108 = arith.constant 0 : index
    %180 = vector.load %arg10[%c304_107, %c0_108] : memref<432x512xbf16, #tpu.memory_space<vmem>>, vector<16x512xbf16>
    tpu.vector_store %arg10[%c304_107, %c0_108], %179 {strides = array<i32>} : memref<432x512xbf16, #tpu.memory_space<vmem>>, vector<16x512xbf16>,
    %181 = vector.extract_strided_slice %120 {offsets = [0, 65], sizes = [16, 512], strides = [1, 1]} : vector<16x768xf32> to vector<16x512xf32>
    %182 = arith.truncf %181 : vector<16x512xf32> to vector<16x512xbf16>
    %c320_109 = arith.constant 320 : index
    %c0_110 = arith.constant 0 : index
    %183 = vector.load %arg10[%c320_109, %c0_110] : memref<432x512xbf16, #tpu.memory_space<vmem>>, vector<16x512xbf16>
    tpu.vector_store %arg10[%c320_109, %c0_110], %182 {strides = array<i32>} : memref<432x512xbf16, #tpu.memory_space<vmem>>, vector<16x512xbf16>,
    %184 = vector.extract_strided_slice %120 {offsets = [0, 125], sizes = [16, 512], strides = [1, 1]} : vector<16x768xf32> to vector<16x512xf32>
    %185 = arith.truncf %184 : vector<16x512xf32> to vector<16x512xbf16>
    %c336_111 = arith.constant 336 : index
    %c0_112 = arith.constant 0 : index
    %186 = vector.load %arg10[%c336_111, %c0_112] : memref<432x512xbf16, #tpu.memory_space<vmem>>, vector<16x512xbf16>
    tpu.vector_store %arg10[%c336_111, %c0_112], %185 {strides = array<i32>} : memref<432x512xbf16, #tpu.memory_space<vmem>>, vector<16x512xbf16>,
    %187 = vector.extract_strided_slice %120 {offsets = [0, 128], sizes = [16, 512], strides = [1, 1]} : vector<16x768xf32> to vector<16x512xf32>
    %188 = arith.truncf %187 : vector<16x512xf32> to vector<16x512xbf16>
    %c352_113 = arith.constant 352 : index
    %c0_114 = arith.constant 0 : index
    %189 = vector.load %arg10[%c352_113, %c0_114] : memref<432x512xbf16, #tpu.memory_space<vmem>>, vector<16x512xbf16>
    tpu.vector_store %arg10[%c352_113, %c0_114], %188 {strides = array<i32>} : memref<432x512xbf16, #tpu.memory_space<vmem>>, vector<16x512xbf16>,
    %190 = vector.extract_strided_slice %120 {offsets = [0, 131], sizes = [16, 512], strides = [1, 1]} : vector<16x768xf32> to vector<16x512xf32>
    %191 = arith.truncf %190 : vector<16x512xf32> to vector<16x512xbf16>
    %c368_115 = arith.constant 368 : index
    %c0_116 = arith.constant 0 : index
    %192 = vector.load %arg10[%c368_115, %c0_116] : memref<432x512xbf16, #tpu.memory_space<vmem>>, vector<16x512xbf16>
    tpu.vector_store %arg10[%c368_115, %c0_116], %191 {strides = array<i32>} : memref<432x512xbf16, #tpu.memory_space<vmem>>, vector<16x512xbf16>,
    %193 = vector.extract_strided_slice %120 {offsets = [0, 191], sizes = [16, 512], strides = [1, 1]} : vector<16x768xf32> to vector<16x512xf32>
    %194 = arith.truncf %193 : vector<16x512xf32> to vector<16x512xbf16>
    %c384_117 = arith.constant 384 : index
    %c0_118 = arith.constant 0 : index
    %195 = vector.load %arg10[%c384_117, %c0_118] : memref<432x512xbf16, #tpu.memory_space<vmem>>, vector<16x512xbf16>
    tpu.vector_store %arg10[%c384_117, %c0_118], %194 {strides = array<i32>} : memref<432x512xbf16, #tpu.memory_space<vmem>>, vector<16x512xbf16>,
    %196 = vector.extract_strided_slice %120 {offsets = [0, 194], sizes = [16, 512], strides = [1, 1]} : vector<16x768xf32> to vector<16x512xf32>
    %197 = arith.truncf %196 : vector<16x512xf32> to vector<16x512xbf16>
    %c400_119 = arith.constant 400 : index
    %c0_120 = arith.constant 0 : index
    %198 = vector.load %arg10[%c400_119, %c0_120] : memref<432x512xbf16, #tpu.memory_space<vmem>>, vector<16x512xbf16>
    tpu.vector_store %arg10[%c400_119, %c0_120], %197 {strides = array<i32>} : memref<432x512xbf16, #tpu.memory_space<vmem>>, vector<16x512xbf16>,
    %199 = vector.extract_strided_slice %120 {offsets = [0, 197], sizes = [16, 512], strides = [1, 1]} : vector<16x768xf32> to vector<16x512xf32>
    %200 = arith.truncf %199 : vector<16x512xf32> to vector<16x512xbf16>
    %c416_121 = arith.constant 416 : index
    %c0_122 = arith.constant 0 : index
    %201 = vector.load %arg10[%c416_121, %c0_122] : memref<432x512xbf16, #tpu.memory_space<vmem>>, vector<16x512xbf16>
    tpu.vector_store %arg10[%c416_121, %c0_122], %200 {strides = array<i32>} : memref<432x512xbf16, #tpu.memory_space<vmem>>, vector<16x512xbf16>,
    %c1 = arith.constant 1 : index
    %c0_123 = arith.constant 0 : index
    %c0_124 = arith.constant 0 : index
    %202 = vector.load %arg3[%c1, %c0_123, %c0_124] : memref<3x48x432xbf16, #tpu.memory_space<vmem>>, vector<1x48x432xbf16>
    %203 = vector.shape_cast %202 : vector<1x48x432xbf16> to vector<48x432xbf16>
    %c0_125 = arith.constant 0 : index
    %c0_126 = arith.constant 0 : index
    %204 = vector.load %arg10[%c0_125, %c0_126] : memref<432x512xbf16, #tpu.memory_space<vmem>>, vector<432x512xbf16>
    %cst_127 = arith.constant dense<0.000000e+00> : vector<48x512xf32>
    %205 = tpu.matmul %203, %204, %cst_127 {dimension_numbers = #tpu.dot_dimension_numbers<[1], [0], [0], [1], [0, 0, 1, 1], [], []>} : vector<48x432xbf16>, vector<432x512xbf16>, vector<48x512xf32> -> vector<48x512xf32>
    %cst_128 = arith.constant 0.000000e+00 : f32
    %206 = vector.broadcast %cst_128 : f32 to vector<48x512xf32>
    %207 = arith.maximumf %205, %206 : vector<48x512xf32>
    %208 = arith.truncf %207 : vector<48x512xf32> to vector<48x512xbf16>
    %c1_129 = arith.constant 1 : index
    %c0_130 = arith.constant 0 : index
    %c0_131 = arith.constant 0 : index
    %209 = vector.load %arg4[%c1_129, %c0_130, %c0_131] : memref<3x32x48xbf16, #tpu.memory_space<vmem>>, vector<1x32x48xbf16>
    %210 = vector.shape_cast %209 : vector<1x32x48xbf16> to vector<32x48xbf16>
    %cst_132 = arith.constant dense<0.000000e+00> : vector<32x512xf32>
    %211 = tpu.matmul %210, %208, %cst_132 {dimension_numbers = #tpu.dot_dimension_numbers<[1], [0], [0], [1], [0, 0, 1, 1], [], []>} : vector<32x48xbf16>, vector<48x512xbf16>, vector<32x512xf32> -> vector<32x512xf32>
    %212 = vector.extract_strided_slice %211 {offsets = [0, 0], sizes = [16, 512], strides = [1, 1]} : vector<32x512xf32> to vector<16x512xf32>
    %cst_133 = arith.constant 0.000000e+00 : f32
    %213 = vector.broadcast %cst_133 : f32 to vector<16x512xf32>
    %214 = arith.maximumf %212, %213 : vector<16x512xf32>
    %215 = vector.extract_strided_slice %211 {offsets = [16, 0], sizes = [16, 512], strides = [1, 1]} : vector<32x512xf32> to vector<16x512xf32>
    %216 = arith.addf %214, %105 : vector<16x512xf32>
    %c1_134 = arith.constant 1 : index
    %c0_135 = arith.constant 0 : index
    %c0_136 = arith.constant 0 : index
    %217 = vector.load %arg5[%c1_134, %c0_135, %c0_136] : memref<3x16x16xbf16, #tpu.memory_space<vmem>>, vector<1x16x16xbf16>
    %218 = vector.shape_cast %217 : vector<1x16x16xbf16> to vector<16x16xbf16>
    %219 = arith.truncf %214 : vector<16x512xf32> to vector<16x512xbf16>
    %cst_137 = arith.constant dense<0.000000e+00> : vector<16x512xf32>
    %220 = tpu.matmul %218, %219, %cst_137 {dimension_numbers = #tpu.dot_dimension_numbers<[1], [0], [0], [1], [0, 0, 1, 1], [], []>} : vector<16x16xbf16>, vector<16x512xbf16>, vector<16x512xf32> -> vector<16x512xf32>
    %c1_138 = arith.constant 1 : index
    %c0_139 = arith.constant 0 : index
    %c0_140 = arith.constant 0 : index
    %221 = vector.load %arg6[%c1_138, %c0_139, %c0_140] : memref<3x16x16xbf16, #tpu.memory_space<vmem>>, vector<1x16x16xbf16>
    %222 = vector.shape_cast %221 : vector<1x16x16xbf16> to vector<16x16xbf16>
    %223 = arith.truncf %216 : vector<16x512xf32> to vector<16x512xbf16>
    %cst_141 = arith.constant dense<0.000000e+00> : vector<16x512xf32>
    %224 = tpu.matmul %222, %223, %cst_141 {dimension_numbers = #tpu.dot_dimension_numbers<[1], [0], [0], [1], [0, 0, 1, 1], [], []>} : vector<16x16xbf16>, vector<16x512xbf16>, vector<16x512xf32> -> vector<16x512xf32>
    %c0_142 = arith.constant 0 : index
    %c0_143 = arith.constant 0 : index
    %225 = vector.load %arg11[%c0_142, %c0_143] : memref<16x512xf32, #tpu.memory_space<vmem>>, vector<16x512xf32>
    %226 = arith.addf %225, %220 : vector<16x512xf32>
    %c0_144 = arith.constant 0 : index
    %c0_145 = arith.constant 0 : index
    %227 = vector.load %arg11[%c0_144, %c0_145] : memref<16x512xf32, #tpu.memory_space<vmem>>, vector<16x512xf32>
    tpu.vector_store %arg11[%c0_144, %c0_145], %226 {strides = array<i32>} : memref<16x512xf32, #tpu.memory_space<vmem>>, vector<16x512xf32>,
    %c0_146 = arith.constant 0 : index
    %c0_147 = arith.constant 0 : index
    %228 = vector.load %arg12[%c0_146, %c0_147] : memref<16x512xf32, #tpu.memory_space<vmem>>, vector<16x512xf32>
    %229 = arith.addf %228, %215 : vector<16x512xf32>
    %c0_148 = arith.constant 0 : index
    %c0_149 = arith.constant 0 : index
    %230 = vector.load %arg12[%c0_148, %c0_149] : memref<16x512xf32, #tpu.memory_space<vmem>>, vector<16x512xf32>
    tpu.vector_store %arg12[%c0_148, %c0_149], %229 {strides = array<i32>} : memref<16x512xf32, #tpu.memory_space<vmem>>, vector<16x512xf32>,
    %c0_150 = arith.constant 0 : index
    %c0_151 = arith.constant 0 : index
    %231 = vector.load %arg13[%c0_150, %c0_151] : memref<16x512xf32, #tpu.memory_space<vmem>>, vector<16x512xf32>
    %232 = arith.addf %231, %224 : vector<16x512xf32>
    %c0_152 = arith.constant 0 : index
    %c0_153 = arith.constant 0 : index
    %233 = vector.load %arg13[%c0_152, %c0_153] : memref<16x512xf32, #tpu.memory_space<vmem>>, vector<16x512xf32>
    tpu.vector_store %arg13[%c0_152, %c0_153], %232 {strides = array<i32>} : memref<16x512xf32, #tpu.memory_space<vmem>>, vector<16x512xf32>,
    %234 = vector.broadcast %2 : vector<1x512xf32> to vector<16x512xf32>
    %235 = arith.mulf %216, %234 : vector<16x512xf32>
    %c0_154 = arith.constant 0 : index
    %c128_155 = arith.constant 128 : index
    %236 = vector.load %arg9[%c0_154, %c128_155] : memref<16x768xf32, #tpu.memory_space<vmem>>, vector<16x512xf32>
    tpu.vector_store %arg9[%c0_154, %c128_155], %235 {strides = array<i32>} : memref<16x768xf32, #tpu.memory_space<vmem>>, vector<16x512xf32>,
    %c0_156 = arith.constant 0 : index
    %c0_157 = arith.constant 0 : index
    %237 = vector.load %arg9[%c0_156, %c0_157] : memref<16x768xf32, #tpu.memory_space<vmem>>, vector<16x768xf32>
    %238 = vector.extract_strided_slice %237 {offsets = [0, 105], sizes = [16, 512], strides = [1, 1]} : vector<16x768xf32> to vector<16x512xf32>
    %239 = arith.truncf %238 : vector<16x512xf32> to vector<16x512xbf16>
    %c0_158 = arith.constant 0 : index
    %c0_159 = arith.constant 0 : index
    %240 = vector.load %arg10[%c0_158, %c0_159] : memref<432x512xbf16, #tpu.memory_space<vmem>>, vector<16x512xbf16>
    tpu.vector_store %arg10[%c0_158, %c0_159], %239 {strides = array<i32>} : memref<432x512xbf16, #tpu.memory_space<vmem>>, vector<16x512xbf16>,
    %241 = vector.extract_strided_slice %237 {offsets = [0, 106], sizes = [16, 512], strides = [1, 1]} : vector<16x768xf32> to vector<16x512xf32>
    %242 = arith.truncf %241 : vector<16x512xf32> to vector<16x512xbf16>
    %c16_160 = arith.constant 16 : index
    %c0_161 = arith.constant 0 : index
    %243 = vector.load %arg10[%c16_160, %c0_161] : memref<432x512xbf16, #tpu.memory_space<vmem>>, vector<16x512xbf16>
    tpu.vector_store %arg10[%c16_160, %c0_161], %242 {strides = array<i32>} : memref<432x512xbf16, #tpu.memory_space<vmem>>, vector<16x512xbf16>,
    %244 = vector.extract_strided_slice %237 {offsets = [0, 107], sizes = [16, 512], strides = [1, 1]} : vector<16x768xf32> to vector<16x512xf32>
    %245 = arith.truncf %244 : vector<16x512xf32> to vector<16x512xbf16>
    %c32_162 = arith.constant 32 : index
    %c0_163 = arith.constant 0 : index
    %246 = vector.load %arg10[%c32_162, %c0_163] : memref<432x512xbf16, #tpu.memory_space<vmem>>, vector<16x512xbf16>
    tpu.vector_store %arg10[%c32_162, %c0_163], %245 {strides = array<i32>} : memref<432x512xbf16, #tpu.memory_space<vmem>>, vector<16x512xbf16>,
    %247 = vector.extract_strided_slice %237 {offsets = [0, 127], sizes = [16, 512], strides = [1, 1]} : vector<16x768xf32> to vector<16x512xf32>
    %248 = arith.truncf %247 : vector<16x512xf32> to vector<16x512xbf16>
    %c48_164 = arith.constant 48 : index
    %c0_165 = arith.constant 0 : index
    %249 = vector.load %arg10[%c48_164, %c0_165] : memref<432x512xbf16, #tpu.memory_space<vmem>>, vector<16x512xbf16>
    tpu.vector_store %arg10[%c48_164, %c0_165], %248 {strides = array<i32>} : memref<432x512xbf16, #tpu.memory_space<vmem>>, vector<16x512xbf16>,
    %250 = vector.extract_strided_slice %237 {offsets = [0, 128], sizes = [16, 512], strides = [1, 1]} : vector<16x768xf32> to vector<16x512xf32>
    %251 = arith.truncf %250 : vector<16x512xf32> to vector<16x512xbf16>
    %c64_166 = arith.constant 64 : index
    %c0_167 = arith.constant 0 : index
    %252 = vector.load %arg10[%c64_166, %c0_167] : memref<432x512xbf16, #tpu.memory_space<vmem>>, vector<16x512xbf16>
    tpu.vector_store %arg10[%c64_166, %c0_167], %251 {strides = array<i32>} : memref<432x512xbf16, #tpu.memory_space<vmem>>, vector<16x512xbf16>,
    %253 = vector.extract_strided_slice %237 {offsets = [0, 129], sizes = [16, 512], strides = [1, 1]} : vector<16x768xf32> to vector<16x512xf32>
    %254 = arith.truncf %253 : vector<16x512xf32> to vector<16x512xbf16>
    %c80_168 = arith.constant 80 : index
    %c0_169 = arith.constant 0 : index
    %255 = vector.load %arg10[%c80_168, %c0_169] : memref<432x512xbf16, #tpu.memory_space<vmem>>, vector<16x512xbf16>
    tpu.vector_store %arg10[%c80_168, %c0_169], %254 {strides = array<i32>} : memref<432x512xbf16, #tpu.memory_space<vmem>>, vector<16x512xbf16>,
    %256 = vector.extract_strided_slice %237 {offsets = [0, 149], sizes = [16, 512], strides = [1, 1]} : vector<16x768xf32> to vector<16x512xf32>
    %257 = arith.truncf %256 : vector<16x512xf32> to vector<16x512xbf16>
    %c96_170 = arith.constant 96 : index
    %c0_171 = arith.constant 0 : index
    %258 = vector.load %arg10[%c96_170, %c0_171] : memref<432x512xbf16, #tpu.memory_space<vmem>>, vector<16x512xbf16>
    tpu.vector_store %arg10[%c96_170, %c0_171], %257 {strides = array<i32>} : memref<432x512xbf16, #tpu.memory_space<vmem>>, vector<16x512xbf16>,
    %259 = vector.extract_strided_slice %237 {offsets = [0, 150], sizes = [16, 512], strides = [1, 1]} : vector<16x768xf32> to vector<16x512xf32>
    %260 = arith.truncf %259 : vector<16x512xf32> to vector<16x512xbf16>
    %c112_172 = arith.constant 112 : index
    %c0_173 = arith.constant 0 : index
    %261 = vector.load %arg10[%c112_172, %c0_173] : memref<432x512xbf16, #tpu.memory_space<vmem>>, vector<16x512xbf16>
    tpu.vector_store %arg10[%c112_172, %c0_173], %260 {strides = array<i32>} : memref<432x512xbf16, #tpu.memory_space<vmem>>, vector<16x512xbf16>,
    %262 = vector.extract_strided_slice %237 {offsets = [0, 151], sizes = [16, 512], strides = [1, 1]} : vector<16x768xf32> to vector<16x512xf32>
    %263 = arith.truncf %262 : vector<16x512xf32> to vector<16x512xbf16>
    %c128_174 = arith.constant 128 : index
    %c0_175 = arith.constant 0 : index
    %264 = vector.load %arg10[%c128_174, %c0_175] : memref<432x512xbf16, #tpu.memory_space<vmem>>, vector<16x512xbf16>
    tpu.vector_store %arg10[%c128_174, %c0_175], %263 {strides = array<i32>} : memref<432x512xbf16, #tpu.memory_space<vmem>>, vector<16x512xbf16>,
    %265 = vector.extract_strided_slice %237 {offsets = [0, 82], sizes = [16, 512], strides = [1, 1]} : vector<16x768xf32> to vector<16x512xf32>
    %266 = arith.truncf %265 : vector<16x512xf32> to vector<16x512xbf16>
    %c144_176 = arith.constant 144 : index
    %c0_177 = arith.constant 0 : index
    %267 = vector.load %arg10[%c144_176, %c0_177] : memref<432x512xbf16, #tpu.memory_space<vmem>>, vector<16x512xbf16>
    tpu.vector_store %arg10[%c144_176, %c0_177], %266 {strides = array<i32>} : memref<432x512xbf16, #tpu.memory_space<vmem>>, vector<16x512xbf16>,
    %268 = vector.extract_strided_slice %237 {offsets = [0, 84], sizes = [16, 512], strides = [1, 1]} : vector<16x768xf32> to vector<16x512xf32>
    %269 = arith.truncf %268 : vector<16x512xf32> to vector<16x512xbf16>
    %c160_178 = arith.constant 160 : index
    %c0_179 = arith.constant 0 : index
    %270 = vector.load %arg10[%c160_178, %c0_179] : memref<432x512xbf16, #tpu.memory_space<vmem>>, vector<16x512xbf16>
    tpu.vector_store %arg10[%c160_178, %c0_179], %269 {strides = array<i32>} : memref<432x512xbf16, #tpu.memory_space<vmem>>, vector<16x512xbf16>,
    %271 = vector.extract_strided_slice %237 {offsets = [0, 86], sizes = [16, 512], strides = [1, 1]} : vector<16x768xf32> to vector<16x512xf32>
    %272 = arith.truncf %271 : vector<16x512xf32> to vector<16x512xbf16>
    %c176_180 = arith.constant 176 : index
    %c0_181 = arith.constant 0 : index
    %273 = vector.load %arg10[%c176_180, %c0_181] : memref<432x512xbf16, #tpu.memory_space<vmem>>, vector<16x512xbf16>
    tpu.vector_store %arg10[%c176_180, %c0_181], %272 {strides = array<i32>} : memref<432x512xbf16, #tpu.memory_space<vmem>>, vector<16x512xbf16>,
    %274 = vector.extract_strided_slice %237 {offsets = [0, 126], sizes = [16, 512], strides = [1, 1]} : vector<16x768xf32> to vector<16x512xf32>
    %275 = arith.truncf %274 : vector<16x512xf32> to vector<16x512xbf16>
    %c192_182 = arith.constant 192 : index
    %c0_183 = arith.constant 0 : index
    %276 = vector.load %arg10[%c192_182, %c0_183] : memref<432x512xbf16, #tpu.memory_space<vmem>>, vector<16x512xbf16>
    tpu.vector_store %arg10[%c192_182, %c0_183], %275 {strides = array<i32>} : memref<432x512xbf16, #tpu.memory_space<vmem>>, vector<16x512xbf16>,
    %277 = vector.extract_strided_slice %237 {offsets = [0, 128], sizes = [16, 512], strides = [1, 1]} : vector<16x768xf32> to vector<16x512xf32>
    %278 = arith.truncf %277 : vector<16x512xf32> to vector<16x512xbf16>
    %c208_184 = arith.constant 208 : index
    %c0_185 = arith.constant 0 : index
    %279 = vector.load %arg10[%c208_184, %c0_185] : memref<432x512xbf16, #tpu.memory_space<vmem>>, vector<16x512xbf16>
    tpu.vector_store %arg10[%c208_184, %c0_185], %278 {strides = array<i32>} : memref<432x512xbf16, #tpu.memory_space<vmem>>, vector<16x512xbf16>,
    %280 = vector.extract_strided_slice %237 {offsets = [0, 130], sizes = [16, 512], strides = [1, 1]} : vector<16x768xf32> to vector<16x512xf32>
    %281 = arith.truncf %280 : vector<16x512xf32> to vector<16x512xbf16>
    %c224_186 = arith.constant 224 : index
    %c0_187 = arith.constant 0 : index
    %282 = vector.load %arg10[%c224_186, %c0_187] : memref<432x512xbf16, #tpu.memory_space<vmem>>, vector<16x512xbf16>
    tpu.vector_store %arg10[%c224_186, %c0_187], %281 {strides = array<i32>} : memref<432x512xbf16, #tpu.memory_space<vmem>>, vector<16x512xbf16>,
    %283 = vector.extract_strided_slice %237 {offsets = [0, 170], sizes = [16, 512], strides = [1, 1]} : vector<16x768xf32> to vector<16x512xf32>
    %284 = arith.truncf %283 : vector<16x512xf32> to vector<16x512xbf16>
    %c240_188 = arith.constant 240 : index
    %c0_189 = arith.constant 0 : index
    %285 = vector.load %arg10[%c240_188, %c0_189] : memref<432x512xbf16, #tpu.memory_space<vmem>>, vector<16x512xbf16>
    tpu.vector_store %arg10[%c240_188, %c0_189], %284 {strides = array<i32>} : memref<432x512xbf16, #tpu.memory_space<vmem>>, vector<16x512xbf16>,
    %286 = vector.extract_strided_slice %237 {offsets = [0, 172], sizes = [16, 512], strides = [1, 1]} : vector<16x768xf32> to vector<16x512xf32>
    %287 = arith.truncf %286 : vector<16x512xf32> to vector<16x512xbf16>
    %c256_190 = arith.constant 256 : index
    %c0_191 = arith.constant 0 : index
    %288 = vector.load %arg10[%c256_190, %c0_191] : memref<432x512xbf16, #tpu.memory_space<vmem>>, vector<16x512xbf16>
    tpu.vector_store %arg10[%c256_190, %c0_191], %287 {strides = array<i32>} : memref<432x512xbf16, #tpu.memory_space<vmem>>, vector<16x512xbf16>,
    %289 = vector.extract_strided_slice %237 {offsets = [0, 174], sizes = [16, 512], strides = [1, 1]} : vector<16x768xf32> to vector<16x512xf32>
    %290 = arith.truncf %289 : vector<16x512xf32> to vector<16x512xbf16>
    %c272_192 = arith.constant 272 : index
    %c0_193 = arith.constant 0 : index
    %291 = vector.load %arg10[%c272_192, %c0_193] : memref<432x512xbf16, #tpu.memory_space<vmem>>, vector<16x512xbf16>
    tpu.vector_store %arg10[%c272_192, %c0_193], %290 {strides = array<i32>} : memref<432x512xbf16, #tpu.memory_space<vmem>>, vector<16x512xbf16>,
    %292 = vector.extract_strided_slice %237 {offsets = [0, 59], sizes = [16, 512], strides = [1, 1]} : vector<16x768xf32> to vector<16x512xf32>
    %293 = arith.truncf %292 : vector<16x512xf32> to vector<16x512xbf16>
    %c288_194 = arith.constant 288 : index
    %c0_195 = arith.constant 0 : index
    %294 = vector.load %arg10[%c288_194, %c0_195] : memref<432x512xbf16, #tpu.memory_space<vmem>>, vector<16x512xbf16>
    tpu.vector_store %arg10[%c288_194, %c0_195], %293 {strides = array<i32>} : memref<432x512xbf16, #tpu.memory_space<vmem>>, vector<16x512xbf16>,
    %295 = vector.extract_strided_slice %237 {offsets = [0, 62], sizes = [16, 512], strides = [1, 1]} : vector<16x768xf32> to vector<16x512xf32>
    %296 = arith.truncf %295 : vector<16x512xf32> to vector<16x512xbf16>
    %c304_196 = arith.constant 304 : index
    %c0_197 = arith.constant 0 : index
    %297 = vector.load %arg10[%c304_196, %c0_197] : memref<432x512xbf16, #tpu.memory_space<vmem>>, vector<16x512xbf16>
    tpu.vector_store %arg10[%c304_196, %c0_197], %296 {strides = array<i32>} : memref<432x512xbf16, #tpu.memory_space<vmem>>, vector<16x512xbf16>,
    %298 = vector.extract_strided_slice %237 {offsets = [0, 65], sizes = [16, 512], strides = [1, 1]} : vector<16x768xf32> to vector<16x512xf32>
    %299 = arith.truncf %298 : vector<16x512xf32> to vector<16x512xbf16>
    %c320_198 = arith.constant 320 : index
    %c0_199 = arith.constant 0 : index
    %300 = vector.load %arg10[%c320_198, %c0_199] : memref<432x512xbf16, #tpu.memory_space<vmem>>, vector<16x512xbf16>
    tpu.vector_store %arg10[%c320_198, %c0_199], %299 {strides = array<i32>} : memref<432x512xbf16, #tpu.memory_space<vmem>>, vector<16x512xbf16>,
    %301 = vector.extract_strided_slice %237 {offsets = [0, 125], sizes = [16, 512], strides = [1, 1]} : vector<16x768xf32> to vector<16x512xf32>
    %302 = arith.truncf %301 : vector<16x512xf32> to vector<16x512xbf16>
    %c336_200 = arith.constant 336 : index
    %c0_201 = arith.constant 0 : index
    %303 = vector.load %arg10[%c336_200, %c0_201] : memref<432x512xbf16, #tpu.memory_space<vmem>>, vector<16x512xbf16>
    tpu.vector_store %arg10[%c336_200, %c0_201], %302 {strides = array<i32>} : memref<432x512xbf16, #tpu.memory_space<vmem>>, vector<16x512xbf16>,
    %304 = vector.extract_strided_slice %237 {offsets = [0, 128], sizes = [16, 512], strides = [1, 1]} : vector<16x768xf32> to vector<16x512xf32>
    %305 = arith.truncf %304 : vector<16x512xf32> to vector<16x512xbf16>
    %c352_202 = arith.constant 352 : index
    %c0_203 = arith.constant 0 : index
    %306 = vector.load %arg10[%c352_202, %c0_203] : memref<432x512xbf16, #tpu.memory_space<vmem>>, vector<16x512xbf16>
    tpu.vector_store %arg10[%c352_202, %c0_203], %305 {strides = array<i32>} : memref<432x512xbf16, #tpu.memory_space<vmem>>, vector<16x512xbf16>,
    %307 = vector.extract_strided_slice %237 {offsets = [0, 131], sizes = [16, 512], strides = [1, 1]} : vector<16x768xf32> to vector<16x512xf32>
    %308 = arith.truncf %307 : vector<16x512xf32> to vector<16x512xbf16>
    %c368_204 = arith.constant 368 : index
    %c0_205 = arith.constant 0 : index
    %309 = vector.load %arg10[%c368_204, %c0_205] : memref<432x512xbf16, #tpu.memory_space<vmem>>, vector<16x512xbf16>
    tpu.vector_store %arg10[%c368_204, %c0_205], %308 {strides = array<i32>} : memref<432x512xbf16, #tpu.memory_space<vmem>>, vector<16x512xbf16>,
    %310 = vector.extract_strided_slice %237 {offsets = [0, 191], sizes = [16, 512], strides = [1, 1]} : vector<16x768xf32> to vector<16x512xf32>
    %311 = arith.truncf %310 : vector<16x512xf32> to vector<16x512xbf16>
    %c384_206 = arith.constant 384 : index
    %c0_207 = arith.constant 0 : index
    %312 = vector.load %arg10[%c384_206, %c0_207] : memref<432x512xbf16, #tpu.memory_space<vmem>>, vector<16x512xbf16>
    tpu.vector_store %arg10[%c384_206, %c0_207], %311 {strides = array<i32>} : memref<432x512xbf16, #tpu.memory_space<vmem>>, vector<16x512xbf16>,
    %313 = vector.extract_strided_slice %237 {offsets = [0, 194], sizes = [16, 512], strides = [1, 1]} : vector<16x768xf32> to vector<16x512xf32>
    %314 = arith.truncf %313 : vector<16x512xf32> to vector<16x512xbf16>
    %c400_208 = arith.constant 400 : index
    %c0_209 = arith.constant 0 : index
    %315 = vector.load %arg10[%c400_208, %c0_209] : memref<432x512xbf16, #tpu.memory_space<vmem>>, vector<16x512xbf16>
    tpu.vector_store %arg10[%c400_208, %c0_209], %314 {strides = array<i32>} : memref<432x512xbf16, #tpu.memory_space<vmem>>, vector<16x512xbf16>,
    %316 = vector.extract_strided_slice %237 {offsets = [0, 197], sizes = [16, 512], strides = [1, 1]} : vector<16x768xf32> to vector<16x512xf32>
    %317 = arith.truncf %316 : vector<16x512xf32> to vector<16x512xbf16>
    %c416_210 = arith.constant 416 : index
    %c0_211 = arith.constant 0 : index
    %318 = vector.load %arg10[%c416_210, %c0_211] : memref<432x512xbf16, #tpu.memory_space<vmem>>, vector<16x512xbf16>
    tpu.vector_store %arg10[%c416_210, %c0_211], %317 {strides = array<i32>} : memref<432x512xbf16, #tpu.memory_space<vmem>>, vector<16x512xbf16>,
    %c2 = arith.constant 2 : index
    %c0_212 = arith.constant 0 : index
    %c0_213 = arith.constant 0 : index
    %319 = vector.load %arg3[%c2, %c0_212, %c0_213] : memref<3x48x432xbf16, #tpu.memory_space<vmem>>, vector<1x48x432xbf16>
    %320 = vector.shape_cast %319 : vector<1x48x432xbf16> to vector<48x432xbf16>
    %c0_214 = arith.constant 0 : index
    %c0_215 = arith.constant 0 : index
    %321 = vector.load %arg10[%c0_214, %c0_215] : memref<432x512xbf16, #tpu.memory_space<vmem>>, vector<432x512xbf16>
    %cst_216 = arith.constant dense<0.000000e+00> : vector<48x512xf32>
    %322 = tpu.matmul %320, %321, %cst_216 {dimension_numbers = #tpu.dot_dimension_numbers<[1], [0], [0], [1], [0, 0, 1, 1], [], []>} : vector<48x432xbf16>, vector<432x512xbf16>, vector<48x512xf32> -> vector<48x512xf32>
    %cst_217 = arith.constant 0.000000e+00 : f32
    %323 = vector.broadcast %cst_217 : f32 to vector<48x512xf32>
    %324 = arith.maximumf %322, %323 : vector<48x512xf32>
    %325 = arith.truncf %324 : vector<48x512xf32> to vector<48x512xbf16>
    %c2_218 = arith.constant 2 : index
    %c0_219 = arith.constant 0 : index
    %c0_220 = arith.constant 0 : index
    %326 = vector.load %arg4[%c2_218, %c0_219, %c0_220] : memref<3x32x48xbf16, #tpu.memory_space<vmem>>, vector<1x32x48xbf16>
    %327 = vector.shape_cast %326 : vector<1x32x48xbf16> to vector<32x48xbf16>
    %cst_221 = arith.constant dense<0.000000e+00> : vector<32x512xf32>
    %328 = tpu.matmul %327, %325, %cst_221 {dimension_numbers = #tpu.dot_dimension_numbers<[1], [0], [0], [1], [0, 0, 1, 1], [], []>} : vector<32x48xbf16>, vector<48x512xbf16>, vector<32x512xf32> -> vector<32x512xf32>
    %329 = vector.extract_strided_slice %328 {offsets = [0, 0], sizes = [16, 512], strides = [1, 1]} : vector<32x512xf32> to vector<16x512xf32>
    %cst_222 = arith.constant 0.000000e+00 : f32
    %330 = vector.broadcast %cst_222 : f32 to vector<16x512xf32>
    %331 = arith.maximumf %329, %330 : vector<16x512xf32>
    %332 = vector.extract_strided_slice %328 {offsets = [16, 0], sizes = [16, 512], strides = [1, 1]} : vector<32x512xf32> to vector<16x512xf32>
    %333 = arith.addf %331, %216 : vector<16x512xf32>
    %c2_223 = arith.constant 2 : index
    %c0_224 = arith.constant 0 : index
    %c0_225 = arith.constant 0 : index
    %334 = vector.load %arg5[%c2_223, %c0_224, %c0_225] : memref<3x16x16xbf16, #tpu.memory_space<vmem>>, vector<1x16x16xbf16>
    %335 = vector.shape_cast %334 : vector<1x16x16xbf16> to vector<16x16xbf16>
    %336 = arith.truncf %331 : vector<16x512xf32> to vector<16x512xbf16>
    %cst_226 = arith.constant dense<0.000000e+00> : vector<16x512xf32>
    %337 = tpu.matmul %335, %336, %cst_226 {dimension_numbers = #tpu.dot_dimension_numbers<[1], [0], [0], [1], [0, 0, 1, 1], [], []>} : vector<16x16xbf16>, vector<16x512xbf16>, vector<16x512xf32> -> vector<16x512xf32>
    %c2_227 = arith.constant 2 : index
    %c0_228 = arith.constant 0 : index
    %c0_229 = arith.constant 0 : index
    %338 = vector.load %arg6[%c2_227, %c0_228, %c0_229] : memref<3x16x16xbf16, #tpu.memory_space<vmem>>, vector<1x16x16xbf16>
    %339 = vector.shape_cast %338 : vector<1x16x16xbf16> to vector<16x16xbf16>
    %340 = arith.truncf %333 : vector<16x512xf32> to vector<16x512xbf16>
    %cst_230 = arith.constant dense<0.000000e+00> : vector<16x512xf32>
    %341 = tpu.matmul %339, %340, %cst_230 {dimension_numbers = #tpu.dot_dimension_numbers<[1], [0], [0], [1], [0, 0, 1, 1], [], []>} : vector<16x16xbf16>, vector<16x512xbf16>, vector<16x512xf32> -> vector<16x512xf32>
    %c0_231 = arith.constant 0 : index
    %c0_232 = arith.constant 0 : index
    %342 = vector.load %arg11[%c0_231, %c0_232] : memref<16x512xf32, #tpu.memory_space<vmem>>, vector<16x512xf32>
    %343 = arith.addf %342, %337 : vector<16x512xf32>
    %c0_233 = arith.constant 0 : index
    %c0_234 = arith.constant 0 : index
    %344 = vector.load %arg11[%c0_233, %c0_234] : memref<16x512xf32, #tpu.memory_space<vmem>>, vector<16x512xf32>
    tpu.vector_store %arg11[%c0_233, %c0_234], %343 {strides = array<i32>} : memref<16x512xf32, #tpu.memory_space<vmem>>, vector<16x512xf32>,
    %c0_235 = arith.constant 0 : index
    %c0_236 = arith.constant 0 : index
    %345 = vector.load %arg12[%c0_235, %c0_236] : memref<16x512xf32, #tpu.memory_space<vmem>>, vector<16x512xf32>
    %346 = arith.addf %345, %332 : vector<16x512xf32>
    %c0_237 = arith.constant 0 : index
    %c0_238 = arith.constant 0 : index
    %347 = vector.load %arg12[%c0_237, %c0_238] : memref<16x512xf32, #tpu.memory_space<vmem>>, vector<16x512xf32>
    tpu.vector_store %arg12[%c0_237, %c0_238], %346 {strides = array<i32>} : memref<16x512xf32, #tpu.memory_space<vmem>>, vector<16x512xf32>,
    %c0_239 = arith.constant 0 : index
    %c0_240 = arith.constant 0 : index
    %348 = vector.load %arg13[%c0_239, %c0_240] : memref<16x512xf32, #tpu.memory_space<vmem>>, vector<16x512xf32>
    %349 = arith.addf %348, %341 : vector<16x512xf32>
    %c0_241 = arith.constant 0 : index
    %c0_242 = arith.constant 0 : index
    %350 = vector.load %arg13[%c0_241, %c0_242] : memref<16x512xf32, #tpu.memory_space<vmem>>, vector<16x512xf32>
    tpu.vector_store %arg13[%c0_241, %c0_242], %349 {strides = array<i32>} : memref<16x512xf32, #tpu.memory_space<vmem>>, vector<16x512xf32>,
    %c0_243 = arith.constant 0 : index
    %c0_244 = arith.constant 0 : index
    %351 = vector.load %arg11[%c0_243, %c0_244] : memref<16x512xf32, #tpu.memory_space<vmem>>, vector<16x512xf32>
    %cst_245 = arith.constant 0.000000e+00 : f32
    %352 = vector.broadcast %cst_245 : f32 to vector<16x512xf32>
    %353 = arith.maximumf %351, %352 : vector<16x512xf32>
    %c0_246 = arith.constant 0 : index
    %c0_247 = arith.constant 0 : index
    %354 = vector.load %arg12[%c0_246, %c0_247] : memref<16x512xf32, #tpu.memory_space<vmem>>, vector<16x512xf32>
    %cst_248 = arith.constant 0.000000e+00 : f32
    %355 = vector.broadcast %cst_248 : f32 to vector<16x512xf32>
    %356 = arith.maximumf %354, %355 : vector<16x512xf32>
    %c0_249 = arith.constant 0 : index
    %c0_250 = arith.constant 0 : index
    %357 = vector.load %arg13[%c0_249, %c0_250] : memref<16x512xf32, #tpu.memory_space<vmem>>, vector<16x512xf32>
    %cst_251 = arith.constant 0.000000e+00 : f32
    %358 = vector.broadcast %cst_251 : f32 to vector<16x512xf32>
    %359 = arith.maximumf %357, %358 : vector<16x512xf32>
    %360 = arith.addf %353, %356 : vector<16x512xf32>
    %c0_252 = arith.constant 0 : index
    %c0_253 = arith.constant 0 : index
    %c0_254 = arith.constant 0 : index
    %361 = vector.load %arg8[%c0_252, %c0_253, %c0_254] : memref<1x16x512xf32, #tpu.memory_space<vmem>>, vector<1x16x512xf32>
    %362 = vector.shape_cast %361 : vector<1x16x512xf32> to vector<16x512xf32>
    %363 = vector.shape_cast %360 : vector<16x512xf32> to vector<1x16x512xf32>
    tpu.vector_store %arg8[%c0_252, %c0_253, %c0_254], %363 {strides = array<i32>} : memref<1x16x512xf32, #tpu.memory_space<vmem>>, vector<1x16x512xf32>,
    %364 = arith.addf %360, %359 : vector<16x512xf32>
    %c0_255 = arith.constant 0 : index
    %c0_256 = arith.constant 0 : index
    %c0_257 = arith.constant 0 : index
    %365 = vector.load %arg7[%c0_255, %c0_256, %c0_257] : memref<1x16x512xf32, #tpu.memory_space<vmem>>, vector<1x16x512xf32>
    %366 = vector.shape_cast %365 : vector<1x16x512xf32> to vector<16x512xf32>
    %367 = vector.shape_cast %364 : vector<16x512xf32> to vector<1x16x512xf32>
    tpu.vector_store %arg7[%c0_255, %c0_256, %c0_257], %367 {strides = array<i32>} : memref<1x16x512xf32, #tpu.memory_space<vmem>>, vector<1x16x512xf32>,
    return
  }
  func.func @transform_0(%arg0: i32) -> (i32, i32, i32) {
    %c0_i32 = arith.constant 0 : i32
    %c0_i32_0 = arith.constant 0 : i32
    %c0_i32_1 = arith.constant 0 : i32
    return %arg0, %c0_i32, %c0_i32_0 : i32, i32, i32
  }
  func.func @transform_1(%arg0: i32) -> (i32, i32) {
    %c0_i32 = arith.constant 0 : i32
    %c0_i32_0 = arith.constant 0 : i32
    %c0_i32_1 = arith.constant 0 : i32
    return %c0_i32, %c0_i32_0 : i32, i32
  }
  func.func @transform_2(%arg0: i32) -> (i32, i32, i32) {
    %c0_i32 = arith.constant 0 : i32
    %c0_i32_0 = arith.constant 0 : i32
    %c0_i32_1 = arith.constant 0 : i32
    %c0_i32_2 = arith.constant 0 : i32
    return %c0_i32, %c0_i32_0, %c0_i32_1 : i32, i32, i32
  }
  func.func @transform_3(%arg0: i32) -> (i32, i32, i32) {
    %c0_i32 = arith.constant 0 : i32
    %c0_i32_0 = arith.constant 0 : i32
    %c0_i32_1 = arith.constant 0 : i32
    %c0_i32_2 = arith.constant 0 : i32
    return %c0_i32, %c0_i32_0, %c0_i32_1 : i32, i32, i32
  }
  func.func @transform_4(%arg0: i32) -> (i32, i32, i32) {
    %c0_i32 = arith.constant 0 : i32
    %c0_i32_0 = arith.constant 0 : i32
    %c0_i32_1 = arith.constant 0 : i32
    %c0_i32_2 = arith.constant 0 : i32
    return %c0_i32, %c0_i32_0, %c0_i32_1 : i32, i32, i32
  }
  func.func @transform_5(%arg0: i32) -> (i32, i32, i32) {
    %c0_i32 = arith.constant 0 : i32
    %c0_i32_0 = arith.constant 0 : i32
    %c0_i32_1 = arith.constant 0 : i32
    %c0_i32_2 = arith.constant 0 : i32
    return %c0_i32, %c0_i32_0, %c0_i32_1 : i32, i32, i32
  }
  func.func @transform_6(%arg0: i32) -> (i32, i32, i32) {
    %c0_i32 = arith.constant 0 : i32
    %c0_i32_0 = arith.constant 0 : i32
    %c0_i32_1 = arith.constant 0 : i32
    return %arg0, %c0_i32, %c0_i32_0 : i32, i32, i32
  }
  func.func @transform_7(%arg0: i32) -> (i32, i32, i32) {
    %c0_i32 = arith.constant 0 : i32
    %c0_i32_0 = arith.constant 0 : i32
    %c0_i32_1 = arith.constant 0 : i32
    return %arg0, %c0_i32, %c0_i32_0 : i32, i32, i32
  }
}

</mosaic_0001>

<bundles_post_ra>
// kernel: rfeg_2_forward.1
= control target key start
LH: loop header
LB: loop body
LE: loop exit
PB: predicated region body
PF: predicated region fallthrough
CT: control target
= control target key end

     0   :  { %s8195_s24 = smov 0   ;;  %s12159_s0 = inlined_call_operand.vmem [shape: f32[2,16,512], index: 0, kind: input, shape index: {}]   ;;  %s12160_s1 = inlined_call_operand.vmem [shape: f32[1,512], index: 1, kind: input, shape index: {}]   ;;  %s12161_s2 = inlined_call_operand.vmem [shape: bf16[3,48,432], index: 2, kind: input, shape index: {}]   ;;  %s12162_s3 = inlined_call_operand.vmem [shape: bf16[3,32,48], index: 3, kind: input, shape index: {}]   ;;  %s12163_s4 = inlined_call_operand.vmem [shape: bf16[3,16,16], index: 4, kind: input, shape index: {}]   ;;  %s12164_s5 = inlined_call_operand.vmem [shape: bf16[3,16,16], index: 5, kind: input, shape index: {}]   ;;  %s12165_s6 = inlined_call_operand.vmem [shape: f32[2,16,512], index: 6, kind: output, shape index: {0}]   ;;  %s12166_s7 = inlined_call_operand.vmem [shape: f32[2,16,512], index: 7, kind: output, shape index: {1}]  }
   0x1   :  { %12523 = sst [smem:[#allocation108_spill]] %s12159_s0 }
   0x2   :  { %12524 = sst [smem:[#allocation109_spill]] %s12160_s1 }
   0x3   :  { %12525 = sst [smem:[#allocation110_spill]] %s12161_s2 }
   0x4   :  { %12526 = sst [smem:[#allocation111_spill]] %s12165_s6 }
   0x5   :  { %12527 = sst [smem:[#allocation112_spill]] %s12166_s7 }
   0x6 LB: > { %12528 = sst [smem:[#allocation7_spill]] %s8126_s24  ;;  %s7454_s25 = sadd.s32 4294967295, %s8126_s24   ;;  %s8126_s24 = sphi %s8195_s24, %s18_s24  }
   0x7   : > { %p7458_p0 = scmp.ge.s32.totalorder %s8126_s24, 1  ;;  %p240_p1 = scmp.lt.s32.totalorder %s8126_s24, 3 }
   0x9   : > { %p241_p2 = pnand %p7458_p0, %p240_p1 }
   0xb   : > { %244 = sbr.rel (%p241_p2) target bundleno = 2732 (0xaac), region = 44 }
  0x10   : > { %p277_p3 = scmp.lt.s32.totalorder %s7454_s25, 1  ;;  %v307_v0 = vlaneseq  ;;  %s12529_s1 = sld [smem:[#allocation109_spill]]  ;;  %v12169_v34 = vmov 0.0   ;;  %vm399_vm0 = vcmask 1043456   ;;  %vm12231_vm1 = vcmask 867328  }
  0x11   : > { %s12531_s0 = sld [smem:[#allocation108_spill]]  ;;  %s12181_s9 = smov 106   ;;  %vm1127_vm2 = vcmask 1022976   ;;  %vm12236_vm3 = vcmask 875520   ;;  %vm12243_vm4 = vcmask 1039360   ;;  %vm1965_vm5 = vcmask 392192  }
  0x12   : > { %s13312_s25 = smov (!%p277_p3, %s7454_s25), 1  ;;  %v308_v2 = vshrl.u32 %v307_v0, 7  ;;  %s12273_s10 = smov 125   ;;  %vm1088_vm6 = vcmask 23552   ;;  %vm1053_vm7 = vcmask 515072   ;;  %vm506_vm8 = vcmask 7168  }
  0x13   : > { %s8206_s28 = sshll.u32 %s13312_s25, 6  ;;  %s12171_s11 = smov 107   ;;  %vm12385_vm9 = vcmask 539648   ;;  %vm471_vm10 = vcmask 171008   ;;  %vm12215_vm11 = vcmask 564224   ;;  %vm436_vm12 = vcmask 179200  }
  0x14   : > { %12530 = sst [smem:[#allocation8_spill]] %s8206_s28  ;;  %v309_v3 = vsub.s32 0, %v308_v2  ;;  %v313_v4 = vsub.s32 1, %v308_v2  ;;  %v317_v5 = vsub.s32 2, %v308_v2  ;;  %v321_v6 = vsub.s32 3, %v308_v2  ;;  %s12177_s12 = smov 127  }
  0x15   : > { %s12281_s13 = smov 3   ;;  %s12279_s14 = smov 63   ;;  %vm12205_vm13 = vcmask 670720   ;;  %vm401_vm14 = vcmask 187392   ;;  %vm12200_vm15 = vcmask 687104  }
  0x16   : > { %v301_v1 = vld [vmem:[%s12529_s1] sm:$0xf]  ;;  %s12290_s15 = smov 1   ;;  %s12294_s16 = smov 66  }
  0x17   : > { %s8212_s8 = scalar_lea.vmem %s12531_s0, %s8206_s28  ;;  %v8216_v9 = vrot.slane %v301_v1, %v309_v3  ;;  %v8218_v10 = vrot.slane %v301_v1, %v313_v4  ;;  %v8221_v12 = vrot.slane %v301_v1, %v317_v5  ;;  %v8223_v13 = vrot.slane %v301_v1, %v321_v6  ;;  %s12277_s17 = smov 21  }
  0x18   : > { %v297_v7 = vld [vmem:[%s8212_s8 + $0x20] sm:$0xff]  ;;  %v298_v8 = vld [vmem:[%s8212_s8 + $0x28] sm:$0xff]  ;;  %v299_v15 = vld [vmem:[%s8212_s8 + $0x30] sm:$0xff]  ;;  %s12275_s18 = smov 69   ;;  %s12269_s19 = smov 22  }
  0x19   : > { %12532 = vst [vmem:[#allocation9_spill] sm:$0xff] %v8216_v9  ;;  %12533 = vst [vmem:[#allocation10_spill] sm:$0xff] %v8218_v10  ;;  %v293_v11 = vld [vmem:[%s8212_s8] sm:$0xff]  ;;  %v294_v14 = vld [vmem:[%s8212_s8 + $0x8] sm:$0xff]  ;;  %v331_v17 = vmul.f32 %v8216_v9, %v297_v7  ;;  %v332_v18 = vmul.f32 %v8218_v10, %v298_v8  ;;  %v8235_v23 = vmul.f32 %v8221_v12, %v299_v15  ;;  %s12271_s20 = smov 82   ;;  %s12267_s21 = smov 23  }
  0x1a   : > { %12534 = vst [vmem:[#allocation11_spill] sm:$0xff] %v8221_v12  ;;  %12535 = vst [vmem:[#allocation12_spill] sm:$0xff] %v8223_v13  ;;  %v300_v16 = vld [vmem:[%s8212_s8 + $0x38] sm:$0xff]  ;;  %v327_v19 = vmul.f32 %v8216_v9, %v293_v11  ;;  %v328_v20 = vmul.f32 %v8218_v10, %v294_v14  ;;  %v295_v21 = vld [vmem:[%s8212_s8 + $0x10] sm:$0xff]  ;;  %s12263_s22 = smov 84   ;;  %s12261_s23 = smov 86  }
  0x1b   : > { %v296_v22 = vld [vmem:[%s8212_s8 + $0x18] sm:$0xff]  ;;  %v8238_v24 = vmul.f32 %v8223_v13, %v300_v16  ;;  %v8241_v25 = vmul.f32 %v8221_v12, %v295_v21  ;;  %v8246_v27 = vpack.c.bf16 %v332_v18, %v331_v17  ;;  %v8305_v36 = vpack.c.bf16 %v8235_v23, %v332_v18  ;;  %s12167_s25 = smov 59   ;;  %s12259_s26 = smov 126  }
  0x1c   : > { %v8244_v26 = vmul.f32 %v8223_v13, %v296_v22  ;;  %v8248_v28 = vpack.c.bf16 %v328_v20, %v327_v19  ;;  %v8282_v31 = vpack.c.bf16 %v332_v18, %v328_v20  ;;  %v8288_v32 = vpack.c.bf16 %v331_v17, %v327_v19  ;;  %s12185_s27 = smov 62   ;;  %s12536_s2 = sld [smem:[#allocation110_spill]] }
  0x1d   : > { %616 = vrot.lane.b32.xlu1 %v8246_v27, %s12181_s9  ;;  %v8256_v29 = vpack.c.bf16 %v8238_v24, %v8235_v23  ;;  %v8295_v33 = vpack.c.bf16 %v8241_v25, %v328_v20  ;;  %v8298_v35 = vpack.c.bf16 %v327_v19, %v12169_v34  ;;  %v8308_v37 = vpack.c.bf16 %v331_v17, %v12169_v34  ;;  %s12229_s29 = smov 2   ;;  %s12227_s30 = smov 42  }
  0x1e   : > { %610 = vrot.lane.b32.xlu0 %v8248_v28, %s12181_s9  ;;  %v8260_v30 = vpack.c.bf16 %v8244_v26, %v8241_v25  ;;  %s12639_s0 = smov 23   ;;  %s12666_s24 = smov 63  }
  0x1f   : > { %s12668_s6 = smov 66   ;;  %s12687_s1 = smov 1  }
  0x21   : > { %618 = vrot.lane.b32.xlu1 %v8256_v29, %s12181_s9 }
  0x22   : > { %612 = vrot.lane.b32.xlu0 %v8260_v30, %s12181_s9 }
  0x25   : > { %1110 = vrot.lane.b32.xlu1 %v8260_v30, %s12273_s10 }
  0x26   : > { %1108 = vrot.lane.b32.xlu0 %v8248_v28, %s12273_s10 }
  0x29   : > { %1116 = vrot.lane.b32.xlu1 %v8256_v29, %s12273_s10 }
  0x2a   : > { %1114 = vrot.lane.b32.xlu0 %v8246_v27, %s12273_s10 }
  0x2d   : > { %577 = vrot.lane.b32.xlu1 %v8260_v30, %s12171_s11 }
  0x2e   : > { %575 = vrot.lane.b32.xlu0 %v8248_v28, %s12171_s11 }
  0x31   : > { %583 = vrot.lane.b32.xlu1 %v8256_v29, %s12171_s11 }
  0x32   : > { %581 = vrot.lane.b32.xlu0 %v8246_v27, %s12171_s11 }
  0x35   : > { %542 = vrot.lane.b32.xlu1 %v8260_v30, %s12177_s12 }
  0x36   : > { %540 = vrot.lane.b32.xlu0 %v8248_v28, %s12177_s12 }
  0x39   : > { %548 = vrot.lane.b32.xlu1 %v8256_v29, %s12177_s12 }
  0x3a   : > { %546 = vrot.lane.b32.xlu0 %v8246_v27, %s12177_s12 }
  0x3d   : > { %1071 = vrot.lane.b32.xlu1 %v8295_v33, %s12281_s13 }
  0x3e   : > { %1069 = vrot.lane.b32.xlu0 %v8298_v35, %s12281_s13 }
  0x41   : > { %1077 = vrot.lane.b32.xlu1 %v8305_v36, %s12281_s13 }
  0x42   : > { %1075 = vrot.lane.b32.xlu0 %v8308_v37, %s12281_s13 }
  0x45   : > { %1036 = vrot.lane.b32.xlu1 %v8295_v33, %s12279_s14 }
  0x46   : > { %1034 = vrot.lane.b32.xlu0 %v8298_v35, %s12279_s14 }
  0x49   : > { %1042 = vrot.lane.b32.xlu1 %v8305_v36, %s12279_s14 }
  0x4a   : > { %1040 = vrot.lane.b32.xlu0 %v8308_v37, %s12279_s14 }
  0x4d   : > { %489 = vrot.lane.b32.xlu1 %v8295_v33, %s12290_s15 }
  0x4e   : > { %487 = vrot.lane.b32.xlu0 %v8298_v35, %s12290_s15 }
  0x51   : > { %495 = vrot.lane.b32.xlu1 %v8305_v36, %s12290_s15 }
  0x52   : > { %493 = vrot.lane.b32.xlu0 %v8308_v37, %s12290_s15 }
  0x55   : > { %1001 = vrot.lane.b32.xlu1 %v8295_v33, %s12294_s16 }
  0x56   : > { %999 = vrot.lane.b32.xlu0 %v8298_v35, %s12294_s16 }
  0x59   : > { %1007 = vrot.lane.b32.xlu1 %v8305_v36, %s12294_s16 }
  0x5a   : > { %1005 = vrot.lane.b32.xlu0 %v8308_v37, %s12294_s16 }
  0x5d   : > { %454 = vrot.lane.b32.xlu1 %v8295_v33, %s12277_s17 }
  0x5e   : > { %452 = vrot.lane.b32.xlu0 %v8298_v35, %s12277_s17 }
  0x61   : > { %460 = vrot.lane.b32.xlu1 %v8305_v36, %s12277_s17 }
  0x62   : > { %458 = vrot.lane.b32.xlu0 %v8308_v37, %s12277_s17 }
  0x65   : > { %966 = vrot.lane.b32.xlu1 %v8295_v33, %s12275_s18 }
  0x66   : > { %964 = vrot.lane.b32.xlu0 %v8298_v35, %s12275_s18 }
  0x69   : > { %972 = vrot.lane.b32.xlu1 %v8305_v36, %s12275_s18 }
  0x6a   : > { %970 = vrot.lane.b32.xlu0 %v8308_v37, %s12275_s18 }
  0x6d   : > { %419 = vrot.lane.b32.xlu1 %v8295_v33, %s12269_s19 }
  0x6e   : > { %417 = vrot.lane.b32.xlu0 %v8298_v35, %s12269_s19 }
  0x71   : > { %425 = vrot.lane.b32.xlu1 %v8305_v36, %s12269_s19 }
  0x72   : > { %423 = vrot.lane.b32.xlu0 %v8308_v37, %s12269_s19 }
  0x75   : > { %931 = vrot.lane.b32.xlu1 %v8260_v30, %s12271_s20 }
  0x76   : > { %929 = vrot.lane.b32.xlu0 %v8248_v28, %s12271_s20 }
  0x79   : > { %937 = vrot.lane.b32.xlu1 %v8256_v29, %s12271_s20 }
  0x7a   : > { %935 = vrot.lane.b32.xlu0 %v8246_v27, %s12271_s20 }
  0x7d   : > { %383 = vrot.lane.b32.xlu1 %v8295_v33, %s12267_s21 }
  0x7e   : > { %381 = vrot.lane.b32.xlu0 %v8298_v35, %s12267_s21 }
  0x81   : > { %389 = vrot.lane.b32.xlu1 %v8305_v36, %s12267_s21 }
  0x82   : > { %387 = vrot.lane.b32.xlu0 %v8308_v37, %s12267_s21 }
  0x85   : > { %896 = vrot.lane.b32.xlu1 %v8260_v30, %s12263_s22 }
  0x86   : > { %894 = vrot.lane.b32.xlu0 %v8248_v28, %s12263_s22 }
  0x89   : > { %902 = vrot.lane.b32.xlu1 %v8256_v29, %s12263_s22 }
  0x8a   : > { %900 = vrot.lane.b32.xlu0 %v8246_v27, %s12263_s22 }
  0x8d   : > { %861 = vrot.lane.b32.xlu1 %v8260_v30, %s12261_s23 }
  0x8e   : > { %859 = vrot.lane.b32.xlu0 %v8248_v28, %s12261_s23 }
  0x8f   : > { %v617_v38 = vpop.permute.xlu1 %616 }
  0x90   : > { %v611_v39 = vpop.permute.xlu0 %610  ;;  %v625_v42 = vrot.slane %v617_v38, 4 }
  0x91   : > { %867 = vrot.lane.b32.xlu1 %v8256_v29, %s12261_s23  ;;  %v622_v43 = vrot.slane %v611_v39, 4 }
  0x92   : > { %865 = vrot.lane.b32.xlu0 %v8246_v27, %s12261_s23 }
  0x93   : > { %v8394_v40 = vpop.permute.xlu1 %618 }
  0x94   : > { %v8396_v41 = vpop.permute.xlu0 %612  ;;  %v12222_v44 = vrot.slane %v8394_v40, 4  ;;  %v12538_v13 = vrot.slane %v8394_v40, 4 }
  0x95   : > { %v12218_v45 = vrot.slane %v8396_v41, 4  ;;  %1215 = vrot.lane.b32.xlu1 %v8260_v30, %s12167_s25 }
  0x96   : > { %1213 = vrot.lane.b32.xlu0 %v8248_v28, %s12167_s25  ;;  %v633_v47 = vsel %vm399_vm0, %v625_v42, %v12222_v44 }
  0x97   : > { %v628_v46 = vsel %vm399_vm0, %v622_v43, %v12218_v45  ;;  %v8410_v48 = vpop.permute.xlu1 %1110  ;;  %v634_v51 = vsel %vm12231_vm1, %v617_v38, %v633_v47 }
  0x98   : > { %v1109_v49 = vpop.permute.xlu0 %1108  ;;  %v630_v50 = vsel %vm12231_vm1, %v611_v39, %v628_v46  ;;  %v12190_v52 = vrot.slane %v8410_v48, 4 }
  0x99   : > { %v1120_v53 = vrot.slane %v1109_v49, 4  ;;  %v7518_v54 = vcombine.high %v630_v50, %v634_v51  ;;  %v7517_v55 = vcombine.low %v630_v50, %v634_v51  ;;  %1221 = vrot.lane.b32.xlu1 %v8256_v29, %s12167_s25 }
  0x9a   : > { %1219 = vrot.lane.b32.xlu0 %v8246_v27, %s12167_s25  ;;  %s12183_s25 = smov 65  }
  0x9b   : > { %1975 = vmatprep.subr.bf16.mxu0 %v7518_v54  ;;  %v8419_v56 = vpop.permute.xlu1 %1116  ;;  %v1126_v60 = vsel %vm399_vm0, %v1120_v53, %v12190_v52 }
  0x9c   : > { %1976 = vmatpush1.bf16.msra.mxu0 %v7517_v55  ;;  %v1115_v57 = vpop.permute.xlu0 %1114  ;;  %v12195_v58 = vrot.slane %v8419_v56, 4  ;;  %v1128_v0 = vsel %vm1127_vm2, %v1109_v49, %v1126_v60  ;;  %v8045_v49 = vld [vmem:[%s12536_s2 + $0xc] ss:$16 sps:$4 sm:$0xff]  }
  0x9d   : > { %v1123_v59 = vrot.slane %v1115_v57, 4  ;;  %826 = vrot.lane.b32.xlu1 %v8260_v30, %s12259_s26  ;;  %7597 = vmatprep.mubr.msk.bf16.mxu1 %vm1965_vm5, %v8045_v49 }
  0x9e   : > { %824 = vrot.lane.b32.xlu0 %v8248_v28, %s12259_s26 }
  0x9f   : > { %v1131_v61 = vsel %vm399_vm0, %v1123_v59, %v12195_v58  ;;  %v8432_v62 = vpop.permute.xlu1 %577 }
  0xa0   : > { %v576_v63 = vpop.permute.xlu0 %575  ;;  %v1132_v1 = vsel %vm1127_vm2, %v1115_v57, %v1131_v61  ;;  %v12213_v2 = vrot.slane %v8432_v62, 4 }
  0xa1   : > { %v587_v3 = vrot.slane %v576_v63, 4  ;;  %v7582_v4 = vcombine.high %v1128_v0, %v1132_v1  ;;  %v7581_v5 = vcombine.low %v1128_v0, %v1132_v1  ;;  %832 = vrot.lane.b32.xlu1 %v8256_v29, %s12259_s26 }
  0xa2   : > { %830 = vrot.lane.b32.xlu0 %v8246_v27, %s12259_s26 }
  0xa3   : > { %2038 = vmatprep.subr.bf16.mxu1 %v7582_v4  ;;  %v8441_v6 = vpop.permute.xlu1 %583  ;;  %v593_v8 = vsel %vm399_vm0, %v587_v3, %v12213_v2 }
  0xa4   : > { %2039 = vmatpush1.bf16.msra.mxu1 %v7581_v5  ;;  %v582_v7 = vpop.permute.xlu0 %581  ;;  %v12214_v11 = vrot.slane %v8441_v6, 4  ;;  %v595_v16 = vsel %vm12236_vm3, %v576_v63, %v593_v8  ;;  %v12251_v5 = vmov 0.0|0.0  }
  0xa5   : > { %v590_v14 = vrot.slane %v582_v7, 4  ;;  %2040 = vmatprep.subr.bf16.mxu1 %v8282_v31  ;;  %1180 = vrot.lane.b32.xlu1 %v8260_v30, %s12185_s27 }
  0xa6   : > { %1178 = vrot.lane.b32.xlu0 %v8248_v28, %s12185_s27 }
  0xa7   : > { %v598_v15 = vsel %vm399_vm0, %v590_v14, %v12214_v11  ;;  %v8457_v18 = vpop.permute.xlu1 %542 }
  0xa8   : > { %v599_v17 = vsel %vm12236_vm3, %v582_v7, %v598_v15  ;;  %v541_v19 = vpop.permute.xlu0 %540  ;;  %2041 = vmatpush1.bf16.msra.mxu1 %v8288_v32  ;;  %v12208_v20 = vrot.slane %v8457_v18, 4 }
  0xa9   : > { %v552_v21 = vrot.slane %v541_v19, 4  ;;  %v7514_v22 = vcombine.high %v595_v16, %v599_v17  ;;  %v7513_v38 = vcombine.low %v595_v16, %v599_v17  ;;  %1186 = vrot.lane.b32.xlu1 %v8256_v29, %s12185_s27 }
  0xaa   : > { %1184 = vrot.lane.b32.xlu0 %v8246_v27, %s12185_s27  ;;  %s12257_s27 = smov 105  }
  0xab   : > { %1977 = vmatprep.subr.bf16.mxu0 %v7514_v22  ;;  %v8465_v39 = vpop.permute.xlu1 %548  ;;  %v558_v43 = vsel %vm399_vm0, %v552_v21, %v12208_v20 }
  0xac   : > { %1978 = vmatpush1.bf16.msra.mxu0 %v7513_v38  ;;  %v547_v42 = vpop.permute.xlu0 %546  ;;  %v12209_v46 = vrot.slane %v8465_v39, 4  ;;  %v560_v51 = vsel %vm12243_vm4, %v541_v19, %v558_v43 }
  0xad   : > { %v555_v47 = vrot.slane %v547_v42, 4  ;;  %1145 = vrot.lane.b32.xlu1 %v8260_v30, %s12183_s25 }
  0xae   : > { %1143 = vrot.lane.b32.xlu0 %v8248_v28, %s12183_s25 }
  0xaf   : > { %v563_v50 = vsel %vm399_vm0, %v555_v47, %v12209_v46  ;;  %v8484_v54 = vpop.permute.xlu1 %1071 }
  0xb0   : > { %v564_v53 = vsel %vm12243_vm4, %v547_v42, %v563_v50  ;;  %v1070_v55 = vpop.permute.xlu0 %1069  ;;  %v12180_v57 = vrot.slane %v8484_v54, 4 }
  0xb1   : > { %v1081_v59 = vrot.slane %v1070_v55, 4  ;;  %v7510_v60 = vcombine.high %v560_v51, %v564_v53  ;;  %v7509_v61 = vcombine.low %v560_v51, %v564_v53  ;;  %1151 = vrot.lane.b32.xlu1 %v8256_v29, %s12183_s25 }
  0xb2   : > { %1149 = vrot.lane.b32.xlu0 %v8246_v27, %s12183_s25  ;;  %s12545_s25 = smov 106  }
  0xb3   : > { %1979 = vmatprep.subr.bf16.mxu0 %v7510_v60  ;;  %v8491_v63 = vpop.permute.xlu1 %1077  ;;  %v1087_v1 = vsel %vm399_vm0, %v1081_v59, %v12180_v57 }
  0xb4   : > { %1980 = vmatpush1.bf16.msra.mxu0 %v7509_v61  ;;  %v1076_v0 = vpop.permute.xlu0 %1075  ;;  %v12188_v3 = vrot.slane %v8491_v63, 4  ;;  %v1089_v8 = vsel %vm1088_vm6, %v1070_v55, %v1087_v1 }
  0xb5   : > { %v1084_v4 = vrot.slane %v1076_v0, 4  ;;  %1981 = vmatprep.subr.bf16.mxu0 %v8282_v31  ;;  %620 = vrot.lane.b32.xlu1 %v12251_v5, %s12181_s9 }
  0xb6   : > { %614 = vrot.lane.b32.xlu0 %v12251_v5, %s12181_s9  ;;  %s12537_s9 = smov 59  }
  0xb7   : > { %v1092_v7 = vsel %vm399_vm0, %v1084_v4, %v12188_v3  ;;  %v8507_v15 = vpop.permute.xlu1 %1036 }
  0xb8   : > { %v1093_v14 = vsel %vm1088_vm6, %v1076_v0, %v1092_v7  ;;  %v1035_v16 = vpop.permute.xlu0 %1034  ;;  %1982 = vmatpush1.bf16.msra.mxu0 %v8288_v32  ;;  %v12175_v17 = vrot.slane %v8507_v15, 4 }
  0xb9   : > { %v1046_v19 = vrot.slane %v1035_v16, 4  ;;  %v7574_v21 = vcombine.high %v1089_v8, %v1093_v14  ;;  %v7573_v22 = vcombine.low %v1089_v8, %v1093_v14  ;;  %787 = vrot.lane.b32.xlu1 %v8295_v33, %s12229_s29 }
  0xba   : > { %785 = vrot.lane.b32.xlu0 %v8298_v35, %s12229_s29 }
  0xbb   : > { %2042 = vmatprep.subr.bf16.mxu1 %v7574_v21  ;;  %v8515_v38 = vpop.permute.xlu1 %1042  ;;  %v1052_v43 = vsel %vm399_vm0, %v1046_v19, %v12175_v17 }
  0xbc   : > { %2043 = vmatpush1.bf16.msra.mxu1 %v7573_v22  ;;  %v1041_v42 = vpop.permute.xlu0 %1040  ;;  %v12176_v47 = vrot.slane %v8515_v38, 4  ;;  %v1054_v51 = vsel %vm1053_vm7, %v1035_v16, %v1052_v43 }
  0xbd   : > { %v1049_v49 = vrot.slane %v1041_v42, 4  ;;  %793 = vrot.lane.b32.xlu1 %v8305_v36, %s12229_s29 }
  0xbe   : > { %791 = vrot.lane.b32.xlu0 %v8308_v37, %s12229_s29 }
  0xbf   : > { %v1057_v50 = vsel %vm399_vm0, %v1049_v49, %v12176_v47  ;;  %v8530_v55 = vpop.permute.xlu1 %489 }
  0xc0   : > { %v1058_v53 = vsel %vm1053_vm7, %v1041_v42, %v1057_v50  ;;  %v488_v59 = vpop.permute.xlu0 %487  ;;  %v12203_v60 = vrot.slane %v8530_v55, 4 }
  0xc1   : > { %v499_v61 = vrot.slane %v488_v59, 4  ;;  %v7570_v0 = vcombine.high %v1054_v51, %v1058_v53  ;;  %v7569_v1 = vcombine.low %v1054_v51, %v1058_v53  ;;  %585 = vrot.lane.b32.xlu1 %v12251_v5, %s12171_s11 }
  0xc2   : > { %579 = vrot.lane.b32.xlu0 %v12251_v5, %s12171_s11  ;;  %s12225_s11 = smov 44  }
  0xc3   : > { %2044 = vmatprep.subr.bf16.mxu1 %v7570_v0  ;;  %v8537_v4 = vpop.permute.xlu1 %495  ;;  %v505_v8 = vsel %vm399_vm0, %v499_v61, %v12203_v60 }
  0xc4   : > { %2045 = vmatpush1.bf16.msra.mxu1 %v7569_v1  ;;  %v494_v7 = vpop.permute.xlu0 %493  ;;  %v12204_v14 = vrot.slane %v8537_v4, 4  ;;  %v507_v21 = vsel %vm506_vm8, %v488_v59, %v505_v8 }
  0xc5   : > { %v502_v16 = vrot.slane %v494_v7, 4  ;;  %752 = vrot.lane.b32.xlu1 %v8295_v33, %s12227_s30 }
  0xc6   : > { %750 = vrot.lane.b32.xlu0 %v8298_v35, %s12227_s30 }
  0xc7   : > { %v510_v19 = vsel %vm399_vm0, %v502_v16, %v12204_v14  ;;  %v8552_v42 = vpop.permute.xlu1 %1001 }
  0xc8   : > { %v511_v22 = vsel %vm506_vm8, %v494_v7, %v510_v19  ;;  %v1000_v43 = vpop.permute.xlu0 %999  ;;  %v12173_v49 = vrot.slane %v8552_v42, 4 }
  0xc9   : > { %v1011_v50 = vrot.slane %v1000_v43, 4  ;;  %v7502_v51 = vcombine.high %v507_v21, %v511_v22  ;;  %v7501_v53 = vcombine.low %v507_v21, %v511_v22  ;;  %758 = vrot.lane.b32.xlu1 %v8305_v36, %s12227_s30 }
  0xca   : > { %756 = vrot.lane.b32.xlu0 %v8308_v37, %s12227_s30 }
  0xcb   : > { %1983 = vmatprep.subr.bf16.mxu0 %v7502_v51  ;;  %v8559_v61 = vpop.permute.xlu1 %1007  ;;  %v1017_v0 = vsel %vm399_vm0, %v1011_v50, %v12173_v49 }
  0xcc   : > { %1984 = vmatpush1.bf16.msra.mxu0 %v7501_v53  ;;  %v1006_v59 = vpop.permute.xlu0 %1005  ;;  %v12174_v1 = vrot.slane %v8559_v61, 4  ;;  %v1019_v16 = vsel %vm12385_vm9, %v1000_v43, %v1017_v0 }
  0xcd   : > { %v1014_v7 = vrot.slane %v1006_v59, 4  ;;  %550 = vrot.lane.b32.xlu1 %v12251_v5, %s12177_s12 }
  0xce   : > { %544 = vrot.lane.b32.xlu0 %v12251_v5, %s12177_s12  ;;  %s12232_s12 = smov 46  }
  0xcf   : > { %v1022_v8 = vsel %vm399_vm0, %v1014_v7, %v12174_v1  ;;  %v8574_v21 = vpop.permute.xlu1 %454 }
  0xd0   : > { %v1023_v19 = vsel %vm12385_vm9, %v1006_v59, %v1022_v8  ;;  %v453_v22 = vpop.permute.xlu0 %452  ;;  %v12198_v50 = vrot.slane %v8574_v21, 4 }
  0xd1   : > { %v464_v51 = vrot.slane %v453_v22, 4  ;;  %v7566_v53 = vcombine.high %v1019_v16, %v1023_v19  ;;  %v7565_v34 = vcombine.low %v1019_v16, %v1023_v19  ;;  %717 = vrot.lane.b32.xlu1 %v8295_v33, %s12225_s11 }
  0xd2   : > { %715 = vrot.lane.b32.xlu0 %v8298_v35, %s12225_s11 }
  0xd3   : > { %2046 = vmatprep.subr.bf16.mxu1 %v7566_v53  ;;  %v8581_v7 = vpop.permute.xlu1 %460  ;;  %v470_v59 = vsel %vm399_vm0, %v464_v51, %v12198_v50 }
  0xd4   : > { %2047 = vmatpush1.bf16.msra.mxu1 %v7565_v34  ;;  %v459_v43 = vpop.permute.xlu0 %458  ;;  %v12199_v0 = vrot.slane %v8581_v7, 4  ;;  %v472_v34 = vsel %vm471_vm10, %v453_v22, %v470_v59  ;;  %v12552_v9 = vrot.slane %v8581_v7, 4 }
  0xd5   : > { %v467_v8 = vrot.slane %v459_v43, 4  ;;  %723 = vrot.lane.b32.xlu1 %v8305_v36, %s12225_s11 }
  0xd6   : > { %721 = vrot.lane.b32.xlu0 %v8308_v37, %s12225_s11 }
  0xd7   : > { %v475_v16 = vsel %vm399_vm0, %v467_v8, %v12199_v0  ;;  %v8596_v53 = vpop.permute.xlu1 %966 }
  0xd8   : > { %v476_v19 = vsel %vm471_vm10, %v459_v43, %v475_v16  ;;  %v965_v51 = vpop.permute.xlu0 %964  ;;  %v12179_v49 = vrot.slane %v8596_v53, 4 }
  0xd9   : > { %v976_v1 = vrot.slane %v965_v51, 4  ;;  %v7498_v17 = vcombine.high %v472_v34, %v476_v19  ;;  %v7497_v47 = vcombine.low %v472_v34, %v476_v19  ;;  %682 = vrot.lane.b32.xlu1 %v8295_v33, %s12232_s12  ;;  %v8615_v33 = vpack.c.bf16 %v8238_v24, %v8238_v24 }
  0xda   : > { %680 = vrot.lane.b32.xlu0 %v8298_v35, %s12232_s12  ;;  %v8619_v35 = vpack.c.bf16 %v8244_v26, %v8244_v26 }
  0xdb   : > { %1985 = vmatprep.subr.bf16.mxu0 %v7498_v17  ;;  %v8603_v8 = vpop.permute.xlu1 %972  ;;  %v982_v43 = vsel %vm399_vm0, %v976_v1, %v12179_v49 }
  0xdc   : > { %1986 = vmatpush1.bf16.msra.mxu0 %v7497_v47  ;;  %v971_v22 = vpop.permute.xlu0 %970  ;;  %v12187_v59 = vrot.slane %v8603_v8, 4  ;;  %v984_v47 = vsel %vm12215_vm11, %v965_v51, %v982_v43 }
  0xdd   : > { %v979_v16 = vrot.slane %v971_v22, 4  ;;  %688 = vrot.lane.b32.xlu1 %v8305_v36, %s12232_s12 }
  0xde   : > { %686 = vrot.lane.b32.xlu0 %v8308_v37, %s12232_s12 }
  0xdf   : > { %v987_v17 = vsel %vm399_vm0, %v979_v16, %v12187_v59  ;;  %v8626_v36 = vpop.permute.xlu1 %419 }
  0xe0   : > { %v988_v1 = vsel %vm12215_vm11, %v971_v22, %v987_v17  ;;  %v418_v34 = vpop.permute.xlu0 %417  ;;  %v12189_v37 = vrot.slane %v8626_v36, 4  ;;  %v8638_v22 = vld [vmem:[%s12536_s2 + $0x4] ss:$16 sps:$4 sm:$0xff]   ;;  %vm12219_vm11 = vcmask 506880  }
  0xe1   : > { %v429_v19 = vrot.slane %v418_v34, 4  ;;  %v7562_v49 = vcombine.high %v984_v47, %v988_v1  ;;  %v7561_v57 = vcombine.low %v984_v47, %v988_v1  ;;  %497 = vrot.lane.b32.xlu1 %v8615_v33, %s12290_s15  ;;  %2007 = vmatprep.mubr.bf16.mxu0 %v8638_v22 }
  0xe2   : > { %491 = vrot.lane.b32.xlu0 %v8619_v35, %s12290_s15 }
  0xe3   : > { %2048 = vmatprep.subr.bf16.mxu1 %v7562_v49  ;;  %v8633_v16 = vpop.permute.xlu1 %425  ;;  %v435_v43 = vsel %vm399_vm0, %v429_v19, %v12189_v37 }
  0xe4   : > { %2049 = vmatpush1.bf16.msra.mxu1 %v7561_v57  ;;  %v424_v51 = vpop.permute.xlu0 %423  ;;  %v12194_v17 = vrot.slane %v8633_v16, 4  ;;  %v437_v49 = vsel %vm436_vm12, %v418_v34, %v435_v43 }
  0xe5   : > { %v432_v47 = vrot.slane %v424_v51, 4  ;;  %647 = vrot.lane.b32.xlu1 %v8260_v30, %s12257_s27 }
  0xe6   : > { %645 = vrot.lane.b32.xlu0 %v8248_v28, %s12257_s27 }
  0xe7   : > { %v440_v57 = vsel %vm399_vm0, %v432_v47, %v12194_v17  ;;  %v8654_v19 = vpop.permute.xlu1 %931 }
  0xe8   : > { %v441_v1 = vsel %vm436_vm12, %v424_v51, %v440_v57  ;;  %v930_v59 = vpop.permute.xlu0 %929  ;;  %v12191_v3 = vrot.slane %v8654_v19, 4 }
  0xe9   : > { %v941_v37 = vrot.slane %v930_v59, 4  ;;  %v7494_v30 = vcombine.high %v437_v49, %v441_v1  ;;  %v7493_v52 = vcombine.low %v437_v49, %v441_v1  ;;  %653 = vrot.lane.b32.xlu1 %v8256_v29, %s12257_s27 }
  0xea   : > { %651 = vrot.lane.b32.xlu0 %v8246_v27, %s12257_s27 }
  0xeb   : > { %1987 = vmatprep.subr.bf16.mxu0 %v7494_v30  ;;  %v8661_v28 = vpop.permute.xlu1 %937  ;;  %v947_v51 = vsel %vm399_vm0, %v941_v37, %v12191_v3 }
  0xec   : > { %1988 = vmatpush1.bf16.msra.mxu0 %v7493_v52  ;;  %v936_v34 = vpop.permute.xlu0 %935  ;;  %v12192_v43 = vrot.slane %v8661_v28, 4  ;;  %v949_v29 = vsel %vm12205_vm13, %v930_v59, %v947_v51 }
  0xed   : > { %v944_v47 = vrot.slane %v936_v34, 4  ;;  %462 = vrot.lane.b32.xlu1 %v8615_v33, %s12277_s17 }
  0xee   : > { %456 = vrot.lane.b32.xlu0 %v8619_v35, %s12277_s17 }
  0xef   : > { %v952_v27 = vsel %vm399_vm0, %v944_v47, %v12192_v43  ;;  %v8676_v57 = vpop.permute.xlu1 %383 }
  0xf0   : > { %v953_v52 = vsel %vm12205_vm13, %v936_v34, %v952_v27  ;;  %v382_v37 = vpop.permute.xlu0 %381  ;;  %v12193_v49 = vrot.slane %v8676_v57, 4  ;;  %vm12210_vm13 = vcmask 482304  }
  0xf1   : > { %v393_v1 = vrot.slane %v382_v37, 4  ;;  %v7558_v30 = vcombine.high %v949_v29, %v953_v52  ;;  %v7557_v3 = vcombine.low %v949_v29, %v953_v52  ;;  %1118 = vrot.lane.b32.xlu1 %v12251_v5, %s12273_s10 }
  0xf2   : > { %1112 = vrot.lane.b32.xlu0 %v12251_v5, %s12273_s10 }
  0xf3   : > { %2050 = vmatprep.subr.bf16.mxu1 %v7558_v30  ;;  %v8683_v47 = vpop.permute.xlu1 %389  ;;  %v400_v34 = vsel %vm399_vm0, %v393_v1, %v12193_v49 }
  0xf4   : > { %2051 = vmatpush1.bf16.msra.mxu1 %v7557_v3  ;;  %v388_v59 = vpop.permute.xlu0 %387  ;;  %v12197_v51 = vrot.slane %v8683_v47, 4  ;;  %v402_v3 = vsel %vm401_vm14, %v382_v37, %v400_v34 }
  0xf5   : > { %v396_v27 = vrot.slane %v388_v59, 4  ;;  %427 = vrot.lane.b32.xlu1 %v8615_v33, %s12269_s19 }
  0xf6   : > { %421 = vrot.lane.b32.xlu0 %v8619_v35, %s12269_s19 }
  0xf7   : > { %v405_v29 = vsel %vm399_vm0, %v396_v27, %v12197_v51  ;;  %v8698_v30 = vpop.permute.xlu1 %896 }
  0xf8   : > { %v406_v52 = vsel %vm401_vm14, %v388_v59, %v405_v29  ;;  %v895_v1 = vpop.permute.xlu0 %894  ;;  %v12196_v43 = vrot.slane %v8698_v30, 4 }
  0xf9   : > { %v906_v49 = vrot.slane %v895_v1, 4  ;;  %v7490_v17 = vcombine.high %v402_v3, %v406_v52  ;;  %v7489_v58 = vcombine.low %v402_v3, %v406_v52  ;;  %391 = vrot.lane.b32.xlu1 %v8615_v33, %s12267_s21 }
  0xfa   : > { %385 = vrot.lane.b32.xlu0 %v8619_v35, %s12267_s21 }
  0xfb   : > { %1989 = vmatprep.subr.bf16.mxu0 %v7490_v17  ;;  %v8705_v27 = vpop.permute.xlu1 %902  ;;  %v912_v59 = vsel %vm399_vm0, %v906_v49, %v12196_v43 }
  0xfc   : > { %1990 = vmatpush1.bf16.msra.mxu0 %v7489_v58  ;;  %v901_v37 = vpop.permute.xlu0 %900  ;;  %v12201_v34 = vrot.slane %v8705_v27, 4  ;;  %v914_v58 = vsel %vm12200_vm15, %v895_v1, %v912_v59 }
  0xfd   : > { %v909_v29 = vrot.slane %v901_v37, 4  ;;  %1079 = vrot.lane.b32.xlu1 %v8615_v33, %s12281_s13 }
  0xfe   : > { %1073 = vrot.lane.b32.xlu0 %v8619_v35, %s12281_s13 }
  0xff   : > { %v917_v17 = vsel %vm399_vm0, %v909_v29, %v12201_v34  ;;  %v8720_v52 = vpop.permute.xlu1 %861 }
 0x100   : > { %v918_v3 = vsel %vm12200_vm15, %v901_v37, %v917_v17  ;;  %v860_v49 = vpop.permute.xlu0 %859  ;;  %v12202_v43 = vrot.slane %v8720_v52, 4  ;;  %vm12266_vm15 = vcmask 703488  }
 0x101   : > { %v871_v51 = vrot.slane %v860_v49, 4  ;;  %v7554_v50 = vcombine.high %v914_v58, %v918_v3  ;;  %v7553_v0 = vcombine.low %v914_v58, %v918_v3  ;;  %869 = vrot.lane.b32.xlu1 %v12251_v5, %s12261_s23 }
 0x102   : > { %863 = vrot.lane.b32.xlu0 %v12251_v5, %s12261_s23 }
 0x103   : > { %2052 = vmatprep.subr.bf16.mxu1 %v7554_v50  ;;  %v8727_v29 = vpop.permute.xlu1 %867  ;;  %v877_v37 = vsel %vm399_vm0, %v871_v51, %v12202_v43 }
 0x104   : > { %2053 = vmatpush1.bf16.msra.mxu1 %v7553_v0  ;;  %v866_v1 = vpop.permute.xlu0 %865  ;;  %v12207_v59 = vrot.slane %v8727_v29, 4  ;;  %v879_v0 = vsel %vm12266_vm15, %v860_v49, %v877_v37 }
 0x105   : > { %v874_v17 = vrot.slane %v866_v1, 4  ;;  %1044 = vrot.lane.b32.xlu1 %v8615_v33, %s12279_s14 }
 0x106   : > { %1038 = vrot.lane.b32.xlu0 %v8619_v35, %s12279_s14 }
 0x107   : > { %v882_v50 = vsel %vm399_vm0, %v874_v17, %v12207_v59  ;;  %v8742_v3 = vpop.permute.xlu1 %1215 }
 0x108   : > { %v883_v58 = vsel %vm12266_vm15, %v866_v1, %v882_v50  ;;  %v1214_v51 = vpop.permute.xlu0 %1213  ;;  %v12206_v34 = vrot.slane %v8742_v3, 4 }
 0x109   : > { %v1225_v43 = vrot.slane %v1214_v51, 4  ;;  %v7550_v60 = vcombine.high %v879_v0, %v883_v58  ;;  %v7549_v14 = vcombine.low %v879_v0, %v883_v58  ;;  %834 = vrot.lane.b32.xlu1 %v12251_v5, %s12259_s26 }
 0x10a   : > { %828 = vrot.lane.b32.xlu0 %v12251_v5, %s12259_s26 }
 0x10b   : > { %1991 = vmatprep.subr.bf16.mxu0 %v7550_v60  ;;  %v8749_v17 = vpop.permute.xlu1 %1221  ;;  %v1231_v1 = vsel %vm399_vm0, %v1225_v43, %v12206_v34 }
 0x10c   : > { %1992 = vmatpush2.bf16.msra.mxu0 %v7549_v14  ;;  %v1220_v49 = vpop.permute.xlu0 %1219  ;;  %v12211_v37 = vrot.slane %v8749_v17, 4  ;;  %v1233_v14 = vsel %vm12210_vm13, %v1214_v51, %v1231_v1 }
 0x10d   : > { %v1228_v50 = vrot.slane %v1220_v49, 4  ;;  %1009 = vrot.lane.b32.xlu1 %v8615_v33, %s12294_s16 }
 0x10e   : > { %1003 = vrot.lane.b32.xlu0 %v8619_v35, %s12294_s16 }
 0x10f   : > { %v1236_v60 = vsel %vm399_vm0, %v1228_v50, %v12211_v37  ;;  %v8764_v58 = vpop.permute.xlu1 %826 }
 0x110   : > { %v1237_v0 = vsel %vm12210_vm13, %v1220_v49, %v1236_v60  ;;  %v825_v43 = vpop.permute.xlu0 %824  ;;  %v12212_v34 = vrot.slane %v8764_v58, 4  ;;  %vm12265_vm13 = vcmask 1031168  }
 0x111   : > { %v836_v59 = vrot.slane %v825_v43, 4  ;;  %v7594_v20 = vcombine.high %v1233_v14, %v1237_v0  ;;  %v7593_v46 = vcombine.low %v1233_v14, %v1237_v0  ;;  %974 = vrot.lane.b32.xlu1 %v8615_v33, %s12275_s18 }
 0x112   : > { %968 = vrot.lane.b32.xlu0 %v8619_v35, %s12275_s18 }
 0x113   : > { %2064 = vmatprep.subr.bf16.mxu1 %v7594_v20  ;;  %v8771_v50 = vpop.permute.xlu1 %832  ;;  %v842_v49 = vsel %vm399_vm0, %v836_v59, %v12212_v34 }
 0x114   : > { %2065 = vmatpush2.bf16.msra.mxu1 %v7593_v46  ;;  %v831_v51 = vpop.permute.xlu0 %830  ;;  %v12217_v1 = vrot.slane %v8771_v50, 4  ;;  %v844_v46 = vsel %vm12265_vm13, %v825_v43, %v842_v49 }
 0x115   : > { %v839_v60 = vrot.slane %v831_v51, 4  ;;  %795 = vrot.lane.b32.xlu1 %v8615_v33, %s12229_s29 }
 0x116   : > { %789 = vrot.lane.b32.xlu0 %v8619_v35, %s12229_s29  ;;  %s12546_s29 = smov 107  }
 0x117   : > { %v847_v20 = vsel %vm399_vm0, %v839_v60, %v12217_v1  ;;  %v8786_v0 = vpop.permute.xlu1 %1180 }
 0x118   : > { %v848_v14 = vsel %vm12265_vm13, %v831_v51, %v847_v20  ;;  %v1179_v59 = vpop.permute.xlu0 %1178  ;;  %v12216_v37 = vrot.slane %v8786_v0, 4 }
 0x119   : > { %v1190_v34 = vrot.slane %v1179_v59, 4  ;;  %v7546_v2 = vcombine.high %v844_v46, %v848_v14  ;;  %v7545_v11 = vcombine.low %v844_v46, %v848_v14  ;;  %939 = vrot.lane.b32.xlu1 %v12251_v5, %s12271_s20 }
 0x11a   : > { %933 = vrot.lane.b32.xlu0 %v12251_v5, %s12271_s20 }
 0x11b   : > { %1993 = vmatprep.subr.bf16.mxu0 %v7546_v2  ;;  %v8793_v60 = vpop.permute.xlu1 %1186  ;;  %v1196_v51 = vsel %vm399_vm0, %v1190_v34, %v12216_v37 }
 0x11c   : > { %1994 = vmatpush2.bf16.msra.mxu0 %v7545_v11  ;;  %v1185_v43 = vpop.permute.xlu0 %1184  ;;  %v12221_v49 = vrot.slane %v8793_v60, 4  ;;  %v1198_v11 = vsel %vm12219_vm11, %v1179_v59, %v1196_v51 }
 0x11d   : > { %v1193_v20 = vrot.slane %v1185_v43, 4  ;;  %1995 = vmatprep.subr.bf16.mxu0 %v8282_v31  ;;  %760 = vrot.lane.b32.xlu1 %v8615_v33, %s12227_s30 }
 0x11e   : > { %754 = vrot.lane.b32.xlu0 %v8619_v35, %s12227_s30  ;;  %s12549_s30 = smov 127  }
 0x11f   : > { %v1201_v2 = vsel %vm399_vm0, %v1193_v20, %v12221_v49  ;;  %v8809_v34 = vpop.permute.xlu1 %1145 }
 0x120   : > { %v1202_v46 = vsel %vm12219_vm11, %v1185_v43, %v1201_v2  ;;  %v1144_v14 = vpop.permute.xlu0 %1143  ;;  %1996 = vmatpush2.bf16.msra.mxu0 %v8288_v32  ;;  %v12220_v31 = vrot.slane %v8809_v34, 4  ;;  %vm12244_vm11 = vcmask 531456  }
 0x121   : > { %v1155_v37 = vrot.slane %v1144_v14, 4  ;;  %v7590_v1 = vcombine.high %v1198_v11, %v1202_v46  ;;  %v7589_v45 = vcombine.low %v1198_v11, %v1202_v46  ;;  %904 = vrot.lane.b32.xlu1 %v12251_v5, %s12263_s22 }
 0x122   : > { %898 = vrot.lane.b32.xlu0 %v12251_v5, %s12263_s22 }
 0x123   : > { %2066 = vmatprep.subr.bf16.mxu1 %v7590_v1  ;;  %v8817_v59 = vpop.permute.xlu1 %1151  ;;  %v1161_v32 = vsel %vm399_vm0, %v1155_v37, %v12220_v31 }
 0x124   : > { %2067 = vmatpush2.bf16.msra.mxu1 %v7589_v45  ;;  %v1150_v43 = vpop.permute.xlu0 %1149  ;;  %v12234_v51 = vrot.slane %v8817_v59, 4  ;;  %v1163_v45 = vsel %vm12244_vm11, %v1144_v14, %v1161_v32  ;;  %v12539_v14 = vrot.slane %v8396_v41, 4  ;;  %v8845_v32 = vld [vmem:[%s12536_s2 + $0x8] ss:$16 sps:$4 sm:$0xff]  }
 0x125   : > { %v1158_v20 = vrot.slane %v1150_v43, 4  ;;  %725 = vrot.lane.b32.xlu1 %v8615_v33, %s12225_s11 }
 0x126   : > { %719 = vrot.lane.b32.xlu0 %v8619_v35, %s12225_s11  ;;  %s12540_s11 = smov 62  }
 0x127   : > { %v1166_v1 = vsel %vm399_vm0, %v1158_v20, %v12234_v51  ;;  %v621_v11 = vpop.permute.xlu1 %620 }
 0x128   : > { %v1167_v2 = vsel %vm12244_vm11, %v1150_v43, %v1166_v1  ;;  %v615_v46 = vpop.permute.xlu0 %614  ;;  %v627_v37 = vrot.slane %v621_v11, 4  ;;  %vm12250_vm11 = vcmask 375808  }
 0x129   : > { %v624_v31 = vrot.slane %v615_v46, 4  ;;  %v7586_v49 = vcombine.high %v1163_v45, %v1167_v2  ;;  %v7585_v44 = vcombine.low %v1163_v45, %v1167_v2  ;;  %1223 = vrot.lane.b32.xlu1 %v12251_v5, %s12537_s9 }
 0x12a   : > { %1217 = vrot.lane.b32.xlu0 %v12251_v5, %s12537_s9  ;;  %v635_v20 = vsel %vm399_vm0, %v12538_v13, %v627_v37 }
 0x12b   : > { %v631_v43 = vsel %vm399_vm0, %v12539_v14, %v624_v31  ;;  %2068 = vmatprep.subr.bf16.mxu1 %v7586_v49  ;;  %v8847_v1 = vpop.permute.xlu1 %787  ;;  %v636_v13 = vsel %vm12231_vm1, %v8394_v40, %v635_v20  ;;  %v8856_v31 = vld [vmem:[%s12536_s2 + $0x2c] ss:$16 sps:$4 sm:$0xff]   ;;  %v8882_v14 = vld [vmem:[%s12536_s2 + $0x28] ss:$16 sps:$4 sm:$0xff]  }
 0x12c   : > { %2069 = vmatpush2.bf16.msra.mxu1 %v7585_v44  ;;  %v786_v45 = vpop.permute.xlu0 %785  ;;  %v632_v2 = vsel %vm12231_vm1, %v8396_v41, %v631_v43  ;;  %v12235_v49 = vrot.slane %v8847_v1, 4  ;;  %vm804_vm1 = vcmask 15360  }
 0x12d   : > { %v797_v11 = vrot.slane %v786_v45, 4  ;;  %v7519_v46 = vcombine.low %v632_v2, %v636_v13  ;;  %v7520_v37 = vcombine.high %v632_v2, %v636_v13  ;;  %690 = vrot.lane.b32.xlu1 %v8615_v33, %s12232_s12 }
 0x12e   : > { %684 = vrot.lane.b32.xlu0 %v8619_v35, %s12232_s12  ;;  %s12543_s12 = smov 65  }
 0x12f   : > { %2101 = vmatprep.subr.bf16.mxu1 %v7520_v37  ;;  %2071 = vmatmul.mubr.bf16.vlgmr.msra.gmra.mxu1 %v8845_v32  ;;  %v8864_v40 = vpop.permute.xlu1 %793  ;;  %v803_v44 = vsel %vm399_vm0, %v797_v11, %v12235_v49 }
 0x130   : > { %2102 = vmatpush1.bf16.msra.mxu1 %v7519_v46  ;;  %v792_v41 = vpop.permute.xlu0 %791  ;;  %7598 = vmatprep.mubr.msk.bf16.mxu1 %vm1965_vm5, %v8856_v31  ;;  %v12238_v33 = vrot.slane %v8864_v40, 4  ;;  %v805_v43 = vsel %vm804_vm1, %v786_v45, %v803_v44  ;;  %v8889_v46 = vld [vmem:[%s12536_s2 + $0x4c] ss:$16 sps:$4 sm:$0xff]   ;;  %v12541_v45 = vrot.slane %v8441_v6, 4  ;;  %v12542_v44 = vrot.slane %v8432_v62, 4 }
 0x131   : > { %v800_v20 = vrot.slane %v792_v41, 4  ;;  %1188 = vrot.lane.b32.xlu1 %v12251_v5, %s12540_s11 }
 0x132   : > { %1182 = vrot.lane.b32.xlu0 %v12251_v5, %s12540_s11 }
 0x133   : > { %v808_v35 = vsel %vm399_vm0, %v800_v20, %v12238_v33  ;;  %v586_v13 = vpop.permute.xlu1 %585 }
 0x134   : > { %v809_v2 = vsel %vm804_vm1, %v792_v41, %v808_v35  ;;  %v580_v11 = vpop.permute.xlu0 %579  ;;  %v592_v37 = vrot.slane %v586_v13, 4 }
 0x135   : > { %v589_v51 = vrot.slane %v580_v11, 4  ;;  %v7538_v49 = vcombine.high %v805_v43, %v809_v2  ;;  %v7537_v20 = vcombine.low %v805_v43, %v809_v2  ;;  %655 = vrot.lane.b32.xlu1 %v12251_v5, %s12257_s27 }
 0x136   : > { %649 = vrot.lane.b32.xlu0 %v12251_v5, %s12257_s27  ;;  %v600_v41 = vsel %vm399_vm0, %v12541_v45, %v592_v37  ;;  %s12614_s27 = smov 42  }
 0x137   : > { %v596_v35 = vsel %vm399_vm0, %v12542_v44, %v589_v51  ;;  %1997 = vmatprep.subr.bf16.mxu0 %v7538_v49  ;;  %2081 = vmatmul.mubr.bf16.gmra.mxu1 %v8882_v14  ;;  %v8902_v13 = vpop.permute.xlu1 %752  ;;  %v601_v11 = vsel %vm12236_vm3, %v8441_v6, %v600_v41 }
 0x138   : > { %1998 = vmatpush2.bf16.msra.mxu0 %v7537_v20  ;;  %v751_v43 = vpop.permute.xlu0 %750  ;;  %v597_v2 = vsel %vm12236_vm3, %v8432_v62, %v596_v35  ;;  %7599 = vmatprep.mubr.msk.bf16.mxu1 %vm1965_vm5, %v8889_v46  ;;  %v12237_v37 = vrot.slane %v8902_v13, 4  ;;  %v8918_v62 = vld [vmem:[%s12536_s2 + $0x48] ss:$16 sps:$4 sm:$0xff]   ;;  %vm769_vm3 = vcmask 343040  }
 0x139   : > { %v762_v45 = vrot.slane %v751_v43, 4  ;;  %v7515_v51 = vcombine.low %v597_v2, %v601_v11  ;;  %v7516_v49 = vcombine.high %v597_v2, %v601_v11  ;;  %1153 = vrot.lane.b32.xlu1 %v12251_v5, %s12543_s12  ;;  %12544 = vst [vmem:[#allocation13_spill] sm:$0xff] %v8918_v62 }
 0x13a   : > { %1147 = vrot.lane.b32.xlu0 %v12251_v5, %s12543_s12 }
 0x13b   : > { %2103 = vmatprep.subr.bf16.mxu1 %v7516_v49  ;;  %v8920_v6 = vpop.permute.xlu1 %758  ;;  %v768_v41 = vsel %vm399_vm0, %v762_v45, %v12237_v37 }
 0x13c   : > { %2104 = vmatpush1.bf16.msra.mxu1 %v7515_v51  ;;  %v757_v20 = vpop.permute.xlu0 %756  ;;  %v12248_v44 = vrot.slane %v8920_v6, 4  ;;  %v770_v11 = vsel %vm769_vm3, %v751_v43, %v768_v41 }
 0x13d   : > { %v765_v35 = vrot.slane %v757_v20, 4  ;;  %2916 = vrot.lane.b32.xlu1 %v12251_v5, %s12545_s25 }
 0x13e   : > { %2910 = vrot.lane.b32.xlu0 %v12251_v5, %s12545_s25 }
 0x13f   : > { %v773_v2 = vsel %vm399_vm0, %v765_v35, %v12248_v44  ;;  %2091 = vmatmul.mubr.bf16.gmra.mxu1 %v8918_v62  ;;  %v551_v45 = vpop.permute.xlu1 %550  ;;  %v12547_v35 = vrot.slane %v8465_v39, 4  ;;  %v12550_v44 = vrot.slane %v8537_v4, 4 }
 0x140   : > { %v774_v51 = vsel %vm769_vm3, %v757_v20, %v773_v2  ;;  %v545_v49 = vpop.permute.xlu0 %544  ;;  %2133 = vmatprep.mubr.bf16.mxu1 %v8638_v22  ;;  %v557_v37 = vrot.slane %v551_v45, 4  ;;  %v12548_v20 = vrot.slane %v8457_v18, 4  ;;  %v8955_v45 = vpack.c.bf16 %v8238_v24, %v8244_v26 }
 0x141   : > { %v554_v33 = vrot.slane %v545_v49, 4  ;;  %v7534_v12 = vcombine.high %v770_v11, %v774_v51  ;;  %v7533_v10 = vcombine.low %v770_v11, %v774_v51  ;;  %2882 = vrot.lane.b32.xlu1 %v12251_v5, %s12546_s29  ;;  %v8966_v24 = vpack.c.bf16 %v8235_v23, %v8241_v25 }
 0x142   : > { %2876 = vrot.lane.b32.xlu0 %v12251_v5, %s12546_s29  ;;  %v565_v43 = vsel %vm399_vm0, %v12547_v35, %v557_v37 }
 0x143   : > { %v561_v41 = vsel %vm399_vm0, %v12548_v20, %v554_v33  ;;  %1999 = vmatprep.subr.bf16.mxu0 %v7534_v12  ;;  %v8947_v22 = vpop.permute.xlu1 %717  ;;  %v566_v51 = vsel %vm12243_vm4, %v8465_v39, %v565_v43 }
 0x144   : > { %2000 = vmatpush2.bf16.msra.mxu0 %v7533_v10  ;;  %v716_v2 = vpop.permute.xlu0 %715  ;;  %v562_v11 = vsel %vm12243_vm4, %v8457_v18, %v561_v41  ;;  %v12246_v37 = vrot.slane %v8947_v22, 4  ;;  %vm734_vm4 = vcmask 359424  }
 0x145   : > { %v727_v49 = vrot.slane %v716_v2, 4  ;;  %v7511_v35 = vcombine.low %v562_v11, %v566_v51  ;;  %v7512_v33 = vcombine.high %v562_v11, %v566_v51  ;;  %2848 = vrot.lane.b32.xlu1 %v12251_v5, %s12549_s30 }
 0x146   : > { %2842 = vrot.lane.b32.xlu0 %v12251_v5, %s12549_s30 }
 0x147   : > { %2105 = vmatprep.subr.bf16.mxu1 %v7512_v33  ;;  %v8962_v10 = vpop.permute.xlu1 %723  ;;  %v733_v26 = vsel %vm399_vm0, %v727_v49, %v12246_v37 }
 0x148   : > { %2106 = vmatpush1.bf16.msra.mxu1 %v7511_v35  ;;  %v722_v12 = vpop.permute.xlu0 %721  ;;  %v12247_v18 = vrot.slane %v8962_v10, 4  ;;  %v735_v25 = vsel %vm734_vm4, %v716_v2, %v733_v26 }
 0x149   : > { %v730_v39 = vrot.slane %v722_v12, 4  ;;  %2107 = vmatprep.subr.bf16.mxu1 %v8955_v45  ;;  %3400 = vrot.lane.b32.xlu1 %v12251_v5, %s12273_s10 }
 0x14a   : > { %3394 = vrot.lane.b32.xlu0 %v12251_v5, %s12273_s10 }
 0x14b   : > { %v738_v23 = vsel %vm399_vm0, %v730_v39, %v12247_v18  ;;  %v8982_v20 = vpop.permute.xlu1 %682 }
 0x14c   : > { %v739_v43 = vsel %vm734_vm4, %v722_v12, %v738_v23  ;;  %v681_v41 = vpop.permute.xlu0 %680  ;;  %2108 = vmatpush1.bf16.msra.mxu1 %v8966_v24  ;;  %v12245_v11 = vrot.slane %v8982_v20, 4 }
 0x14d   : > { %v692_v51 = vrot.slane %v681_v41, 4  ;;  %v7530_v49 = vcombine.high %v735_v25, %v739_v43  ;;  %v7529_v35 = vcombine.low %v735_v25, %v739_v43  ;;  %3158 = vrot.lane.b32.xlu1 %v12251_v5, %s12261_s23 }
 0x14e   : > { %3152 = vrot.lane.b32.xlu0 %v12251_v5, %s12261_s23  ;;  %s12617_s23 = smov 46  }
 0x14f   : > { %2001 = vmatprep.subr.bf16.mxu0 %v7530_v49  ;;  %v8990_v2 = vpop.permute.xlu1 %688  ;;  %v698_v12 = vsel %vm399_vm0, %v692_v51, %v12245_v11 }
 0x150   : > { %2002 = vmatpush2.bf16.msra.mxu0 %v7529_v35  ;;  %v687_v33 = vpop.permute.xlu0 %686  ;;  %v12249_v26 = vrot.slane %v8990_v2, 4  ;;  %v700_v25 = vsel %vm12250_vm11, %v681_v41, %v698_v12  ;;  %v12551_v41 = vrot.slane %v8530_v55, 4 }
 0x151   : > { %v695_v39 = vrot.slane %v687_v33, 4  ;;  %3124 = vrot.lane.b32.xlu1 %v12251_v5, %s12259_s26 }
 0x152   : > { %3118 = vrot.lane.b32.xlu0 %v12251_v5, %s12259_s26  ;;  %s12613_s26 = smov 2  }
 0x153   : > { %v703_v23 = vsel %vm399_vm0, %v695_v39, %v12249_v26  ;;  %v498_v49 = vpop.permute.xlu1 %497 }
 0x154   : > { %v704_v43 = vsel %vm12250_vm11, %v687_v33, %v703_v23  ;;  %v492_v35 = vpop.permute.xlu0 %491  ;;  %v504_v51 = vrot.slane %v498_v49, 4  ;;  %vm664_vm11 = vcmask 859136  }
 0x155   : > { %v501_v11 = vrot.slane %v492_v35, 4  ;;  %v7526_v37 = vcombine.high %v700_v25, %v704_v43  ;;  %v7525_v18 = vcombine.low %v700_v25, %v704_v43  ;;  %3226 = vrot.lane.b32.xlu1 %v12251_v5, %s12271_s20 }
 0x156   : > { %3220 = vrot.lane.b32.xlu0 %v12251_v5, %s12271_s20  ;;  %v512_v39 = vsel %vm399_vm0, %v12550_v44, %v504_v51 }
 0x157   : > { %v508_v33 = vsel %vm399_vm0, %v12551_v41, %v501_v11  ;;  %2003 = vmatprep.subr.bf16.mxu0 %v7526_v37  ;;  %v9015_v12 = vpop.permute.xlu1 %647  ;;  %v513_v43 = vsel %vm506_vm8, %v8537_v4, %v512_v39 }
 0x158   : > { %2004 = vmatpush2.bf16.msra.mxu0 %v7525_v18  ;;  %v646_v23 = vpop.permute.xlu0 %645  ;;  %v509_v25 = vsel %vm506_vm8, %v8530_v55, %v508_v33  ;;  %v12255_v49 = vrot.slane %v9015_v12, 4 }
 0x159   : > { %v657_v35 = vrot.slane %v646_v23, 4  ;;  %v7503_v26 = vcombine.low %v509_v25, %v513_v43  ;;  %v7504_v44 = vcombine.high %v509_v25, %v513_v43  ;;  %3192 = vrot.lane.b32.xlu1 %v12251_v5, %s12263_s22 }
 0x15a   : > { %3186 = vrot.lane.b32.xlu0 %v12251_v5, %s12263_s22  ;;  %s12616_s22 = smov 44  }
 0x15b   : > { %2109 = vmatprep.subr.bf16.mxu1 %v7504_v44  ;;  %v9026_v37 = vpop.permute.xlu1 %653  ;;  %v663_v55 = vsel %vm399_vm0, %v657_v35, %v12255_v49  ;;  %v12553_v49 = vrot.slane %v8574_v21, 4 }
 0x15c   : > { %2110 = vmatpush1.bf16.msra.mxu1 %v7503_v26  ;;  %v652_v18 = vpop.permute.xlu0 %651  ;;  %v661_v4 = vrot.slane %v9026_v37, 4  ;;  %v665_v39 = vsel %vm664_vm11, %v646_v23, %v663_v55  ;;  %v9046_v23 = vld [vmem:[%s12536_s2] ss:$16 sps:$4 sm:$0xff]  }
 0x15d   : > { %v660_v11 = vrot.slane %v652_v18, 4 }
 0x15f   : > { %v668_v51 = vsel %vm399_vm0, %v660_v11, %v661_v4  ;;  %v463_v33 = vpop.permute.xlu1 %462 }
 0x160   : > { %v669_v41 = vsel %vm664_vm11, %v652_v18, %v668_v51  ;;  %v457_v25 = vpop.permute.xlu0 %456  ;;  %v469_v26 = vrot.slane %v463_v33, 4 }
 0x161   : > { %v466_v43 = vrot.slane %v457_v25, 4  ;;  %v7522_v44 = vcombine.high %v665_v39, %v669_v41  ;;  %v7521_v5 = vcombine.low %v665_v39, %v669_v41  ;;  %v12554_v25 = vrot.slane %v8419_v56, 4 }
 0x162   : > { %v477_v35 = vsel %vm399_vm0, %v12552_v9, %v469_v26  ;;  %v9055_v9 = vld [vmem:[%s12536_s2 + $0x24] ss:$16 sps:$4 sm:$0xff]   ;;  %v12555_v26 = vrot.slane %v8410_v48, 4 }
 0x163   : > { %v473_v62 = vsel %vm399_vm0, %v12553_v49, %v466_v43  ;;  %2005 = vmatprep.subr.bf16.mxu0 %v7522_v44  ;;  %v1119_v18 = vpop.permute.xlu1 %1118  ;;  %v478_v51 = vsel %vm471_vm10, %v8581_v7, %v477_v35 }
 0x164   : > { %2006 = vmatpush2.bf16.msra.mxu0 %v7521_v5  ;;  %v1113_v55 = vpop.permute.xlu0 %1112  ;;  %v474_v11 = vsel %vm471_vm10, %v8574_v21, %v473_v62  ;;  %v1125_v49 = vrot.slane %v1119_v18, 4 }
 0x165   : > { %v1122_v39 = vrot.slane %v1113_v55, 4  ;;  %v7499_v41 = vcombine.low %v474_v11, %v478_v51  ;;  %v7500_v33 = vcombine.high %v474_v11, %v478_v51  ;;  %v12556_v51 = vrot.slane %v8633_v16, 4 }
 0x166   : > { %v1133_v5 = vsel %vm399_vm0, %v12554_v25, %v1125_v49 }
 0x167   : > { %v1129_v21 = vsel %vm399_vm0, %v12555_v26, %v1122_v39  ;;  %2008 = vmatmul.mubr.bf16.vlgmr.msra.gmra.mxu0 %v9046_v23  ;;  %2111 = vmatprep.subr.bf16.mxu1 %v7500_v33  ;;  %v428_v7 = vpop.permute.xlu1 %427  ;;  %v1134_v44 = vsel %vm1127_vm2, %v8419_v56, %v1133_v5  ;;  %v12557_v39 = vrot.slane %v8626_v36, 4 }
 0x168   : > { %2112 = vmatpush1.bf16.msra.mxu1 %v7499_v41  ;;  %v422_v62 = vpop.permute.xlu0 %421  ;;  %v1130_v43 = vsel %vm1127_vm2, %v8410_v48, %v1129_v21  ;;  %2017 = vmatprep.mubr.bf16.mxu0 %v9055_v9  ;;  %v434_v35 = vrot.slane %v428_v7, 4  ;;  %v9078_v48 = vld [vmem:[%s12536_s2 + $0x20] ss:$16 sps:$4 sm:$0xff]  }
 0x169   : > { %v431_v18 = vrot.slane %v422_v62, 4  ;;  %v7583_v55 = vcombine.low %v1130_v43, %v1134_v44  ;;  %v7584_v11 = vcombine.high %v1130_v43, %v1134_v44  ;;  %v9088_v43 = vld [vmem:[%s12536_s2 + $0x44] ss:$16 sps:$4 sm:$0xff]   ;;  %v12558_v44 = vrot.slane %v8683_v47, 4 }
 0x16a   : > { %v442_v49 = vsel %vm399_vm0, %v12556_v51, %v434_v35 }
 0x16b   : > { %v438_v41 = vsel %vm399_vm0, %v12557_v39, %v431_v18  ;;  %2164 = vmatprep.subr.bf16.mxu0 %v7584_v11  ;;  %v392_v56 = vpop.permute.xlu1 %391  ;;  %v443_v5 = vsel %vm436_vm12, %v8633_v16, %v442_v49 }
 0x16c   : > { %2165 = vmatpush1.bf16.msra.mxu0 %v7583_v55  ;;  %v386_v33 = vpop.permute.xlu0 %385  ;;  %v439_v25 = vsel %vm436_vm12, %v8626_v36, %v438_v41  ;;  %v398_v26 = vrot.slane %v392_v56, 4  ;;  %v12559_v36 = vrot.slane %v8676_v57, 4 }
 0x16d   : > { %v395_v21 = vrot.slane %v386_v33, 4  ;;  %v7495_v7 = vcombine.low %v439_v25, %v443_v5  ;;  %v7496_v62 = vcombine.high %v439_v25, %v443_v5  ;;  %2166 = vmatprep.subr.bf16.mxu0 %v8955_v45  ;;  %v12560_v33 = vrot.slane %v8491_v63, 4 }
 0x16e   : > { %v407_v35 = vsel %vm399_vm0, %v12558_v44, %v398_v26  ;;  %v12561_v5 = vrot.slane %v8484_v54, 4 }
 0x16f   : > { %v403_v18 = vsel %vm399_vm0, %v12559_v36, %v395_v21  ;;  %2018 = vmatmul.mubr.bf16.gmra.mxu0 %v9078_v48  ;;  %2113 = vmatprep.subr.bf16.mxu1 %v7496_v62  ;;  %v1080_v16 = vpop.permute.xlu1 %1079  ;;  %v408_v51 = vsel %vm401_vm14, %v8683_v47, %v407_v35 }
 0x170   : > { %2114 = vmatpush1.bf16.msra.mxu1 %v7495_v7  ;;  %v1074_v55 = vpop.permute.xlu0 %1073  ;;  %v404_v11 = vsel %vm401_vm14, %v8676_v57, %v403_v18  ;;  %2167 = vmatpush1.bf16.msra.mxu0 %v8966_v24  ;;  %v1086_v49 = vrot.slane %v1080_v16, 4  ;;  %v9112_v57 = vld [vmem:[%s12536_s2 + $0x40] ss:$16 sps:$4 sm:$0xff]   ;;  %v12562_v16 = vrot.slane %v8727_v29, 4 }
 0x171   : > { %v1083_v39 = vrot.slane %v1074_v55, 4  ;;  %v7491_v41 = vcombine.low %v404_v11, %v408_v51  ;;  %v7492_v56 = vcombine.high %v404_v11, %v408_v51  ;;  %2027 = vmatprep.mubr.bf16.mxu0 %v9088_v43  ;;  %v12563_v11 = vrot.slane %v8720_v52, 4 }
 0x172   : > { %v1094_v25 = vsel %vm399_vm0, %v12560_v33, %v1086_v49 }
 0x173   : > { %v1090_v26 = vsel %vm399_vm0, %v12561_v5, %v1083_v39  ;;  %2115 = vmatprep.subr.bf16.mxu1 %v7492_v56  ;;  %v870_v47 = vpop.permute.xlu1 %869  ;;  %v1095_v62 = vsel %vm1088_vm6, %v8491_v63, %v1094_v25 }
 0x174   : > { %2116 = vmatpush1.bf16.msra.mxu1 %v7491_v41  ;;  %v864_v21 = vpop.permute.xlu0 %863  ;;  %v1091_v7 = vsel %vm1088_vm6, %v8484_v54, %v1090_v26  ;;  %v876_v44 = vrot.slane %v870_v47, 4  ;;  %v8109_v41 = vld [vmem:[%s12536_s2 + $0xc] ss:$16 sps:$4 sm:$0xff]   ;;  %v12564_v26 = vrot.slane %v8515_v38, 4 }
 0x175   : > { %v873_v35 = vrot.slane %v864_v21, 4  ;;  %v7575_v36 = vcombine.low %v1091_v7, %v1095_v62  ;;  %v7576_v18 = vcombine.high %v1091_v7, %v1095_v62  ;;  %v12565_v21 = vrot.slane %v8507_v15, 4 }
 0x176   : > { %v884_v55 = vsel %vm399_vm0, %v12562_v16, %v876_v44 }
 0x177   : > { %v880_v51 = vsel %vm399_vm0, %v12563_v11, %v873_v35  ;;  %2028 = vmatmul.mubr.bf16.gmra.mxu0 %v9112_v57  ;;  %2168 = vmatprep.subr.bf16.mxu0 %v7576_v18  ;;  %v1045_v49 = vpop.permute.xlu1 %1044  ;;  %v885_v39 = vsel %vm12266_vm15, %v8727_v29, %v884_v55  ;;  %v12566_v55 = vrot.slane %v8771_v50, 4 }
 0x178   : > { %2169 = vmatpush1.bf16.msra.mxu0 %v7575_v36  ;;  %v1039_v54 = vpop.permute.xlu0 %1038  ;;  %v881_v63 = vsel %vm12266_vm15, %v8720_v52, %v880_v51  ;;  %7600 = vmatprep.mubr.msk.bf16.mxu0 %vm1965_vm5, %v8109_v41  ;;  %v1051_v56 = vrot.slane %v1045_v49, 4  ;;  %v12567_v51 = vrot.slane %v8764_v58, 4 }
 0x179   : > { %v1048_v33 = vrot.slane %v1039_v54, 4  ;;  %v7551_v25 = vcombine.low %v881_v63, %v885_v39  ;;  %v7552_v5 = vcombine.high %v881_v63, %v885_v39 }
 0x17a   : > { %v1059_v47 = vsel %vm399_vm0, %v12564_v26, %v1051_v56  ;;  %v12569_v26 = vrot.slane %v8552_v42, 4 }
 0x17b   : > { %v1055_v52 = vsel %vm399_vm0, %v12565_v21, %v1048_v33  ;;  %2117 = vmatprep.subr.bf16.mxu1 %v7552_v5  ;;  %v835_v29 = vpop.permute.xlu1 %834  ;;  %v1060_v44 = vsel %vm1053_vm7, %v8515_v38, %v1059_v47 }
 0x17c   : > { %2118 = vmatpush2.bf16.msra.mxu1 %v7551_v25  ;;  %v829_v7 = vpop.permute.xlu0 %828  ;;  %v1056_v62 = vsel %vm1053_vm7, %v8507_v15, %v1055_v52  ;;  %v841_v35 = vrot.slane %v835_v29, 4  ;;  %v12568_v25 = vrot.slane %v8559_v61, 4 }
 0x17d   : > { %v838_v36 = vrot.slane %v829_v7, 4  ;;  %v7571_v18 = vcombine.low %v1056_v62, %v1060_v44  ;;  %v7572_v16 = vcombine.high %v1056_v62, %v1060_v44 }
 0x17e   : > { %v849_v11 = vsel %vm399_vm0, %v12566_v55, %v841_v35  ;;  %v12570_v35 = vrot.slane %v8603_v8, 4 }
 0x17f   : > { %v845_v49 = vsel %vm399_vm0, %v12567_v51, %v838_v36  ;;  %2170 = vmatprep.subr.bf16.mxu0 %v7572_v16  ;;  %v1010_v54 = vpop.permute.xlu1 %1009  ;;  %v850_v38 = vsel %vm12265_vm13, %v8771_v50, %v849_v11 }
 0x180   : > { %2171 = vmatpush1.bf16.msra.mxu0 %v7571_v18  ;;  %v1004_v63 = vpop.permute.xlu0 %1003  ;;  %v846_v15 = vsel %vm12265_vm13, %v8764_v58, %v845_v49  ;;  %v1016_v39 = vrot.slane %v1010_v54, 4  ;;  %v12571_v18 = vrot.slane %v8596_v53, 4  ;;  %vm12572_vm13 = vcmask 564224  }
 0x181   : > { %v1013_v41 = vrot.slane %v1004_v63, 4  ;;  %v7547_v56 = vcombine.low %v846_v15, %v850_v38  ;;  %v7548_v33 = vcombine.high %v846_v15, %v850_v38  ;;  %vm12573_vm15 = vmmov %vm12572_vm13  ;;  %v12574_v63 = vrot.slane %v8864_v40, 4 }
 0x182   : > { %v1024_v5 = vsel %vm399_vm0, %v12568_v25, %v1016_v39  ;;  %v12575_v38 = vrot.slane %v8847_v1, 4 }
 0x183   : > { %v1020_v47 = vsel %vm399_vm0, %v12569_v26, %v1013_v41  ;;  %2119 = vmatprep.subr.bf16.mxu1 %v7548_v33  ;;  %v975_v21 = vpop.permute.xlu1 %974  ;;  %v1025_v50 = vsel %vm12385_vm9, %v8559_v61, %v1024_v5  ;;  %v12576_v26 = vrot.slane %v8661_v28, 4 }
 0x184   : > { %2120 = vmatpush2.bf16.msra.mxu1 %v7547_v56  ;;  %v969_v52 = vpop.permute.xlu0 %968  ;;  %v1021_v58 = vsel %vm12385_vm9, %v8552_v42, %v1020_v47  ;;  %v981_v29 = vrot.slane %v975_v21, 4  ;;  %v12577_v21 = vrot.slane %v8654_v19, 4 }
 0x185   : > { %v978_v7 = vrot.slane %v969_v52, 4  ;;  %v7567_v62 = vcombine.low %v1021_v58, %v1025_v50  ;;  %v7568_v44 = vcombine.high %v1021_v58, %v1025_v50  ;;  %2121 = vmatprep.subr.bf16.mxu1 %v8955_v45 }
 0x186   : > { %v989_v36 = vsel %vm399_vm0, %v12570_v35, %v981_v29  ;;  %v12580_v35 = vrot.slane %v8920_v6, 4 }
 0x187   : > { %v985_v16 = vsel %vm399_vm0, %v12571_v18, %v978_v7  ;;  %2172 = vmatprep.subr.bf16.mxu0 %v7568_v44  ;;  %v796_v55 = vpop.permute.xlu1 %795  ;;  %v990_v11 = vsel %vm12573_vm15, %v8603_v8, %v989_v36  ;;  %v12581_v18 = vrot.slane %v8902_v13, 4 }
 0x188   : > { %2173 = vmatpush1.bf16.msra.mxu0 %v7567_v62  ;;  %v790_v42 = vpop.permute.xlu0 %789  ;;  %v986_v61 = vsel %vm12572_vm13, %v8596_v53, %v985_v16  ;;  %2122 = vmatpush2.bf16.msra.mxu1 %v8966_v24  ;;  %v802_v45 = vrot.slane %v796_v55, 4  ;;  %vm12578_vm13 = vcmask 670720  }
 0x189   : > { %v799_v51 = vrot.slane %v790_v42, 4  ;;  %v7563_v49 = vcombine.low %v986_v61, %v990_v11  ;;  %v7564_v54 = vcombine.high %v986_v61, %v990_v11  ;;  %vm12579_vm15 = vmmov %vm12578_vm13 }
 0x18a   : > { %v810_v15 = vsel %vm399_vm0, %v12574_v63, %v802_v45  ;;  %v12583_v63 = vrot.slane %v8698_v30, 4 }
 0x18b   : > { %v806_v39 = vsel %vm399_vm0, %v12575_v38, %v799_v51  ;;  %2174 = vmatprep.subr.bf16.mxu0 %v7564_v54  ;;  %v940_v41 = vpop.permute.xlu1 %939  ;;  %v811_v24 = vsel %vm804_vm1, %v8864_v40, %v810_v15 }
 0x18c   : > { %2175 = vmatpush1.bf16.msra.mxu0 %v7563_v49  ;;  %v934_v53 = vpop.permute.xlu0 %933  ;;  %v807_v8 = vsel %vm804_vm1, %v8847_v1, %v806_v39  ;;  %v946_v56 = vrot.slane %v940_v41, 4  ;;  %v12582_v49 = vrot.slane %v8705_v27, 4 }
 0x18d   : > { %v943_v33 = vrot.slane %v934_v53, 4  ;;  %v7539_v25 = vcombine.low %v807_v8, %v811_v24  ;;  %v7540_v5 = vcombine.high %v807_v8, %v811_v24 }
 0x18e   : > { %v954_v47 = vsel %vm399_vm0, %v12576_v26, %v946_v56  ;;  %v12586_v56 = vrot.slane %v8962_v10, 4 }
 0x18f   : > { %v950_v52 = vsel %vm399_vm0, %v12577_v21, %v943_v33  ;;  %2123 = vmatprep.subr.bf16.mxu1 %v7540_v5  ;;  %v761_v58 = vpop.permute.xlu1 %760  ;;  %v955_v40 = vsel %vm12579_vm15, %v8661_v28, %v954_v47 }
 0x190   : > { %2124 = vmatpush2.bf16.msra.mxu1 %v7539_v25  ;;  %v755_v50 = vpop.permute.xlu0 %754  ;;  %v951_v1 = vsel %vm12578_vm13, %v8654_v19, %v950_v52  ;;  %v767_v29 = vrot.slane %v761_v58, 4  ;;  %vm12584_vm13 = vcmask 687104   ;;  %v12587_v25 = vrot.slane %v8947_v22, 4 }
 0x191   : > { %v764_v7 = vrot.slane %v755_v50, 4  ;;  %v7559_v62 = vcombine.low %v951_v1, %v955_v40  ;;  %v7560_v44 = vcombine.high %v951_v1, %v955_v40  ;;  %vm12585_vm15 = vmmov %vm12584_vm13  ;;  %v12588_v1 = vrot.slane %v8749_v17, 4 }
 0x192   : > { %v775_v36 = vsel %vm399_vm0, %v12580_v35, %v767_v29  ;;  %v12589_v29 = vrot.slane %v8742_v3, 4 }
 0x193   : > { %v771_v16 = vsel %vm399_vm0, %v12581_v18, %v764_v7  ;;  %2176 = vmatprep.subr.bf16.mxu0 %v7560_v44  ;;  %v905_v55 = vpop.permute.xlu1 %904  ;;  %v776_v28 = vsel %vm769_vm3, %v8920_v6, %v775_v36 }
 0x194   : > { %2177 = vmatpush1.bf16.msra.mxu0 %v7559_v62  ;;  %v899_v42 = vpop.permute.xlu0 %898  ;;  %v772_v19 = vsel %vm769_vm3, %v8902_v13, %v771_v16  ;;  %v911_v61 = vrot.slane %v905_v55, 4  ;;  %v12592_v55 = vrot.slane %v8990_v2, 4 }
 0x195   : > { %v908_v11 = vrot.slane %v899_v42, 4  ;;  %v7535_v45 = vcombine.low %v772_v19, %v776_v28  ;;  %v7536_v51 = vcombine.high %v772_v19, %v776_v28  ;;  %v12593_v19 = vrot.slane %v8982_v20, 4 }
 0x196   : > { %v919_v54 = vsel %vm399_vm0, %v12582_v49, %v911_v61 }
 0x197   : > { %v915_v15 = vsel %vm399_vm0, %v12583_v63, %v908_v11  ;;  %2125 = vmatprep.subr.bf16.mxu1 %v7536_v51  ;;  %v726_v38 = vpop.permute.xlu1 %725  ;;  %v920_v6 = vsel %vm12585_vm15, %v8705_v27, %v919_v54  ;;  %v12596_v63 = vrot.slane %v8793_v60, 4 }
 0x198   : > { %2126 = vmatpush2.bf16.msra.mxu1 %v7535_v45  ;;  %v720_v39 = vpop.permute.xlu0 %719  ;;  %v916_v13 = vsel %vm12584_vm13, %v8698_v30, %v915_v15  ;;  %v732_v41 = vrot.slane %v726_v38, 4  ;;  %vm12590_vm13 = vcmask 482304   ;;  %v12597_v38 = vrot.slane %v8786_v0, 4 }
 0x199   : > { %v729_v53 = vrot.slane %v720_v39, 4  ;;  %v7555_v8 = vcombine.low %v916_v13, %v920_v6  ;;  %v7556_v24 = vcombine.high %v916_v13, %v920_v6  ;;  %vm12591_vm15 = vmmov %vm12590_vm13 }
 0x19a   : > { %v740_v33 = vsel %vm399_vm0, %v12586_v56, %v732_v41 }
 0x19b   : > { %v736_v5 = vsel %vm399_vm0, %v12587_v25, %v729_v53  ;;  %2178 = vmatprep.subr.bf16.mxu0 %v7556_v24  ;;  %v1224_v26 = vpop.permute.xlu1 %1223  ;;  %v741_v27 = vsel %vm734_vm4, %v8962_v10, %v740_v33  ;;  %v12600_v33 = vrot.slane %v9015_v12, 4 }
 0x19c   : > { %2179 = vmatpush1.bf16.msra.mxu0 %v7555_v8  ;;  %v1218_v47 = vpop.permute.xlu0 %1217  ;;  %v737_v30 = vsel %vm734_vm4, %v8947_v22, %v736_v5  ;;  %v1230_v21 = vrot.slane %v1224_v26, 4 }
 0x19d   : > { %v1227_v52 = vrot.slane %v1218_v47, 4  ;;  %v7531_v58 = vcombine.low %v737_v30, %v741_v27  ;;  %v7532_v50 = vcombine.high %v737_v30, %v741_v27 }
 0x19e   : > { %v1238_v40 = vsel %vm399_vm0, %v12588_v1, %v1230_v21 }
 0x19f   : > { %v1234_v7 = vsel %vm399_vm0, %v12589_v29, %v1227_v52  ;;  %2127 = vmatprep.subr.bf16.mxu1 %v7532_v50  ;;  %v691_v62 = vpop.permute.xlu1 %690  ;;  %v1239_v10 = vsel %vm12591_vm15, %v8749_v17, %v1238_v40 }
 0x1a0   : > { %2128 = vmatpush2.bf16.msra.mxu1 %v7531_v58  ;;  %v685_v44 = vpop.permute.xlu0 %684  ;;  %v1235_v22 = vsel %vm12590_vm13, %v8742_v3, %v1234_v7  ;;  %v697_v35 = vrot.slane %v691_v62, 4  ;;  %vm12594_vm13 = vcmask 375808   ;;  %v12602_v58 = vrot.slane %v8809_v34, 4 }
 0x1a1   : > { %v694_v36 = vrot.slane %v685_v44, 4  ;;  %v7595_v18 = vcombine.low %v1235_v22, %v1239_v10  ;;  %v7596_v16 = vcombine.high %v1235_v22, %v1239_v10  ;;  %vm12595_vm15 = vmmov %vm12594_vm13 }
 0x1a2   : > { %v705_v42 = vsel %vm399_vm0, %v12592_v55, %v697_v35 }
 0x1a3   : > { %v701_v28 = vsel %vm399_vm0, %v12593_v19, %v694_v36  ;;  %2190 = vmatprep.subr.bf16.mxu0 %v7596_v16  ;;  %v1189_v61 = vpop.permute.xlu1 %1188  ;;  %v706_v17 = vsel %vm12595_vm15, %v8990_v2, %v705_v42 }
 0x1a4   : > { %2191 = vmatpush2.bf16.msra.mxu0 %v7595_v18  ;;  %v1183_v11 = vpop.permute.xlu0 %1182  ;;  %v702_v3 = vsel %vm12594_vm13, %v8982_v20, %v701_v28  ;;  %v1195_v45 = vrot.slane %v1189_v61, 4  ;;  %vm12598_vm13 = vcmask 506880  }
 0x1a5   : > { %v1192_v51 = vrot.slane %v1183_v11, 4  ;;  %v7527_v49 = vcombine.low %v702_v3, %v706_v17  ;;  %v7528_v54 = vcombine.high %v702_v3, %v706_v17  ;;  %vm12599_vm15 = vmmov %vm12598_vm13 }
 0x1a6   : > { %v1203_v15 = vsel %vm399_vm0, %v12596_v63, %v1195_v45 }
 0x1a7   : > { %v1199_v39 = vsel %vm399_vm0, %v12597_v38, %v1192_v51  ;;  %2129 = vmatprep.subr.bf16.mxu1 %v7528_v54  ;;  %v656_v13 = vpop.permute.xlu1 %655  ;;  %v1204_v2 = vsel %vm12599_vm15, %v8793_v60, %v1203_v15 }
 0x1a8   : > { %2130 = vmatpush2.bf16.msra.mxu1 %v7527_v49  ;;  %v650_v6 = vpop.permute.xlu0 %649  ;;  %v1200_v20 = vsel %vm12598_vm13, %v8786_v0, %v1199_v39  ;;  %v662_v41 = vrot.slane %v656_v13, 4  ;;  %vm12603_vm13 = vcmask 531456  }
 0x1a9   : > { %v659_v53 = vrot.slane %v650_v6, 4  ;;  %v7591_v8 = vcombine.low %v1200_v20, %v1204_v2  ;;  %v7592_v24 = vcombine.high %v1200_v20, %v1204_v2  ;;  %vm12604_vm15 = vmmov %vm12603_vm13 }
 0x1aa   : > { %v670_v56 = vsel %vm399_vm0, %v661_v4, %v662_v41  ;;  %v12601_v4 = vrot.slane %v8817_v59, 4 }
 0x1ab   : > { %v666_v25 = vsel %vm399_vm0, %v12600_v33, %v659_v53  ;;  %2192 = vmatprep.subr.bf16.mxu0 %v7592_v24  ;;  %v1154_v5 = vpop.permute.xlu1 %1153  ;;  %v671_v60 = vsel %vm664_vm11, %v9026_v37, %v670_v56 }
 0x1ac   : > { %2193 = vmatpush2.bf16.msra.mxu0 %v7591_v8  ;;  %v1148_v26 = vpop.permute.xlu0 %1147  ;;  %v667_v0 = vsel %vm664_vm11, %v9015_v12, %v666_v25  ;;  %v1160_v47 = vrot.slane %v1154_v5, 4 }
 0x1ad   : > { %v1157_v30 = vrot.slane %v1148_v26, 4  ;;  %v7523_v27 = vcombine.low %v667_v0, %v671_v60  ;;  %v7524_v21 = vcombine.high %v667_v0, %v671_v60 }
 0x1ae   : > { %v1168_v52 = vsel %vm399_vm0, %v12601_v4, %v1160_v47  ;;  %v9292_v4 = vld [vmem:[%s12162_s3] sm:$0xff]  }
 0x1af   : > { %v1164_v50 = vsel %vm399_vm0, %v12602_v58, %v1157_v30  ;;  %2131 = vmatprep.subr.bf16.mxu1 %v7524_v21  ;;  %v1169_v37 = vsel %vm12604_vm15, %v8817_v59, %v1168_v52  ;;  %v12283_v59 = vmov 0   ;;  %vm12715_vm15 = vcmask 867328  }
 0x1b0   : > { %2132 = vmatpush2.bf16.msra.mxu1 %v7523_v27  ;;  %v1165_v12 = vsel %vm12603_vm13, %v8809_v34, %v1164_v50  ;;  %v12605_v34 = vld [vmem:[#allocation13_spill] sm:$0xff]  ;;  %vm12358_vm13 = vcmask 130048  }
 0x1b1   : > { %v7587_v1 = vcombine.low %v1165_v12, %v1169_v37  ;;  %v7588_v40 = vcombine.high %v1165_v12, %v1169_v37 }
 0x1b3   : > { %2134 = vmatmul.mubr.bf16.vlgmr.msra.gmra.mxu1 %v9046_v23  ;;  %2194 = vmatprep.subr.bf16.mxu0 %v7588_v40 }
 0x1b4   : > { %2195 = vmatpush2.bf16.msra.mxu0 %v7587_v1  ;;  %2143 = vmatprep.mubr.bf16.mxu1 %v9055_v9 }
 0x1b7   : > { %2197 = vmatmul.mubr.bf16.vlgmr.msra.gmra.mxu0 %v8845_v32 }
 0x1b8   : > { %7601 = vmatprep.mubr.msk.bf16.mxu0 %vm1965_vm5, %v8856_v31 }
 0x1bb   : > { %2144 = vmatmul.mubr.bf16.gmra.mxu1 %v9078_v48 }
 0x1bc   : > { %2153 = vmatprep.mubr.bf16.mxu1 %v9088_v43 }
 0x1bf   : > { %2207 = vmatmul.mubr.bf16.gmra.mxu0 %v8882_v14 }
 0x1c0   : > { %7602 = vmatprep.mubr.msk.bf16.mxu0 %vm1965_vm5, %v8889_v46 }
 0x1c3   : > { %2154 = vmatmul.mubr.bf16.gmra.mxu1 %v9112_v57 }
 0x1c4   : > { %2368 = vmatprep.mubr.bf16.mxu1 %v12283_v59 }
 0x1c7   : > { %2217 = vmatmul.mubr.bf16.gmra.mxu0 %v12605_v34 }
 0x1c8   : > { %2315 = vmatprep.mubr.bf16.mxu0 %v12283_v59 }
 0x1ef   : > { %v2072_v32 = vpop.f32.mrf.mxu1 }
 0x1f1   : > { %v2074_v31 = vpop.f32.mrf.mxu1 }
 0x1f3   : > { %v2076_v23 = vpop.f32.mrf.mxu1 }
 0x1f5   : > { %v2078_v9 = vpop.f32.mrf.mxu1 }
 0x1f7   : > { %v2082_v48 = vpop.f32.mrf.mxu1 }
 0x1f9   : > { %v2084_v43 = vpop.f32.mrf.mxu1 }
 0x1fb   : > { %v2086_v14 = vpop.f32.mrf.mxu1 }
 0x1fd   : > { %v2088_v46 = vpop.f32.mrf.mxu1 }
 0x1ff   : > { %v2092_v22 = vpop.f32.mrf.mxu1 }
 0x201   : > { %v2094_v36 = vpop.f32.mrf.mxu1 }
 0x203   : > { %v2096_v55 = vpop.f32.mrf.mxu1 }
 0x205   : > { %v2098_v17 = vpop.f32.mrf.mxu1 }
 0x227   : > { %v2009_v29 = vpop.f32.mrf.mxu0 }
 0x228   : > { %v2073_v25 = vadd.f32 %v2072_v32, %v2009_v29 }
 0x229   : > { %v2011_v7 = vpop.f32.mrf.mxu0 }
 0x22a   : > { %v2075_v20 = vadd.f32 %v2074_v31, %v2011_v7  ;;  %v2227_v47 = vmax.f32 %v2073_v25, 0.0 }
 0x22b   : > { %v2013_v62 = vpop.f32.mrf.mxu0 }
 0x22c   : > { %v2077_v5 = vadd.f32 %v2076_v23, %v2013_v62  ;;  %v2228_v26 = vmax.f32 %v2075_v20, 0.0 }
 0x22d   : > { %v2015_v44 = vpop.f32.mrf.mxu0 }
 0x22e   : > { %v2079_v2 = vadd.f32 %v2078_v9, %v2015_v44  ;;  %v2231_v30 = vmax.f32 %v2077_v5, 0.0  ;;  %v8062_v5 = vld [vmem:[%s12162_s3 + $0x8] sm:$0xff]  }
 0x22f   : > { %v2019_v57 = vpop.f32.mrf.mxu0 }
 0x230   : > { %v2083_v51 = vadd.f32 %v2082_v48, %v2019_v57  ;;  %v2232_v0 = vmax.f32 %v2079_v2, 0.0  ;;  %v2251_v21 = vpack.c.bf16 %v2231_v30, %v2227_v47  ;;  %v8110_v47 = vld [vmem:[%s8212_s8] sm:$0xff] }
 0x231   : > { %v2021_v10 = vpop.f32.mrf.mxu0 }
 0x232   : > { %v2085_v42 = vadd.f32 %v2084_v43, %v2021_v10  ;;  %v2235_v53 = vmax.f32 %v2083_v51, 0.0  ;;  %v2252_v27 = vpack.c.bf16 %v2232_v0, %v2228_v26 }
 0x233   : > { %v2023_v35 = vpop.f32.mrf.mxu0 }
 0x234   : > { %v2236_v49 = vmax.f32 %v2085_v42, 0.0  ;;  %v2087_v54 = vadd.f32 %v2086_v14, %v2023_v35 }
 0x235   : > { %v2025_v18 = vpop.f32.mrf.mxu0 }
 0x236   : > { %v2089_v61 = vadd.f32 %v2088_v46, %v2025_v18  ;;  %v2239_v8 = vmax.f32 %v2087_v54, 0.0 }
 0x237   : > { %v2029_v16 = vpop.f32.mrf.mxu0 }
 0x238   : > { %v2093_v19 = vadd.f32 %v2092_v22, %v2029_v16  ;;  %v2240_v38 = vmax.f32 %v2089_v61, 0.0  ;;  %v2255_v60 = vpack.c.bf16 %v2239_v8, %v2235_v53 }
 0x239   : > { %v2031_v28 = vpop.f32.mrf.mxu0 }
 0x23a   : > { %v2095_v11 = vadd.f32 %v2094_v36, %v2031_v28  ;;  %v2243_v63 = vmax.f32 %v2093_v19, 0.0  ;;  %v2256_v33 = vpack.c.bf16 %v2240_v38, %v2236_v49 }
 0x23b   : > { %v2033_v3 = vpop.f32.mrf.mxu0 }
 0x23c   : > { %v2097_v45 = vadd.f32 %v2096_v55, %v2033_v3  ;;  %v2244_v39 = vmax.f32 %v2095_v11, 0.0 }
 0x23d   : > { %v2035_v15 = vpop.f32.mrf.mxu0 }
 0x23e   : > { %v2247_v13 = vmax.f32 %v2097_v45, 0.0  ;;  %v2099_v6 = vadd.f32 %v2098_v17, %v2035_v15 }
 0x240   : > { %v2248_v41 = vmax.f32 %v2099_v6, 0.0  ;;  %v2259_v24 = vpack.c.bf16 %v2247_v13, %v2243_v63 }
 0x242   : > { %v2260_v56 = vpack.c.bf16 %v2248_v41, %v2244_v39 }
 0x244   : > { %2293 = vmatprep.subr.bf16.mxu0 %v2260_v56 }
 0x245   : > { %2294 = vmatpush1.bf16.msra.mxu0 %v2259_v24 }
 0x246   : > { %2295 = vmatprep.subr.bf16.mxu0 %v2256_v33 }
 0x249   : > { %2296 = vmatpush1.bf16.msra.mxu0 %v2255_v60 }
 0x24a   : > { %2297 = vmatprep.subr.bf16.mxu0 %v2252_v27 }
 0x24d   : > { %2298 = vmatpush1.bf16.msra.mxu0 %v2251_v21  ;;  %v12607_v21 = vld [vmem:[#allocation9_spill] sm:$0xff] }
 0x250   : > { %7605 = vmatmul.mubr.msk.bf16.vlgmr.msra.gmra.mxu0 %vm1965_vm5, %v9292_v4 }
 0x251   : > { %2325 = vmatprep.mubr.bf16.mxu0 %v12283_v59 }
 0x258   : > { %7606 = vmatmul.mubr.msk.bf16.gmra.mxu0 %vm1965_vm5, %v8062_v5 }
 0x259   : > { %2452 = vmatprep.mubr.bf16.mxu0 %v12283_v59 }
 0x273   : > { %v2135_v52 = vpop.f32.mrf.mxu1 }
 0x275   : > { %v2137_v58 = vpop.f32.mrf.mxu1 }
 0x277   : > { %v2139_v50 = vpop.f32.mrf.mxu1  ;;  %v2198_v12 = vpop.f32.mrf.mxu0 }
 0x278   : > { %v2199_v2 = vadd.f32 %v2198_v12, %v2135_v52  ;;  %v12608_v12 = vmov 0.0  }
 0x279   : > { %v2141_v37 = vpop.f32.mrf.mxu1  ;;  %v2200_v1 = vpop.f32.mrf.mxu0 }
 0x27a   : > { %v2201_v54 = vadd.f32 %v2200_v1, %v2137_v58  ;;  %v2229_v33 = vmax.f32 %v2199_v2, 0.0  ;;  %v8111_v1 = vld [vmem:[%s8212_s8 + $0x20] sm:$0xff] }
 0x27b   : > { %v2145_v40 = vpop.f32.mrf.mxu1  ;;  %v2202_v34 = vpop.f32.mrf.mxu0 }
 0x27c   : > { %v2203_v38 = vadd.f32 %v2202_v34, %v2139_v50  ;;  %v2230_v53 = vmax.f32 %v2201_v54, 0.0 }
 0x27d   : > { %v2147_v32 = vpop.f32.mrf.mxu1  ;;  %v2204_v31 = vpop.f32.mrf.mxu0 }
 0x27e   : > { %v2205_v11 = vadd.f32 %v2204_v31, %v2141_v37  ;;  %v2233_v8 = vmax.f32 %v2203_v38, 0.0 }
 0x27f   : > { %v2149_v23 = vpop.f32.mrf.mxu1  ;;  %v2208_v9 = vpop.f32.mrf.mxu0 }
 0x280   : > { %v2209_v51 = vadd.f32 %v2208_v9, %v2145_v40  ;;  %v2234_v6 = vmax.f32 %v2205_v11, 0.0  ;;  %v2253_v25 = vpack.c.bf16 %v2233_v8, %v2229_v33 }
 0x281   : > { %v2151_v48 = vpop.f32.mrf.mxu1  ;;  %v2210_v43 = vpop.f32.mrf.mxu0 }
 0x282   : > { %v2211_v42 = vadd.f32 %v2210_v43, %v2147_v32  ;;  %v2237_v41 = vmax.f32 %v2209_v51, 0.0  ;;  %v2254_v56 = vpack.c.bf16 %v2234_v6, %v2230_v53  ;;  %v8115_v51 = vld [vmem:[%s8212_s8 + $0x30] sm:$0xff]  ;;  %v12630_v53 = vld [vmem:[#allocation12_spill] sm:$0xff] }
 0x283   : > { %v2155_v29 = vpop.f32.mrf.mxu1  ;;  %v2212_v14 = vpop.f32.mrf.mxu0 }
 0x284   : > { %v2213_v28 = vadd.f32 %v2212_v14, %v2149_v23  ;;  %v2238_v63 = vmax.f32 %v2211_v42, 0.0  ;;  %v8112_v23 = vld [vmem:[%s8212_s8 + $0x8] sm:$0xff] }
 0x285   : > { %v2157_v7 = vpop.f32.mrf.mxu1  ;;  %v2214_v62 = vpop.f32.mrf.mxu0 }
 0x286   : > { %v2215_v10 = vadd.f32 %v2214_v62, %v2151_v48  ;;  %v2241_v39 = vmax.f32 %v2213_v28, 0.0  ;;  %v8113_v48 = vld [vmem:[%s8212_s8 + $0x28] sm:$0xff]  ;;  %v9335_v62 = vld [vmem:[%s12163_s4] sm:$0xff]  }
 0x287   : > { %v2218_v46 = vpop.f32.mrf.mxu0  ;;  %v2159_v44 = vpop.f32.mrf.mxu1 }
 0x288   : > { %v2219_v18 = vadd.f32 %v2218_v46, %v2155_v29  ;;  %v2242_v3 = vmax.f32 %v2215_v10, 0.0  ;;  %v2257_v24 = vpack.c.bf16 %v2241_v39, %v2237_v41  ;;  %v9363_v10 = vpop.permute.xlu0 %2910 }
 0x289   : > { %v2220_v57 = vpop.f32.mrf.mxu0  ;;  %v2161_v16 = vpop.f32.mrf.mxu1  ;;  %12618 = vst [vmem:[#allocation18_spill] sm:$0xff] %v9363_v10 }
 0x28a   : > { %v2221_v35 = vadd.f32 %v2220_v57, %v2157_v7  ;;  %v2245_v49 = vmax.f32 %v2219_v18, 0.0  ;;  %v2258_v20 = vpack.c.bf16 %v2242_v3, %v2238_v63  ;;  %v8116_v63 = vld [vmem:[%s8212_s8 + $0x18] sm:$0xff] }
 0x28b   : > { %v2222_v22 = vpop.f32.mrf.mxu0 }
 0x28c   : > { %v2223_v36 = vadd.f32 %v2222_v22, %v2159_v44  ;;  %v2246_v17 = vmax.f32 %v2221_v35, 0.0  ;;  %v12615_v44 = vld [vmem:[#allocation10_spill] sm:$0xff]  ;;  %v9367_v18 = vpop.permute.xlu0 %2876 }
 0x28d   : > { %v2224_v55 = vpop.f32.mrf.mxu0  ;;  %12621 = vst [vmem:[#allocation19_spill] sm:$0xff] %v9367_v18 }
 0x28e   : > { %v2225_v19 = vadd.f32 %v2224_v55, %v2161_v16  ;;  %v2249_v61 = vmax.f32 %v2223_v36, 0.0  ;;  %v8114_v55 = vld [vmem:[%s8212_s8 + $0x10] sm:$0xff] }
 0x290   : > { %v2250_v45 = vmax.f32 %v2225_v19, 0.0  ;;  %v2261_v13 = vpack.c.bf16 %v2249_v61, %v2245_v49  ;;  %v12623_v61 = vld [vmem:[#allocation11_spill] sm:$0xff]  ;;  %v9379_v54 = vpop.permute.xlu0 %2842 }
 0x291   : > { %12625 = vst [vmem:[#allocation22_spill] sm:$0xff] %v9379_v54 }
 0x292   : > { %v2262_v15 = vpack.c.bf16 %v2250_v45, %v2246_v17 }
 0x294   : > { %2346 = vmatprep.subr.bf16.mxu1 %v2262_v15  ;;  %v9407_v33 = vpop.permute.xlu0 %3394 }
 0x295   : > { %2347 = vmatpush1.bf16.msra.mxu1 %v2261_v13  ;;  %v8117_v13 = vld [vmem:[%s8212_s8 + $0x38] sm:$0xff]  ;;  %12631 = vst [vmem:[#allocation26_spill] sm:$0xff] %v9407_v33  ;;  %s12634_s8 = smov 105  }
 0x296   : > { %2348 = vmatprep.subr.bf16.mxu1 %v2258_v20 }
 0x299   : > { %2349 = vmatpush1.bf16.msra.mxu1 %v2257_v24 }
 0x29a   : > { %2350 = vmatprep.subr.bf16.mxu1 %v2254_v56 }
 0x29d   : > { %2351 = vmatpush1.bf16.msra.mxu1 %v2253_v25 }
 0x2a0   : > { %7607 = vmatmul.mubr.msk.bf16.vlgmr.msra.gmra.mxu1 %vm1965_vm5, %v9292_v4 }
 0x2a1   : > { %2378 = vmatprep.mubr.bf16.mxu1 %v12283_v59 }
 0x2a8   : > { %7608 = vmatmul.mubr.msk.bf16.gmra.mxu1 %vm1965_vm5, %v8062_v5 }
 0x2a9   : > { %2495 = vmatprep.mubr.bf16.mxu1 %v12283_v59 }
 0x310   : > { %v2317_v26 = vpop.f32.mrf.mxu0 }
 0x311   : > { %v2389_v0 = vmax.f32 %v2317_v26, 0.0  ;;  %v9421_v26 = vpop.permute.xlu0 %3152 }
 0x312   : > { %v2319_v60 = vpop.f32.mrf.mxu0  ;;  %12633 = vst [vmem:[#allocation28_spill] sm:$0xff] %v9421_v26 }
 0x313   : > { %v9308_v30 = vadd.f32 %v8110_v47, %v2389_v0  ;;  %v2390_v58 = vmax.f32 %v2319_v60, 0.0 }
 0x314   : > { %v2321_v27 = vpop.f32.mrf.mxu0 }
 0x315   : > { %12606 = vst [vmem:[#allocation13_spill] sm:$0xff] %v9308_v30  ;;  %v2630_v4 = vmul.f32 %v9308_v30, %v12607_v21  ;;  %v2393_v52 = vmax.f32 %v2321_v27, 0.0  ;;  %v9322_v9 = vadd.f32 %v8112_v23, %v2390_v58  ;;  %v9428_v60 = vpop.permute.xlu0 %3118 }
 0x316   : > { %v2323_v50 = vpop.f32.mrf.mxu0  ;;  %12635 = vst [vmem:[#allocation29_spill] sm:$0xff] %v9428_v60 }
 0x317   : > { %v7972_v37 = vpack.c.bf16 %v2630_v4, %v12608_v12  ;;  %v9314_v40 = vadd.f32 %v8111_v1, %v2393_v52  ;;  %v2394_v34 = vmax.f32 %v2323_v50, 0.0  ;;  %v2407_v32 = vpack.c.bf16 %v2393_v52, %v2389_v0  ;;  %12610 = vst [vmem:[#allocation15_spill] sm:$0xff] %v9322_v9 }
 0x318   : > { %v9353_v57 = vmul.f32 %v9322_v9, %v12615_v44 }
 0x319   : > { %12609 = vst [vmem:[#allocation14_spill] sm:$0xff] %v9314_v40  ;;  %3352 = vrot.lane.b32.xlu0 %v7972_v37, %s12281_s13  ;;  %v9319_v31 = vmul.f32 %v9314_v40, %v12607_v21  ;;  %v9325_v43 = vadd.f32 %v8113_v48, %v2394_v34  ;;  %v2408_v29 = vpack.c.bf16 %v2394_v34, %v2390_v58  ;;  %v9433_v47 = vpop.permute.xlu0 %3220 }
 0x31a   : > { %v2508_v46 = vpack.c.bf16 %v9314_v40, %v9308_v30  ;;  %v7978_v22 = vpack.c.bf16 %v9353_v57, %v2630_v4  ;;  %12636 = vst [vmem:[#allocation30_spill] sm:$0xff] %v9433_v47 }
 0x31b   : > { %12611 = vst [vmem:[#allocation16_spill] sm:$0xff] %v9325_v43  ;;  %v9328_v14 = vpack.c.bf16 %v9319_v31, %v2630_v4  ;;  %2434 = vmatprep.subr.bf16.mxu0 %v2408_v29  ;;  %v2509_v7 = vpack.c.bf16 %v9325_v43, %v9322_v9  ;;  %v7975_v0 = vpack.c.bf16 %v9319_v31, %v12608_v12 }
 0x31c   : > { %2435 = vmatpush1.bf16.msra.mxu0 %v2407_v32  ;;  %v9470_v32 = vmul.f32 %v9325_v43, %v12615_v44  ;;  %v8064_v43 = vld [vmem:[%s12164_s5] sm:$0xff]  }
 0x31d   : > { %12612 = vst [vmem:[#allocation17_spill] sm:$0xff] %v9328_v14  ;;  %3318 = vrot.lane.b32.xlu0 %v7972_v37, %s12279_s14  ;;  %2534 = vmatprep.subr.bf16.mxu0 %v2509_v7  ;;  %v9438_v27 = vpop.permute.xlu0 %3186 }
 0x31e   : > { %12638 = vst [vmem:[#allocation31_spill] sm:$0xff] %v9438_v27  ;;  %v7980_v48 = vpack.c.bf16 %v9470_v32, %v9319_v31 }
 0x31f   : > { %7610 = vmatmul.mubr.msk.bf16.vlgmr.msra.gmra.mxu0 %vm12358_vm13, %v9335_v62 }
 0x320   : > { %2535 = vmatpush1.bf16.msra.mxu0 %v2508_v46  ;;  %2552 = vmatprep.mubr.bf16.mxu0 %v12283_v59 }
 0x321   : > { %2786 = vrot.lane.b32.xlu0 %v7972_v37, %s12290_s15 }
 0x325   : > { %3284 = vrot.lane.b32.xlu0 %v7972_v37, %s12294_s16 }
 0x327   : > { %7613 = vmatmul.mubr.msk.bf16.vlgmr.msra.gmra.mxu0 %vm12358_vm13, %v8064_v43 }
 0x329   : > { %2752 = vrot.lane.b32.xlu0 %v7972_v37, %s12277_s17 }
 0x32d   : > { %3250 = vrot.lane.b32.xlu0 %v7972_v37, %s12275_s18 }
 0x331   : > { %2718 = vrot.lane.b32.xlu0 %v7972_v37, %s12269_s19  ;;  %s12620_s19 = smov 86  }
 0x335   : > { %2684 = vrot.lane.b32.xlu0 %v7972_v37, %s12267_s21  ;;  %s12619_s21 = smov 84  }
 0x339   : > { %3076 = vrot.lane.b32.xlu0 %v7972_v37, %s12613_s26 }
 0x33d   : > { %3042 = vrot.lane.b32.xlu0 %v7972_v37, %s12614_s27 }
 0x341   : > { %3008 = vrot.lane.b32.xlu0 %v7972_v37, %s12616_s22 }
 0x345   : > { %2974 = vrot.lane.b32.xlu0 %v7972_v37, %s12617_s23 }
 0x349   : > { %2906 = vrot.lane.b32.xlu0 %v7978_v22, %s12545_s25 }
 0x34d   : > { %3390 = vrot.lane.b32.xlu0 %v7978_v22, %s12273_s10  ;;  %s12637_s10 = smov 22  }
 0x351   : > { %2872 = vrot.lane.b32.xlu0 %v7978_v22, %s12546_s29 }
 0x355   : > { %2838 = vrot.lane.b32.xlu0 %v7978_v22, %s12549_s30 }
 0x359   : > { %3216 = vrot.lane.b32.xlu0 %v7978_v22, %s12271_s20  ;;  %s12627_s20 = smov 126  }
 0x35d   : > { %3182 = vrot.lane.b32.xlu0 %v7978_v22, %s12619_s21 }
 0x360   : > { %v2370_v35 = vpop.f32.mrf.mxu1 }
 0x361   : > { %v2391_v36 = vmax.f32 %v2370_v35, 0.0  ;;  %3148 = vrot.lane.b32.xlu0 %v7978_v22, %s12620_s19 }
 0x362   : > { %v2372_v16 = vpop.f32.mrf.mxu1 }
 0x363   : > { %v9370_v42 = vadd.f32 %v8114_v55, %v2391_v36  ;;  %v2392_v19 = vmax.f32 %v2372_v16, 0.0  ;;  %v12649_v16 = vmov 0.0|0.0  }
 0x364   : > { %v2374_v28 = vpop.f32.mrf.mxu1 }
 0x365   : > { %12622 = vst [vmem:[#allocation20_spill] sm:$0xff] %v9370_v42  ;;  %v2632_v11 = vmul.f32 %v9370_v42, %v12623_v61  ;;  %v2395_v3 = vmax.f32 %v2374_v28, 0.0  ;;  %3492 = vrot.lane.b32.xlu0 %v7978_v22, %s12537_s9  ;;  %v9382_v15 = vadd.f32 %v8116_v63, %v2392_v19 }
 0x366   : > { %v2376_v17 = vpop.f32.mrf.mxu1 }
 0x367   : > { %v7973_v45 = vpack.c.bf16 %v2632_v11, %v9353_v57  ;;  %v9377_v49 = vadd.f32 %v8115_v51, %v2395_v3  ;;  %12626 = vst [vmem:[#allocation23_spill] sm:$0xff] %v9382_v15  ;;  %v2396_v38 = vmax.f32 %v2376_v17, 0.0  ;;  %v2409_v2 = vpack.c.bf16 %v2395_v3, %v2391_v36 }
 0x368   : > { %v9398_v8 = vmul.f32 %v9382_v15, %v12630_v53 }
 0x369   : > { %12624 = vst [vmem:[#allocation21_spill] sm:$0xff] %v9377_v49  ;;  %v9386_v39 = vmul.f32 %v9377_v49, %v12623_v61  ;;  %3114 = vrot.lane.b32.xlu0 %v7978_v22, %s12627_s20  ;;  %v9390_v6 = vadd.f32 %v8117_v13, %v2396_v38  ;;  %v2410_v20 = vpack.c.bf16 %v2396_v38, %v2392_v19 }
 0x36a   : > { %3354 = vrot.lane.b32.xlu1 %v7973_v45, %s12281_s13  ;;  %v2510_v5 = vpack.c.bf16 %v9377_v49, %v9370_v42  ;;  %v7979_v37 = vpack.c.bf16 %v9398_v8, %v2632_v11 }
 0x36b   : > { %12628 = vst [vmem:[#allocation24_spill] sm:$0xff] %v9390_v6  ;;  %v9394_v41 = vpack.c.bf16 %v9386_v39, %v2632_v11  ;;  %v9402_v24 = vmul.f32 %v9390_v6, %v12630_v53  ;;  %2477 = vmatprep.subr.bf16.mxu1 %v2410_v20  ;;  %v2511_v56 = vpack.c.bf16 %v9390_v6, %v9382_v15 }
 0x36c   : > { %2478 = vmatpush1.bf16.msra.mxu1 %v2409_v2 }
 0x36d   : > { %12629 = vst [vmem:[#allocation25_spill] sm:$0xff] %v9394_v41  ;;  %3458 = vrot.lane.b32.xlu0 %v7978_v22, %s12540_s11  ;;  %2577 = vmatprep.subr.bf16.mxu1 %v2511_v56  ;;  %v9412_v25 = vpack.c.bf16 %v9402_v24, %v9398_v8  ;;  %v7981_v12 = vpack.c.bf16 %v9402_v24, %v9386_v39 }
 0x36e   : > { %3320 = vrot.lane.b32.xlu1 %v7973_v45, %s12279_s14 }
 0x36f   : > { %12632 = vst [vmem:[#allocation27_spill] sm:$0xff] %v9412_v25  ;;  %7611 = vmatmul.mubr.msk.bf16.vlgmr.msra.gmra.mxu1 %vm12358_vm13, %v9335_v62  ;;  %v9484_v62 = vpop.permute.xlu1 %2916 }
 0x370   : > { %2578 = vmatpush1.bf16.msra.mxu1 %v2510_v5  ;;  %2595 = vmatprep.mubr.bf16.mxu1 %v12283_v59  ;;  %12643 = vst [vmem:[#allocation33_spill] sm:$0xff] %v9484_v62  ;;  %v7974_v5 = vpack.c.bf16 %v9398_v8, %v9398_v8 }
 0x371   : > { %3424 = vrot.lane.b32.xlu0 %v7978_v22, %s12543_s12 }
 0x372   : > { %2788 = vrot.lane.b32.xlu1 %v7973_v45, %s12290_s15 }
 0x373   : > { %v9492_v31 = vpop.permute.xlu1 %2882 }
 0x374   : > { %12645 = vst [vmem:[#allocation35_spill] sm:$0xff] %v9492_v31 }
 0x375   : > { %2940 = vrot.lane.b32.xlu0 %v7978_v22, %s12634_s8 }
 0x376   : > { %3286 = vrot.lane.b32.xlu1 %v7973_v45, %s12294_s16 }
 0x377   : > { %v9500_v36 = vpop.permute.xlu1 %2848  ;;  %7614 = vmatmul.mubr.msk.bf16.vlgmr.msra.gmra.mxu1 %vm12358_vm13, %v8064_v43  ;;  %vm12716_vm13 = vmmov %vm12715_vm15 }
 0x378   : > { %12648 = vst [vmem:[#allocation38_spill] sm:$0xff] %v9500_v36  ;;  %v8065_v36 = vld [vmem:[%s12536_s2 + $0x6c] ss:$16 sps:$4 sm:$0xff]  }
 0x379   : > { %3358 = vrot.lane.b32.xlu0 %v7975_v0, %s12281_s13  ;;  %7759 = vmatprep.mubr.msk.bf16.mxu1 %vm1965_vm5, %v8065_v36 }
 0x37a   : > { %2754 = vrot.lane.b32.xlu1 %v7973_v45, %s12277_s17 }
 0x37b   : > { %v9509_v19 = vpop.permute.xlu1 %3400 }
 0x37c   : > { %12650 = vst [vmem:[#allocation39_spill] sm:$0xff] %v9509_v19 }
 0x37d   : > { %3324 = vrot.lane.b32.xlu0 %v7975_v0, %s12279_s14 }
 0x37e   : > { %3252 = vrot.lane.b32.xlu1 %v7973_v45, %s12275_s18 }
 0x37f   : > { %v9517_v3 = vpop.permute.xlu1 %3158 }
 0x380   : > { %12651 = vst [vmem:[#allocation40_spill] sm:$0xff] %v9517_v3 }
 0x381   : > { %2792 = vrot.lane.b32.xlu0 %v7975_v0, %s12290_s15 }
 0x382   : > { %2720 = vrot.lane.b32.xlu1 %v7973_v45, %s12637_s10 }
 0x383   : > { %v9527_v51 = vpop.permute.xlu1 %3124 }
 0x384   : > { %12652 = vst [vmem:[#allocation41_spill] sm:$0xff] %v9527_v51 }
 0x385   : > { %3290 = vrot.lane.b32.xlu0 %v7975_v0, %s12294_s16 }
 0x386   : > { %2686 = vrot.lane.b32.xlu1 %v7973_v45, %s12639_s0 }
 0x387   : > { %v9535_v13 = vpop.permute.xlu1 %3226 }
 0x388   : > { %12653 = vst [vmem:[#allocation42_spill] sm:$0xff] %v9535_v13 }
 0x389   : > { %2758 = vrot.lane.b32.xlu0 %v7975_v0, %s12277_s17  ;;  %s12641_s17 = smov 82  }
 0x38a   : > { %3078 = vrot.lane.b32.xlu1 %v7973_v45, %s12613_s26 }
 0x38b   : > { %v9443_v4 = vpop.permute.xlu0 %3352  ;;  %v9543_v2 = vpop.permute.xlu1 %3192 }
 0x38c   : > { %12654 = vst [vmem:[#allocation43_spill] sm:$0xff] %v9543_v2 }
 0x38d   : > { %3256 = vrot.lane.b32.xlu0 %v7975_v0, %s12275_s18  ;;  %s12640_s18 = smov 125  }
 0x38e   : > { %3044 = vrot.lane.b32.xlu1 %v7973_v45, %s12614_s27 }
 0x38f   : > { %v9447_v52 = vpop.permute.xlu0 %3318 }
 0x391   : > { %2724 = vrot.lane.b32.xlu0 %v7975_v0, %s12637_s10 }
 0x392   : > { %3010 = vrot.lane.b32.xlu1 %v7973_v45, %s12616_s22 }
 0x393   : > { %v9451_v58 = vpop.permute.xlu0 %2786 }
 0x395   : > { %2690 = vrot.lane.b32.xlu0 %v7975_v0, %s12639_s0 }
 0x396   : > { %2976 = vrot.lane.b32.xlu1 %v7973_v45, %s12617_s23  ;;  %v7976_v45 = vpack.c.bf16 %v9386_v39, %v9470_v32 }
 0x397   : > { %v9455_v50 = vpop.permute.xlu0 %3284 }
 0x399   : > { %3082 = vrot.lane.b32.xlu0 %v7975_v0, %s12613_s26 }
 0x39a   : > { %2908 = vrot.lane.b32.xlu1 %v7979_v37, %s12545_s25 }
 0x39b   : > { %v9460_v1 = vpop.permute.xlu0 %2752 }
 0x39d   : > { %3048 = vrot.lane.b32.xlu0 %v7975_v0, %s12614_s27 }
 0x39e   : > { %3392 = vrot.lane.b32.xlu1 %v7979_v37, %s12640_s18 }
 0x39f   : > { %v9464_v34 = vpop.permute.xlu0 %3250 }
 0x3a1   : > { %3014 = vrot.lane.b32.xlu0 %v7975_v0, %s12616_s22 }
 0x3a2   : > { %2874 = vrot.lane.b32.xlu1 %v7979_v37, %s12546_s29 }
 0x3a3   : > { %v9472_v23 = vpop.permute.xlu0 %2718 }
 0x3a4   : > { %v2730_v31 = vrot.slane %v9472_v23, 4 }
 0x3a5   : > { %2980 = vrot.lane.b32.xlu0 %v7975_v0, %s12617_s23 }
 0x3a6   : > { %2840 = vrot.lane.b32.xlu1 %v7979_v37, %s12549_s30 }
 0x3a7   : > { %v9478_v29 = vpop.permute.xlu0 %2684 }
 0x3a9   : > { %2912 = vrot.lane.b32.xlu0 %v7980_v48, %s12545_s25 }
 0x3aa   : > { %3218 = vrot.lane.b32.xlu1 %v7979_v37, %s12641_s17 }
 0x3ab   : > { %v9482_v7 = vpop.permute.xlu0 %3076 }
 0x3ac   : > { %12642 = vst [vmem:[#allocation32_spill] sm:$0xff] %v9482_v7 }
 0x3ad   : > { %3396 = vrot.lane.b32.xlu0 %v7980_v48, %s12640_s18 }
 0x3ae   : > { %3184 = vrot.lane.b32.xlu1 %v7979_v37, %s12619_s21 }
 0x3af   : > { %v9488_v46 = vpop.permute.xlu0 %3042 }
 0x3b0   : > { %12644 = vst [vmem:[#allocation34_spill] sm:$0xff] %v9488_v46 }
 0x3b1   : > { %2878 = vrot.lane.b32.xlu0 %v7980_v48, %s12546_s29 }
 0x3b2   : > { %3150 = vrot.lane.b32.xlu1 %v7979_v37, %s12620_s19 }
 0x3b3   : > { %v9494_v22 = vpop.permute.xlu0 %3008 }
 0x3b4   : > { %12646 = vst [vmem:[#allocation36_spill] sm:$0xff] %v9494_v22 }
 0x3b5   : > { %2844 = vrot.lane.b32.xlu0 %v7980_v48, %s12549_s30 }
 0x3b6   : > { %3494 = vrot.lane.b32.xlu1 %v7979_v37, %s12537_s9 }
 0x3b7   : > { %v9498_v35 = vpop.permute.xlu0 %2974 }
 0x3b8   : > { %12647 = vst [vmem:[#allocation37_spill] sm:$0xff] %v9498_v35 }
 0x3b9   : > { %3496 = vrot.lane.b32.xlu0 %v12649_v16, %s12537_s9 }
 0x3ba   : > { %3116 = vrot.lane.b32.xlu1 %v7979_v37, %s12627_s20 }
 0x3bb   : > { %v9505_v55 = vpop.permute.xlu0 %2906 }
 0x3bc   : > { %v2918_v62 = vrot.slane %v9505_v55, 4 }
 0x3bd   : > { %3222 = vrot.lane.b32.xlu0 %v7980_v48, %s12641_s17 }
 0x3be   : > { %3460 = vrot.lane.b32.xlu1 %v7979_v37, %s12540_s11 }
 0x3bf   : > { %v9511_v28 = vpop.permute.xlu0 %3390 }
 0x3c1   : > { %3188 = vrot.lane.b32.xlu0 %v7980_v48, %s12619_s21 }
 0x3c2   : > { %3426 = vrot.lane.b32.xlu1 %v7979_v37, %s12543_s12 }
 0x3c3   : > { %v9515_v11 = vpop.permute.xlu0 %2872 }
 0x3c4   : > { %v2884_v2 = vrot.slane %v9515_v11, 4 }
 0x3c5   : > { %3154 = vrot.lane.b32.xlu0 %v7980_v48, %s12620_s19 }
 0x3c6   : > { %2942 = vrot.lane.b32.xlu1 %v7979_v37, %s12634_s8 }
 0x3c7   : > { %v9521_v17 = vpop.permute.xlu0 %2838 }
 0x3c9   : > { %3498 = vrot.lane.b32.xlu0 %v7980_v48, %s12537_s9 }
 0x3ca   : > { %3360 = vrot.lane.b32.xlu1 %v7976_v45, %s12281_s13  ;;  %s12657_s13 = smov 69  }
 0x3cb   : > { %v9529_v63 = vpop.permute.xlu0 %3216 }
 0x3cd   : > { %3120 = vrot.lane.b32.xlu0 %v7980_v48, %s12627_s20 }
 0x3ce   : > { %3326 = vrot.lane.b32.xlu1 %v7976_v45, %s12279_s14  ;;  %s12655_s14 = smov 21  }
 0x3cf   : > { %v9533_v38 = vpop.permute.xlu0 %3182 }
 0x3d1   : > { %3464 = vrot.lane.b32.xlu0 %v7980_v48, %s12540_s11 }
 0x3d2   : > { %2794 = vrot.lane.b32.xlu1 %v7976_v45, %s12290_s15 }
 0x3d3   : > { %v9539_v20 = vpop.permute.xlu0 %3148 }
 0x3d5   : > { %3430 = vrot.lane.b32.xlu0 %v7980_v48, %s12543_s12 }
 0x3d6   : > { %3292 = vrot.lane.b32.xlu1 %v7976_v45, %s12294_s16 }
 0x3d7   : > { %v9545_v56 = vpop.permute.xlu0 %3492 }
 0x3d9   : > { %2946 = vrot.lane.b32.xlu0 %v7980_v48, %s12634_s8 }
 0x3da   : > { %2760 = vrot.lane.b32.xlu1 %v7976_v45, %s12655_s14 }
 0x3db   : > { %v9551_v0 = vpop.permute.xlu0 %3114 }
 0x3dc   : > { %v9553_v37 = vpop.permute.xlu1 %3354 }
 0x3dd   : > { %12656 = vst [vmem:[#allocation44_spill] sm:$0xff] %v9553_v37  ;;  %2790 = vrot.lane.b32.xlu0 %v7974_v5, %s12290_s15  ;;  %s12664_s15 = smov 3  }
 0x3de   : > { %3258 = vrot.lane.b32.xlu1 %v7976_v45, %s12657_s13 }
 0x3df   : > { %v9557_v59 = vpop.permute.xlu0 %3458 }
 0x3e0   : > { %12658 = vst [vmem:[#allocation45_spill] sm:$0xff] %v9557_v59  ;;  %v9559_v53 = vpop.permute.xlu1 %3320 }
 0x3e1   : > { %12659 = vst [vmem:[#allocation46_spill] sm:$0xff] %v9559_v53  ;;  %2756 = vrot.lane.b32.xlu0 %v7974_v5, %s12655_s14 }
 0x3e2   : > { %2726 = vrot.lane.b32.xlu1 %v7976_v45, %s12637_s10 }
 0x3e3   : > { %v9563_v48 = vpop.permute.xlu0 %3424 }
 0x3e4   : > { %12660 = vst [vmem:[#allocation47_spill] sm:$0xff] %v9563_v48  ;;  %v9565_v6 = vpop.permute.xlu1 %2788 }
 0x3e5   : > { %2722 = vrot.lane.b32.xlu0 %v7974_v5, %s12637_s10 }
 0x3e6   : > { %2692 = vrot.lane.b32.xlu1 %v7976_v45, %s12639_s0 }
 0x3e7   : > { %v9569_v8 = vpop.permute.xlu0 %2940 }
 0x3e8   : > { %12661 = vst [vmem:[#allocation48_spill] sm:$0xff] %v9569_v8  ;;  %v9571_v15 = vpop.permute.xlu1 %3286 }
 0x3e9   : > { %12662 = vst [vmem:[#allocation49_spill] sm:$0xff] %v9571_v15  ;;  %2688 = vrot.lane.b32.xlu0 %v7974_v5, %s12639_s0 }
 0x3ea   : > { %3084 = vrot.lane.b32.xlu1 %v7976_v45, %s12613_s26 }
 0x3eb   : > { %v9575_v49 = vpop.permute.xlu0 %3358 }
 0x3ec   : > { %v9577_v61 = vpop.permute.xlu1 %2754  ;;  %v3367_v47 = vrot.slane %v9575_v49, 4 }
 0x3ed   : > { %12663 = vst [vmem:[#allocation50_spill] sm:$0xff] %v9577_v61  ;;  %3356 = vrot.lane.b32.xlu0 %v7974_v5, %s12664_s15 }
 0x3ee   : > { %3050 = vrot.lane.b32.xlu1 %v7976_v45, %s12614_s27 }
 0x3ef   : > { %v9581_v42 = vpop.permute.xlu0 %3324 }
 0x3f0   : > { %v9583_v44 = vpop.permute.xlu1 %3252 }
 0x3f1   : > { %12665 = vst [vmem:[#allocation51_spill] sm:$0xff] %v9583_v44  ;;  %3322 = vrot.lane.b32.xlu0 %v7974_v5, %s12666_s24 }
 0x3f2   : > { %3016 = vrot.lane.b32.xlu1 %v7976_v45, %s12616_s22 }
 0x3f3   : > { %v9591_v9 = vpop.permute.xlu0 %2792 }
 0x3f4   : > { %v9594_v40 = vpop.permute.xlu1 %2720 }
 0x3f5   : > { %12667 = vst [vmem:[#allocation52_spill] sm:$0xff] %v9594_v40  ;;  %3288 = vrot.lane.b32.xlu0 %v7974_v5, %s12668_s6 }
 0x3f6   : > { %2982 = vrot.lane.b32.xlu1 %v7976_v45, %s12617_s23 }
 0x3f7   : > { %v9602_v30 = vpop.permute.xlu0 %3290 }
 0x3f8   : > { %v9600_v21 = vpop.permute.xlu1 %2686 }
 0x3f9   : > { %12669 = vst [vmem:[#allocation53_spill] sm:$0xff] %v9600_v21  ;;  %3254 = vrot.lane.b32.xlu0 %v7974_v5, %s12657_s13 }
 0x3fa   : > { %2914 = vrot.lane.b32.xlu1 %v7981_v12, %s12545_s25 }
 0x3fb   : > { %v9610_v43 = vpop.permute.xlu0 %2758 }
 0x3fc   : > { %v9606_v51 = vpop.permute.xlu1 %3078  ;;  %12671 = vst [vmem:[#allocation55_spill] sm:$0xff] %v9610_v43 }
 0x3fd   : > { %12670 = vst [vmem:[#allocation54_spill] sm:$0xff] %v9606_v51  ;;  %3080 = vrot.lane.b32.xlu0 %v7974_v5, %s12613_s26 }
 0x3fe   : > { %3398 = vrot.lane.b32.xlu1 %v7981_v12, %s12640_s18 }
 0x3ff   : > { %v9618_v60 = vpop.permute.xlu0 %3256 }
 0x400   : > { %v9612_v45 = vpop.permute.xlu1 %3044  ;;  %12674 = vst [vmem:[#allocation58_spill] sm:$0xff] %v9618_v60 }
 0x401   : > { %12672 = vst [vmem:[#allocation56_spill] sm:$0xff] %v9612_v45  ;;  %3046 = vrot.lane.b32.xlu0 %v7974_v5, %s12614_s27  ;;  %v7977_v45 = vpack.c.bf16 %v9402_v24, %v9402_v24 }
 0x402   : > { %2880 = vrot.lane.b32.xlu1 %v7981_v12, %s12546_s29 }
 0x403   : > { %v9627_v3 = vpop.permute.xlu0 %2724 }
 0x404   : > { %v9616_v39 = vpop.permute.xlu1 %3010  ;;  %12676 = vst [vmem:[#allocation60_spill] sm:$0xff] %v9627_v3 }
 0x405   : > { %12673 = vst [vmem:[#allocation57_spill] sm:$0xff] %v9616_v39  ;;  %3012 = vrot.lane.b32.xlu0 %v7974_v5, %s12616_s22 }
 0x406   : > { %2846 = vrot.lane.b32.xlu1 %v7981_v12, %s12549_s30 }
 0x407   : > { %v9636_v19 = vpop.permute.xlu0 %2690 }
 0x408   : > { %v9622_v26 = vpop.permute.xlu1 %2976  ;;  %12677 = vst [vmem:[#allocation61_spill] sm:$0xff] %v9636_v19 }
 0x409   : > { %12675 = vst [vmem:[#allocation59_spill] sm:$0xff] %v9622_v26  ;;  %2978 = vrot.lane.b32.xlu0 %v7974_v5, %s12617_s23 }
 0x40a   : > { %3502 = vrot.lane.b32.xlu1 %v12649_v16, %s12537_s9 }
 0x40b   : > { %v9646_v8 = vpop.permute.xlu0 %3082 }
 0x40c   : > { %v9629_v41 = vpop.permute.xlu1 %2908  ;;  %12678 = vst [vmem:[#allocation62_spill] sm:$0xff] %v9646_v8 }
 0x40d   : > { %3462 = vrot.lane.b32.xlu0 %v12649_v16, %s12540_s11 }
 0x40e   : > { %3224 = vrot.lane.b32.xlu1 %v7981_v12, %s12641_s17 }
 0x40f   : > { %v9655_v26 = vpop.permute.xlu0 %3048 }
 0x410   : > { %v9634_v25 = vpop.permute.xlu1 %3392  ;;  %12679 = vst [vmem:[#allocation63_spill] sm:$0xff] %v9655_v26 }
 0x411   : > { %2944 = vrot.lane.b32.xlu0 %v12649_v16, %s12634_s8 }
 0x412   : > { %3190 = vrot.lane.b32.xlu1 %v7981_v12, %s12619_s21 }
 0x413   : > { %v9668_v22 = vpop.permute.xlu0 %3014 }
 0x414   : > { %v9641_v5 = vpop.permute.xlu1 %2874  ;;  %12681 = vst [vmem:[#allocation65_spill] sm:$0xff] %v9668_v22 }
 0x415   : > { %3428 = vrot.lane.b32.xlu0 %v12649_v16, %s12543_s12 }
 0x416   : > { %3156 = vrot.lane.b32.xlu1 %v7981_v12, %s12620_s19 }
 0x417   : > { %v9678_v8 = vpop.permute.xlu0 %2980 }
 0x418   : > { %v9648_v33 = vpop.permute.xlu1 %2840  ;;  %12684 = vst [vmem:[#allocation68_spill] sm:$0xff] %v9678_v8 }
 0x419   : > { %5238 = vrot.lane.b32.xlu0 %v12649_v16, %s12545_s25 }
 0x41a   : > { %3500 = vrot.lane.b32.xlu1 %v7981_v12, %s12537_s9 }
 0x41b   : > { %v9690_v36 = vpop.permute.xlu0 %2912 }
 0x41c   : > { %v9653_v35 = vpop.permute.xlu1 %3218  ;;  %v2921_v27 = vrot.slane %v9690_v36, 4 }
 0x41d   : > { %5204 = vrot.lane.b32.xlu0 %v12649_v16, %s12546_s29 }
 0x41e   : > { %3122 = vrot.lane.b32.xlu1 %v7981_v12, %s12627_s20 }
 0x41f   : > { %v9701_v48 = vpop.permute.xlu0 %3396 }
 0x420   : > { %v9660_v54 = vpop.permute.xlu1 %3184 }
 0x421   : > { %12680 = vst [vmem:[#allocation64_spill] sm:$0xff] %v9660_v54  ;;  %5170 = vrot.lane.b32.xlu0 %v12649_v16, %s12549_s30 }
 0x422   : > { %3466 = vrot.lane.b32.xlu1 %v7981_v12, %s12540_s11 }
 0x424   : > { %v9671_v39 = vpop.permute.xlu1 %3150 }
 0x425   : > { %12682 = vst [vmem:[#allocation66_spill] sm:$0xff] %v9671_v39  ;;  %5722 = vrot.lane.b32.xlu0 %v12649_v16, %s12640_s18 }
 0x426   : > { %3432 = vrot.lane.b32.xlu1 %v7981_v12, %s12543_s12 }
 0x428   : > { %v9676_v26 = vpop.permute.xlu1 %3494 }
 0x429   : > { %12683 = vst [vmem:[#allocation67_spill] sm:$0xff] %v9676_v26  ;;  %5480 = vrot.lane.b32.xlu0 %v12649_v16, %s12620_s19 }
 0x42a   : > { %3468 = vrot.lane.b32.xlu1 %v12649_v16, %s12540_s11 }
 0x42c   : > { %v9684_v22 = vpop.permute.xlu1 %3116 }
 0x42d   : > { %12685 = vst [vmem:[#allocation69_spill] sm:$0xff] %v9684_v22  ;;  %5446 = vrot.lane.b32.xlu0 %v12649_v16, %s12627_s20  ;;  %v9706_v22 = vld [vmem:[%s12536_s2 + $0x64] ss:$16 sps:$4 sm:$0xff]  }
 0x42e   : > { %2950 = vrot.lane.b32.xlu1 %v12649_v16, %s12634_s8  ;;  %12689 = vst [vmem:[#allocation72_spill] sm:$0xff] %v9706_v22  ;;  %4285 = vmatprep.mubr.bf16.mxu0 %v9706_v22 }
 0x430   : > { %v9694_v8 = vpop.permute.xlu1 %3460 }
 0x431   : > { %12686 = vst [vmem:[#allocation70_spill] sm:$0xff] %v9694_v8  ;;  %5548 = vrot.lane.b32.xlu0 %v12649_v16, %s12641_s17  ;;  %v9715_v8 = vpop.permute.xlu0 %2878 }
 0x432   : > { %2796 = vrot.lane.b32.xlu1 %v7977_v45, %s12687_s1 }
 0x434   : > { %v9699_v51 = vpop.permute.xlu1 %3426 }
 0x435   : > { %12688 = vst [vmem:[#allocation71_spill] sm:$0xff] %v9699_v51  ;;  %5514 = vrot.lane.b32.xlu0 %v12649_v16, %s12619_s21  ;;  %v9722_v26 = vpop.permute.xlu0 %2844 }
 0x436   : > { %2948 = vrot.lane.b32.xlu1 %v7981_v12, %s12634_s8 }
 0x438   : > { %v9712_v24 = vpop.permute.xlu1 %2942 }
 0x439   : > { %12690 = vst [vmem:[#allocation73_spill] sm:$0xff] %v9712_v24  ;;  %v9728_v12 = vpop.permute.xlu0 %3496 }
 0x43a   : > { %2762 = vrot.lane.b32.xlu1 %v7977_v45, %s12655_s14  ;;  %12693 = vst [vmem:[#allocation76_spill] sm:$0xff] %v9728_v12 }
 0x43c   : > { %v9717_v51 = vpop.permute.xlu1 %3360 }
 0x43d   : > { %12691 = vst [vmem:[#allocation74_spill] sm:$0xff] %v9717_v51  ;;  %v9735_v3 = vpop.permute.xlu0 %3222 }
 0x43e   : > { %2728 = vrot.lane.b32.xlu1 %v7977_v45, %s12637_s10  ;;  %12695 = vst [vmem:[#allocation78_spill] sm:$0xff] %v9735_v3 }
 0x440   : > { %v9720_v59 = vpop.permute.xlu1 %3326 }
 0x441   : > { %12692 = vst [vmem:[#allocation75_spill] sm:$0xff] %v9720_v59  ;;  %v9741_v14 = vpop.permute.xlu0 %3188 }
 0x442   : > { %2694 = vrot.lane.b32.xlu1 %v7977_v45, %s12639_s0  ;;  %12697 = vst [vmem:[#allocation80_spill] sm:$0xff] %v9741_v14  ;;  %v3262_v14 = vrot.slane %v9464_v34, 4 }
 0x444   : > { %v9725_v19 = vpop.permute.xlu1 %2794 }
 0x445   : > { %v9748_v60 = vpop.permute.xlu0 %3154 }
 0x446   : > { %3362 = vrot.lane.b32.xlu1 %v7977_v45, %s12664_s15  ;;  %12700 = vst [vmem:[#allocation83_spill] sm:$0xff] %v9748_v60  ;;  %v2798_v60 = vrot.slane %v9451_v58, 4 }
 0x448   : > { %v9730_v22 = vpop.permute.xlu1 %3292 }
 0x449   : > { %v9754_v3 = vpop.permute.xlu0 %3498 }
 0x44a   : > { %3328 = vrot.lane.b32.xlu1 %v7977_v45, %s12666_s24  ;;  %12702 = vst [vmem:[#allocation85_spill] sm:$0xff] %v9754_v3  ;;  %v3364_v3 = vrot.slane %v9443_v4, 4 }
 0x44c   : > { %v9733_v24 = vpop.permute.xlu1 %2760 }
 0x44d   : > { %12694 = vst [vmem:[#allocation77_spill] sm:$0xff] %v9733_v24 }
 0x44e   : > { %3294 = vrot.lane.b32.xlu1 %v7977_v45, %s12668_s6 }
 0x450   : > { %v9738_v39 = vpop.permute.xlu1 %3258 }
 0x451   : > { %12696 = vst [vmem:[#allocation79_spill] sm:$0xff] %v9738_v39 }
 0x452   : > { %3260 = vrot.lane.b32.xlu1 %v7977_v45, %s12657_s13 }
 0x454   : > { %v9743_v54 = vpop.permute.xlu1 %2726 }
 0x455   : > { %12698 = vst [vmem:[#allocation81_spill] sm:$0xff] %v9743_v54 }
 0x456   : > { %3086 = vrot.lane.b32.xlu1 %v7977_v45, %s12613_s26 }
 0x458   : > { %v9746_v12 = vpop.permute.xlu1 %2692 }
 0x459   : > { %12699 = vst [vmem:[#allocation82_spill] sm:$0xff] %v9746_v12  ;;  %v12708_v12 = vrot.slane %v9559_v53, 4  ;;  %v2801_v53 = vrot.slane %v9591_v9, 4 }
 0x45a   : > { %3052 = vrot.lane.b32.xlu1 %v7977_v45, %s12614_s27 }
 0x45c   : > { %v9751_v24 = vpop.permute.xlu1 %3084 }
 0x45d   : > { %12701 = vst [vmem:[#allocation84_spill] sm:$0xff] %v9751_v24  ;;  %v9766_v24 = vpack.c.bf16 %v9470_v32, %v9353_v57  ;;  %v9778_v57 = vpop.permute.xlu0 %3120  ;;  %v3296_v32 = vrot.slane %v9455_v50, 4 }
 0x45e   : > { %3018 = vrot.lane.b32.xlu1 %v7977_v45, %s12616_s22  ;;  %12705 = vst [vmem:[#allocation88_spill] sm:$0xff] %v9778_v57  ;;  %v3402_v57 = vrot.slane %v9511_v28, 4 }
 0x460   : > { %v9756_v39 = vpop.permute.xlu1 %3050 }
 0x461   : > { %12703 = vst [vmem:[#allocation86_spill] sm:$0xff] %v9756_v39  ;;  %v2764_v39 = vrot.slane %v9460_v1, 4 }
 0x462   : > { %2984 = vrot.lane.b32.xlu1 %v7977_v45, %s12617_s23  ;;  %v3330_v45 = vrot.slane %v9447_v52, 4 }
 0x464   : > { %v9772_v18 = vpop.permute.xlu1 %3016  ;;  %v3336_v10 = vsel %vm399_vm0, %v3330_v45, %v12708_v12  ;;  %v9815_v12 = vpop.permute.xlu0 %3464  ;;  %v12710_v45 = vrot.slane %v9571_v15, 4 }
 0x465   : > { %12704 = vst [vmem:[#allocation87_spill] sm:$0xff] %v9772_v18  ;;  %v12707_v18 = vrot.slane %v9553_v37, 4  ;;  %v12368_v37 = vrot.slane %v9600_v21, 4 }
 0x466   : > { %3434 = vrot.lane.b32.xlu1 %v12649_v16, %s12543_s12  ;;  %v3302_v7 = vsel %vm399_vm0, %v3296_v32, %v12710_v45  ;;  %v12711_v32 = vrot.slane %v9629_v41, 4 }
 0x467   : > { %v3370_v43 = vsel %vm399_vm0, %v3364_v3, %v12707_v18  ;;  %v9830_v18 = vsel %vm1053_vm7, %v9447_v52, %v3336_v10  ;;  %v9845_v10 = vsel %vm12385_vm9, %v9455_v50, %v3302_v7  ;;  %v12712_v52 = vrot.slane %v9577_v61, 4  ;;  %v12737_v61 = vld [vmem:[#allocation31_spill] sm:$0xff] }
 0x468   : > { %v9794_v54 = vpop.permute.xlu1 %2982  ;;  %v2924_v45 = vsel %vm399_vm0, %v2918_v62, %v12711_v32  ;;  %v12713_v32 = vrot.slane %v9583_v44, 4  ;;  %v3405_v7 = vrot.slane %v9701_v48, 4  ;;  %v12717_v62 = vrot.slane %v9634_v25, 4 }
 0x469   : > { %12706 = vst [vmem:[#allocation89_spill] sm:$0xff] %v9794_v54  ;;  %v12709_v54 = vrot.slane %v9565_v6, 4 }
 0x46a   : > { %5244 = vrot.lane.b32.xlu1 %v12649_v16, %s12545_s25  ;;  %v3268_v50 = vsel %vm399_vm0, %v3262_v14, %v12713_v32 }
 0x46b   : > { %v2804_v13 = vsel %vm399_vm0, %v2798_v60, %v12709_v54  ;;  %v9826_v60 = vsel %vm1088_vm6, %v9443_v4, %v3370_v43  ;;  %v3333_v4 = vrot.slane %v9581_v42, 4  ;;  %v2770_v43 = vsel %vm399_vm0, %v2764_v39, %v12712_v52 }
 0x46c   : > { %v9822_v54 = vpop.permute.xlu1 %2914  ;;  %v9839_v46 = vsel %vm506_vm8, %v9451_v58, %v2804_v13  ;;  %v2925_v39 = vsel %vm12715_vm15, %v9505_v55, %v2924_v45  ;;  %v3408_v58 = vsel %vm399_vm0, %v3402_v57, %v12717_v62  ;;  %v9878_v55 = vsel %vm471_vm10, %v9460_v1, %v2770_v43 }
 0x46d   : > { %v12359_v3 = vrot.slane %v9822_v54, 4  ;;  %v12369_v57 = vrot.slane %v9648_v33, 4  ;;  %v12719_v62 = vrot.slane %v9641_v5, 4  ;;  %v12720_v1 = vrot.slane %v9594_v40, 4 }
 0x46e   : > { %5210 = vrot.lane.b32.xlu1 %v12649_v16, %s12546_s29  ;;  %vm12721_vm15 = vcmask 875520  }
 0x46f   : > { %v2928_v13 = vsel %vm399_vm0, %v2921_v27, %v12359_v3  ;;  %v12367_v27 = vrot.slane %v9717_v51, 4  ;;  %v9871_v3 = vpop.permute.xlu0 %3430  ;;  %v2736_v43 = vsel %vm399_vm0, %v2730_v31, %v12720_v1  ;;  %v3299_v1 = vrot.slane %v9602_v30, 4  ;;  %v12732_v51 = vld [vmem:[#allocation17_spill] sm:$0xff] }
 0x470   : > { %v9861_v15 = vpop.permute.xlu1 %3398  ;;  %v2929_v52 = vsel %vm12716_vm13, %v9690_v36, %v2928_v13  ;;  %vm12718_vm13 = vcmask 564224   ;;  %v2890_v13 = vsel %vm399_vm0, %v2884_v2, %v12719_v62 }
 0x471   : > { %12714 = vst [vmem:[#allocation90_spill] sm:$0xff] %v9861_v15  ;;  %v12366_v14 = vrot.slane %v9861_v15, 4  ;;  %v7679_v32 = vcombine.low %v2925_v39, %v2929_v52  ;;  %v7680_v44 = vcombine.high %v2925_v39, %v2929_v52  ;;  %v9882_v36 = vsel %vm12718_vm13, %v9464_v34, %v3268_v50  ;;  %vm12724_vm13 = vmmov %vm12721_vm15 }
 0x472   : > { %5176 = vrot.lane.b32.xlu1 %v12649_v16, %s12549_s30  ;;  %v2887_v34 = vrot.slane %v9715_v8, 4  ;;  %v12371_v50 = vrot.slane %v9720_v59, 4  ;;  %v3374_v31 = vsel %vm399_vm0, %v3367_v47, %v12367_v27  ;;  %v3229_v47 = vrot.slane %v9653_v35, 4  ;;  %v12731_v59 = vld [vmem:[#allocation77_spill] sm:$0xff] }
 0x473   : > { %4253 = vmatprep.subr.bf16.mxu0 %v7680_v44  ;;  %v3412_v45 = vsel %vm399_vm0, %v3405_v7, %v12366_v14  ;;  %v3409_v44 = vsel %vm1127_vm2, %v9511_v28, %v3408_v58  ;;  %v2891_v14 = vsel %vm12721_vm15, %v9515_v11, %v2890_v13  ;;  %v12722_v28 = vrot.slane %v9478_v29, 4 }
 0x474   : > { %v9898_v39 = vpop.permute.xlu1 %2880  ;;  %4254 = vmatpush1.bf16.msra.mxu0 %v7679_v32  ;;  %v3413_v7 = vsel %vm1127_vm2, %v9701_v48, %v3412_v45  ;;  %v9913_v32 = vsel %vm436_vm12, %v9472_v23, %v2736_v43  ;;  %v2853_v58 = vrot.slane %v9722_v26, 4  ;;  %v9924_v45 = vpop.permute.xlu0 %2946  ;;  %v12723_v11 = vrot.slane %v9521_v17, 4 }
 0x475   : > { %v12370_v52 = vrot.slane %v9898_v39, 4  ;;  %v7743_v2 = vcombine.low %v3409_v44, %v3413_v7  ;;  %v7744_v62 = vcombine.high %v3409_v44, %v3413_v7  ;;  %v2702_v48 = vsel %vm399_vm0, %v12722_v28, %v12368_v37 }
 0x476   : > { %5728 = vrot.lane.b32.xlu1 %v12649_v16, %s12640_s18  ;;  %v2856_v13 = vsel %vm399_vm0, %v12723_v11, %v12369_v57  ;;  %v12725_v57 = vld [vmem:[#allocation55_spill] sm:$0xff]  ;;  %vm12730_vm15 = vcmask 1039360  }
 0x477   : > { %4316 = vmatprep.subr.bf16.mxu1 %v7744_v62  ;;  %v2894_v23 = vsel %vm399_vm0, %v2887_v34, %v12370_v52  ;;  %v3375_v62 = vsel %vm1088_vm6, %v9575_v49, %v3374_v31  ;;  %v3340_v34 = vsel %vm399_vm0, %v3333_v4, %v12371_v50  ;;  %v12726_v52 = vld [vmem:[#allocation58_spill] sm:$0xff]  ;;  %v9952_v49 = vsel %vm401_vm14, %v9478_v29, %v2702_v48 }
 0x478   : > { %v9935_v44 = vpop.permute.xlu1 %2846  ;;  %4317 = vmatpush1.bf16.msra.mxu1 %v7743_v2  ;;  %v2895_v7 = vsel %vm12724_vm13, %v9715_v8, %v2894_v23  ;;  %v2767_v2 = vrot.slane %v12725_v57, 4  ;;  %v3265_v43 = vrot.slane %v12726_v52, 4  ;;  %v12727_v8 = vld [vmem:[#allocation64_spill] sm:$0xff]  ;;  %v12728_v4 = vld [vmem:[#allocation30_spill] sm:$0xff]  ;;  %vm12733_vm13 = vmmov %vm12730_vm15  ;;  %v7735_v15 = vcombine.low %v9826_v60, %v3375_v62 }
 0x479   : > { %v12378_v27 = vrot.slane %v9935_v44, 4  ;;  %4318 = vmatprep.subr.bf16.mxu1 %v9766_v24  ;;  %v7675_v11 = vcombine.low %v2891_v14, %v2895_v7  ;;  %v7676_v37 = vcombine.high %v2891_v14, %v2895_v7  ;;  %v3195_v23 = vrot.slane %v12727_v8, 4 }
 0x47a   : > { %5486 = vrot.lane.b32.xlu1 %v12649_v16, %s12620_s19  ;;  %v12729_v31 = vrot.slane %v12728_v4, 4  ;;  %v7736_v14 = vcombine.high %v9826_v60, %v3375_v62  ;;  %v2857_v7 = vsel %vm12730_vm15, %v9521_v17, %v2856_v13  ;;  %v12735_v13 = vld [vmem:[#allocation79_spill] sm:$0xff]  ;;  %vm12742_vm15 = vcmask 670720   ;;  %v12744_v62 = vld [vmem:[#allocation81_spill] sm:$0xff] }
 0x47b   : > { %4255 = vmatprep.subr.bf16.mxu0 %v7676_v37  ;;  %v2860_v28 = vsel %vm399_vm0, %v2853_v58, %v12378_v27  ;;  %v3341_v37 = vsel %vm1053_vm7, %v9581_v42, %v3340_v34  ;;  %v12386_v21 = vrot.slane %v12735_v13, 4  ;;  %v9977_v58 = vpop.permute.xlu0 %2790  ;;  %v12739_v42 = vld [vmem:[#allocation66_spill] sm:$0xff] }
 0x47c   : > { %v3236_v50 = vsel %vm399_vm0, %v3229_v47, %v12729_v31  ;;  %v9966_v48 = vpop.permute.xlu1 %3502  ;;  %4256 = vmatpush1.bf16.msra.mxu0 %v7675_v11  ;;  %4319 = vmatpush1.bf16.msra.mxu1 %v12732_v51  ;;  %v2861_v4 = vsel %vm12733_vm13, %v9722_v26, %v2860_v28  ;;  %v12734_v31 = vrot.slane %v9725_v19, 4  ;;  %v12736_v11 = vrot.slane %v9730_v22, 4 }
 0x47d   : > { %4320 = vmatprep.subr.bf16.mxu1 %v7736_v14  ;;  %v7671_v27 = vcombine.low %v2857_v7, %v2861_v4  ;;  %v7672_v29 = vcombine.high %v2857_v7, %v2861_v4  ;;  %v12738_v26 = vrot.slane %v12737_v61, 4  ;;  %v12387_v34 = vrot.slane %v12739_v42, 4  ;;  %v12741_v14 = vld [vmem:[#allocation60_spill] sm:$0xff] }
 0x47e   : > { %v2808_v17 = vsel %vm399_vm0, %v2801_v53, %v12734_v31  ;;  %v3306_v40 = vsel %vm399_vm0, %v3299_v1, %v12736_v11  ;;  %v12740_v53 = vrot.slane %v9529_v63, 4  ;;  %5452 = vrot.lane.b32.xlu1 %v12649_v16, %s12627_s20  ;;  %v2733_v7 = vrot.slane %v12741_v14, 4 }
 0x47f   : > { %v3202_v28 = vsel %vm399_vm0, %v3195_v23, %v12738_v26  ;;  %v9995_v1 = vsel %vm12742_vm15, %v9653_v35, %v3236_v50  ;;  %4257 = vmatprep.subr.bf16.mxu0 %v7672_v29  ;;  %v7732_v61 = vcombine.high %v9830_v18, %v3341_v37  ;;  %v12743_v4 = vrot.slane %v9533_v38, 4 }
 0x480   : > { %v3234_v31 = vsel %vm399_vm0, %v12740_v53, %v3229_v47  ;;  %v12388_v11 = vrot.slane %v12744_v62, 4  ;;  %v3225_v26 = vpop.permute.xlu1 %3224  ;;  %4258 = vmatpush1.bf16.msra.mxu0 %v7671_v27  ;;  %4321 = vmatpush1.bf16.msra.mxu1 %v7735_v15  ;;  %v2809_v47 = vsel %vm506_vm8, %v9591_v9, %v2808_v17  ;;  %v3307_v53 = vsel %vm12385_vm9, %v9602_v30, %v3306_v40  ;;  %v12747_v30 = vld [vmem:[#allocation78_spill] sm:$0xff] }
 0x481   : > { %v3200_v60 = vsel %vm399_vm0, %v12743_v4, %v3195_v23  ;;  %v12745_v35 = vrot.slane %v12731_v59, 4  ;;  %vm12746_vm13 = vcmask 687104   ;;  %v3232_v23 = vrot.slane %v3225_v26, 4  ;;  %4259 = vmatprep.subr.bf16.mxu0 %v9766_v24  ;;  %4322 = vmatprep.subr.bf16.mxu1 %v7732_v61  ;;  %v12752_v61 = vld [vmem:[#allocation61_spill] sm:$0xff] }
 0x482   : > { %v10011_v29 = vsel %vm12746_vm13, %v12727_v8, %v3202_v28  ;;  %v3272_v15 = vsel %vm399_vm0, %v3265_v43, %v12386_v21  ;;  %v10019_v9 = vsel %vm12742_vm15, %v9529_v63, %v3234_v31  ;;  %v3231_v40 = vrot.slane %v12747_v30, 4  ;;  %vm12748_vm9 = vmmov %vm12746_vm13  ;;  %5554 = vrot.lane.b32.xlu1 %v12649_v16, %s12641_s17  ;;  %v10034_v43 = vpop.permute.xlu0 %2756  ;;  %v12750_v63 = vld [vmem:[#allocation42_spill] sm:$0xff] }
 0x483   : > { %v2774_v50 = vsel %vm399_vm0, %v2767_v2, %v12745_v35  ;;  %v7731_v27 = vcombine.low %v9830_v18, %v3341_v37  ;;  %v10025_v2 = vsel %vm12748_vm9, %v9533_v38, %v3200_v60  ;;  %v12749_v8 = vrot.slane %v9539_v20, 4  ;;  %vm12753_vm9 = vmmov %vm12742_vm15 }
 0x484   : > { %v12751_v28 = vrot.slane %v12750_v63, 4  ;;  %v7664_v18 = vcombine.high %v9839_v46, %v2809_v47  ;;  %v7728_v38 = vcombine.high %v9845_v10, %v3307_v53  ;;  %v2775_v37 = vsel %vm471_vm10, %v12725_v57, %v2774_v50  ;;  %v3191_v35 = vpop.permute.xlu1 %3190  ;;  %4260 = vmatpush1.bf16.msra.mxu0 %v12732_v51  ;;  %v12758_v57 = vld [vmem:[#allocation43_spill] sm:$0xff] }
 0x485   : > { %v3166_v17 = vsel %vm399_vm0, %v12749_v8, %v12387_v34  ;;  %v2699_v4 = vrot.slane %v12752_v61, 4  ;;  %4323 = vmatpush1.bf16.msra.mxu1 %v7731_v27  ;;  %vm12754_vm13 = vcmask 564224   ;;  %v2740_v63 = vsel %vm399_vm0, %v2733_v7, %v12388_v11  ;;  %v12757_v7 = vld [vmem:[#allocation80_spill] sm:$0xff] }
 0x486   : > { %v3240_v31 = vsel %vm399_vm0, %v3232_v23, %v12751_v28  ;;  %v3273_v8 = vsel %vm12754_vm13, %v12726_v52, %v3272_v15  ;;  %v12755_v28 = vld [vmem:[#allocation82_spill] sm:$0xff]  ;;  %v3198_v50 = vrot.slane %v3191_v35, 4  ;;  %4261 = vmatprep.subr.bf16.mxu0 %v7664_v18  ;;  %4324 = vmatprep.subr.bf16.mxu1 %v7728_v38  ;;  %v7663_v27 = vcombine.low %v9839_v46, %v2809_v47  ;;  %v12760_v38 = vld [vmem:[#allocation67_spill] sm:$0xff] }
 0x487   : > { %v10045_v60 = vsel %vm12753_vm9, %v3225_v26, %v3240_v31  ;;  %v3238_v26 = vsel %vm399_vm0, %v3231_v40, %v3232_v23  ;;  %v12756_v31 = vld [vmem:[#allocation76_spill] sm:$0xff]  ;;  %v7727_v52 = vcombine.low %v9845_v10, %v3307_v53  ;;  %5520 = vrot.lane.b32.xlu1 %v12649_v16, %s12619_s21  ;;  %v3197_v11 = vrot.slane %v12757_v7, 4 }
 0x488   : > { %v3506_v34 = vrot.slane %v12756_v31, 4  ;;  %v12759_v21 = vrot.slane %v12758_v57, 4  ;;  %v7660_v23 = vcombine.high %v9878_v55, %v2775_v37  ;;  %v7724_v40 = vcombine.high %v9882_v36, %v3273_v8  ;;  %v10074_v47 = vpop.permute.xlu1 %3156  ;;  %4262 = vmatpush1.bf16.msra.mxu0 %v7663_v27 }
 0x489   : > { %v3505_v46 = vrot.slane %v12760_v38, 4  ;;  %vm12761_vm15 = vcmask 687104   ;;  %4325 = vmatpush1.bf16.msra.mxu1 %v7727_v52  ;;  %v2741_v53 = vsel %vm436_vm12, %v12741_v14, %v2740_v63  ;;  %v3239_v57 = vsel %vm12753_vm9, %v12747_v30, %v3238_v26 }
 0x48a   : > { %v3206_v18 = vsel %vm399_vm0, %v3198_v50, %v12759_v21  ;;  %v10080_v21 = vpop.permute.xlu0 %2722  ;;  %v12389_v15 = vrot.slane %v10074_v47, 4  ;;  %4263 = vmatprep.subr.bf16.mxu0 %v7660_v23  ;;  %4326 = vmatprep.subr.bf16.mxu1 %v7724_v40  ;;  %v3204_v52 = vsel %vm399_vm0, %v3197_v11, %v3198_v50  ;;  %v7659_v14 = vcombine.low %v9878_v55, %v2775_v37  ;;  %v12765_v23 = vld [vmem:[#allocation83_spill] sm:$0xff]  ;;  %v12766_v11 = vld [vmem:[#allocation45_spill] sm:$0xff] }
 0x48b   : > { %v10072_v10 = vsel %vm12761_vm15, %v3191_v35, %v3206_v18  ;;  %v12763_v35 = vrot.slane %v12755_v28, 4  ;;  %v7723_v63 = vcombine.low %v9882_v36, %v3273_v8  ;;  %vm12764_vm13 = vcmask 703488   ;;  %v12768_v37 = vld [vmem:[#allocation85_spill] sm:$0xff] }
 0x48c   : > { %12762 = vst [vmem:[#allocation55_spill] sm:$0xff] %v10072_v10  ;;  %v10093_v30 = vsel %vm12764_vm13, %v9539_v20, %v3166_v17  ;;  %v3512_v18 = vsel %vm399_vm0, %v3505_v46, %v3506_v34  ;;  %v3163_v40 = vrot.slane %v12765_v23, 4  ;;  %v7656_v31 = vcombine.high %v9913_v32, %v2741_v53  ;;  %v3501_v55 = vpop.permute.xlu1 %3500  ;;  %4264 = vmatpush1.bf16.msra.mxu0 %v7659_v14 }
 0x48d   : > { %v2706_v27 = vsel %vm399_vm0, %v2699_v4, %v12763_v35  ;;  %v7720_v4 = vcombine.high %v10019_v9, %v3239_v57  ;;  %v3470_v50 = vrot.slane %v12766_v11, 4  ;;  %4327 = vmatpush1.bf16.msra.mxu1 %v7723_v63  ;;  %v3205_v36 = vsel %vm12761_vm15, %v12757_v7, %v3204_v52  ;;  %v12769_v63 = vld [vmem:[#allocation69_spill] sm:$0xff] }
 0x48e   : > { %v2707_v20 = vsel %vm401_vm14, %v12752_v61, %v2706_v27  ;;  %v12767_v17 = vrot.slane %v9545_v56, 4  ;;  %v3507_v8 = vrot.slane %v12768_v37, 4  ;;  %v3509_v35 = vrot.slane %v9966_v48, 4  ;;  %4265 = vmatprep.subr.bf16.mxu0 %v7656_v31  ;;  %v10121_v52 = vpop.permute.xlu0 %2688 }
 0x48f   : > { %v3508_v26 = vrot.slane %v3501_v55, 4  ;;  %4328 = vmatprep.subr.bf16.mxu1 %v7720_v4  ;;  %v3170_v14 = vsel %vm399_vm0, %v3163_v40, %v12389_v15  ;;  %vm12770_vm9 = vcmask 482304   ;;  %v7655_v27 = vcombine.low %v9913_v32, %v2741_v53  ;;  %v12776_v53 = vld [vmem:[#allocation88_spill] sm:$0xff] }
 0x490   : > { %v3510_v34 = vsel %vm399_vm0, %v12767_v17, %v3505_v46  ;;  %v10117_v7 = vsel %vm12770_vm9, %v12760_v38, %v3512_v18  ;;  %v7719_v46 = vcombine.low %v10019_v9, %v3239_v57  ;;  %v7652_v31 = vcombine.high %v9952_v49, %v2707_v20  ;;  %v12772_v17 = vld [vmem:[#allocation70_spill] sm:$0xff]  ;;  %vm12773_vm13 = vmmov %vm12770_vm9  ;;  %v10131_v38 = vpop.permute.xlu1 %3122 }
 0x491   : > { %12771 = vst [vmem:[#allocation58_spill] sm:$0xff] %v10117_v7  ;;  %v3516_v48 = vsel %vm399_vm0, %v3508_v26, %v3509_v35  ;;  %v7716_v4 = vcombine.high %v10025_v2, %v3205_v36  ;;  %v3514_v40 = vsel %vm399_vm0, %v3507_v8, %v3508_v26  ;;  %v12391_v15 = vrot.slane %v12772_v17, 4  ;;  %4266 = vmatpush1.bf16.msra.mxu0 %v7655_v27  ;;  %v12785_v27 = vld [vmem:[#allocation56_spill] sm:$0xff] }
 0x492   : > { %v10129_v61 = vsel %vm12773_vm13, %v3501_v55, %v3516_v48  ;;  %4329 = vmatpush1.bf16.msra.mxu1 %v7719_v46  ;;  %vm12775_vm15 = vcmask 703488   ;;  %v3515_v9 = vsel %vm12770_vm9, %v12768_v37, %v3514_v40  ;;  %v3129_v57 = vrot.slane %v12776_v53, 4  ;;  %4267 = vmatprep.subr.bf16.mxu0 %v7652_v31  ;;  %vm12777_vm13 = vmmov %vm12770_vm9  ;;  %v12780_v46 = vld [vmem:[#allocation71_spill] sm:$0xff] }
 0x493   : > { %12774 = vst [vmem:[#allocation64_spill] sm:$0xff] %v10129_v61  ;;  %v3171_v32 = vsel %vm12775_vm15, %v12765_v23, %v3170_v14  ;;  %v12390_v18 = vrot.slane %v10131_v38, 4  ;;  %4330 = vmatprep.subr.bf16.mxu1 %v7716_v4  ;;  %v3511_v55 = vsel %vm12777_vm13, %v9545_v56, %v3510_v34  ;;  %v7651_v8 = vcombine.low %v9952_v49, %v2707_v20  ;;  %v12781_v49 = vld [vmem:[#allocation47_spill] sm:$0xff]  ;;  %v12782_v20 = vld [vmem:[#allocation84_spill] sm:$0xff]  ;;  %v12790_v61 = vld [vmem:[#allocation86_spill] sm:$0xff] }
 0x494   : > { %v7715_v35 = vcombine.low %v10025_v2, %v3205_v36  ;;  %v12778_v23 = vrot.slane %v12769_v63, 4  ;;  %v12779_v37 = vrot.slane %v9551_v0, 4  ;;  %v7712_v31 = vcombine.high %v10093_v30, %v3171_v32  ;;  %v10159_v34 = vpop.permute.xlu1 %3466 }
 0x495   : > { %v7756_v4 = vcombine.high %v3511_v55, %v3515_v9  ;;  %v3136_v56 = vsel %vm399_vm0, %v3129_v57, %v12390_v18  ;;  %v3436_v2 = vrot.slane %v12781_v49, 4  ;;  %4268 = vmatpush1.bf16.msra.mxu0 %v7651_v8  ;;  %vm12783_vm15 = vcmask 1031168   ;;  %v10169_v18 = vpop.permute.xlu0 %3356  ;;  %v12786_v8 = vld [vmem:[#allocation62_spill] sm:$0xff] }
 0x496   : > { %v3132_v14 = vsel %vm399_vm0, %v12779_v37, %v12778_v23  ;;  %4331 = vmatpush1.bf16.msra.mxu1 %v7715_v35  ;;  %v3137_v40 = vsel %vm12783_vm15, %v12776_v53, %v3136_v56  ;;  %v3476_v23 = vsel %vm399_vm0, %v3470_v50, %v12391_v15  ;;  %v12784_v37 = vld [vmem:[#allocation54_spill] sm:$0xff]  ;;  %v3473_v57 = vrot.slane %v9815_v12, 4  ;;  %4269 = vmatprep.subr.bf16.mxu0 %v7712_v31  ;;  %vm12787_vm9 = vmmov %vm12783_vm15 }
 0x497   : > { %v12395_v36 = vrot.slane %v10159_v34, 4  ;;  %4342 = vmatprep.subr.bf16.mxu1 %v7756_v4  ;;  %v3091_v35 = vrot.slane %v12786_v8, 4  ;;  %v7711_v53 = vcombine.low %v10093_v30, %v3171_v32  ;;  %v7755_v56 = vcombine.low %v3511_v55, %v3515_v9  ;;  %v12794_v55 = vld [vmem:[#allocation33_spill] sm:$0xff] }
 0x498   : > { %v3133_v50 = vsel %vm12787_vm9, %v9551_v0, %v3132_v14  ;;  %vm12788_vm13 = vcmask 506880   ;;  %v12789_v16 = vrot.slane %v12780_v46, 4  ;;  %v3439_v4 = vrot.slane %v9871_v3, 4  ;;  %v10186_v32 = vpop.permute.xlu1 %3432 }
 0x499   : > { %v7708_v15 = vcombine.high %v3133_v50, %v3137_v40  ;;  %v3477_v48 = vsel %vm12788_vm13, %v12766_v11, %v3476_v23  ;;  %v3480_v26 = vsel %vm399_vm0, %v3473_v57, %v12395_v36  ;;  %12791 = vst [vmem:[#allocation30_spill] sm:$0xff] %v10186_v32  ;;  %4270 = vmatpush2.bf16.msra.mxu0 %v7711_v53  ;;  %vm12792_vm15 = vmmov %vm12788_vm13  ;;  %v12793_v11 = vrot.slane %v12782_v20, 4  ;;  %v12797_v53 = vld [vmem:[#allocation63_spill] sm:$0xff] }
 0x49a   : > { %v3442_v31 = vsel %vm399_vm0, %v3436_v2, %v12789_v16  ;;  %4343 = vmatpush2.bf16.msra.mxu1 %v7755_v56  ;;  %v3481_v0 = vsel %vm12792_vm15, %v9815_v12, %v3480_v26  ;;  %v12795_v14 = vrot.slane %v12794_v55, 4  ;;  %v12796_v23 = vrot.slane %v9822_v54, 4  ;;  %v12799_v26 = vld [vmem:[#allocation32_spill] sm:$0xff]  ;;  %v12802_v55 = vld [vmem:[#allocation34_spill] sm:$0xff] }
 0x49b   : > { %v3098_v9 = vsel %vm399_vm0, %v3091_v35, %v12793_v11  ;;  %4271 = vmatprep.subr.bf16.mxu0 %v7708_v15  ;;  %v7751_v57 = vcombine.low %v3477_v48, %v3481_v0  ;;  %v7752_v36 = vcombine.high %v3477_v48, %v3481_v0  ;;  %v3057_v56 = vrot.slane %v12797_v53, 4  ;;  %v10215_v0 = vpop.permute.xlu0 %3322 }
 0x49c   : > { %v2930_v16 = vsel %vm399_vm0, %v12796_v23, %v12795_v14  ;;  %v7707_v30 = vcombine.low %v3133_v50, %v3137_v40  ;;  %v12798_v12 = vrot.slane %v12784_v37, 4  ;;  %v12800_v46 = vrot.slane %v12799_v26, 4  ;;  %v12804_v23 = vld [vmem:[#allocation18_spill] sm:$0xff]  ;;  %v10227_v17 = vpop.permute.xlu1 %3468 }
 0x49d   : > { %v12801_v11 = vrot.slane %v12785_v27, 4  ;;  %v12803_v7 = vrot.slane %v12802_v55, 4  ;;  %v12805_v2 = vrot.slane %v12804_v23, 4  ;;  %v12806_v15 = vrot.slane %v9629_v41, 4  ;;  %4344 = vmatprep.subr.bf16.mxu1 %v7752_v36 }
 0x49e   : > { %v3094_v35 = vsel %vm399_vm0, %v12800_v46, %v12798_v12  ;;  %vm12807_vm9 = vcmask 531456   ;;  %v12808_v46 = vrot.slane %v10186_v32, 4  ;;  %v3099_v12 = vsel %vm804_vm1, %v12786_v8, %v3098_v9  ;;  %4272 = vmatpush2.bf16.msra.mxu0 %v7707_v30  ;;  %4345 = vmatpush2.bf16.msra.mxu1 %v7751_v57 }
 0x49f   : > { %v3060_v14 = vsel %vm399_vm0, %v12803_v7, %v12801_v11  ;;  %v2926_v48 = vsel %vm399_vm0, %v12806_v15, %v12805_v2  ;;  %v3443_v40 = vsel %vm12807_vm9, %v12781_v49, %v3442_v31  ;;  %v12809_v7 = vld [vmem:[#allocation57_spill] sm:$0xff]  ;;  %vm12810_vm13 = vcmask 867328   ;;  %vm12811_vm15 = vmmov %vm12807_vm9  ;;  %v12814_v15 = vld [vmem:[#allocation35_spill] sm:$0xff]  ;;  %4273 = vmatprep.subr.bf16.mxu0 %v9766_v24  ;;  %v10269_v32 = vpop.permute.xlu0 %3288 }
 0x4a0   : > { %v3446_v50 = vsel %vm399_vm0, %v3439_v4, %v12808_v46  ;;  %v2931_v23 = vsel %vm12810_vm13, %v9822_v54, %v2930_v16  ;;  %v12812_v49 = vrot.slane %v12790_v61, 4  ;;  %v12813_v4 = vld [vmem:[#allocation87_spill] sm:$0xff]  ;;  %v12815_v8 = vrot.slane %v12814_v15, 4  ;;  %v12817_v16 = vld [vmem:[#allocation36_spill] sm:$0xff]  ;;  %v12818_v11 = vld [vmem:[#allocation38_spill] sm:$0xff] }
 0x4a1   : > { %v3447_v36 = vsel %vm12811_vm15, %v9871_v3, %v3446_v50  ;;  %v12816_v9 = vrot.slane %v9898_v39, 4  ;;  %v3020_v57 = vrot.slane %v12817_v16, 4  ;;  %v2855_v3 = vrot.slane %v12818_v11, 4  ;;  %vm12819_vm9 = vmmov %vm12810_vm13  ;;  %v10256_v11 = vld [vmem:[%s12536_s2 + $0x68] ss:$16 sps:$4 sm:$0xff]  }
 0x4a2   : > { %v3064_v31 = vsel %vm399_vm0, %v3057_v56, %v12812_v49  ;;  %v7747_v54 = vcombine.low %v3443_v40, %v3447_v36  ;;  %v7748_v30 = vcombine.high %v3443_v40, %v3447_v36  ;;  %v2927_v50 = vsel %vm12819_vm9, %v9629_v41, %v2926_v48  ;;  %v12820_v49 = vld [vmem:[#allocation19_spill] sm:$0xff]  ;;  %v12824_v41 = vld [vmem:[#allocation22_spill] sm:$0xff]  ;;  %4274 = vmatpush2.bf16.msra.mxu0 %v12732_v51 }
 0x4a3   : > { %v2896_v46 = vsel %vm399_vm0, %v12816_v9, %v12815_v8  ;;  %v3095_v56 = vsel %vm804_vm1, %v12799_v26, %v3094_v35  ;;  %v12821_v15 = vrot.slane %v12820_v49, 4  ;;  %v12822_v2 = vrot.slane %v9641_v5, 4  ;;  %v12823_v9 = vld [vmem:[#allocation65_spill] sm:$0xff]  ;;  %v10261_v35 = vpop.permute.xlu1 %2950 }
 0x4a4   : > { %v3023_v24 = vrot.slane %v12823_v9, 4  ;;  %4346 = vmatprep.subr.bf16.mxu1 %v7748_v30  ;;  %v7700_v40 = vcombine.high %v3095_v56, %v3099_v12  ;;  %v7682_v36 = vcombine.high %v2927_v50, %v2931_v23  ;;  %v2852_v48 = vrot.slane %v12824_v41, 4  ;;  %v12826_v49 = vld [vmem:[#allocation89_spill] sm:$0xff] }
 0x4a5   : > { %v2892_v8 = vsel %vm399_vm0, %v12822_v2, %v12821_v15  ;;  %vm12825_vm13 = vcmask 875520   ;;  %4347 = vmatpush2.bf16.msra.mxu1 %v7747_v54  ;;  %v3061_v2 = vsel %vm769_vm3, %v12802_v55, %v3060_v14  ;;  %v3065_v30 = vsel %vm769_vm3, %v12797_v53, %v3064_v31  ;;  %v12830_v14 = vld [vmem:[#allocation59_spill] sm:$0xff] }
 0x4a6   : > { %v2897_v26 = vsel %vm12825_vm13, %v9898_v39, %v2896_v46  ;;  %v12827_v41 = vrot.slane %v9935_v44, 4  ;;  %4275 = vmatprep.subr.bf16.mxu0 %v7700_v40  ;;  %4379 = vmatprep.subr.bf16.mxu1 %v7682_v36  ;;  %v12828_v39 = vrot.slane %v12809_v7, 4  ;;  %v12829_v46 = vrot.slane %v12813_v4, 4  ;;  %vm12831_vm15 = vmmov %vm12825_vm13  ;;  %v12834_v36 = vld [vmem:[#allocation68_spill] sm:$0xff] }
 0x4a7   : > { %v2893_v31 = vsel %vm12831_vm15, %v9641_v5, %v2892_v8  ;;  %v7681_v54 = vcombine.low %v2927_v50, %v2931_v23  ;;  %v7699_v15 = vcombine.low %v3095_v56, %v3099_v12  ;;  %v12833_v40 = vrot.slane %v9648_v33, 4  ;;  %v2797_v23 = vpop.permute.xlu1 %2796  ;;  %v12836_v50 = vld [vmem:[#allocation37_spill] sm:$0xff] }
 0x4a8   : > { %v2862_v10 = vsel %vm399_vm0, %v12827_v41, %v2855_v3  ;;  %v3026_v51 = vsel %vm399_vm0, %v3020_v57, %v12828_v39  ;;  %v3030_v55 = vsel %vm399_vm0, %v3023_v24, %v12829_v46  ;;  %v10286_v3 = vld [vmem:[%s12536_s2 + $0x8c] ss:$16 sps:$4 sm:$0xff]   ;;  %v2989_v41 = vrot.slane %v12834_v36, 4  ;;  %4349 = vmatmul.mubr.bf16.vlgmr.msra.gmra.mxu1 %v10256_v11 }
 0x4a9   : > { %12832 = vst [vmem:[#allocation77_spill] sm:$0xff] %v10286_v3  ;;  %v2858_v57 = vsel %vm399_vm0, %v12833_v40, %v2852_v48  ;;  %v7696_v24 = vcombine.high %v3061_v2, %v3065_v30  ;;  %v7678_v39 = vcombine.high %v2893_v31, %v2897_v26  ;;  %vm12835_vm9 = vcmask 1039360   ;;  %4276 = vmatpush2.bf16.msra.mxu0 %v7699_v15 }
 0x4aa   : > { %v2863_v5 = vsel %vm12835_vm9, %v9935_v44, %v2862_v10  ;;  %4380 = vmatpush1.bf16.msra.mxu1 %v7681_v54  ;;  %v3031_v12 = vsel %vm734_vm4, %v12823_v9, %v3030_v55  ;;  %v2986_v56 = vrot.slane %v12836_v50, 4  ;;  %v2803_v8 = vrot.slane %v2797_v23, 4  ;;  %vm12838_vm13 = vmmov %vm12835_vm9  ;;  %v12839_v10 = vld [vmem:[#allocation73_spill] sm:$0xff]  ;;  %7760 = vmatprep.mubr.msk.bf16.mxu1 %vm1965_vm5, %v10286_v3  ;;  %v10309_v55 = vpop.permute.xlu0 %3254 }
 0x4ab   : > { %4277 = vmatprep.subr.bf16.mxu0 %v7696_v24  ;;  %4381 = vmatprep.subr.bf16.mxu1 %v7678_v39  ;;  %v3027_v48 = vsel %vm734_vm4, %v12817_v16, %v3026_v51  ;;  %v12837_v46 = vrot.slane %v12826_v49, 4  ;;  %v2859_v44 = vsel %vm12838_vm13, %v9648_v33, %v2858_v57  ;;  %v7677_v54 = vcombine.low %v2893_v31, %v2897_v26  ;;  %v10317_v33 = vld [vmem:[%s12536_s2 + $0x88] ss:$16 sps:$4 sm:$0xff]   ;;  %v10321_v57 = vpop.permute.xlu1 %2948  ;;  %v12844_v39 = vld [vmem:[#allocation39_spill] sm:$0xff] }
 0x4ac   : > { %v7695_v53 = vcombine.low %v3061_v2, %v3065_v30  ;;  %v2800_v9 = vrot.slane %v9977_v58, 4  ;;  %v7692_v24 = vcombine.high %v3027_v48, %v3031_v12  ;;  %v7674_v16 = vcombine.high %v2859_v44, %v2863_v5  ;;  %v12841_v26 = vld [vmem:[#allocation26_spill] sm:$0xff]  ;;  %v12842_v30 = vld [vmem:[#allocation48_spill] sm:$0xff] }
 0x4ad   : > { %v2996_v40 = vsel %vm399_vm0, %v2989_v41, %v12837_v46  ;;  %v12840_v51 = vrot.slane %v12830_v14, 4  ;;  %v3404_v2 = vrot.slane %v12841_v26, 4  ;;  %v2952_v31 = vrot.slane %v12842_v30, 4 }
 0x4ae   : > { %4278 = vmatpush2.bf16.msra.mxu0 %v7695_v53  ;;  %4382 = vmatpush1.bf16.msra.mxu1 %v7677_v54  ;;  %vm12843_vm15 = vcmask 375808   ;;  %v3407_v23 = vrot.slane %v12844_v39, 4  ;;  %v12845_v46 = vrot.slane %v9725_v19, 4  ;;  %v2956_v15 = vrot.slane %v10321_v57, 4 }
 0x4af   : > { %v2992_v41 = vsel %vm399_vm0, %v2986_v56, %v12840_v51  ;;  %v2997_v58 = vsel %vm12843_vm15, %v12834_v36, %v2996_v40  ;;  %v2955_v56 = vrot.slane %v9924_v45, 4  ;;  %4279 = vmatprep.subr.bf16.mxu0 %v7692_v24  ;;  %4383 = vmatprep.subr.bf16.mxu1 %v7674_v16  ;;  %v7673_v26 = vcombine.low %v2859_v44, %v2863_v5  ;;  %vm12846_vm9 = vmmov %vm12843_vm15  ;;  %v10339_v40 = vld [vmem:[%s12536_s2 + $0xac] ss:$16 sps:$4 sm:$0xff]  }
 0x4b0   : > { %v2810_v51 = vsel %vm399_vm0, %v12845_v46, %v2803_v8  ;;  %v7691_v3 = vcombine.low %v3027_v48, %v3031_v12  ;;  %v2993_v53 = vsel %vm12846_vm9, %v12836_v50, %v2992_v41  ;;  %v12847_v54 = vrot.slane %v12839_v10, 4  ;;  %4359 = vmatmul.mubr.bf16.gmra.mxu1 %v10317_v33  ;;  %v2763_v50 = vpop.permute.xlu1 %2762  ;;  %v12850_v16 = vld [vmem:[#allocation90_spill] sm:$0xff] }
 0x4b1   : > { %v12848_v8 = vrot.slane %v9565_v6, 4  ;;  %v2766_v24 = vrot.slane %v10034_v43, 4  ;;  %v7688_v5 = vcombine.high %v2993_v53, %v2997_v58  ;;  %v2962_v12 = vsel %vm399_vm0, %v2955_v56, %v2956_v15  ;;  %v10359_v56 = vpop.permute.xlu0 %3080  ;;  %7761 = vmatprep.mubr.msk.bf16.mxu1 %vm1965_vm5, %v10339_v40 }
 0x4b2   : > { %v2958_v36 = vsel %vm399_vm0, %v2952_v31, %v12847_v54  ;;  %4280 = vmatpush2.bf16.msra.mxu0 %v7691_v3  ;;  %4384 = vmatpush1.bf16.msra.mxu1 %v7673_v26  ;;  %v2963_v48 = vsel %vm664_vm11, %v9924_v45, %v2962_v12  ;;  %v2811_v44 = vsel %vm506_vm8, %v9725_v19, %v2810_v51  ;;  %v12851_v41 = vrot.slane %v12850_v16, 4  ;;  %v12852_v3 = vld [vmem:[#allocation27_spill] sm:$0xff] }
 0x4b3   : > { %v2806_v39 = vsel %vm399_vm0, %v12848_v8, %v2800_v9  ;;  %v12849_v9 = vrot.slane %v9634_v25, 4  ;;  %v2769_v46 = vrot.slane %v2763_v50, 4  ;;  %4281 = vmatprep.subr.bf16.mxu0 %v7688_v5  ;;  %4385 = vmatprep.subr.bf16.mxu1 %v12852_v3  ;;  %v2732_v26 = vrot.slane %v10080_v21, 4  ;;  %v12857_v50 = vld [vmem:[#allocation52_spill] sm:$0xff] }
 0x4b4   : > { %v3414_v31 = vsel %vm399_vm0, %v12851_v41, %v3407_v23  ;;  %v7687_v45 = vcombine.low %v2993_v53, %v2997_v58  ;;  %v2959_v19 = vsel %vm664_vm11, %v12842_v30, %v2958_v36  ;;  %v2807_v51 = vsel %vm506_vm8, %v9565_v6, %v2806_v39  ;;  %v10378_v30 = vld [vmem:[%s12536_s2 + $0xa8] ss:$16 sps:$4 sm:$0xff]   ;;  %v2729_v58 = vpop.permute.xlu1 %2728  ;;  %v12856_v53 = vld [vmem:[#allocation25_spill] sm:$0xff] }
 0x4b5   : > { %v3410_v43 = vsel %vm399_vm0, %v12849_v9, %v3404_v2  ;;  %v12853_v2 = vld [vmem:[#allocation50_spill] sm:$0xff]  ;;  %v12855_v8 = vrot.slane %v12731_v59, 4  ;;  %v7684_v12 = vcombine.high %v2959_v19, %v2963_v48  ;;  %v7666_v21 = vcombine.high %v2807_v51, %v2811_v44 }
 0x4b6   : > { %v12854_v23 = vrot.slane %v12853_v2, 4  ;;  %v3415_v6 = vsel %vm1127_vm2, %v12850_v16, %v3414_v31  ;;  %4282 = vmatpush2.bf16.msra.mxu0 %v7687_v45  ;;  %4386 = vmatpush1.bf16.msra.mxu1 %v12856_v53  ;;  %v3411_v39 = vsel %vm1127_vm2, %v9634_v25, %v3410_v43  ;;  %v12858_v9 = vrot.slane %v12857_v50, 4  ;;  %v10393_v45 = vpop.permute.xlu0 %3046 }
 0x4b7   : > { %v2776_v5 = vsel %vm399_vm0, %v12855_v8, %v2769_v46  ;;  %4283 = vmatprep.subr.bf16.mxu0 %v7684_v12  ;;  %4387 = vmatprep.subr.bf16.mxu1 %v7666_v21  ;;  %v7683_v46 = vcombine.low %v2959_v19, %v2963_v48  ;;  %v2698_v31 = vrot.slane %v10121_v52, 4  ;;  %v7746_v8 = vcombine.high %v3411_v39, %v3415_v6  ;;  %v12861_v12 = vld [vmem:[#allocation40_spill] sm:$0xff] }
 0x4b8   : > { %v2772_v54 = vsel %vm399_vm0, %v12854_v23, %v2766_v24  ;;  %v2777_v36 = vsel %vm471_vm10, %v12731_v59, %v2776_v5  ;;  %v2735_v24 = vrot.slane %v2729_v58, 4  ;;  %v2738_v41 = vsel %vm399_vm0, %v12858_v9, %v2732_v26  ;;  %v10401_v5 = vld [vmem:[%s12536_s2 + $0x60] ss:$16 sps:$4 sm:$0xff]   ;;  %4369 = vmatmul.mubr.bf16.gmra.mxu1 %v10378_v30 }
 0x4b9   : > { %v7665_v23 = vcombine.low %v2807_v51, %v2811_v44  ;;  %v2773_v16 = vsel %vm471_vm10, %v12853_v2, %v2772_v54  ;;  %v12859_v59 = vrot.slane %v12744_v62, 4  ;;  %v3366_v48 = vrot.slane %v10169_v18, 4  ;;  %v2695_v44 = vpop.permute.xlu1 %2694  ;;  %v10412_v54 = vld [vmem:[%s12536_s2 + $0x84] ss:$16 sps:$4 sm:$0xff]   ;;  %v12860_v18 = vld [vmem:[#allocation72_spill] sm:$0xff] }
 0x4ba   : > { %v7662_v43 = vcombine.high %v2773_v16, %v2777_v36  ;;  %4284 = vmatpush2.bf16.msra.mxu0 %v7683_v46  ;;  %v2701_v26 = vrot.slane %v2695_v44, 4  ;;  %v7745_v19 = vcombine.low %v3411_v39, %v3415_v6  ;;  %v7661_v51 = vcombine.low %v2773_v16, %v2777_v36  ;;  %4411 = vmatprep.mubr.bf16.mxu1 %v12860_v18  ;;  %v12862_v58 = vld [vmem:[#allocation53_spill] sm:$0xff]  ;;  %v12865_v39 = vld [vmem:[#allocation44_spill] sm:$0xff] }
 0x4bb   : > { %v2742_v25 = vsel %vm399_vm0, %v12859_v59, %v2735_v24  ;;  %4388 = vmatpush1.bf16.msra.mxu1 %v7665_v23  ;;  %4442 = vmatprep.subr.bf16.mxu0 %v7746_v8  ;;  %v2739_v2 = vsel %vm436_vm12, %v12857_v50, %v2738_v41  ;;  %v3165_v21 = vrot.slane %v12861_v12, 4  ;;  %v12863_v24 = vrot.slane %v12862_v58, 4 }
 0x4bc   : > { %v2743_v52 = vsel %vm436_vm12, %v12744_v62, %v2742_v25  ;;  %4389 = vmatprep.subr.bf16.mxu1 %v7662_v43  ;;  %v12864_v9 = vrot.slane %v12755_v28, 4  ;;  %v12866_v50 = vrot.slane %v12865_v39, 4  ;;  %v3332_v46 = vrot.slane %v10215_v0, 4  ;;  %v10430_v25 = vpop.permute.xlu0 %3012 }
 0x4bd   : > { %v2704_v62 = vsel %vm399_vm0, %v12863_v24, %v2698_v31  ;;  %4286 = vmatmul.mubr.bf16.vlgmr.msra.gmra.mxu0 %v10401_v5  ;;  %v7658_v36 = vcombine.high %v2739_v2, %v2743_v52  ;;  %v3363_v23 = vpop.permute.xlu1 %3362  ;;  %v12867_v31 = vld [vmem:[#allocation28_spill] sm:$0xff]  ;;  %v12868_v43 = vrot.slane %v10074_v47, 4  ;;  %v12871_v18 = vrot.slane %v12739_v42, 4  ;;  %v12872_v24 = vld [vmem:[#allocation74_spill] sm:$0xff] }
 0x4be   : > { %v2708_v6 = vsel %vm399_vm0, %v12864_v9, %v2701_v26  ;;  %v3372_v41 = vsel %vm399_vm0, %v12866_v50, %v3366_v48  ;;  %4443 = vmatpush1.bf16.msra.mxu0 %v7745_v19  ;;  %v3162_v59 = vrot.slane %v12867_v31, 4  ;;  %v3369_v44 = vrot.slane %v3363_v23, 4  ;;  %v12869_v48 = vld [vmem:[#allocation29_spill] sm:$0xff]  ;;  %4295 = vmatprep.mubr.bf16.mxu0 %v10412_v54 }
 0x4bf   : > { %4390 = vmatpush1.bf16.msra.mxu1 %v7661_v51  ;;  %v2709_v16 = vsel %vm401_vm14, %v12755_v28, %v2708_v6  ;;  %v3172_v8 = vsel %vm399_vm0, %v12868_v43, %v3165_v21  ;;  %4444 = vmatprep.subr.bf16.mxu0 %v12852_v3  ;;  %v3128_v0 = vrot.slane %v12869_v48, 4  ;;  %v12870_v26 = vld [vmem:[#allocation41_spill] sm:$0xff]  ;;  %v7657_v19 = vcombine.low %v2739_v2, %v2743_v52  ;;  %v12874_v2 = vld [vmem:[#allocation46_spill] sm:$0xff] }
 0x4c0   : > { %4391 = vmatprep.subr.bf16.mxu1 %v7658_v36  ;;  %v3131_v51 = vrot.slane %v12870_v26, 4  ;;  %v2705_v28 = vsel %vm401_vm14, %v12862_v58, %v2704_v62  ;;  %v3168_v12 = vsel %vm399_vm0, %v12871_v18, %v3162_v59  ;;  %v12873_v21 = vrot.slane %v12872_v24, 4  ;;  %v10450_v36 = vld [vmem:[%s12536_s2 + $0x80] ss:$16 sps:$4 sm:$0xff]  }
 0x4c1   : > { %v7654_v6 = vcombine.high %v2705_v28, %v2709_v16  ;;  %v3373_v52 = vsel %vm1088_vm6, %v12865_v39, %v3372_v41  ;;  %v12875_v58 = vrot.slane %v12874_v2, 4  ;;  %v3298_v50 = vrot.slane %v10269_v32, 4  ;;  %v3329_v31 = vpop.permute.xlu1 %3328  ;;  %v10469_v32 = vld [vmem:[%s12536_s2 + $0xa4] ss:$16 sps:$4 sm:$0xff]  }
 0x4c2   : > { %v3376_v9 = vsel %vm399_vm0, %v12873_v21, %v3369_v44  ;;  %vm12876_vm13 = vcmask 703488   ;;  %4445 = vmatpush1.bf16.msra.mxu0 %v12856_v53  ;;  %v12877_v43 = vrot.slane %v10131_v38, 4  ;;  %v3335_v41 = vrot.slane %v3329_v31, 4 }
 0x4c3   : > { %v3338_v62 = vsel %vm399_vm0, %v12875_v58, %v3332_v46  ;;  %v3173_v23 = vsel %vm12876_vm13, %v10074_v47, %v3172_v8  ;;  %4392 = vmatpush1.bf16.msra.mxu1 %v7657_v19  ;;  %v3377_v59 = vsel %vm1088_vm6, %v12872_v24, %v3376_v9  ;;  %vm12878_vm15 = vmmov %vm12876_vm13  ;;  %v7653_v8 = vcombine.low %v2705_v28, %v2709_v16  ;;  %v10476_v19 = vpop.permute.xlu0 %2978 }
 0x4c4   : > { %v3138_v39 = vsel %vm399_vm0, %v12877_v43, %v3131_v51  ;;  %4393 = vmatprep.subr.bf16.mxu1 %v7654_v6  ;;  %v7737_v44 = vcombine.low %v3373_v52, %v3377_v59  ;;  %v7738_v46 = vcombine.high %v3373_v52, %v3377_v59  ;;  %v3169_v47 = vsel %vm12878_vm15, %v12739_v42, %v3168_v12  ;;  %v12880_v51 = vld [vmem:[#allocation75_spill] sm:$0xff]  ;;  %v12883_v12 = vld [vmem:[#allocation49_spill] sm:$0xff] }
 0x4c5   : > { %v12879_v48 = vrot.slane %v12769_v63, 4  ;;  %v12881_v18 = vrot.slane %v12880_v51, 4  ;;  %4296 = vmatmul.mubr.bf16.gmra.mxu0 %v10450_v36  ;;  %v7714_v21 = vcombine.high %v3169_v47, %v3173_v23  ;;  %v3264_v9 = vrot.slane %v10309_v55, 4  ;;  %v3295_v16 = vpop.permute.xlu1 %3294 }
 0x4c6   : > { %4446 = vmatprep.subr.bf16.mxu0 %v7738_v46  ;;  %vm12882_vm9 = vcmask 1031168   ;;  %v12884_v6 = vrot.slane %v12883_v12, 4  ;;  %v3301_v58 = vrot.slane %v3295_v16, 4  ;;  %4305 = vmatprep.mubr.bf16.mxu0 %v10469_v32  ;;  %v7713_v59 = vcombine.low %v3169_v47, %v3173_v23 }
 0x4c7   : > { %v3134_v26 = vsel %vm399_vm0, %v12879_v48, %v3128_v0  ;;  %v3342_v24 = vsel %vm399_vm0, %v12881_v18, %v3335_v41  ;;  %v3139_v42 = vsel %vm12882_vm9, %v10131_v38, %v3138_v39  ;;  %4394 = vmatpush1.bf16.msra.mxu1 %v7653_v8  ;;  %4447 = vmatpush1.bf16.msra.mxu0 %v7737_v44  ;;  %vm12885_vm13 = vmmov %vm12882_vm9  ;;  %v12886_v43 = vrot.slane %v9730_v22, 4  ;;  %v12887_v39 = vld [vmem:[#allocation51_spill] sm:$0xff]  ;;  %v3463_v8 = vpop.permute.xlu0 %3462 }
 0x4c8   : > { %v3339_v0 = vsel %vm1053_vm7, %v12874_v2, %v3338_v62  ;;  %v3343_v28 = vsel %vm1053_vm7, %v12880_v51, %v3342_v24  ;;  %v3304_v52 = vsel %vm399_vm0, %v12884_v6, %v3298_v50  ;;  %4395 = vmatprep.subr.bf16.mxu1 %v7714_v21  ;;  %v3135_v38 = vsel %vm12885_vm13, %v12769_v63, %v3134_v26  ;;  %v10501_v50 = vld [vmem:[%s12536_s2 + $0xa0] ss:$16 sps:$4 sm:$0xff]  }
 0x4c9   : > { %v7733_v31 = vcombine.low %v3339_v0, %v3343_v28  ;;  %v7734_v55 = vcombine.high %v3339_v0, %v3343_v28  ;;  %v3308_v2 = vsel %vm399_vm0, %v12886_v43, %v3301_v58  ;;  %v7710_v62 = vcombine.high %v3135_v38, %v3139_v42  ;;  %v3261_v46 = vpop.permute.xlu1 %3260 }
 0x4ca   : > { %v12888_v41 = vrot.slane %v12887_v39, 4  ;;  %vm12889_vm15 = vcmask 539648   ;;  %v3090_v47 = vrot.slane %v10359_v56, 4  ;;  %v3267_v48 = vrot.slane %v3261_v46, 4 }
 0x4cb   : > { %4448 = vmatprep.subr.bf16.mxu0 %v7734_v55  ;;  %4396 = vmatpush2.bf16.msra.mxu1 %v7713_v59  ;;  %v3305_v63 = vsel %vm12889_vm15, %v12883_v12, %v3304_v52  ;;  %vm12890_vm9 = vmmov %vm12889_vm15  ;;  %v7709_v18 = vcombine.low %v3135_v38, %v3139_v42  ;;  %v12891_v24 = vrot.slane %v12735_v13, 4  ;;  %vm12892_vm13 = vcmask 564224   ;;  %v2945_v58 = vpop.permute.xlu0 %2944 }
 0x4cc   : > { %v3270_v44 = vsel %vm399_vm0, %v12888_v41, %v3264_v9  ;;  %4449 = vmatpush1.bf16.msra.mxu0 %v7733_v31  ;;  %v3309_v23 = vsel %vm12890_vm9, %v9730_v22, %v3308_v2  ;;  %4397 = vmatprep.subr.bf16.mxu1 %v7710_v62  ;;  %v3056_v9 = vrot.slane %v10393_v45, 4  ;;  %vm12893_vm15 = vmmov %vm12892_vm13  ;;  %v12894_v42 = vrot.slane %v12784_v37, 4  ;;  %v8118_v45 = vld [vmem:[%s12536_s2 + $0x6c] ss:$16 sps:$4 sm:$0xff]  }
 0x4cd   : > { %v7729_v26 = vcombine.low %v3305_v63, %v3309_v23  ;;  %v7730_v51 = vcombine.high %v3305_v63, %v3309_v23  ;;  %v3274_v21 = vsel %vm399_vm0, %v12891_v24, %v3267_v48  ;;  %4306 = vmatmul.mubr.bf16.gmra.mxu0 %v10501_v50  ;;  %v3087_v16 = vpop.permute.xlu1 %3086  ;;  %v3271_v22 = vsel %vm12892_vm13, %v12887_v39, %v3270_v44 }
 0x4ce   : > { %v3275_v56 = vsel %vm12893_vm15, %v12735_v13, %v3274_v21  ;;  %v3096_v0 = vsel %vm399_vm0, %v12894_v42, %v3090_v47  ;;  %v3093_v28 = vrot.slane %v3087_v16, 4  ;;  %7762 = vmatprep.mubr.msk.bf16.mxu0 %vm1965_vm5, %v8118_v45  ;;  %v3022_v52 = vrot.slane %v10430_v25, 4 }
 0x4cf   : > { %4450 = vmatprep.subr.bf16.mxu0 %v7730_v51  ;;  %4398 = vmatpush2.bf16.msra.mxu1 %v7709_v18  ;;  %v7725_v12 = vcombine.low %v3271_v22, %v3275_v56  ;;  %v7726_v6 = vcombine.high %v3271_v22, %v3275_v56  ;;  %v12895_v13 = vrot.slane %v12782_v20, 4  ;;  %v12896_v55 = vrot.slane %v12785_v27, 4 }
 0x4d0   : > { %4451 = vmatpush1.bf16.msra.mxu0 %v7729_v26  ;;  %4399 = vmatprep.subr.bf16.mxu1 %v12852_v3  ;;  %v3097_v59 = vsel %vm804_vm1, %v12784_v37, %v3096_v0  ;;  %v3475_v43 = vrot.slane %v10227_v17, 4  ;;  %v12897_v62 = vcombine.high %v9995_v1, %v10045_v60  ;;  %v12898_v44 = vrot.slane %v12809_v7, 4 }
 0x4d1   : > { %v3100_v31 = vsel %vm399_vm0, %v12895_v13, %v3093_v28  ;;  %4452 = vmatprep.subr.bf16.mxu0 %v7726_v6  ;;  %v3062_v3 = vsel %vm399_vm0, %v12896_v55, %v3056_v9  ;;  %v3053_v38 = vpop.permute.xlu1 %3052  ;;  %v3472_v46 = vrot.slane %v3463_v8, 4  ;;  %v12899_v63 = vrot.slane %v12790_v61, 4  ;;  %v3429_v8 = vpop.permute.xlu0 %3428  ;;  %v12910_v13 = vld [vmem:[#allocation58_spill] sm:$0xff] }
 0x4d2   : > { %v3101_v25 = vsel %vm804_vm1, %v12782_v20, %v3100_v31  ;;  %v3059_v2 = vrot.slane %v3053_v38, 4  ;;  %v2988_v20 = vrot.slane %v10476_v19, 4  ;;  %v12900_v23 = vcombine.low %v9995_v1, %v10045_v60  ;;  %v12902_v19 = vld [vmem:[#allocation55_spill] sm:$0xff]  ;;  %v12904_v60 = vld [vmem:[#allocation70_spill] sm:$0xff]  ;;  %v12911_v31 = vld [vmem:[#allocation64_spill] sm:$0xff] }
 0x4d3   : > { %4400 = vmatpush2.bf16.msra.mxu1 %v12856_v53  ;;  %v7701_v39 = vcombine.low %v3097_v59, %v3101_v25  ;;  %v7702_v41 = vcombine.high %v3097_v59, %v3101_v25  ;;  %v3028_v53 = vsel %vm399_vm0, %v12898_v44, %v3022_v52  ;;  %v3063_v47 = vsel %vm769_vm3, %v12785_v27, %v3062_v3  ;;  %v12919_v44 = vld [vmem:[#allocation71_spill] sm:$0xff] }
 0x4d4   : > { %4453 = vmatpush1.bf16.msra.mxu0 %v7725_v12  ;;  %v3066_v37 = vsel %vm399_vm0, %v12899_v63, %v3059_v2  ;;  %v12901_v26 = vrot.slane %v10159_v34, 4  ;;  %v12903_v24 = vcombine.high %v10011_v29, %v12902_v19  ;;  %v3029_v1 = vsel %vm734_vm4, %v12809_v7, %v3028_v53 }
 0x4d5   : > { %4454 = vmatprep.subr.bf16.mxu0 %v12897_v62  ;;  %4401 = vmatprep.subr.bf16.mxu1 %v7702_v41  ;;  %v3019_v17 = vpop.permute.xlu1 %3018  ;;  %v3067_v48 = vsel %vm769_vm3, %v12790_v61, %v3066_v37  ;;  %v12905_v27 = vrot.slane %v12904_v60, 4  ;;  %v2954_v61 = vrot.slane %v2945_v58, 4  ;;  %v2957_v22 = vrot.slane %v10261_v35, 4 }
 0x4d6   : > { %v3482_v51 = vsel %vm399_vm0, %v12901_v26, %v3475_v43  ;;  %v3025_v18 = vrot.slane %v3019_v17, 4  ;;  %v7697_v21 = vcombine.low %v3063_v47, %v3067_v48  ;;  %v7698_v9 = vcombine.high %v3063_v47, %v3067_v48 }
 0x4d7   : > { %4402 = vmatpush2.bf16.msra.mxu1 %v7701_v39  ;;  %v3478_v16 = vsel %vm399_vm0, %v12905_v27, %v3472_v46  ;;  %v12906_v56 = vrot.slane %v12813_v4, 4  ;;  %v12907_v0 = vrot.slane %v12830_v14, 4  ;;  %v3438_v12 = vrot.slane %v3429_v8, 4 }
 0x4d8   : > { %4455 = vmatpush1.bf16.msra.mxu0 %v12900_v23  ;;  %4403 = vmatprep.subr.bf16.mxu1 %v7698_v9  ;;  %v12908_v7 = vcombine.low %v10011_v29, %v12902_v19  ;;  %vm12909_vm9 = vcmask 506880   ;;  %v2964_v52 = vsel %vm399_vm0, %v2956_v15, %v2957_v22  ;;  %v12912_v55 = vcombine.high %v12910_v13, %v12911_v31  ;;  %v12921_v23 = vld [vmem:[#allocation30_spill] sm:$0xff]  ;;  %v10642_v19 = vpop.f32.mrf.mxu0 }
 0x4d9   : > { %4456 = vmatprep.subr.bf16.mxu0 %v12903_v24  ;;  %v3032_v42 = vsel %vm399_vm0, %v12906_v56, %v3025_v18  ;;  %v2994_v28 = vsel %vm399_vm0, %v12907_v0, %v2988_v20  ;;  %v2985_v6 = vpop.permute.xlu1 %2984  ;;  %v3483_v35 = vsel %vm12909_vm9, %v10159_v34, %v3482_v51  ;;  %vm12913_vm13 = vmmov %vm12909_vm9  ;;  %v12914_v59 = vrot.slane %v12839_v10, 4  ;;  %12932 = vst [vmem:[#allocation81_spill] sm:$0xff] %v10642_v19 }
 0x4da   : > { %v3033_v45 = vsel %vm734_vm4, %v12813_v4, %v3032_v42  ;;  %v2991_v58 = vrot.slane %v2985_v6, 4  ;;  %v3479_v29 = vsel %vm12913_vm13, %v12904_v60, %v3478_v16  ;;  %v12915_v34 = vrot.slane %v12826_v49, 4 }
 0x4db   : > { %4404 = vmatpush2.bf16.msra.mxu1 %v7697_v21  ;;  %v7693_v3 = vcombine.low %v3029_v1, %v3033_v45  ;;  %v7694_v38 = vcombine.high %v3029_v1, %v3033_v45  ;;  %v2960_v4 = vsel %vm399_vm0, %v12914_v59, %v2954_v61  ;;  %v7754_v15 = vcombine.high %v3479_v29, %v3483_v35 }
 0x4dc   : > { %4457 = vmatpush1.bf16.msra.mxu0 %v12908_v7  ;;  %v2998_v25 = vsel %vm399_vm0, %v12915_v34, %v2991_v58  ;;  %v2965_v43 = vsel %vm664_vm11, %v10321_v57, %v2964_v52  ;;  %v12916_v62 = vcombine.low %v12910_v13, %v12911_v31  ;;  %vm12917_vm15 = vcmask 375808  }
 0x4dd   : > { %4468 = vmatprep.subr.bf16.mxu0 %v12912_v55  ;;  %4405 = vmatprep.subr.bf16.mxu1 %v7694_v38  ;;  %v3435_v2 = vpop.permute.xlu1 %3434  ;;  %v2995_v39 = vsel %vm12917_vm15, %v12830_v14, %v2994_v28  ;;  %vm12918_vm9 = vmmov %vm12917_vm15  ;;  %v12920_v53 = vrot.slane %v12919_v44, 4  ;;  %v2961_v20 = vsel %vm664_vm11, %v12839_v10, %v2960_v4  ;;  %v7753_v17 = vcombine.low %v3479_v29, %v3483_v35  ;;  %v12925_v10 = vld [vmem:[#allocation77_spill] sm:$0xff] }
 0x4de   : > { %v2999_v41 = vsel %vm12918_vm9, %v12826_v49, %v2998_v25  ;;  %v3441_v63 = vrot.slane %v3435_v2, 4  ;;  %v12922_v47 = vrot.slane %v12921_v23, 4  ;;  %v7686_v14 = vcombine.high %v2961_v20, %v2965_v43 }
 0x4df   : > { %4406 = vmatpush2.bf16.msra.mxu1 %v7693_v3  ;;  %v3444_v46 = vsel %vm399_vm0, %v12920_v53, %v3438_v12  ;;  %v7689_v37 = vcombine.low %v2995_v39, %v2999_v41  ;;  %v7690_v57 = vcombine.high %v2995_v39, %v2999_v41  ;;  %vm12923_vm13 = vcmask 531456  }
 0x4e0   : > { %4469 = vmatpush2.bf16.msra.mxu0 %v12916_v62  ;;  %v3448_v48 = vsel %vm399_vm0, %v12922_v47, %v3441_v63  ;;  %v3445_v49 = vsel %vm12923_vm13, %v12919_v44, %v3444_v46  ;;  %vm12924_vm15 = vmmov %vm12923_vm13  ;;  %v7685_v18 = vcombine.low %v2961_v20, %v2965_v43  ;;  %vm12962_vm9 = vcmask 130048  }
 0x4e1   : > { %4470 = vmatprep.subr.bf16.mxu0 %v7754_v15  ;;  %4407 = vmatprep.subr.bf16.mxu1 %v7690_v57  ;;  %v3449_v8 = vsel %vm12924_vm15, %v12921_v23, %v3448_v48  ;;  %vm12963_vm13 = vmmov %vm12962_vm9 }
 0x4e2   : > { %v7749_v26 = vcombine.low %v3445_v49, %v3449_v8  ;;  %v7750_v51 = vcombine.high %v3445_v49, %v3449_v8  ;;  %vm12976_vm15 = vmmov %vm12962_vm9 }
 0x4e3   : > { %4408 = vmatpush2.bf16.msra.mxu1 %v7689_v37 }
 0x4e4   : > { %4471 = vmatpush2.bf16.msra.mxu0 %v7753_v17  ;;  %4409 = vmatprep.subr.bf16.mxu1 %v7686_v14 }
 0x4e5   : > { %4472 = vmatprep.subr.bf16.mxu0 %v7750_v51 }
 0x4e7   : > { %4410 = vmatpush2.bf16.msra.mxu1 %v7685_v18 }
 0x4e8   : > { %4473 = vmatpush2.bf16.msra.mxu0 %v7749_v26 }
 0x4ea   : > { %4412 = vmatmul.mubr.bf16.vlgmr.msra.gmra.mxu1 %v10401_v5  ;;  %v12926_v5 = vmov 0  }
 0x4eb   : > { %4475 = vmatmul.mubr.bf16.vlgmr.msra.gmra.mxu0 %v10256_v11  ;;  %4421 = vmatprep.mubr.bf16.mxu1 %v10412_v54  ;;  %v10632_v11 = vpop.f32.mrf.mxu1 }
 0x4ec   : > { %7763 = vmatprep.mubr.msk.bf16.mxu0 %vm1965_vm5, %v12925_v10  ;;  %12927 = vst [vmem:[#allocation17_spill] sm:$0xff] %v10632_v11 }
 0x4ed   : > { %v10634_v54 = vpop.f32.mrf.mxu1 }
 0x4ee   : > { %12928 = vst [vmem:[#allocation79_spill] sm:$0xff] %v10634_v54 }
 0x4f2   : > { %4422 = vmatmul.mubr.bf16.gmra.mxu1 %v10450_v36  ;;  %v10636_v36 = vpop.f32.mrf.mxu1 }
 0x4f3   : > { %4485 = vmatmul.mubr.bf16.gmra.mxu0 %v10317_v33  ;;  %4431 = vmatprep.mubr.bf16.mxu1 %v10469_v32  ;;  %12929 = vst [vmem:[#allocation31_spill] sm:$0xff] %v10636_v36 }
 0x4f4   : > { %7764 = vmatprep.mubr.msk.bf16.mxu0 %vm1965_vm5, %v10339_v40  ;;  %v10638_v33 = vpop.f32.mrf.mxu1 }
 0x4f5   : > { %12930 = vst [vmem:[#allocation66_spill] sm:$0xff] %v10638_v33 }
 0x4f6   : > { %v10640_v32 = vpop.f32.mrf.mxu1 }
 0x4f7   : > { %12931 = vst [vmem:[#allocation60_spill] sm:$0xff] %v10640_v32 }
 0x4f8   : > { %v10644_v40 = vpop.f32.mrf.mxu1 }
 0x4f9   : > { %12933 = vst [vmem:[#allocation78_spill] sm:$0xff] %v10644_v40  ;;  %v12994_v40 = vmov 0.0|0.0  }
 0x4fa   : > { %4432 = vmatmul.mubr.bf16.gmra.mxu1 %v10501_v50  ;;  %v10646_v50 = vpop.f32.mrf.mxu0 }
 0x4fb   : > { %4495 = vmatmul.mubr.bf16.gmra.mxu0 %v10378_v30  ;;  %4647 = vmatprep.mubr.bf16.mxu1 %v12926_v5  ;;  %12934 = vst [vmem:[#allocation42_spill] sm:$0xff] %v10646_v50  ;;  %v10648_v30 = vpop.f32.mrf.mxu1 }
 0x4fc   : > { %4594 = vmatprep.mubr.bf16.mxu0 %v12926_v5  ;;  %12935 = vst [vmem:[#allocation61_spill] sm:$0xff] %v10648_v30  ;;  %v10650_v24 = vpop.f32.mrf.mxu0 }
 0x4fd   : > { %12936 = vst [vmem:[#allocation82_spill] sm:$0xff] %v10650_v24  ;;  %v10652_v21 = vpop.f32.mrf.mxu1 }
 0x4fe   : > { %12937 = vst [vmem:[#allocation76_spill] sm:$0xff] %v10652_v21  ;;  %v10654_v9 = vpop.f32.mrf.mxu0 }
 0x4ff   : > { %12938 = vst [vmem:[#allocation80_spill] sm:$0xff] %v10654_v9  ;;  %v10656_v1 = vpop.f32.mrf.mxu1 }
 0x500   : > { %12939 = vst [vmem:[#allocation43_spill] sm:$0xff] %v10656_v1  ;;  %v10658_v60 = vpop.f32.mrf.mxu0 }
 0x501   : > { %12940 = vst [vmem:[#allocation67_spill] sm:$0xff] %v10658_v60  ;;  %v10660_v27 = vpop.f32.mrf.mxu1 }
 0x502   : > { %12941 = vst [vmem:[#allocation83_spill] sm:$0xff] %v10660_v27  ;;  %v10662_v16 = vpop.f32.mrf.mxu0 }
 0x503   : > { %12942 = vst [vmem:[#allocation45_spill] sm:$0xff] %v10662_v16  ;;  %v10664_v61 = vpop.f32.mrf.mxu1 }
 0x504   : > { %12943 = vst [vmem:[#allocation85_spill] sm:$0xff] %v10664_v61  ;;  %v10666_v22 = vpop.f32.mrf.mxu0 }
 0x505   : > { %12944 = vst [vmem:[#allocation69_spill] sm:$0xff] %v10666_v22  ;;  %v10668_v56 = vpop.f32.mrf.mxu1 }
 0x506   : > { %12945 = vst [vmem:[#allocation88_spill] sm:$0xff] %v10668_v56  ;;  %v10670_v0 = vpop.f32.mrf.mxu0 }
 0x507   : > { %12946 = vst [vmem:[#allocation47_spill] sm:$0xff] %v10670_v0 }
 0x508   : > { %v10672_v12 = vpop.f32.mrf.mxu0 }
 0x509   : > { %12947 = vst [vmem:[#allocation84_spill] sm:$0xff] %v10672_v12 }
 0x50a   : > { %v10674_v7 = vpop.f32.mrf.mxu0 }
 0x50b   : > { %12948 = vst [vmem:[#allocation54_spill] sm:$0xff] %v10674_v7 }
 0x50c   : > { %v10676_v52 = vpop.f32.mrf.mxu0 }
 0x50d   : > { %12949 = vst [vmem:[#allocation56_spill] sm:$0xff] %v10676_v52 }
 0x50e   : > { %v10678_v13 = vpop.f32.mrf.mxu0 }
 0x50f   : > { %12950 = vst [vmem:[#allocation62_spill] sm:$0xff] %v10678_v13 }
 0x568   : > { %v4350_v42 = vpop.f32.mrf.mxu1 }
 0x56a   : > { %v4352_v28 = vpop.f32.mrf.mxu1 }
 0x56c   : > { %v4354_v6 = vpop.f32.mrf.mxu1 }
 0x56e   : > { %v4356_v45 = vpop.f32.mrf.mxu1 }
 0x570   : > { %v4360_v35 = vpop.f32.mrf.mxu1 }
 0x572   : > { %v4362_v58 = vpop.f32.mrf.mxu1 }
 0x574   : > { %v4364_v55 = vpop.f32.mrf.mxu1 }
 0x576   : > { %v4366_v29 = vpop.f32.mrf.mxu1 }
 0x578   : > { %v4370_v34 = vpop.f32.mrf.mxu1 }
 0x57a   : > { %v4372_v43 = vpop.f32.mrf.mxu1 }
 0x57c   : > { %v4374_v39 = vpop.f32.mrf.mxu1 }
 0x57d   : > { %v4287_v31 = vpop.f32.mrf.mxu0 }
 0x57e   : > { %v4376_v57 = vpop.f32.mrf.mxu1 }
 0x57f   : > { %v4289_v3 = vpop.f32.mrf.mxu0 }
 0x581   : > { %v4291_v38 = vpop.f32.mrf.mxu0 }
 0x583   : > { %v4293_v59 = vpop.f32.mrf.mxu0 }
 0x584   : > { %v4357_v18 = vadd.f32 %v4356_v45, %v4293_v59 }
 0x585   : > { %v4297_v4 = vpop.f32.mrf.mxu0 }
 0x586   : > { %v4361_v17 = vadd.f32 %v4360_v35, %v4297_v4  ;;  %v4351_v35 = vadd.f32 %v4350_v42, %v4287_v31 }
 0x587   : > { %v4299_v25 = vpop.f32.mrf.mxu0 }
 0x588   : > { %v4363_v41 = vadd.f32 %v4362_v58, %v4299_v25  ;;  %v4513_v56 = vmax.f32 %v4361_v17, 0.0  ;;  %v4353_v25 = vadd.f32 %v4352_v28, %v4289_v3  ;;  %v10683_v28 = vld [vmem:[%s12162_s3 + $0x10] sm:$0xff]  }
 0x589   : > { %v4301_v15 = vpop.f32.mrf.mxu0 }
 0x58a   : > { %v4514_v23 = vmax.f32 %v4363_v41, 0.0  ;;  %v4365_v47 = vadd.f32 %v4364_v55, %v4301_v15  ;;  %v4506_v55 = vmax.f32 %v4353_v25, 0.0  ;;  %v4505_v41 = vmax.f32 %v4351_v35, 0.0 }
 0x58b   : > { %v4303_v2 = vpop.f32.mrf.mxu0 }
 0x58c   : > { %v4367_v46 = vadd.f32 %v4366_v29, %v4303_v2  ;;  %v4517_v58 = vmax.f32 %v4365_v47, 0.0  ;;  %v4355_v2 = vadd.f32 %v4354_v6, %v4291_v38  ;;  %v10691_v6 = vld [vmem:[%s12162_s3 + $0x18] sm:$0xff]  }
 0x58d   : > { %v4307_v62 = vpop.f32.mrf.mxu0 }
 0x58e   : > { %v4371_v44 = vadd.f32 %v4370_v34, %v4307_v62  ;;  %v4518_v49 = vmax.f32 %v4367_v46, 0.0  ;;  %v4510_v62 = vmax.f32 %v4357_v18, 0.0  ;;  %v4533_v4 = vpack.c.bf16 %v4517_v58, %v4513_v56 }
 0x58f   : > { %v4309_v53 = vpop.f32.mrf.mxu0  ;;  %v4509_v15 = vmax.f32 %v4355_v2, 0.0 }
 0x590   : > { %v4373_v63 = vadd.f32 %v4372_v43, %v4309_v53  ;;  %v4521_v48 = vmax.f32 %v4371_v44, 0.0  ;;  %v4534_v29 = vpack.c.bf16 %v4518_v49, %v4514_v23 }
 0x591   : > { %v4311_v37 = vpop.f32.mrf.mxu0  ;;  %v4529_v45 = vpack.c.bf16 %v4509_v15, %v4505_v41 }
 0x592   : > { %v4375_v20 = vadd.f32 %v4374_v39, %v4311_v37  ;;  %v4522_v8 = vmax.f32 %v4373_v63, 0.0  ;;  %v4530_v39 = vpack.c.bf16 %v4510_v62, %v4506_v55 }
 0x593   : > { %v4313_v14 = vpop.f32.mrf.mxu0 }
 0x594   : > { %v4525_v26 = vmax.f32 %v4375_v20, 0.0  ;;  %v4377_v51 = vadd.f32 %v4376_v57, %v4313_v14 }
 0x596   : > { %v4526_v10 = vmax.f32 %v4377_v51, 0.0  ;;  %v4537_v34 = vpack.c.bf16 %v4525_v26, %v4521_v48 }
 0x598   : > { %v4538_v43 = vpack.c.bf16 %v4526_v10, %v4522_v8 }
 0x59a   : > { %4572 = vmatprep.subr.bf16.mxu0 %v4538_v43 }
 0x59b   : > { %4573 = vmatpush1.bf16.msra.mxu0 %v4537_v34 }
 0x59c   : > { %4574 = vmatprep.subr.bf16.mxu0 %v4534_v29 }
 0x59f   : > { %4575 = vmatpush1.bf16.msra.mxu0 %v4533_v4 }
 0x5a0   : > { %4576 = vmatprep.subr.bf16.mxu0 %v4530_v39 }
 0x5a3   : > { %4577 = vmatpush1.bf16.msra.mxu0 %v4529_v45 }
 0x5a6   : > { %7771 = vmatmul.mubr.msk.bf16.vlgmr.msra.gmra.mxu0 %vm1965_vm5, %v10683_v28 }
 0x5a7   : > { %4604 = vmatprep.mubr.bf16.mxu0 %v12926_v5 }
 0x5aa   : > { %v4413_v56 = vpop.f32.mrf.mxu1 }
 0x5ab   : > { %v4476_v42 = vpop.f32.mrf.mxu0 }
 0x5ac   : > { %v4415_v31 = vpop.f32.mrf.mxu1 }
 0x5ad   : > { %v4478_v3 = vpop.f32.mrf.mxu0 }
 0x5ae   : > { %v4417_v38 = vpop.f32.mrf.mxu1  ;;  %7772 = vmatmul.mubr.msk.bf16.gmra.mxu0 %vm1965_vm5, %v10691_v6  ;;  %v4479_v61 = vadd.f32 %v4478_v3, %v4415_v31 }
 0x5af   : > { %v4480_v59 = vpop.f32.mrf.mxu0  ;;  %4731 = vmatprep.mubr.bf16.mxu0 %v12926_v5 }
 0x5b0   : > { %v4419_v44 = vpop.f32.mrf.mxu1  ;;  %v4481_v21 = vadd.f32 %v4480_v59, %v4417_v38  ;;  %v12953_v38 = vld [vmem:[#allocation9_spill] sm:$0xff] }
 0x5b1   : > { %v4482_v53 = vpop.f32.mrf.mxu0 }
 0x5b2   : > { %v4423_v46 = vpop.f32.mrf.mxu1  ;;  %v4483_v4 = vadd.f32 %v4482_v53, %v4419_v44  ;;  %v4511_v44 = vmax.f32 %v4481_v21, 0.0 }
 0x5b3   : > { %v4486_v63 = vpop.f32.mrf.mxu0 }
 0x5b4   : > { %v4425_v37 = vpop.f32.mrf.mxu1  ;;  %v4487_v41 = vadd.f32 %v4486_v63, %v4423_v46  ;;  %v12954_v63 = vmov 0.0  }
 0x5b5   : > { %v4488_v57 = vpop.f32.mrf.mxu0 }
 0x5b6   : > { %v4427_v20 = vpop.f32.mrf.mxu1  ;;  %v4489_v43 = vadd.f32 %v4488_v57, %v4425_v37  ;;  %v4515_v37 = vmax.f32 %v4487_v41, 0.0  ;;  %v4508_v57 = vmax.f32 %v4479_v61, 0.0  ;;  %v12951_v61 = vld [vmem:[#allocation13_spill] sm:$0xff] }
 0x5b7   : > { %v4490_v17 = vpop.f32.mrf.mxu0 }
 0x5b8   : > { %v4429_v23 = vpop.f32.mrf.mxu1  ;;  %v4491_v62 = vadd.f32 %v4490_v17, %v4427_v20  ;;  %v4516_v27 = vmax.f32 %v4489_v43, 0.0 }
 0x5b9   : > { %v4492_v47 = vpop.f32.mrf.mxu0 }
 0x5ba   : > { %v4433_v48 = vpop.f32.mrf.mxu1  ;;  %v4493_v18 = vadd.f32 %v4492_v47, %v4429_v23  ;;  %v4519_v23 = vmax.f32 %v4491_v62, 0.0  ;;  %v12961_v62 = vld [vmem:[#allocation10_spill] sm:$0xff] }
 0x5bb   : > { %v4496_v14 = vpop.f32.mrf.mxu0 }
 0x5bc   : > { %v4435_v49 = vpop.f32.mrf.mxu1  ;;  %v4497_v34 = vadd.f32 %v4496_v14, %v4433_v48  ;;  %v4520_v55 = vmax.f32 %v4493_v18, 0.0  ;;  %v4477_v14 = vadd.f32 %v4476_v42, %v4413_v56  ;;  %v4535_v53 = vpack.c.bf16 %v4519_v23, %v4515_v37 }
 0x5bd   : > { %v4498_v8 = vpop.f32.mrf.mxu0 }
 0x5be   : > { %v4437_v26 = vpop.f32.mrf.mxu1  ;;  %v4499_v10 = vadd.f32 %v4498_v8, %v4435_v49  ;;  %v4523_v45 = vmax.f32 %v4497_v34, 0.0  ;;  %v4512_v49 = vmax.f32 %v4483_v4, 0.0  ;;  %v4536_v48 = vpack.c.bf16 %v4520_v55, %v4516_v27 }
 0x5bf   : > { %v4500_v51 = vpop.f32.mrf.mxu0  ;;  %v4507_v17 = vmax.f32 %v4477_v14, 0.0 }
 0x5c0   : > { %v4501_v58 = vadd.f32 %v4500_v51, %v4437_v26  ;;  %v4439_v25 = vpop.f32.mrf.mxu1  ;;  %v4524_v15 = vmax.f32 %v4499_v10, 0.0  ;;  %v4532_v20 = vpack.c.bf16 %v4512_v49, %v4508_v57  ;;  %v12955_v26 = vld [vmem:[#allocation14_spill] sm:$0xff] }
 0x5c1   : > { %v4502_v29 = vpop.f32.mrf.mxu0  ;;  %v4531_v31 = vpack.c.bf16 %v4511_v44, %v4507_v17  ;;  %v12966_v44 = vld [vmem:[#allocation11_spill] sm:$0xff] }
 0x5c2   : > { %v4503_v2 = vadd.f32 %v4502_v29, %v4439_v25  ;;  %v4527_v35 = vmax.f32 %v4501_v58, 0.0  ;;  %v12959_v25 = vld [vmem:[#allocation16_spill] sm:$0xff] }
 0x5c4   : > { %v4528_v39 = vmax.f32 %v4503_v2, 0.0  ;;  %v4539_v47 = vpack.c.bf16 %v4527_v35, %v4523_v45  ;;  %v8086_v45 = vld [vmem:[%s12164_s5 + $0x8] sm:$0xff]  }
 0x5c6   : > { %v4540_v1 = vpack.c.bf16 %v4528_v39, %v4524_v15  ;;  %v8085_v15 = vld [vmem:[%s12163_s4 + $0x8] sm:$0xff]  }
 0x5c8   : > { %4625 = vmatprep.subr.bf16.mxu1 %v4540_v1 }
 0x5c9   : > { %4626 = vmatpush1.bf16.msra.mxu1 %v4539_v47 }
 0x5ca   : > { %4627 = vmatprep.subr.bf16.mxu1 %v4536_v48  ;;  %v12964_v48 = vld [vmem:[#allocation20_spill] sm:$0xff] }
 0x5cd   : > { %4628 = vmatpush1.bf16.msra.mxu1 %v4535_v53 }
 0x5ce   : > { %4629 = vmatprep.subr.bf16.mxu1 %v4532_v20 }
 0x5d1   : > { %4630 = vmatpush1.bf16.msra.mxu1 %v4531_v31 }
 0x5d4   : > { %7773 = vmatmul.mubr.msk.bf16.vlgmr.msra.gmra.mxu1 %vm1965_vm5, %v10683_v28 }
 0x5d5   : > { %4657 = vmatprep.mubr.bf16.mxu1 %v12926_v5 }
 0x5dc   : > { %7774 = vmatmul.mubr.msk.bf16.gmra.mxu1 %vm1965_vm5, %v10691_v6  ;;  %v12957_v6 = vld [vmem:[#allocation15_spill] sm:$0xff] }
 0x5dd   : > { %4774 = vmatprep.mubr.bf16.mxu1 %v12926_v5 }
 0x666   : > { %v4596_v1 = vpop.f32.mrf.mxu0 }
 0x667   : > { %v4668_v27 = vmax.f32 %v4596_v1, 0.0  ;;  %v12967_v1 = vld [vmem:[#allocation21_spill] sm:$0xff] }
 0x668   : > { %v4598_v21 = vpop.f32.mrf.mxu0 }
 0x669   : > { %v10703_v56 = vadd.f32 %v4668_v27, %v12951_v61  ;;  %v4669_v42 = vmax.f32 %v4598_v21, 0.0  ;;  %v12969_v21 = vld [vmem:[#allocation23_spill] sm:$0xff] }
 0x66a   : > { %v4600_v3 = vpop.f32.mrf.mxu0 }
 0x66b   : > { %12952 = vst [vmem:[#allocation86_spill] sm:$0xff] %v10703_v56  ;;  %v4958_v59 = vmul.f32 %v10703_v56, %v12953_v38  ;;  %v4672_v46 = vmax.f32 %v4600_v3, 0.0  ;;  %v10712_v18 = vadd.f32 %v4669_v42, %v12957_v6 }
 0x66c   : > { %v4602_v28 = vpop.f32.mrf.mxu0 }
 0x66d   : > { %v7984_v8 = vpack.c.bf16 %v4958_v59, %v12954_v63  ;;  %v10709_v51 = vadd.f32 %v4672_v46, %v12955_v26  ;;  %12958 = vst [vmem:[#allocation63_spill] sm:$0xff] %v10712_v18  ;;  %v4673_v10 = vmax.f32 %v4602_v28, 0.0  ;;  %v4687_v58 = vpack.c.bf16 %v4672_v46, %v4668_v27 }
 0x66e   : > { %v4959_v35 = vmul.f32 %v10712_v18, %v12961_v62 }
 0x66f   : > { %12956 = vst [vmem:[#allocation33_spill] sm:$0xff] %v10709_v51  ;;  %v10716_v34 = vmul.f32 %v10709_v51, %v12953_v38  ;;  %5680 = vrot.lane.b32.xlu0 %v7984_v8, %s12664_s15  ;;  %v10720_v29 = vadd.f32 %v4673_v10, %v12959_v25  ;;  %v4688_v43 = vpack.c.bf16 %v4673_v10, %v4669_v42  ;;  %v12971_v38 = vld [vmem:[#allocation24_spill] sm:$0xff] }
 0x670   : > { %v4788_v41 = vpack.c.bf16 %v10709_v51, %v10703_v56  ;;  %v7990_v26 = vpack.c.bf16 %v4959_v35, %v4958_v59 }
 0x671   : > { %12960 = vst [vmem:[#allocation32_spill] sm:$0xff] %v10720_v29  ;;  %v10723_v2 = vpack.c.bf16 %v10716_v34, %v4958_v59  ;;  %v10729_v4 = vmul.f32 %v10720_v29, %v12961_v62  ;;  %4713 = vmatprep.subr.bf16.mxu0 %v4688_v43  ;;  %v4789_v55 = vpack.c.bf16 %v10720_v29, %v10712_v18 }
 0x672   : > { %4714 = vmatpush1.bf16.msra.mxu0 %v4687_v58  ;;  %v12974_v58 = vld [vmem:[#allocation12_spill] sm:$0xff] }
 0x673   : > { %5646 = vrot.lane.b32.xlu0 %v7984_v8, %s12666_s24  ;;  %4814 = vmatprep.subr.bf16.mxu0 %v4789_v55  ;;  %v10738_v39 = vpack.c.bf16 %v10729_v4, %v4959_v35 }
 0x675   : > { %7778 = vmatmul.mubr.msk.bf16.vlgmr.msra.gmra.mxu0 %vm12962_vm9, %v8085_v15 }
 0x676   : > { %4815 = vmatpush1.bf16.msra.mxu0 %v4788_v41  ;;  %4832 = vmatprep.mubr.bf16.mxu0 %v12926_v5 }
 0x677   : > { %5114 = vrot.lane.b32.xlu0 %v7984_v8, %s12687_s1 }
 0x67b   : > { %5612 = vrot.lane.b32.xlu0 %v7984_v8, %s12668_s6 }
 0x67d   : > { %7783 = vmatmul.mubr.msk.bf16.vlgmr.msra.gmra.mxu0 %vm12963_vm13, %v8086_v45  ;;  %vm13007_vm13 = vcmask 1039360  }
 0x67f   : > { %5080 = vrot.lane.b32.xlu0 %v7984_v8, %s12655_s14 }
 0x683   : > { %5578 = vrot.lane.b32.xlu0 %v7984_v8, %s12657_s13 }
 0x687   : > { %5046 = vrot.lane.b32.xlu0 %v7984_v8, %s12637_s10 }
 0x68b   : > { %5012 = vrot.lane.b32.xlu0 %v7984_v8, %s12639_s0 }
 0x68f   : > { %5404 = vrot.lane.b32.xlu0 %v7984_v8, %s12613_s26 }
 0x693   : > { %5370 = vrot.lane.b32.xlu0 %v7984_v8, %s12614_s27 }
 0x694   : > { %v4649_v23 = vpop.f32.mrf.mxu1 }
 0x695   : > { %v4670_v47 = vmax.f32 %v4649_v23, 0.0 }
 0x696   : > { %v4651_v49 = vpop.f32.mrf.mxu1 }
 0x697   : > { %v10757_v14 = vadd.f32 %v4670_v47, %v12964_v48  ;;  %v4671_v37 = vmax.f32 %v4651_v49, 0.0  ;;  %5336 = vrot.lane.b32.xlu0 %v7984_v8, %s12616_s22 }
 0x698   : > { %v4653_v57 = vpop.f32.mrf.mxu1 }
 0x699   : > { %12965 = vst [vmem:[#allocation34_spill] sm:$0xff] %v10757_v14  ;;  %v4960_v53 = vmul.f32 %v10757_v14, %v12966_v44  ;;  %v4674_v20 = vmax.f32 %v4653_v57, 0.0  ;;  %v10766_v61 = vadd.f32 %v4671_v37, %v12969_v21 }
 0x69a   : > { %v4655_v17 = vpop.f32.mrf.mxu1 }
 0x69b   : > { %v7985_v31 = vpack.c.bf16 %v4960_v53, %v4959_v35  ;;  %v10763_v27 = vadd.f32 %v4674_v20, %v12967_v1  ;;  %12970 = vst [vmem:[#allocation57_spill] sm:$0xff] %v10766_v61  ;;  %v4675_v42 = vmax.f32 %v4655_v17, 0.0  ;;  %5302 = vrot.lane.b32.xlu0 %v7984_v8, %s12617_s23  ;;  %v4689_v6 = vpack.c.bf16 %v4674_v20, %v4670_v47  ;;  %v10809_v35 = vpop.permute.xlu0 %5238 }
 0x69c   : > { %v10782_v25 = vmul.f32 %v10766_v61, %v12974_v58  ;;  %12977 = vst [vmem:[#allocation38_spill] sm:$0xff] %v10809_v35  ;;  %v7987_v47 = vpack.c.bf16 %v10716_v34, %v12954_v63  ;;  %v10850_v63 = vpop.permute.xlu1 %5244 }
 0x69d   : > { %12968 = vst [vmem:[#allocation18_spill] sm:$0xff] %v10763_v27  ;;  %v10770_v3 = vmul.f32 %v10763_v27, %v12966_v44  ;;  %v10774_v46 = vadd.f32 %v4675_v42, %v12971_v38  ;;  %v4690_v28 = vpack.c.bf16 %v4675_v42, %v4671_v37  ;;  %5682 = vrot.lane.b32.xlu1 %v7985_v31, %s12664_s15  ;;  %12983 = vst [vmem:[#allocation68_spill] sm:$0xff] %v10850_v63 }
 0x69e   : > { %v4790_v62 = vpack.c.bf16 %v10763_v27, %v10757_v14  ;;  %v7991_v23 = vpack.c.bf16 %v10782_v25, %v4960_v53 }
 0x69f   : > { %12972 = vst [vmem:[#allocation87_spill] sm:$0xff] %v10774_v46  ;;  %v10778_v10 = vpack.c.bf16 %v10770_v3, %v4960_v53  ;;  %v10786_v43 = vmul.f32 %v10774_v46, %v12974_v58  ;;  %4756 = vmatprep.subr.bf16.mxu1 %v4690_v28  ;;  %v4791_v8 = vpack.c.bf16 %v10774_v46, %v10766_v61  ;;  %v10814_v55 = vpop.permute.xlu0 %5204 }
 0x6a0   : > { %4757 = vmatpush1.bf16.msra.mxu1 %v4689_v6  ;;  %5234 = vrot.lane.b32.xlu0 %v7990_v26, %s12545_s25  ;;  %12978 = vst [vmem:[#allocation19_spill] sm:$0xff] %v10814_v55  ;;  %v10858_v44 = vpop.permute.xlu1 %5210  ;;  %v7992_v58 = vpack.c.bf16 %v10729_v4, %v10716_v34 }
 0x6a1   : > { %12973 = vst [vmem:[#allocation35_spill] sm:$0xff] %v10778_v10  ;;  %5648 = vrot.lane.b32.xlu1 %v7985_v31, %s12666_s24  ;;  %4857 = vmatprep.subr.bf16.mxu1 %v4791_v8  ;;  %v10794_v59 = vpack.c.bf16 %v10786_v43, %v10782_v25  ;;  %12984 = vst [vmem:[#allocation37_spill] sm:$0xff] %v10858_v44  ;;  %v10961_v60 = vpack.c.bf16 %v10786_v43, %v10770_v3 }
 0x6a3   : > { %12975 = vst [vmem:[#allocation36_spill] sm:$0xff] %v10794_v59  ;;  %7779 = vmatmul.mubr.msk.bf16.vlgmr.msra.gmra.mxu1 %vm12976_vm15, %v8085_v15  ;;  %v10819_v15 = vpop.permute.xlu0 %5170  ;;  %vm13008_vm15 = vcmask 670720  }
 0x6a4   : > { %4858 = vmatpush1.bf16.msra.mxu1 %v4790_v62  ;;  %5718 = vrot.lane.b32.xlu0 %v7990_v26, %s12640_s18  ;;  %12979 = vst [vmem:[#allocation65_spill] sm:$0xff] %v10819_v15  ;;  %v10866_v17 = vpop.permute.xlu1 %5176 }
 0x6a5   : > { %5116 = vrot.lane.b32.xlu1 %v7985_v31, %s12687_s1  ;;  %4875 = vmatprep.mubr.bf16.mxu1 %v12926_v5  ;;  %12985 = vst [vmem:[#allocation73_spill] sm:$0xff] %v10866_v17 }
 0x6a7   : > { %v10824_v41 = vpop.permute.xlu0 %5722 }
 0x6a8   : > { %5200 = vrot.lane.b32.xlu0 %v7990_v26, %s12546_s29  ;;  %12980 = vst [vmem:[#allocation22_spill] sm:$0xff] %v10824_v41  ;;  %v10874_v1 = vpop.permute.xlu1 %5728 }
 0x6a9   : > { %5614 = vrot.lane.b32.xlu1 %v7985_v31, %s12668_s6  ;;  %12986 = vst [vmem:[#allocation26_spill] sm:$0xff] %v10874_v1 }
 0x6ab   : > { %7784 = vmatmul.mubr.msk.bf16.vlgmr.msra.gmra.mxu1 %vm12962_vm9, %v8086_v45  ;;  %v10829_v45 = vpop.permute.xlu0 %5480  ;;  %vm13010_vm9 = vmmov %vm13008_vm15 }
 0x6ac   : > { %5166 = vrot.lane.b32.xlu0 %v7990_v26, %s12549_s30  ;;  %12981 = vst [vmem:[#allocation89_spill] sm:$0xff] %v10829_v45  ;;  %v10882_v38 = vpop.permute.xlu1 %5486 }
 0x6ad   : > { %5082 = vrot.lane.b32.xlu1 %v7985_v31, %s12655_s14  ;;  %12987 = vst [vmem:[#allocation48_spill] sm:$0xff] %v10882_v38 }
 0x6af   : > { %v10837_v49 = vpop.permute.xlu0 %5446 }
 0x6b0   : > { %5544 = vrot.lane.b32.xlu0 %v7990_v26, %s12641_s17  ;;  %12982 = vst [vmem:[#allocation59_spill] sm:$0xff] %v10837_v49  ;;  %v10892_v6 = vpop.permute.xlu1 %5452 }
 0x6b1   : > { %5580 = vrot.lane.b32.xlu1 %v7985_v31, %s12657_s13  ;;  %12988 = vst [vmem:[#allocation39_spill] sm:$0xff] %v10892_v6 }
 0x6b3   : > { %v10842_v48 = vpop.permute.xlu0 %5548 }
 0x6b4   : > { %5510 = vrot.lane.b32.xlu0 %v7990_v26, %s12619_s21 }
 0x6b5   : > { %5048 = vrot.lane.b32.xlu1 %v7985_v31, %s12637_s10 }
 0x6b7   : > { %v10847_v37 = vpop.permute.xlu0 %5514 }
 0x6b8   : > { %5476 = vrot.lane.b32.xlu0 %v7990_v26, %s12620_s19 }
 0x6b9   : > { %5014 = vrot.lane.b32.xlu1 %v7985_v31, %s12639_s0 }
 0x6bc   : > { %5820 = vrot.lane.b32.xlu0 %v7990_v26, %s12537_s9 }
 0x6bd   : > { %5406 = vrot.lane.b32.xlu1 %v7985_v31, %s12613_s26 }
 0x6c0   : > { %5442 = vrot.lane.b32.xlu0 %v7990_v26, %s12627_s20 }
 0x6c1   : > { %5372 = vrot.lane.b32.xlu1 %v7985_v31, %s12614_s27 }
 0x6c4   : > { %5786 = vrot.lane.b32.xlu0 %v7990_v26, %s12540_s11 }
 0x6c5   : > { %5338 = vrot.lane.b32.xlu1 %v7985_v31, %s12616_s22 }
 0x6c8   : > { %5752 = vrot.lane.b32.xlu0 %v7990_v26, %s12543_s12 }
 0x6c9   : > { %5304 = vrot.lane.b32.xlu1 %v7985_v31, %s12617_s23 }
 0x6cc   : > { %5268 = vrot.lane.b32.xlu0 %v7990_v26, %s12634_s8  ;;  %v7988_v26 = vpack.c.bf16 %v10770_v3, %v10729_v4  ;;  %v10977_v3 = vpack.c.bf16 %v10782_v25, %v10782_v25 }
 0x6cd   : > { %5236 = vrot.lane.b32.xlu1 %v7991_v23, %s12545_s25 }
 0x6d0   : > { %5686 = vrot.lane.b32.xlu0 %v7987_v47, %s12664_s15 }
 0x6d1   : > { %5720 = vrot.lane.b32.xlu1 %v7991_v23, %s12640_s18 }
 0x6d4   : > { %5652 = vrot.lane.b32.xlu0 %v7987_v47, %s12666_s24 }
 0x6d5   : > { %5202 = vrot.lane.b32.xlu1 %v7991_v23, %s12546_s29 }
 0x6d8   : > { %5120 = vrot.lane.b32.xlu0 %v7987_v47, %s12687_s1 }
 0x6d9   : > { %5168 = vrot.lane.b32.xlu1 %v7991_v23, %s12549_s30 }
 0x6dc   : > { %5618 = vrot.lane.b32.xlu0 %v7987_v47, %s12668_s6 }
 0x6dd   : > { %5546 = vrot.lane.b32.xlu1 %v7991_v23, %s12641_s17 }
 0x6e0   : > { %5086 = vrot.lane.b32.xlu0 %v7987_v47, %s12655_s14 }
 0x6e1   : > { %5512 = vrot.lane.b32.xlu1 %v7991_v23, %s12619_s21  ;;  %v10854_v57 = vpop.permute.xlu0 %5680 }
 0x6e4   : > { %5584 = vrot.lane.b32.xlu0 %v7987_v47, %s12657_s13 }
 0x6e5   : > { %5478 = vrot.lane.b32.xlu1 %v7991_v23, %s12620_s19  ;;  %v10860_v53 = vpop.permute.xlu0 %5646 }
 0x6e8   : > { %5052 = vrot.lane.b32.xlu0 %v7987_v47, %s12637_s10 }
 0x6e9   : > { %5822 = vrot.lane.b32.xlu1 %v7991_v23, %s12537_s9  ;;  %v10864_v20 = vpop.permute.xlu0 %5114 }
 0x6ec   : > { %5018 = vrot.lane.b32.xlu0 %v7987_v47, %s12639_s0 }
 0x6ed   : > { %5444 = vrot.lane.b32.xlu1 %v7991_v23, %s12627_s20  ;;  %v10870_v31 = vpop.permute.xlu0 %5612 }
 0x6f0   : > { %5410 = vrot.lane.b32.xlu0 %v7987_v47, %s12613_s26 }
 0x6f1   : > { %5788 = vrot.lane.b32.xlu1 %v7991_v23, %s12540_s11  ;;  %v10876_v21 = vpop.permute.xlu0 %5080 }
 0x6f4   : > { %5376 = vrot.lane.b32.xlu0 %v7987_v47, %s12614_s27 }
 0x6f5   : > { %5754 = vrot.lane.b32.xlu1 %v7991_v23, %s12543_s12  ;;  %v10880_v42 = vpop.permute.xlu0 %5578 }
 0x6f8   : > { %5342 = vrot.lane.b32.xlu0 %v7987_v47, %s12616_s22 }
 0x6f9   : > { %5270 = vrot.lane.b32.xlu1 %v7991_v23, %s12634_s8  ;;  %v10886_v28 = vpop.permute.xlu0 %5046  ;;  %v10902_v23 = vpop.permute.xlu1 %5554 }
 0x6fc   : > { %5308 = vrot.lane.b32.xlu0 %v7987_v47, %s12617_s23 }
 0x6fd   : > { %5688 = vrot.lane.b32.xlu1 %v7988_v26, %s12664_s15  ;;  %v10896_v8 = vpop.permute.xlu0 %5012  ;;  %v10910_v34 = vpop.permute.xlu1 %5520 }
 0x6fe   : > { %12991 = vst [vmem:[#allocation50_spill] sm:$0xff] %v10910_v34 }
 0x700   : > { %5240 = vrot.lane.b32.xlu0 %v7992_v58, %s12545_s25 }
 0x701   : > { %5654 = vrot.lane.b32.xlu1 %v7988_v26, %s12666_s24  ;;  %v10900_v62 = vpop.permute.xlu0 %5404 }
 0x702   : > { %12989 = vst [vmem:[#allocation90_spill] sm:$0xff] %v10900_v62 }
 0x704   : > { %5724 = vrot.lane.b32.xlu0 %v7992_v58, %s12640_s18 }
 0x705   : > { %5122 = vrot.lane.b32.xlu1 %v7988_v26, %s12687_s1  ;;  %v10906_v47 = vpop.permute.xlu0 %5370 }
 0x706   : > { %12990 = vst [vmem:[#allocation27_spill] sm:$0xff] %v10906_v47 }
 0x708   : > { %5206 = vrot.lane.b32.xlu0 %v7992_v58, %s12546_s29 }
 0x709   : > { %5620 = vrot.lane.b32.xlu1 %v7988_v26, %s12668_s6  ;;  %v10912_v4 = vpop.permute.xlu0 %5336 }
 0x70a   : > { %12992 = vst [vmem:[#allocation25_spill] sm:$0xff] %v10912_v4 }
 0x70c   : > { %5172 = vrot.lane.b32.xlu0 %v7992_v58, %s12549_s30 }
 0x70d   : > { %5088 = vrot.lane.b32.xlu1 %v7988_v26, %s12655_s14  ;;  %v10916_v30 = vpop.permute.xlu0 %5302 }
 0x70e   : > { %12993 = vst [vmem:[#allocation52_spill] sm:$0xff] %v10916_v30 }
 0x70f   : > { %v10918_v33 = vpop.permute.xlu1 %5682 }
 0x710   : > { %5824 = vrot.lane.b32.xlu0 %v12994_v40, %s12537_s9 }
 0x711   : > { %5586 = vrot.lane.b32.xlu1 %v7988_v26, %s12657_s13 }
 0x712   : > { %v10923_v36 = vpop.permute.xlu0 %5234 }
 0x713   : > { %v10925_v32 = vpop.permute.xlu1 %5648 }
 0x714   : > { %12995 = vst [vmem:[#allocation72_spill] sm:$0xff] %v10925_v32  ;;  %5550 = vrot.lane.b32.xlu0 %v7992_v58, %s12641_s17  ;;  %v13057_v34 = vrot.slane %v10925_v32, 4 }
 0x715   : > { %5054 = vrot.lane.b32.xlu1 %v7988_v26, %s12637_s10 }
 0x716   : > { %v10929_v54 = vpop.permute.xlu0 %5718 }
 0x717   : > { %v10931_v11 = vpop.permute.xlu1 %5116 }
 0x718   : > { %5516 = vrot.lane.b32.xlu0 %v7992_v58, %s12619_s21 }
 0x719   : > { %5020 = vrot.lane.b32.xlu1 %v7988_v26, %s12639_s0 }
 0x71a   : > { %v10935_v13 = vpop.permute.xlu0 %5200 }
 0x71b   : > { %v10937_v52 = vpop.permute.xlu1 %5614 }
 0x71c   : > { %12996 = vst [vmem:[#allocation40_spill] sm:$0xff] %v10937_v52  ;;  %5482 = vrot.lane.b32.xlu0 %v7992_v58, %s12620_s19 }
 0x71d   : > { %5412 = vrot.lane.b32.xlu1 %v7988_v26, %s12613_s26 }
 0x71e   : > { %v5167_v7 = vpop.permute.xlu0 %5166 }
 0x71f   : > { %v10941_v12 = vpop.permute.xlu1 %5082  ;;  %v5178_v45 = vrot.slane %v5167_v7, 4 }
 0x720   : > { %5826 = vrot.lane.b32.xlu0 %v7992_v58, %s12537_s9 }
 0x721   : > { %5378 = vrot.lane.b32.xlu1 %v7988_v26, %s12614_s27 }
 0x722   : > { %v10945_v0 = vpop.permute.xlu0 %5544 }
 0x723   : > { %v10947_v22 = vpop.permute.xlu1 %5580 }
 0x724   : > { %12997 = vst [vmem:[#allocation53_spill] sm:$0xff] %v10947_v22  ;;  %5448 = vrot.lane.b32.xlu0 %v7992_v58, %s12627_s20 }
 0x725   : > { %5344 = vrot.lane.b32.xlu1 %v7988_v26, %s12616_s22 }
 0x726   : > { %v10951_v9 = vpop.permute.xlu0 %5510 }
 0x727   : > { %v10953_v16 = vpop.permute.xlu1 %5048  ;;  %v5522_v30 = vrot.slane %v10951_v9, 4 }
 0x728   : > { %5792 = vrot.lane.b32.xlu0 %v7992_v58, %s12540_s11 }
 0x729   : > { %5310 = vrot.lane.b32.xlu1 %v7988_v26, %s12617_s23 }
 0x72a   : > { %v10957_v24 = vpop.permute.xlu0 %5476 }
 0x72b   : > { %v10963_v50 = vpop.permute.xlu1 %5014 }
 0x72c   : > { %5758 = vrot.lane.b32.xlu0 %v7992_v58, %s12543_s12 }
 0x72d   : > { %5242 = vrot.lane.b32.xlu1 %v10961_v60, %s12545_s25 }
 0x72e   : > { %v10968_v19 = vpop.permute.xlu0 %5820 }
 0x72f   : > { %v10970_v14 = vpop.permute.xlu1 %5406 }
 0x730   : > { %12998 = vst [vmem:[#allocation44_spill] sm:$0xff] %v10970_v14  ;;  %5274 = vrot.lane.b32.xlu0 %v7992_v58, %s12634_s8 }
 0x731   : > { %5726 = vrot.lane.b32.xlu1 %v10961_v60, %s12640_s18 }
 0x732   : > { %v10979_v26 = vpop.permute.xlu0 %5442 }
 0x733   : > { %v10981_v27 = vpop.permute.xlu1 %5372 }
 0x734   : > { %12999 = vst [vmem:[#allocation28_spill] sm:$0xff] %v10981_v27  ;;  %5118 = vrot.lane.b32.xlu0 %v10977_v3, %s12687_s1  ;;  %v5524_v27 = vrot.slane %v10847_v37, 4 }
 0x735   : > { %5208 = vrot.lane.b32.xlu1 %v10961_v60, %s12546_s29 }
 0x736   : > { %v10987_v46 = vpop.permute.xlu0 %5786 }
 0x737   : > { %13000 = vst [vmem:[#allocation29_spill] sm:$0xff] %v10987_v46  ;;  %v10989_v58 = vpop.permute.xlu1 %5338 }
 0x738   : > { %13001 = vst [vmem:[#allocation41_spill] sm:$0xff] %v10989_v58  ;;  %5084 = vrot.lane.b32.xlu0 %v10977_v3, %s12655_s14  ;;  %v5556_v58 = vrot.slane %v10945_v0, 4 }
 0x739   : > { %5174 = vrot.lane.b32.xlu1 %v10961_v60, %s12549_s30 }
 0x73a   : > { %v10995_v25 = vpop.permute.xlu0 %5752 }
 0x73b   : > { %13002 = vst [vmem:[#allocation74_spill] sm:$0xff] %v10995_v25  ;;  %v10997_v61 = vpop.permute.xlu1 %5304 }
 0x73c   : > { %13003 = vst [vmem:[#allocation46_spill] sm:$0xff] %v10997_v61  ;;  %5050 = vrot.lane.b32.xlu0 %v10977_v3, %s12637_s10  ;;  %v5558_v61 = vrot.slane %v10842_v48, 4 }
 0x73d   : > { %5830 = vrot.lane.b32.xlu1 %v12994_v40, %s12537_s9 }
 0x73e   : > { %v11003_v56 = vpop.permute.xlu0 %5268 }
 0x73f   : > { %13004 = vst [vmem:[#allocation75_spill] sm:$0xff] %v11003_v56  ;;  %v11005_v51 = vpop.permute.xlu1 %5236 }
 0x740   : > { %13005 = vst [vmem:[#allocation49_spill] sm:$0xff] %v11005_v51  ;;  %5016 = vrot.lane.b32.xlu0 %v10977_v3, %s12639_s0 }
 0x741   : > { %5552 = vrot.lane.b32.xlu1 %v10961_v60, %s12641_s17 }
 0x742   : > { %v11011_v29 = vpop.permute.xlu0 %5686 }
 0x743   : > { %v11013_v18 = vpop.permute.xlu1 %5720 }
 0x744   : > { %5684 = vrot.lane.b32.xlu0 %v10977_v3, %s12664_s15 }
 0x745   : > { %5518 = vrot.lane.b32.xlu1 %v10961_v60, %s12619_s21 }
 0x746   : > { %v11019_v5 = vpop.permute.xlu0 %5652 }
 0x747   : > { %v11021_v6 = vpop.permute.xlu1 %5202 }
 0x748   : > { %5650 = vrot.lane.b32.xlu0 %v10977_v3, %s12666_s24 }
 0x749   : > { %5484 = vrot.lane.b32.xlu1 %v10961_v60, %s12620_s19  ;;  %s13012_s19 = sld [smem:[#allocation110_spill]] }
 0x74a   : > { %v11027_v49 = vpop.permute.xlu0 %5120 }
 0x74b   : > { %v11029_v38 = vpop.permute.xlu1 %5168 }
 0x74c   : > { %13006 = vst [vmem:[#allocation51_spill] sm:$0xff] %v11029_v38  ;;  %v12425_v10 = vrot.slane %v11029_v38, 4  ;;  %5616 = vrot.lane.b32.xlu0 %v10977_v3, %s12668_s6 }
 0x74d   : > { %5828 = vrot.lane.b32.xlu1 %v10961_v60, %s12537_s9 }
 0x74e   : > { %v5184_v59 = vsel %vm399_vm0, %v5178_v45, %v12425_v10  ;;  %v11039_v1 = vpop.permute.xlu0 %5618 }
 0x74f   : > { %v5547_v41 = vpop.permute.xlu1 %5546  ;;  %v11042_v56 = vsel %vm13007_vm13, %v5167_v7, %v5184_v59  ;;  %vm13013_vm13 = vcmask 687104  }
 0x750   : > { %v5557_v25 = vrot.slane %v5547_v41, 4  ;;  %5582 = vrot.lane.b32.xlu0 %v10977_v3, %s12657_s13 }
 0x751   : > { %5450 = vrot.lane.b32.xlu1 %v10961_v60, %s12627_s20 }
 0x752   : > { %v5562_v38 = vsel %vm399_vm0, %v5556_v58, %v5557_v25  ;;  %v5564_v45 = vsel %vm399_vm0, %v5557_v25, %v5558_v61  ;;  %v11052_v10 = vpop.permute.xlu0 %5086  ;;  %v8087_v61 = vld [vmem:[%s13012_s19 + $0xcc] ss:$16 sps:$4 sm:$0xff]  }
 0x753   : > { %v11055_v7 = vsel %vm13008_vm15, %v5547_v41, %v5564_v45  ;;  %v5513_v59 = vpop.permute.xlu1 %5512  ;;  %v11059_v48 = vsel %vm13010_vm9, %v10945_v0, %v5562_v38  ;;  %7929 = vmatprep.mubr.msk.bf16.mxu1 %vm1965_vm5, %v8087_v61  ;;  %vm13016_vm15 = vmmov %vm13013_vm13  ;;  %v5488_v45 = vrot.slane %v10957_v24, 4  ;;  %vm13018_vm9 = vcmask 703488  }
 0x754   : > { %13009 = vst [vmem:[#allocation55_spill] sm:$0xff] %v11055_v7  ;;  %13011 = vst [vmem:[#allocation70_spill] sm:$0xff] %v11059_v48  ;;  %v5523_v14 = vrot.slane %v5513_v59, 4  ;;  %5408 = vrot.lane.b32.xlu0 %v10977_v3, %s12613_s26 }
 0x755   : > { %5794 = vrot.lane.b32.xlu1 %v10961_v60, %s12540_s11 }
 0x756   : > { %v5528_v41 = vsel %vm399_vm0, %v5522_v30, %v5523_v14  ;;  %v5530_v0 = vsel %vm399_vm0, %v5523_v14, %v5524_v27  ;;  %v11072_v38 = vpop.permute.xlu0 %5584 }
 0x757   : > { %v11076_v37 = vsel %vm13013_vm13, %v5513_v59, %v5530_v0  ;;  %v11078_v58 = vpop.permute.xlu1 %5478  ;;  %v11082_v25 = vsel %vm13016_vm15, %v10951_v9, %v5528_v41  ;;  %v5832_v59 = vrot.slane %v10968_v19, 4  ;;  %vm13022_vm13 = vcmask 482304  }
 0x758   : > { %13014 = vst [vmem:[#allocation58_spill] sm:$0xff] %v11076_v37  ;;  %13015 = vst [vmem:[#allocation64_spill] sm:$0xff] %v11078_v58  ;;  %v12430_v4 = vrot.slane %v11078_v58, 4  ;;  %5374 = vrot.lane.b32.xlu0 %v10977_v3, %s12614_s27  ;;  %vm13026_vm15 = vcmask 1031168   ;;  %v5730_v37 = vrot.slane %v10929_v54, 4 }
 0x759   : > { %13017 = vst [vmem:[#allocation71_spill] sm:$0xff] %v11082_v25  ;;  %5760 = vrot.lane.b32.xlu1 %v10961_v60, %s12543_s12 }
 0x75a   : > { %v5494_v30 = vsel %vm399_vm0, %v5488_v45, %v12430_v4  ;;  %v11093_v14 = vpop.permute.xlu0 %5052 }
 0x75b   : > { %v5823_v27 = vpop.permute.xlu1 %5822  ;;  %v11097_v9 = vsel %vm13018_vm9, %v10957_v24, %v5494_v30  ;;  %v5454_v24 = vrot.slane %v10979_v26, 4  ;;  %vm13038_vm9 = vmmov %vm13022_vm13 }
 0x75c   : > { %13019 = vst [vmem:[#allocation30_spill] sm:$0xff] %v11097_v9  ;;  %v5833_v61 = vrot.slane %v5823_v27, 4  ;;  %5340 = vrot.lane.b32.xlu0 %v10977_v3, %s12616_s22 }
 0x75d   : > { %5796 = vrot.lane.b32.xlu1 %v12994_v40, %s12540_s11 }
 0x75e   : > { %v5838_v41 = vsel %vm399_vm0, %v5832_v59, %v5833_v61  ;;  %v11105_v0 = vpop.permute.xlu0 %5018 }
 0x75f   : > { %13020 = vst [vmem:[#allocation77_spill] sm:$0xff] %v11105_v0  ;;  %v11107_v45 = vpop.permute.xlu1 %5444  ;;  %v11111_v4 = vsel %vm13022_vm13, %v10968_v19, %v5838_v41  ;;  %v7989_v19 = vpack.c.bf16 %v10786_v43, %v10786_v43  ;;  %v11144_v43 = vld [vmem:[%s13012_s19 + $0xc4] ss:$16 sps:$4 sm:$0xff]   ;;  %vm13053_vm13 = vcmask 867328  }
 0x760   : > { %13021 = vst [vmem:[#allocation13_spill] sm:$0xff] %v11107_v45  ;;  %13023 = vst [vmem:[#allocation9_spill] sm:$0xff] %v11111_v4  ;;  %v12436_v30 = vrot.slane %v11107_v45, 4  ;;  %5306 = vrot.lane.b32.xlu0 %v10977_v3, %s12617_s23  ;;  %6613 = vmatprep.mubr.bf16.mxu0 %v11144_v43 }
 0x761   : > { %5278 = vrot.lane.b32.xlu1 %v12994_v40, %s12634_s8  ;;  %13030 = vst [vmem:[#allocation11_spill] sm:$0xff] %v11144_v43 }
 0x762   : > { %v5460_v59 = vsel %vm399_vm0, %v5454_v24, %v12436_v30  ;;  %v11122_v58 = vpop.permute.xlu0 %5410 }
 0x763   : > { %13024 = vst [vmem:[#allocation14_spill] sm:$0xff] %v11122_v58  ;;  %v11126_v41 = vpop.permute.xlu1 %5788  ;;  %v11130_v4 = vsel %vm13026_vm15, %v10979_v26, %v5460_v59  ;;  %vm13054_vm15 = vmmov %vm13053_vm13 }
 0x764   : > { %13025 = vst [vmem:[#allocation15_spill] sm:$0xff] %v11126_v41  ;;  %13027 = vst [vmem:[#allocation16_spill] sm:$0xff] %v11130_v4  ;;  %5790 = vrot.lane.b32.xlu0 %v12994_v40, %s12540_s11 }
 0x765   : > { %5124 = vrot.lane.b32.xlu1 %v7989_v19, %s12687_s1 }
 0x766   : > { %v11135_v3 = vpop.permute.xlu0 %5376 }
 0x767   : > { %13028 = vst [vmem:[#allocation10_spill] sm:$0xff] %v11135_v3  ;;  %v11137_v45 = vpop.permute.xlu1 %5754 }
 0x768   : > { %13029 = vst [vmem:[#allocation20_spill] sm:$0xff] %v11137_v45  ;;  %5272 = vrot.lane.b32.xlu0 %v12994_v40, %s12634_s8 }
 0x769   : > { %5276 = vrot.lane.b32.xlu1 %v10961_v60, %s12634_s8 }
 0x76a   : > { %v11148_v26 = vpop.permute.xlu0 %5342 }
 0x76b   : > { %13031 = vst [vmem:[#allocation21_spill] sm:$0xff] %v11148_v26  ;;  %v11151_v24 = vpop.permute.xlu1 %5270 }
 0x76c   : > { %13032 = vst [vmem:[#allocation23_spill] sm:$0xff] %v11151_v24  ;;  %5756 = vrot.lane.b32.xlu0 %v12994_v40, %s12543_s12 }
 0x76d   : > { %5090 = vrot.lane.b32.xlu1 %v7989_v19, %s12655_s14  ;;  %s13287_s14 = sld [smem:[#allocation112_spill]] }
 0x76e   : > { %v11156_v59 = vpop.permute.xlu0 %5308 }
 0x76f   : > { %13033 = vst [vmem:[#allocation24_spill] sm:$0xff] %v11156_v59  ;;  %v11158_v30 = vpop.permute.xlu1 %5688 }
 0x770   : > { %13034 = vst [vmem:[#allocation12_spill] sm:$0xff] %v11158_v30 }
 0x771   : > { %5056 = vrot.lane.b32.xlu1 %v7989_v19, %s12637_s10 }
 0x772   : > { %v11161_v3 = vpop.permute.xlu0 %5240 }
 0x773   : > { %v11163_v60 = vpop.permute.xlu1 %5654 }
 0x774   : > { %13035 = vst [vmem:[#allocation91_spill] sm:$0xff] %v11163_v60 }
 0x775   : > { %5022 = vrot.lane.b32.xlu1 %v7989_v19, %s12639_s0 }
 0x776   : > { %v11166_v43 = vpop.permute.xlu0 %5724 }
 0x777   : > { %v11168_v24 = vpop.permute.xlu1 %5122 }
 0x779   : > { %5690 = vrot.lane.b32.xlu1 %v7989_v19, %s12664_s15 }
 0x77a   : > { %v11171_v26 = vpop.permute.xlu0 %5206 }
 0x77b   : > { %v11173_v4 = vpop.permute.xlu1 %5620 }
 0x77c   : > { %13036 = vst [vmem:[#allocation92_spill] sm:$0xff] %v11173_v4 }
 0x77d   : > { %5656 = vrot.lane.b32.xlu1 %v7989_v19, %s12666_s24  ;;  %s13281_s24 = sld [smem:[#allocation8_spill]] }
 0x77e   : > { %v11176_v59 = vpop.permute.xlu0 %5172 }
 0x77f   : > { %v11178_v58 = vpop.permute.xlu1 %5088 }
 0x781   : > { %5622 = vrot.lane.b32.xlu1 %v7989_v19, %s12668_s6 }
 0x782   : > { %v5825_v9 = vpop.permute.xlu0 %5824 }
 0x783   : > { %v11181_v45 = vpop.permute.xlu1 %5586  ;;  %v5834_v47 = vrot.slane %v5825_v9, 4  ;;  %s12100_s15 = scalar_lea.vmem %s13287_s14, %s13281_s24 }
 0x784   : > { %13037 = vst [vmem:[#allocation93_spill] sm:$0xff] %v11181_v45 }
 0x785   : > { %v5840_v62 = vsel %vm399_vm0, %v5833_v61, %v5834_v47  ;;  %5588 = vrot.lane.b32.xlu1 %v7989_v19, %s12657_s13 }
 0x786   : > { %v11185_v25 = vpop.permute.xlu0 %5550  ;;  %v11188_v41 = vsel %vm13038_vm9, %v5823_v27, %v5840_v62  ;;  %vm13060_vm9 = vcmask 875520  }
 0x787   : > { %13039 = vst [vmem:[#allocation94_spill] sm:$0xff] %v11188_v41  ;;  %v11190_v46 = vpop.permute.xlu1 %5054 }
 0x789   : > { %5414 = vrot.lane.b32.xlu1 %v7989_v19, %s12613_s26 }
 0x78a   : > { %v11193_v48 = vpop.permute.xlu0 %5516 }
 0x78b   : > { %13040 = vst [vmem:[#allocation95_spill] sm:$0xff] %v11193_v48  ;;  %v11195_v17 = vpop.permute.xlu1 %5020 }
 0x78d   : > { %5380 = vrot.lane.b32.xlu1 %v7989_v19, %s12614_s27 }
 0x78e   : > { %v11198_v9 = vpop.permute.xlu0 %5482 }
 0x78f   : > { %13041 = vst [vmem:[#allocation96_spill] sm:$0xff] %v11198_v9  ;;  %v11200_v47 = vpop.permute.xlu1 %5412 }
 0x790   : > { %13042 = vst [vmem:[#allocation97_spill] sm:$0xff] %v11200_v47 }
 0x791   : > { %5346 = vrot.lane.b32.xlu1 %v7989_v19, %s12616_s22 }
 0x792   : > { %v11203_v61 = vpop.permute.xlu0 %5826 }
 0x793   : > { %13043 = vst [vmem:[#allocation98_spill] sm:$0xff] %v11203_v61  ;;  %v11205_v62 = vpop.permute.xlu1 %5378  ;;  %v5249_v61 = vrot.slane %v11161_v3, 4 }
 0x794   : > { %13044 = vst [vmem:[#allocation99_spill] sm:$0xff] %v11205_v62  ;;  %v5126_v62 = vrot.slane %v10864_v20, 4 }
 0x795   : > { %5312 = vrot.lane.b32.xlu1 %v7989_v19, %s12617_s23 }
 0x796   : > { %v11208_v27 = vpop.permute.xlu0 %5448 }
 0x797   : > { %13045 = vst [vmem:[#allocation100_spill] sm:$0xff] %v11208_v27  ;;  %v11210_v41 = vpop.permute.xlu1 %5344  ;;  %v13051_v27 = vrot.slane %v11005_v51, 4  ;;  %v13112_v7 = vld [vmem:[#allocation97_spill] sm:$0xff] }
 0x798   : > { %13046 = vst [vmem:[#allocation101_spill] sm:$0xff] %v11210_v41  ;;  %v5246_v41 = vrot.slane %v10923_v36, 4 }
 0x799   : > { %5762 = vrot.lane.b32.xlu1 %v12994_v40, %s12543_s12  ;;  %v5692_v40 = vrot.slane %v10854_v57, 4  ;;  %s13291_s12 = sld [smem:[#allocation111_spill]] }
 0x79a   : > { %v11214_v44 = vpop.permute.xlu0 %5792  ;;  %v5252_v15 = vsel %vm399_vm0, %v5246_v41, %v13051_v27 }
 0x79b   : > { %13047 = vst [vmem:[#allocation102_spill] sm:$0xff] %v11214_v44  ;;  %v11216_v9 = vpop.permute.xlu1 %5310  ;;  %v5253_v63 = vsel %vm13053_vm13, %v10923_v36, %v5252_v15  ;;  %v13055_v44 = vrot.slane %v11013_v18, 4  ;;  %v13056_v36 = vrot.slane %v10918_v33, 4  ;;  %v13058_v15 = vrot.slane %v11021_v6, 4  ;;  %vm13063_vm13 = vmmov %vm13060_vm9 }
 0x79c   : > { %13048 = vst [vmem:[#allocation103_spill] sm:$0xff] %v11216_v9  ;;  %v5658_v9 = vrot.slane %v10860_v53, 4 }
 0x79d   : > { %v5736_v55 = vsel %vm399_vm0, %v5730_v37, %v13055_v44  ;;  %v5695_v44 = vrot.slane %v11011_v29, 4 }
 0x79e   : > { %v11225_v48 = vpop.permute.xlu0 %5758  ;;  %v5664_v41 = vsel %vm399_vm0, %v5658_v9, %v13057_v34  ;;  %v5215_v34 = vrot.slane %v11171_v26, 4 }
 0x79f   : > { %13049 = vst [vmem:[#allocation104_spill] sm:$0xff] %v11225_v48  ;;  %v11231_v35 = vpop.permute.xlu1 %5242  ;;  %s12115_s25 = scalar_lea.vmem %s13291_s12, %s13281_s24 }
 0x7a0   : > { %13050 = vst [vmem:[#allocation105_spill] sm:$0xff] %v11231_v35  ;;  %v12474_v19 = vrot.slane %v11231_v35, 4 }
 0x7a2   : > { %v5256_v51 = vsel %vm399_vm0, %v5249_v61, %v12474_v19  ;;  %v11249_v0 = vpop.permute.xlu0 %5274  ;;  %v5733_v61 = vrot.slane %v11166_v43, 4 }
 0x7a3   : > { %13052 = vst [vmem:[#allocation106_spill] sm:$0xff] %v11249_v0  ;;  %v11252_v27 = vpop.permute.xlu1 %5726  ;;  %v5257_v48 = vsel %vm13054_vm15, %v11161_v3, %v5256_v51  ;;  %v5212_v0 = vrot.slane %v10935_v13, 4  ;;  %v5698_v51 = vsel %vm399_vm0, %v5692_v40, %v13056_v36  ;;  %v5737_v40 = vsel %vm1127_vm2, %v10929_v54, %v5736_v55 }
 0x7a4   : > { %v12478_v19 = vrot.slane %v11252_v27, 4  ;;  %v7849_v47 = vcombine.low %v5253_v63, %v5257_v48  ;;  %v7850_v35 = vcombine.high %v5253_v63, %v5257_v48  ;;  %v12481_v63 = vrot.slane %v10937_v52, 4 }
 0x7a5   : > { %v5661_v54 = vrot.slane %v11019_v5, 4  ;;  %vm13065_vm15 = vcmask 1039360  }
 0x7a6   : > { %v5740_v37 = vsel %vm399_vm0, %v5733_v61, %v12478_v19  ;;  %v11274_v3 = vpop.permute.xlu0 %5118  ;;  %6581 = vmatprep.subr.bf16.mxu0 %v7850_v35  ;;  %v5218_v61 = vsel %vm399_vm0, %v5212_v0, %v13058_v15  ;;  %v13059_v19 = vrot.slane %v11158_v30, 4 }
 0x7a7   : > { %v11280_v48 = vpop.permute.xlu1 %5208  ;;  %v5741_v36 = vsel %vm1127_vm2, %v11166_v43, %v5740_v37  ;;  %6582 = vmatpush1.bf16.msra.mxu0 %v7849_v47  ;;  %v5699_v43 = vsel %vm1088_vm6, %v10854_v57, %v5698_v51  ;;  %v11307_v47 = vsel %vm1053_vm7, %v10860_v53, %v5664_v41  ;;  %v12485_v51 = vrot.slane %v11168_v24, 4 }
 0x7a8   : > { %v5702_v32 = vsel %vm399_vm0, %v5695_v44, %v13059_v19  ;;  %v12482_v35 = vrot.slane %v11280_v48, 4  ;;  %v7913_v9 = vcombine.low %v5737_v40, %v5741_v36  ;;  %v7914_v55 = vcombine.high %v5737_v40, %v5741_v36 }
 0x7a9   : > { %v5219_v19 = vsel %vm13060_vm9, %v10935_v13, %v5218_v61  ;;  %v13061_v44 = vrot.slane %v10931_v11, 4  ;;  %v13062_v40 = vrot.slane %v11163_v60, 4  ;;  %v5703_v53 = vsel %vm1088_vm6, %v11011_v29, %v5702_v32 }
 0x7aa   : > { %v5222_v0 = vsel %vm399_vm0, %v5215_v34, %v12482_v35  ;;  %v11301_v15 = vpop.permute.xlu0 %5084  ;;  %6644 = vmatprep.subr.bf16.mxu1 %v7914_v55  ;;  %v12484_v41 = vrot.slane %v11173_v4, 4  ;;  %v5181_v61 = vrot.slane %v11176_v59, 4  ;;  %v13064_v32 = vrot.slane %v10870_v31, 4 }
 0x7ab   : > { %v5132_v37 = vsel %vm399_vm0, %v5126_v62, %v13061_v44  ;;  %v5668_v57 = vsel %vm399_vm0, %v5661_v54, %v13062_v40  ;;  %v11316_v36 = vpop.permute.xlu1 %5174  ;;  %v5223_v13 = vsel %vm13063_vm13, %v11171_v26, %v5222_v0  ;;  %6645 = vmatpush1.bf16.msra.mxu1 %v7913_v9  ;;  %v12486_v54 = vrot.slane %v10941_v12, 4 }
 0x7ac   : > { %v12483_v62 = vrot.slane %v11316_v36, 4  ;;  %v7845_v34 = vcombine.low %v5219_v19, %v5223_v13  ;;  %6646 = vmatprep.subr.bf16.mxu1 %v10738_v39  ;;  %v7846_v55 = vcombine.high %v5219_v19, %v5223_v13  ;;  %v11329_v44 = vsel %vm506_vm8, %v10864_v20, %v5132_v37 }
 0x7ad   : > { %v5630_v29 = vsel %vm399_vm0, %v13064_v32, %v12481_v63  ;;  %v12488_v26 = vrot.slane %v10947_v22, 4  ;;  %v5129_v9 = vrot.slane %v11027_v49, 4  ;;  %v5627_v0 = vrot.slane %v11039_v1, 4  ;;  %v13114_v22 = vld [vmem:[#allocation9_spill] sm:$0xff] }
 0x7ae   : > { %v5188_v19 = vsel %vm399_vm0, %v5181_v61, %v12483_v62  ;;  %v11342_v40 = vpop.permute.xlu0 %5050  ;;  %v12491_v20 = vrot.slane %v11178_v58, 4  ;;  %6583 = vmatprep.subr.bf16.mxu0 %v7846_v55  ;;  %v7906_v13 = vcombine.high %v5699_v43, %v5703_v53  ;;  %v5669_v63 = vsel %vm1053_vm7, %v11019_v5, %v5668_v57 }
 0x7af   : > { %v11345_v37 = vpop.permute.xlu1 %5830  ;;  %v5189_v32 = vsel %vm13065_vm15, %v11176_v59, %v5188_v19  ;;  %v5136_v35 = vsel %vm399_vm0, %v5129_v9, %v12485_v51  ;;  %v5634_v61 = vsel %vm399_vm0, %v5627_v0, %v12484_v41  ;;  %v12487_v62 = vrot.slane %v11181_v45, 4  ;;  %6584 = vmatpush1.bf16.msra.mxu0 %v7845_v34  ;;  %6647 = vmatpush1.bf16.msra.mxu1 %v10723_v2  ;;  %v13120_v45 = vld [vmem:[#allocation14_spill] sm:$0xff] }
 0x7b0   : > { %v7841_v55 = vcombine.low %v11042_v56, %v5189_v32  ;;  %v12489_v59 = vrot.slane %v10953_v16, 4  ;;  %v5095_v19 = vrot.slane %v11052_v10, 4  ;;  %6648 = vmatprep.subr.bf16.mxu1 %v7906_v13  ;;  %v7842_v5 = vcombine.high %v11042_v56, %v5189_v32 }
 0x7b1   : > { %v13066_v57 = vrot.slane %v10876_v21, 4  ;;  %v5593_v0 = vrot.slane %v11072_v38, 4  ;;  %v7905_v34 = vcombine.low %v5699_v43, %v5703_v53  ;;  %vm13067_vm9 = vcmask 539648  }
 0x7b2   : > { %v11369_v41 = vpop.permute.xlu0 %5016  ;;  %v5631_v51 = vsel %vm13067_vm9, %v10870_v31, %v5630_v29  ;;  %v13068_v13 = vrot.slane %v10880_v42, 4  ;;  %v5102_v32 = vsel %vm399_vm0, %v5095_v19, %v12491_v20  ;;  %6585 = vmatprep.subr.bf16.mxu0 %v7842_v5  ;;  %v5137_v43 = vsel %vm506_vm8, %v11027_v49, %v5136_v35  ;;  %vm13069_vm13 = vmmov %vm13067_vm9 }
 0x7b3   : > { %v5098_v9 = vsel %vm399_vm0, %v13066_v57, %v12486_v54  ;;  %v5553_v57 = vpop.permute.xlu1 %5552  ;;  %v7902_v54 = vcombine.high %v11307_v47, %v5669_v63  ;;  %v5635_v31 = vsel %vm13069_vm13, %v11039_v1, %v5634_v61  ;;  %v5600_v53 = vsel %vm399_vm0, %v5593_v0, %v12487_v62  ;;  %6586 = vmatpush1.bf16.msra.mxu0 %v7841_v55 }
 0x7b4   : > { %v5596_v56 = vsel %vm399_vm0, %v13068_v13, %v12488_v26  ;;  %v12490_v29 = vrot.slane %v11190_v46, 4  ;;  %v5560_v13 = vrot.slane %v5553_v57, 4  ;;  %6649 = vmatpush1.bf16.msra.mxu1 %v7905_v34  ;;  %v11392_v19 = vsel %vm471_vm10, %v10876_v21, %v5098_v9  ;;  %6587 = vmatprep.subr.bf16.mxu0 %v10738_v39 }
 0x7b5   : > { %v5061_v5 = vrot.slane %v11093_v14, 4  ;;  %v7901_v49 = vcombine.low %v11307_v47, %v5669_v63  ;;  %6650 = vmatprep.subr.bf16.mxu1 %v7902_v54  ;;  %vm13070_vm15 = vcmask 564224   ;;  %v13071_v35 = vrot.slane %v10886_v28, 4 }
 0x7b6   : > { %v5597_v1 = vsel %vm13070_vm15, %v10880_v42, %v5596_v56  ;;  %v13072_v55 = vrot.slane %v10902_v23, 4  ;;  %v11407_v9 = vpop.permute.xlu0 %5684  ;;  %v7834_v0 = vcombine.high %v11329_v44, %v5137_v43  ;;  %v7898_v34 = vcombine.high %v5631_v51, %v5635_v31  ;;  %vm13075_vm13 = vmmov %vm13070_vm15 }
 0x7b7   : > { %v5064_v61 = vsel %vm399_vm0, %v13071_v35, %v12489_v59  ;;  %v5103_v63 = vsel %vm471_vm10, %v11052_v10, %v5102_v32  ;;  %v5559_v42 = vrot.slane %v11185_v25, 4  ;;  %v12492_v47 = vrot.slane %v11195_v17, 4  ;;  %v5519_v56 = vpop.permute.xlu1 %5518  ;;  %6588 = vmatpush1.bf16.msra.mxu0 %v10723_v2 }
 0x7b8   : > { %v5568_v21 = vsel %vm399_vm0, %v5560_v13, %v13072_v55  ;;  %vm13073_vm9 = vcmask 670720   ;;  %v5601_v23 = vsel %vm13075_vm13, %v11072_v38, %v5600_v53  ;;  %v5068_v35 = vsel %vm399_vm0, %v5061_v5, %v12490_v29  ;;  %6651 = vmatpush1.bf16.msra.mxu1 %v7901_v49  ;;  %6589 = vmatprep.subr.bf16.mxu0 %v7834_v0  ;;  %v13077_v5 = vld [vmem:[#allocation50_spill] sm:$0xff] }
 0x7b9   : > { %v11415_v54 = vsel %vm13073_vm9, %v5553_v57, %v5568_v21  ;;  %v5526_v32 = vrot.slane %v5519_v56, 4  ;;  %v13076_v21 = vld [vmem:[#allocation77_spill] sm:$0xff]  ;;  %v5566_v38 = vsel %vm399_vm0, %v5559_v42, %v5560_v13  ;;  %v7833_v53 = vcombine.low %v11329_v44, %v5137_v43  ;;  %6652 = vmatprep.subr.bf16.mxu1 %v7898_v34  ;;  %v13079_v57 = vld [vmem:[#allocation95_spill] sm:$0xff] }
 0x7ba   : > { %13074 = vst [vmem:[#allocation107_spill] sm:$0xff] %v11415_v54  ;;  %v5027_v62 = vrot.slane %v13076_v21, 4  ;;  %v13078_v26 = vrot.slane %v13077_v5, 4  ;;  %v7897_v59 = vcombine.low %v5631_v51, %v5635_v31  ;;  %v11434_v10 = vpop.permute.xlu0 %5650  ;;  %v7830_v29 = vcombine.high %v11392_v19, %v5103_v63  ;;  %v13084_v42 = vld [vmem:[#allocation37_spill] sm:$0xff] }
 0x7bb   : > { %v7894_v49 = vcombine.high %v5597_v1, %v5601_v23  ;;  %v5525_v13 = vrot.slane %v13079_v57, 4  ;;  %vm13080_vm15 = vcmask 687104   ;;  %v11444_v43 = vpop.permute.xlu1 %5484  ;;  %6590 = vmatpush1.bf16.msra.mxu0 %v7833_v53  ;;  %v7829_v0 = vcombine.low %v11392_v19, %v5103_v63  ;;  %v13107_v51 = vld [vmem:[#allocation25_spill] sm:$0xff] }
 0x7bc   : > { %v5534_v55 = vsel %vm399_vm0, %v5526_v32, %v13078_v26  ;;  %v5034_v20 = vsel %vm399_vm0, %v5027_v62, %v12492_v47  ;;  %13082 = vst [vmem:[#allocation50_spill] sm:$0xff] %v11444_v43  ;;  %v5069_v26 = vsel %vm436_vm12, %v11093_v14, %v5068_v35  ;;  %6653 = vmatpush1.bf16.msra.mxu1 %v7897_v59  ;;  %v13086_v35 = vld [vmem:[#allocation96_spill] sm:$0xff]  ;;  %v5837_v19 = vrot.slane %v11345_v37, 4  ;;  %vm13093_vm13 = vmmov %vm13080_vm15 }
 0x7bd   : > { %v11442_v44 = vsel %vm13080_vm15, %v5519_v56, %v5534_v55  ;;  %v5567_v62 = vsel %vm13073_vm9, %v11185_v25, %v5566_v38  ;;  %v13085_v55 = vld [vmem:[#allocation73_spill] sm:$0xff]  ;;  %v5532_v47 = vsel %vm399_vm0, %v5525_v13, %v5526_v32  ;;  %6591 = vmatprep.subr.bf16.mxu0 %v7830_v29  ;;  %6654 = vmatprep.subr.bf16.mxu1 %v7894_v49  ;;  %v5491_v31 = vrot.slane %v13086_v35, 4  ;;  %v13090_v56 = vld [vmem:[#allocation98_spill] sm:$0xff] }
 0x7be   : > { %13081 = vst [vmem:[#allocation77_spill] sm:$0xff] %v11442_v44  ;;  %v5065_v14 = vsel %vm436_vm12, %v10886_v28, %v5064_v61  ;;  %v7893_v53 = vcombine.low %v5597_v1, %v5601_v23  ;;  %v11462_v59 = vpop.permute.xlu0 %5616  ;;  %v13088_v25 = vrot.slane %v10963_v50, 4  ;;  %v13089_v38 = vrot.slane %v10896_v8, 4  ;;  %v13091_v13 = vld [vmem:[#allocation70_spill] sm:$0xff]  ;;  %v13095_v44 = vld [vmem:[#allocation15_spill] sm:$0xff] }
 0x7bf   : > { %13087 = vst [vmem:[#allocation95_spill] sm:$0xff] %v11462_v59  ;;  %v5835_v32 = vrot.slane %v13090_v56, 4  ;;  %v5829_v29 = vpop.permute.xlu1 %5828  ;;  %v7826_v49 = vcombine.high %v5065_v14, %v5069_v26  ;;  %v7890_v34 = vcombine.high %v13091_v13, %v5567_v62  ;;  %v5035_v28 = vsel %vm401_vm14, %v13076_v21, %v5034_v20  ;;  %6592 = vmatpush1.bf16.msra.mxu0 %v7829_v0 }
 0x7c0   : > { %v5030_v5 = vsel %vm399_vm0, %v13089_v38, %v13088_v25  ;;  %v13092_v1 = vrot.slane %v11444_v43, 4  ;;  %v5836_v63 = vrot.slane %v5829_v29, 4  ;;  %6655 = vmatpush1.bf16.msra.mxu1 %v7893_v53  ;;  %v5533_v23 = vsel %vm13093_vm13, %v13079_v57, %v5532_v47  ;;  %v13094_v25 = vld [vmem:[#allocation29_spill] sm:$0xff]  ;;  %v13097_v47 = vld [vmem:[#allocation100_spill] sm:$0xff] }
 0x7c1   : > { %v5798_v38 = vrot.slane %v13094_v25, 4  ;;  %v7825_v54 = vcombine.low %v5065_v14, %v5069_v26  ;;  %6593 = vmatprep.subr.bf16.mxu0 %v7826_v49  ;;  %6656 = vmatprep.subr.bf16.mxu1 %v7890_v34  ;;  %v5031_v20 = vsel %vm401_vm14, %v10896_v8, %v5030_v5  ;;  %v5457_v57 = vrot.slane %v13097_v47, 4  ;;  %v13101_v34 = vld [vmem:[#allocation71_spill] sm:$0xff] }
 0x7c2   : > { %v5498_v61 = vsel %vm399_vm0, %v5491_v31, %v13092_v1  ;;  %v5842_v37 = vsel %vm399_vm0, %v5835_v32, %v5836_v63  ;;  %v5844_v21 = vsel %vm399_vm0, %v5836_v63, %v5837_v19  ;;  %v7889_v31 = vcombine.low %v13091_v13, %v5567_v62  ;;  %v11486_v0 = vpop.permute.xlu0 %5582  ;;  %v13105_v13 = vld [vmem:[#allocation90_spill] sm:$0xff]  ;;  %v13106_v63 = vld [vmem:[#allocation27_spill] sm:$0xff] }
 0x7c3   : > { %13096 = vst [vmem:[#allocation37_spill] sm:$0xff] %v11486_v0  ;;  %v7822_v53 = vcombine.high %v5031_v20, %v5035_v28  ;;  %vm13098_vm15 = vcmask 482304   ;;  %v11492_v26 = vpop.permute.xlu1 %5450  ;;  %v7886_v14 = vcombine.high %v13101_v34, %v5533_v23  ;;  %vm13102_vm9 = vcmask 703488   ;;  %6594 = vmatpush1.bf16.msra.mxu0 %v7825_v54  ;;  %v13116_v0 = vld [vmem:[#allocation102_spill] sm:$0xff] }
 0x7c4   : > { %v11490_v1 = vsel %vm13098_vm15, %v5829_v29, %v5844_v21  ;;  %13100 = vst [vmem:[#allocation96_spill] sm:$0xff] %v11492_v26  ;;  %v5499_v8 = vsel %vm13102_vm9, %v13086_v35, %v5498_v61  ;;  %v12511_v49 = vrot.slane %v11492_v26, 4  ;;  %6657 = vmatpush1.bf16.msra.mxu1 %v7889_v31  ;;  %vm13104_vm13 = vmmov %vm13098_vm15  ;;  %v5416_v19 = vrot.slane %v13105_v13, 4  ;;  %v13108_v35 = vld [vmem:[#allocation44_spill] sm:$0xff] }
 0x7c5   : > { %13099 = vst [vmem:[#allocation73_spill] sm:$0xff] %v11490_v1  ;;  %v5843_v29 = vsel %vm13104_vm13, %v13090_v56, %v5842_v37  ;;  %v5382_v21 = vrot.slane %v13106_v63, 4  ;;  %6595 = vmatprep.subr.bf16.mxu0 %v7822_v53  ;;  %6658 = vmatprep.subr.bf16.mxu1 %v7886_v14  ;;  %v13109_v32 = vrot.slane %v13095_v44, 4  ;;  %v7821_v31 = vcombine.low %v5031_v20, %v5035_v28  ;;  %v13111_v1 = vld [vmem:[#allocation20_spill] sm:$0xff]  ;;  %v13113_v53 = vld [vmem:[#allocation30_spill] sm:$0xff] }
 0x7c6   : > { %v5464_v54 = vsel %vm399_vm0, %v5457_v57, %v12511_v49  ;;  %v7885_v56 = vcombine.low %v13101_v34, %v5533_v23  ;;  %v11515_v37 = vpop.permute.xlu0 %5408  ;;  %v7882_v14 = vcombine.high %v13113_v53, %v5499_v8  ;;  %v7926_v4 = vcombine.high %v13114_v22, %v5843_v29  ;;  %v13118_v20 = vld [vmem:[#allocation28_spill] sm:$0xff]  ;;  %v13119_v34 = vld [vmem:[#allocation74_spill] sm:$0xff] }
 0x7c7   : > { %v5804_v62 = vsel %vm399_vm0, %v5798_v38, %v13109_v32  ;;  %13110 = vst [vmem:[#allocation98_spill] sm:$0xff] %v11515_v37  ;;  %v11519_v61 = vpop.permute.xlu1 %5794  ;;  %v13115_v38 = vld [vmem:[#allocation52_spill] sm:$0xff]  ;;  %v5801_v52 = vrot.slane %v13116_v0, 4  ;;  %6596 = vmatpush1.bf16.msra.mxu0 %v7821_v31  ;;  %vm13117_vm15 = vcmask 1031168   ;;  %v5764_v49 = vrot.slane %v13119_v34, 4 }
 0x7c8   : > { %v5802_v28 = vrot.slane %v11519_v61, 4  ;;  %6659 = vmatpush1.bf16.msra.mxu1 %v7885_v56  ;;  %v5465_v23 = vsel %vm13117_vm15, %v13097_v47, %v5464_v54  ;;  %v5419_v5 = vrot.slane %v13120_v45, 4  ;;  %6597 = vmatprep.subr.bf16.mxu0 %v7882_v14  ;;  %v13121_v37 = vrot.slane %v13108_v35, 4  ;;  %v13133_v35 = vld [vmem:[#allocation105_spill] sm:$0xff] }
 0x7c9   : > { %6670 = vmatprep.subr.bf16.mxu1 %v7926_v4  ;;  %v7881_v31 = vcombine.low %v13113_v53, %v5499_v8  ;;  %v7925_v56 = vcombine.low %v13114_v22, %v5843_v29  ;;  %vm13123_vm9 = vcmask 506880   ;;  %v13124_v54 = vrot.slane %v13111_v1, 4  ;;  %v13128_v8 = vld [vmem:[#allocation104_spill] sm:$0xff]  ;;  %v13130_v1 = vld [vmem:[#allocation99_spill] sm:$0xff]  ;;  %v13136_v53 = vld [vmem:[#allocation38_spill] sm:$0xff] }
 0x7ca   : > { %v5422_v32 = vsel %vm399_vm0, %v5416_v19, %v13121_v37  ;;  %v5808_v60 = vsel %vm399_vm0, %v5801_v52, %v5802_v28  ;;  %v11537_v26 = vpop.permute.xlu0 %5374  ;;  %v5805_v47 = vsel %vm13123_vm9, %v13094_v25, %v5804_v62  ;;  %v13125_v4 = vrot.slane %v13112_v7, 4  ;;  %v13126_v52 = vld [vmem:[#allocation16_spill] sm:$0xff]  ;;  %vm13127_vm13 = vmmov %vm13123_vm9 }
 0x7cb   : > { %13122 = vst [vmem:[#allocation70_spill] sm:$0xff] %v11537_v26  ;;  %v5770_v14 = vsel %vm399_vm0, %v5764_v49, %v13124_v54  ;;  %v11547_v19 = vpop.permute.xlu1 %5760  ;;  %v7878_v37 = vcombine.high %v13126_v52, %v5465_v23  ;;  %v5809_v22 = vsel %vm13127_vm13, %v13116_v0, %v5808_v60  ;;  %v5767_v29 = vrot.slane %v13128_v8, 4  ;;  %6598 = vmatpush2.bf16.msra.mxu0 %v7881_v31  ;;  %v13129_v49 = vld [vmem:[#allocation41_spill] sm:$0xff] }
 0x7cc   : > { %v5426_v57 = vsel %vm399_vm0, %v5419_v5, %v13125_v4  ;;  %6671 = vmatpush2.bf16.msra.mxu1 %v7925_v56  ;;  %v7921_v25 = vcombine.low %v5805_v47, %v5809_v22  ;;  %v7922_v62 = vcombine.high %v5805_v47, %v5809_v22  ;;  %v13131_v5 = vld [vmem:[#allocation68_spill] sm:$0xff]  ;;  %v13134_v26 = vrot.slane %v13133_v35, 4  ;;  %v13138_v56 = vld [vmem:[#allocation49_spill] sm:$0xff]  ;;  %v13140_v22 = vld [vmem:[#allocation10_spill] sm:$0xff] }
 0x7cd   : > { %v13132_v4 = vrot.slane %v13131_v5, 4  ;;  %6599 = vmatprep.subr.bf16.mxu0 %v7878_v37  ;;  %v13135_v60 = vrot.slane %v13118_v20, 4  ;;  %v13137_v31 = vrot.slane %v13136_v53, 4  ;;  %v13139_v30 = vrot.slane %v13138_v56, 4  ;;  %v13142_v37 = vld [vmem:[#allocation101_spill] sm:$0xff] }
 0x7ce   : > { %v5385_v54 = vrot.slane %v13140_v22, 4  ;;  %v13141_v7 = vrot.slane %v11547_v19, 4  ;;  %v7877_v43 = vcombine.low %v13126_v52, %v5465_v23  ;;  %6672 = vmatprep.subr.bf16.mxu1 %v7922_v62  ;;  %vm13143_vm15 = vcmask 531456  }
 0x7cf   : > { %v5258_v59 = vsel %vm399_vm0, %v13134_v26, %v13132_v4  ;;  %v5388_v0 = vsel %vm399_vm0, %v5382_v21, %v13135_v60  ;;  %v5254_v47 = vsel %vm399_vm0, %v13139_v30, %v13137_v31  ;;  %v11574_v26 = vpop.permute.xlu0 %5340  ;;  %v5352_v4 = vrot.slane %v13142_v37, 4  ;;  %v5797_v21 = vpop.permute.xlu1 %5796  ;;  %vm13144_vm9 = vmmov %vm13143_vm15 }
 0x7d0   : > { %v5774_v5 = vsel %vm399_vm0, %v5767_v29, %v13141_v7  ;;  %v5771_v53 = vsel %vm13143_vm15, %v13119_v34, %v5770_v14  ;;  %v5427_v60 = vsel %vm804_vm1, %v13120_v45, %v5426_v57  ;;  %vm13145_vm13 = vcmask 867328   ;;  %6600 = vmatpush2.bf16.msra.mxu0 %v7877_v43  ;;  %6673 = vmatpush2.bf16.msra.mxu1 %v7921_v25 }
 0x7d1   : > { %v5775_v30 = vsel %vm13144_vm9, %v13128_v8, %v5774_v5  ;;  %v5259_v7 = vsel %vm13145_vm13, %v13133_v35, %v5258_v59  ;;  %v5803_v29 = vrot.slane %v5797_v21, 4  ;;  %v13146_v62 = vrot.slane %v13130_v1, 4  ;;  %6601 = vmatprep.subr.bf16.mxu0 %v10738_v39  ;;  %vm13149_vm15 = vmmov %vm13145_vm13  ;;  %v13150_v35 = vld [vmem:[#allocation21_spill] sm:$0xff] }
 0x7d2   : > { %v7917_v23 = vcombine.low %v5771_v53, %v5775_v30  ;;  %v7918_v52 = vcombine.high %v5771_v53, %v5775_v30  ;;  %v13147_v34 = vrot.slane %v13084_v42, 4  ;;  %v13148_v14 = vrot.slane %v11280_v48, 4  ;;  %v13157_v30 = vld [vmem:[#allocation46_spill] sm:$0xff] }
 0x7d3   : > { %v5392_v31 = vsel %vm399_vm0, %v5385_v54, %v13146_v62  ;;  %v5423_v45 = vsel %vm804_vm1, %v13105_v13, %v5422_v32  ;;  %v5389_v43 = vsel %vm769_vm3, %v13106_v63, %v5388_v0  ;;  %v5255_v59 = vsel %vm13149_vm15, %v13138_v56, %v5254_v47  ;;  %v11602_v42 = vpop.permute.xlu0 %5306  ;;  %v13153_v13 = vld [vmem:[#allocation19_spill] sm:$0xff]  ;;  %v11614_v47 = vpop.permute.xlu1 %5278 }
 0x7d4   : > { %v5224_v8 = vsel %vm399_vm0, %v13148_v14, %v13147_v34  ;;  %v5351_v57 = vrot.slane %v13150_v35, 4  ;;  %v5810_v25 = vsel %vm399_vm0, %v5802_v28, %v5803_v29  ;;  %6674 = vmatprep.subr.bf16.mxu1 %v7918_v52  ;;  %v13151_v54 = vrot.slane %v13129_v49, 4  ;;  %v11619_v28 = vld [vmem:[%s13012_s19 + $0xc8] ss:$16 sps:$4 sm:$0xff]   ;;  %6602 = vmatpush2.bf16.msra.mxu0 %v10723_v2  ;;  %v13159_v14 = vld [vmem:[#allocation65_spill] sm:$0xff] }
 0x7d5   : > { %v13152_v39 = vrot.slane %v13107_v51, 4  ;;  %v13154_v32 = vrot.slane %v13153_v13, 4  ;;  %v13155_v63 = vrot.slane %v11021_v6, 4  ;;  %v7852_v56 = vcombine.high %v5255_v59, %v5259_v7  ;;  %6675 = vmatpush2.bf16.msra.mxu1 %v7917_v23  ;;  %v13163_v13 = vld [vmem:[#allocation103_spill] sm:$0xff]  ;;  %v13167_v23 = vld [vmem:[#allocation24_spill] sm:$0xff] }
 0x7d6   : > { %v7870_v21 = vcombine.high %v5423_v45, %v5427_v60  ;;  %vm13156_vm9 = vcmask 506880   ;;  %v5315_v29 = vrot.slane %v13157_v30, 4  ;;  %v5358_v52 = vsel %vm399_vm0, %v5351_v57, %v5352_v4 }
 0x7d7   : > { %v5354_v5 = vsel %vm399_vm0, %v13152_v39, %v13151_v54  ;;  %v5220_v0 = vsel %vm399_vm0, %v13155_v63, %v13154_v32  ;;  %v11623_v53 = vsel %vm13156_vm9, %v11519_v61, %v5810_v25  ;;  %vm13158_vm13 = vcmask 875520   ;;  %v13161_v39 = vld [vmem:[#allocation51_spill] sm:$0xff]  ;;  %6707 = vmatprep.subr.bf16.mxu1 %v7852_v56  ;;  %v5125_v56 = vpop.permute.xlu1 %5124 }
 0x7d8   : > { %v5225_v62 = vsel %vm13158_vm13, %v11280_v48, %v5224_v8  ;;  %v5393_v34 = vsel %vm769_vm3, %v13140_v22, %v5392_v31  ;;  %v13160_v54 = vrot.slane %v13159_v14, 4  ;;  %v13162_v61 = vrot.slane %v13161_v39, 4  ;;  %6603 = vmatprep.subr.bf16.mxu0 %v7870_v21  ;;  %vm13166_vm15 = vmmov %vm13158_vm13  ;;  %6677 = vmatmul.mubr.bf16.vlgmr.msra.gmra.mxu1 %v11619_v28 }
 0x7d9   : > { %v5318_v32 = vrot.slane %v13163_v13, 4  ;;  %v13164_v63 = vrot.slane %v13085_v55, 4  ;;  %v13165_v57 = vrot.slane %v11316_v36, 4  ;;  %v5355_v2 = vsel %vm734_vm4, %v13107_v51, %v5354_v5  ;;  %v11653_v55 = vld [vmem:[%s13012_s19 + $0xec] ss:$16 sps:$4 sm:$0xff]  }
 0x7da   : > { %v5186_v25 = vsel %vm399_vm0, %v13162_v61, %v13160_v54  ;;  %v5221_v22 = vsel %vm13166_vm15, %v11021_v6, %v5220_v0  ;;  %v5317_v31 = vrot.slane %v13167_v23, 4  ;;  %v7851_v8 = vcombine.low %v5255_v59, %v5259_v7  ;;  %v5791_v54 = vpop.permute.xlu0 %5790  ;;  %v13171_v59 = vld [vmem:[#allocation23_spill] sm:$0xff]  ;;  %7930 = vmatprep.mubr.msk.bf16.mxu1 %vm1965_vm5, %v11653_v55 }
 0x7db   : > { %v5190_v48 = vsel %vm399_vm0, %v13165_v57, %v13164_v63  ;;  %v7869_v14 = vcombine.low %v5423_v45, %v5427_v60  ;;  %v7848_v61 = vcombine.high %v5221_v22, %v5225_v62  ;;  %v5800_v21 = vrot.slane %v5791_v54, 4  ;;  %v11686_v54 = vld [vmem:[%s13012_s19 + $0xe8] ss:$16 sps:$4 sm:$0xff]  }
 0x7dc   : > { %v7866_v63 = vcombine.high %v5389_v43, %v5393_v34  ;;  %v5359_v51 = vsel %vm734_vm4, %v13150_v35, %v5358_v52  ;;  %vm13168_vm9 = vcmask 1039360   ;;  %6708 = vmatpush1.bf16.msra.mxu1 %v7851_v8  ;;  %v13170_v7 = vrot.slane %v13115_v38, 4 }
 0x7dd   : > { %v5187_v6 = vsel %vm13168_vm9, %v13161_v39, %v5186_v25  ;;  %vm13169_vm13 = vmmov %vm13168_vm9  ;;  %6604 = vmatpush2.bf16.msra.mxu0 %v7869_v14  ;;  %v5281_v5 = vrot.slane %v13171_v59, 4  ;;  %v5324_v35 = vsel %vm399_vm0, %v5317_v31, %v5318_v32  ;;  %v5131_v0 = vrot.slane %v5125_v56, 4  ;;  %6709 = vmatprep.subr.bf16.mxu1 %v7848_v61  ;;  %v11681_v14 = vpop.permute.xlu1 %5276 }
 0x7de   : > { %v5191_v60 = vsel %vm13169_vm13, %v11316_v36, %v5190_v48  ;;  %v5320_v45 = vsel %vm399_vm0, %v13170_v7, %v5315_v29  ;;  %v13172_v52 = vrot.slane %v13095_v44, 4  ;;  %6605 = vmatprep.subr.bf16.mxu0 %v7866_v63  ;;  %v7847_v36 = vcombine.low %v5221_v22, %v5225_v62  ;;  %v13178_v7 = vld [vmem:[#allocation26_spill] sm:$0xff] }
 0x7df   : > { %v7865_v25 = vcombine.low %v5389_v43, %v5393_v34  ;;  %v7862_v57 = vcombine.high %v5355_v2, %v5359_v51  ;;  %vm13173_vm15 = vcmask 506880   ;;  %v5128_v8 = vrot.slane %v11274_v3, 4  ;;  %v13174_v34 = vld [vmem:[#allocation75_spill] sm:$0xff] }
 0x7e0   : > { %v5806_v39 = vsel %vm399_vm0, %v13172_v52, %v5800_v21  ;;  %v7844_v31 = vcombine.high %v5187_v6, %v5191_v60  ;;  %v5280_v22 = vrot.slane %v13174_v34, 4  ;;  %v5284_v3 = vrot.slane %v11681_v14, 4  ;;  %6710 = vmatpush1.bf16.msra.mxu1 %v7847_v36  ;;  %v13177_v21 = vld [vmem:[#allocation22_spill] sm:$0xff] }
 0x7e1   : > { %v11678_v48 = vsel %vm13173_vm15, %v13095_v44, %v5806_v39  ;;  %v13175_v44 = vld [vmem:[#allocation106_spill] sm:$0xff]  ;;  %6606 = vmatpush2.bf16.msra.mxu0 %v7865_v25  ;;  %vm13176_vm9 = vcmask 375808   ;;  %v5732_v63 = vrot.slane %v13177_v21, 4  ;;  %v5735_v52 = vrot.slane %v13178_v7, 4  ;;  %6687 = vmatmul.mubr.bf16.gmra.mxu1 %v11686_v54 }
 0x7e2   : > { %v5283_v61 = vrot.slane %v13175_v44, 4  ;;  %v5325_v56 = vsel %vm13176_vm9, %v13167_v23, %v5324_v35  ;;  %v13179_v39 = vrot.slane %v11168_v24, 4  ;;  %6607 = vmatprep.subr.bf16.mxu0 %v7862_v57  ;;  %6711 = vmatprep.subr.bf16.mxu1 %v7844_v31  ;;  %vm13180_vm13 = vmmov %vm13176_vm9  ;;  %v5286_v36 = vsel %vm399_vm0, %v5280_v22, %v5281_v5  ;;  %v11713_v21 = vld [vmem:[%s13012_s19 + $0x10c] ss:$16 sps:$4 sm:$0xff]  }
 0x7e3   : > { %v5321_v62 = vsel %vm13180_vm13, %v13115_v38, %v5320_v45  ;;  %v7843_v25 = vcombine.low %v5187_v6, %v5191_v60  ;;  %v7861_v35 = vcombine.low %v5355_v2, %v5359_v51  ;;  %v13182_v38 = vrot.slane %v10931_v11, 4  ;;  %v5091_v60 = vpop.permute.xlu1 %5090  ;;  %7931 = vmatprep.mubr.msk.bf16.mxu1 %vm1965_vm5, %v11713_v21 }
 0x7e4   : > { %v5138_v43 = vsel %vm399_vm0, %v13179_v39, %v5131_v0  ;;  %v5290_v23 = vsel %vm399_vm0, %v5283_v61, %v5284_v3  ;;  %v13181_v0 = vrot.slane %v11252_v27, 4  ;;  %v5094_v6 = vrot.slane %v11301_v15, 4 }
 0x7e5   : > { %v5134_v45 = vsel %vm399_vm0, %v13182_v38, %v5128_v8  ;;  %v7858_v31 = vcombine.high %v5321_v62, %v5325_v56  ;;  %v5097_v2 = vrot.slane %v5091_v60, 4  ;;  %6608 = vmatpush2.bf16.msra.mxu0 %v7861_v35  ;;  %6712 = vmatpush1.bf16.msra.mxu1 %v7843_v25  ;;  %v5291_v51 = vsel %vm664_vm11, %v13175_v44, %v5290_v23  ;;  %v13184_v8 = vld [vmem:[#allocation36_spill] sm:$0xff] }
 0x7e6   : > { %v5742_v57 = vsel %vm399_vm0, %v13181_v0, %v5735_v52  ;;  %v5139_v22 = vsel %vm506_vm8, %v11168_v24, %v5138_v43  ;;  %v13183_v61 = vrot.slane %v11013_v18, 4  ;;  %6713 = vmatprep.subr.bf16.mxu1 %v13184_v8  ;;  %v5287_v15 = vsel %vm664_vm11, %v13174_v34, %v5286_v36  ;;  %v11749_v35 = vld [vmem:[%s13012_s19 + $0x108] ss:$16 sps:$4 sm:$0xff]  }
 0x7e7   : > { %6609 = vmatprep.subr.bf16.mxu0 %v7858_v31  ;;  %v5743_v52 = vsel %vm1127_vm2, %v11252_v27, %v5742_v57  ;;  %v13185_v39 = vrot.slane %v11178_v58, 4  ;;  %v7857_v25 = vcombine.low %v5321_v62, %v5325_v56  ;;  %v5135_v24 = vsel %vm506_vm8, %v10931_v11, %v5134_v45  ;;  %v5057_v36 = vpop.permute.xlu1 %5056  ;;  %v13187_v56 = vld [vmem:[#allocation35_spill] sm:$0xff] }
 0x7e8   : > { %v5738_v7 = vsel %vm399_vm0, %v13183_v61, %v5732_v63  ;;  %v13186_v43 = vrot.slane %v10941_v12, 4  ;;  %v5060_v34 = vrot.slane %v11342_v40, 4  ;;  %v7854_v23 = vcombine.high %v5287_v15, %v5291_v51 }
 0x7e9   : > { %v5104_v44 = vsel %vm399_vm0, %v13185_v39, %v5097_v2  ;;  %v7836_v27 = vcombine.high %v5135_v24, %v5139_v22  ;;  %v5739_v11 = vsel %vm1127_vm2, %v11013_v18, %v5738_v7  ;;  %v5063_v62 = vrot.slane %v5057_v36, 4  ;;  %6610 = vmatpush2.bf16.msra.mxu0 %v7857_v25  ;;  %6714 = vmatpush1.bf16.msra.mxu1 %v13187_v56  ;;  %v11769_v39 = vld [vmem:[%s13012_s19 + $0xc0] ss:$16 sps:$4 sm:$0xff]  }
 0x7ea   : > { %v5100_v63 = vsel %vm399_vm0, %v13186_v43, %v5094_v6  ;;  %v5105_v0 = vsel %vm471_vm10, %v11178_v58, %v5104_v44  ;;  %v7916_v57 = vcombine.high %v5739_v11, %v5743_v52  ;;  %6611 = vmatprep.subr.bf16.mxu0 %v7854_v23  ;;  %v13188_v40 = vrot.slane %v11190_v46, 4  ;;  %6697 = vmatmul.mubr.bf16.gmra.mxu1 %v11749_v35 }
 0x7eb   : > { %6715 = vmatprep.subr.bf16.mxu1 %v7836_v27  ;;  %v7853_v45 = vcombine.low %v5287_v15, %v5291_v51  ;;  %v7835_v6 = vcombine.low %v5135_v24, %v5139_v22  ;;  %v5101_v60 = vsel %vm471_vm10, %v10941_v12, %v5100_v63  ;;  %v13189_v18 = vrot.slane %v10953_v16, 4  ;;  %v5023_v61 = vpop.permute.xlu1 %5022  ;;  %v13190_v22 = vld [vmem:[#allocation89_spill] sm:$0xff] }
 0x7ec   : > { %v5070_v38 = vsel %vm399_vm0, %v13188_v40, %v5063_v62  ;;  %v5026_v2 = vrot.slane %v11369_v41, 4  ;;  %v5694_v58 = vrot.slane %v11407_v9, 4  ;;  %v7832_v7 = vcombine.high %v5101_v60, %v5105_v0  ;;  %v13191_v41 = vld [vmem:[#allocation48_spill] sm:$0xff]  ;;  %v13196_v40 = vld [vmem:[#allocation59_spill] sm:$0xff] }
 0x7ed   : > { %v5066_v31 = vsel %vm399_vm0, %v13189_v18, %v5060_v34  ;;  %v5029_v51 = vrot.slane %v5023_v61, 4  ;;  %6612 = vmatpush2.bf16.msra.mxu0 %v7853_v45  ;;  %6716 = vmatpush1.bf16.msra.mxu1 %v7835_v6  ;;  %v5071_v12 = vsel %vm436_vm12, %v11190_v46, %v5070_v38  ;;  %v5490_v15 = vrot.slane %v13190_v22, 4  ;;  %v11784_v34 = vld [vmem:[%s13012_s19 + $0xe4] ss:$16 sps:$4 sm:$0xff]   ;;  %v13202_v61 = vld [vmem:[#allocation12_spill] sm:$0xff] }
 0x7ee   : > { %v5493_v44 = vrot.slane %v13191_v41, 4  ;;  %6717 = vmatprep.subr.bf16.mxu1 %v7832_v7  ;;  %6770 = vmatprep.subr.bf16.mxu0 %v7916_v57  ;;  %v7915_v9 = vcombine.low %v5739_v11, %v5743_v52  ;;  %v13192_v25 = vrot.slane %v11195_v17, 4  ;;  %v7831_v43 = vcombine.low %v5101_v60, %v5105_v0  ;;  %v13193_v46 = vld [vmem:[#allocation11_spill] sm:$0xff]  ;;  %v13198_v60 = vld [vmem:[#allocation64_spill] sm:$0xff] }
 0x7ef   : > { %v5067_v63 = vsel %vm436_vm12, %v10953_v16, %v5066_v31  ;;  %6739 = vmatprep.mubr.bf16.mxu1 %v13193_v46  ;;  %v13194_v36 = vrot.slane %v10963_v50, 4  ;;  %v13195_v52 = vrot.slane %v10918_v33, 4  ;;  %v5660_v11 = vrot.slane %v11434_v10, 4  ;;  %v5691_v16 = vpop.permute.xlu1 %5690  ;;  %v13197_v45 = vld [vmem:[#allocation39_spill] sm:$0xff]  ;;  %v13204_v41 = vld [vmem:[#allocation72_spill] sm:$0xff] }
 0x7f0   : > { %v5036_v24 = vsel %vm399_vm0, %v13192_v25, %v5029_v51  ;;  %6614 = vmatmul.mubr.bf16.vlgmr.msra.gmra.mxu0 %v11769_v39  ;;  %v7828_v62 = vcombine.high %v5067_v63, %v5071_v12  ;;  %v5697_v0 = vrot.slane %v5691_v16, 4  ;;  %v5456_v38 = vrot.slane %v13196_v40, 4  ;;  %v13206_v25 = vld [vmem:[#allocation95_spill] sm:$0xff] }
 0x7f1   : > { %v5032_v23 = vsel %vm399_vm0, %v13194_v36, %v5026_v2  ;;  %v5700_v27 = vsel %vm399_vm0, %v13195_v52, %v5694_v58  ;;  %6718 = vmatpush1.bf16.msra.mxu1 %v7831_v43  ;;  %6771 = vmatpush1.bf16.msra.mxu0 %v7915_v9  ;;  %v5037_v57 = vsel %vm401_vm14, %v11195_v17, %v5036_v24  ;;  %v5459_v6 = vrot.slane %v13197_v45, 4  ;;  %v13200_v2 = vld [vmem:[#allocation50_spill] sm:$0xff] }
 0x7f2   : > { %v13199_v18 = vrot.slane %v13198_v60, 4  ;;  %v13201_v10 = vrot.slane %v13200_v2, 4  ;;  %6719 = vmatprep.subr.bf16.mxu1 %v7828_v62  ;;  %6772 = vmatprep.subr.bf16.mxu0 %v13184_v8  ;;  %v13203_v7 = vrot.slane %v13202_v61, 4  ;;  %v7827_v17 = vcombine.low %v5067_v63, %v5071_v12  ;;  %v11821_v12 = vld [vmem:[%s13012_s19 + $0xe0] ss:$16 sps:$4 sm:$0xff]  }
 0x7f3   : > { %v5033_v22 = vsel %vm401_vm14, %v10963_v50, %v5032_v23  ;;  %6623 = vmatprep.mubr.bf16.mxu0 %v11784_v34  ;;  %v13205_v9 = vrot.slane %v13204_v41, 4  ;;  %v5626_v24 = vrot.slane %v13206_v25, 4  ;;  %v5657_v43 = vpop.permute.xlu1 %5656  ;;  %vm13207_vm2 = vcmask 703488   ;;  %v11836_v62 = vld [vmem:[%s13012_s19 + $0x104] ss:$16 sps:$4 sm:$0xff]  }
 0x7f4   : > { %v5496_v31 = vsel %vm399_vm0, %v13199_v18, %v5490_v15  ;;  %v5500_v58 = vsel %vm399_vm0, %v13201_v10, %v5493_v44  ;;  %v5704_v51 = vsel %vm399_vm0, %v13203_v7, %v5697_v0  ;;  %v5701_v15 = vsel %vm1088_vm6, %v10918_v33, %v5700_v27  ;;  %vm13208_vm8 = vmmov %vm13207_vm2  ;;  %v13209_v27 = vld [vmem:[#allocation96_spill] sm:$0xff]  ;;  %v13211_v0 = vld [vmem:[#allocation13_spill] sm:$0xff] }
 0x7f5   : > { %v5666_v44 = vsel %vm399_vm0, %v13205_v9, %v5660_v11  ;;  %v7824_v46 = vcombine.high %v5033_v22, %v5037_v57  ;;  %v5705_v50 = vsel %vm1088_vm6, %v13202_v61, %v5704_v51  ;;  %v5501_v63 = vsel %vm13207_vm2, %v13200_v2, %v5500_v58  ;;  %6720 = vmatpush1.bf16.msra.mxu1 %v7827_v17  ;;  %v13213_v18 = vld [vmem:[#allocation91_spill] sm:$0xff]  ;;  %v13217_v51 = vld [vmem:[#allocation37_spill] sm:$0xff] }
 0x7f6   : > { %v5663_v33 = vrot.slane %v5657_v43, 4  ;;  %6773 = vmatpush1.bf16.msra.mxu0 %v13187_v56  ;;  %v7907_v36 = vcombine.low %v5701_v15, %v5705_v50  ;;  %v7908_v23 = vcombine.high %v5701_v15, %v5705_v50  ;;  %v5497_v52 = vsel %vm13208_vm8, %v13198_v60, %v5496_v31  ;;  %v13215_v31 = vld [vmem:[#allocation40_spill] sm:$0xff] }
 0x7f7   : > { %v13210_v11 = vrot.slane %v13209_v27, 4  ;;  %6721 = vmatprep.subr.bf16.mxu1 %v7824_v46  ;;  %v13212_v40 = vrot.slane %v13211_v0, 4  ;;  %v13214_v2 = vrot.slane %v13213_v18, 4  ;;  %v7823_v58 = vcombine.low %v5033_v22, %v5037_v57  ;;  %v5623_v15 = vpop.permute.xlu1 %5622 }
 0x7f8   : > { %6774 = vmatprep.subr.bf16.mxu0 %v7908_v23  ;;  %v5667_v60 = vsel %vm1053_vm7, %v13204_v41, %v5666_v44  ;;  %v13216_v61 = vrot.slane %v13215_v31, 4  ;;  %v5592_v17 = vrot.slane %v13217_v51, 4  ;;  %6624 = vmatmul.mubr.bf16.gmra.mxu0 %v11821_v12  ;;  %vm13218_vm6 = vcmask 1031168  }
 0x7f9   : > { %v5466_v16 = vsel %vm399_vm0, %v13210_v11, %v5459_v6  ;;  %v5462_v45 = vsel %vm399_vm0, %v13212_v40, %v5456_v38  ;;  %v5670_v10 = vsel %vm399_vm0, %v13214_v2, %v5663_v33  ;;  %v7884_v6 = vcombine.high %v5497_v52, %v5501_v63  ;;  %6722 = vmatpush1.bf16.msra.mxu1 %v7823_v58  ;;  %vm13219_vm10 = vmmov %vm13218_vm6  ;;  %v13222_v33 = vld [vmem:[#allocation53_spill] sm:$0xff] }
 0x7fa   : > { %v5632_v7 = vsel %vm399_vm0, %v13216_v61, %v5626_v24  ;;  %v5671_v38 = vsel %vm1053_vm7, %v13213_v18, %v5670_v10  ;;  %v5467_v57 = vsel %vm13218_vm6, %v13209_v27, %v5466_v16  ;;  %v5629_v22 = vrot.slane %v5623_v15, 4  ;;  %6775 = vmatpush1.bf16.msra.mxu0 %v7907_v36  ;;  %6633 = vmatprep.mubr.bf16.mxu0 %v11836_v62  ;;  %v13220_v24 = vld [vmem:[#allocation92_spill] sm:$0xff]  ;;  %v11867_v11 = vld [vmem:[%s13012_s19 + $0x100] ss:$16 sps:$4 sm:$0xff]  }
 0x7fb   : > { %v7903_v41 = vcombine.low %v5667_v60, %v5671_v38  ;;  %v7904_v9 = vcombine.high %v5667_v60, %v5671_v38  ;;  %6723 = vmatprep.subr.bf16.mxu1 %v7884_v6  ;;  %v5463_v44 = vsel %vm13219_vm10, %v13211_v0, %v5462_v45  ;;  %v7883_v25 = vcombine.low %v5497_v52, %v5501_v63  ;;  %v5589_v36 = vpop.permute.xlu1 %5588  ;;  %v13226_v52 = vld [vmem:[#allocation98_spill] sm:$0xff]  ;;  %v13227_v10 = vld [vmem:[#allocation93_spill] sm:$0xff] }
 0x7fc   : > { %v13221_v43 = vrot.slane %v13220_v24, 4  ;;  %v7880_v50 = vcombine.high %v5463_v44, %v5467_v57  ;;  %v13223_v23 = vrot.slane %v13222_v33, 4  ;;  %vm13224_vm7 = vcmask 539648   ;;  %v13229_v6 = vld [vmem:[#allocation70_spill] sm:$0xff] }
 0x7fd   : > { %6776 = vmatprep.subr.bf16.mxu0 %v7904_v9  ;;  %v5633_v16 = vsel %vm13224_vm7, %v13215_v31, %v5632_v7  ;;  %vm13225_vm12 = vmmov %vm13224_vm7  ;;  %v5418_v0 = vrot.slane %v13226_v52, 4  ;;  %v5595_v40 = vrot.slane %v5589_v36, 4  ;;  %6724 = vmatpush2.bf16.msra.mxu1 %v7883_v25  ;;  %v7879_v2 = vcombine.low %v5463_v44, %v5467_v57  ;;  %v8119_v9 = vld [vmem:[%s13012_s19 + $0xcc] ss:$16 sps:$4 sm:$0xff]   ;;  %v13234_v44 = vld [vmem:[#allocation97_spill] sm:$0xff] }
 0x7fe   : > { %v5636_v46 = vsel %vm399_vm0, %v13221_v43, %v5629_v22  ;;  %v5598_v27 = vsel %vm399_vm0, %v13223_v23, %v5592_v17  ;;  %6777 = vmatpush1.bf16.msra.mxu0 %v7903_v41  ;;  %6725 = vmatprep.subr.bf16.mxu1 %v7880_v50  ;;  %v13228_v58 = vrot.slane %v13227_v10, 4  ;;  %v5384_v61 = vrot.slane %v13229_v6, 4  ;;  %v13232_v17 = vld [vmem:[#allocation44_spill] sm:$0xff]  ;;  %v13237_v52 = vld [vmem:[#allocation55_spill] sm:$0xff] }
 0x7ff   : > { %v5637_v63 = vsel %vm13225_vm12, %v13220_v24, %v5636_v46  ;;  %v5415_v31 = vpop.permute.xlu1 %5414  ;;  %vm13230_vm14 = vcmask 564224   ;;  %v13233_v15 = vrot.slane %v13232_v17, 4  ;;  %v13235_v25 = vrot.slane %v13234_v44, 4 }
 0x800   : > { %v7899_v45 = vcombine.low %v5633_v16, %v5637_v63  ;;  %v7900_v18 = vcombine.high %v5633_v16, %v5637_v63  ;;  %v5602_v60 = vsel %vm399_vm0, %v13228_v58, %v5595_v40  ;;  %6634 = vmatmul.mubr.bf16.gmra.mxu0 %v11867_v11  ;;  %v5599_v7 = vsel %vm13230_vm14, %v13222_v33, %v5598_v27  ;;  %vm13231_vm15 = vmmov %vm13230_vm14  ;;  %v5273_v33 = vpop.permute.xlu0 %5272 }
 0x801   : > { %v5603_v51 = vsel %vm13231_vm15, %v13227_v10, %v5602_v60  ;;  %v5424_v38 = vsel %vm399_vm0, %v13233_v15, %v5418_v0  ;;  %v5421_v57 = vrot.slane %v5415_v31, 4  ;;  %6726 = vmatpush2.bf16.msra.mxu1 %v7879_v2  ;;  %7932 = vmatprep.mubr.msk.bf16.mxu0 %vm1965_vm5, %v8119_v9  ;;  %v13236_v43 = vrot.slane %v13118_v20, 4  ;;  %v13238_v0 = vld [vmem:[#allocation107_spill] sm:$0xff]  ;;  %v13243_v15 = vld [vmem:[#allocation58_spill] sm:$0xff] }
 0x802   : > { %6778 = vmatprep.subr.bf16.mxu0 %v7900_v18  ;;  %v7895_v22 = vcombine.low %v5599_v7, %v5603_v51  ;;  %v7896_v41 = vcombine.high %v5599_v7, %v5603_v51  ;;  %6727 = vmatprep.subr.bf16.mxu1 %v13184_v8  ;;  %v5350_v50 = vrot.slane %v11574_v26, 4  ;;  %v5425_v8 = vsel %vm804_vm1, %v13232_v17, %v5424_v38  ;;  %v13244_v38 = vld [vmem:[#allocation77_spill] sm:$0xff] }
 0x803   : > { %6779 = vmatpush1.bf16.msra.mxu0 %v7899_v45  ;;  %v5428_v24 = vsel %vm399_vm0, %v13235_v25, %v5421_v57  ;;  %v5390_v46 = vsel %vm399_vm0, %v13236_v43, %v5384_v61  ;;  %v5381_v23 = vpop.permute.xlu1 %5380  ;;  %v13239_v40 = vcombine.high %v13237_v52, %v13238_v0  ;;  %v13240_v26 = vrot.slane %v13130_v1, 4  ;;  %v13247_v43 = vld [vmem:[#allocation94_spill] sm:$0xff] }
 0x804   : > { %6780 = vmatprep.subr.bf16.mxu0 %v7896_v41  ;;  %v5429_v27 = vsel %vm804_vm1, %v13234_v44, %v5428_v24  ;;  %v5387_v36 = vrot.slane %v5381_v23, 4  ;;  %v5391_v18 = vsel %vm769_vm3, %v13118_v20, %v5390_v46  ;;  %v13241_v2 = vrot.slane %v13129_v49, 4  ;;  %v5757_v17 = vpop.permute.xlu0 %5756  ;;  %v13248_v46 = vld [vmem:[#allocation73_spill] sm:$0xff]  ;;  %vm13250_vm1 = vmmov %vm13176_vm9 }
 0x805   : > { %6728 = vmatpush2.bf16.msra.mxu1 %v13187_v56  ;;  %v7871_v16 = vcombine.low %v5425_v8, %v5429_v27  ;;  %v7872_v63 = vcombine.high %v5425_v8, %v5429_v27  ;;  %v5316_v56 = vrot.slane %v11602_v42, 4  ;;  %v5282_v58 = vrot.slane %v5273_v33, 4  ;;  %v13252_v27 = vld [vmem:[#allocation20_spill] sm:$0xff] }
 0x806   : > { %v5394_v45 = vsel %vm399_vm0, %v13240_v26, %v5387_v36  ;;  %v5356_v10 = vsel %vm399_vm0, %v13241_v2, %v5350_v50  ;;  %v13242_v31 = vcombine.low %v13237_v52, %v13238_v0  ;;  %v5285_v20 = vrot.slane %v11614_v47, 4 }
 0x807   : > { %6781 = vmatpush1.bf16.msra.mxu0 %v7895_v22  ;;  %6729 = vmatprep.subr.bf16.mxu1 %v7872_v63  ;;  %v5347_v60 = vpop.permute.xlu1 %5346  ;;  %v5395_v6 = vsel %vm769_vm3, %v13130_v1, %v5394_v45  ;;  %v13245_v57 = vcombine.high %v13243_v15, %v13244_v38  ;;  %v5357_v1 = vsel %vm734_vm4, %v13129_v49, %v5356_v10  ;;  %v5766_v44 = vrot.slane %v5757_v17, 4  ;;  %vm13251_vm3 = vmmov %vm13250_vm1 }
 0x808   : > { %6782 = vmatprep.subr.bf16.mxu0 %v13239_v40  ;;  %v5353_v61 = vrot.slane %v5347_v60, 4  ;;  %v7867_v7 = vcombine.low %v5391_v18, %v5395_v6  ;;  %v7868_v51 = vcombine.high %v5391_v18, %v5395_v6  ;;  %v5322_v22 = vsel %vm399_vm0, %v5315_v29, %v5316_v56 }
 0x809   : > { %6730 = vmatpush2.bf16.msra.mxu1 %v7871_v16  ;;  %v5292_v47 = vsel %vm399_vm0, %v5284_v3, %v5285_v20  ;;  %v5288_v41 = vsel %vm399_vm0, %v5281_v5, %v5282_v58  ;;  %v13246_v49 = vcombine.low %v13243_v15, %v13244_v38  ;;  %v13249_v3 = vcombine.high %v13247_v43, %v13248_v46 }
 0x80a   : > { %v5360_v42 = vsel %vm399_vm0, %v5352_v4, %v5353_v61  ;;  %6731 = vmatprep.subr.bf16.mxu1 %v7868_v51  ;;  %v5323_v33 = vsel %vm13250_vm1, %v13157_v30, %v5322_v22  ;;  %v5289_v8 = vsel %vm664_vm11, %v13171_v59, %v5288_v41  ;;  %v13253_v36 = vrot.slane %v13252_v27, 4 }
 0x80b   : > { %6783 = vmatpush1.bf16.msra.mxu0 %v13242_v31  ;;  %v5313_v9 = vpop.permute.xlu1 %5312  ;;  %v5361_v4 = vsel %vm734_vm4, %v13142_v37, %v5360_v42  ;;  %v5293_v37 = vsel %vm664_vm11, %v11681_v14, %v5292_v47  ;;  %v13255_v30 = vcombine.high %v11678_v48, %v11623_v53  ;;  %vm13257_vm4 = vcmask 531456  }
 0x80c   : > { %6784 = vmatprep.subr.bf16.mxu0 %v13245_v57  ;;  %v5319_v25 = vrot.slane %v5313_v9, 4  ;;  %v7863_v29 = vcombine.low %v5357_v1, %v5361_v4  ;;  %v7864_v24 = vcombine.high %v5357_v1, %v5361_v4  ;;  %v5772_v16 = vsel %vm399_vm0, %v13253_v36, %v5766_v44  ;;  %vm13258_vm11 = vmmov %vm13257_vm4 }
 0x80d   : > { %6732 = vmatpush2.bf16.msra.mxu1 %v7867_v7  ;;  %v7856_v0 = vcombine.high %v5289_v8, %v5293_v37  ;;  %v5773_v40 = vsel %vm13257_vm4, %v13252_v27, %v5772_v16  ;;  %v13259_v45 = vcombine.low %v11678_v48, %v11623_v53  ;;  %v7855_v10 = vcombine.low %v5289_v8, %v5293_v37 }
 0x80e   : > { %v5326_v5 = vsel %vm399_vm0, %v5318_v32, %v5319_v25  ;;  %6733 = vmatprep.subr.bf16.mxu1 %v7864_v24  ;;  %v13254_v32 = vcombine.low %v13247_v43, %v13248_v46 }
 0x80f   : > { %6785 = vmatpush1.bf16.msra.mxu0 %v13246_v49  ;;  %v5763_v50 = vpop.permute.xlu1 %5762  ;;  %v5327_v23 = vsel %vm13251_vm3, %v13163_v13, %v5326_v5  ;;  %v13256_v13 = vrot.slane %v11547_v19, 4 }
 0x810   : > { %6796 = vmatprep.subr.bf16.mxu0 %v13249_v3  ;;  %v5769_v63 = vrot.slane %v5763_v50, 4  ;;  %v7859_v14 = vcombine.low %v5323_v33, %v5327_v23  ;;  %v7860_v52 = vcombine.high %v5323_v33, %v5327_v23 }
 0x811   : > { %6734 = vmatpush2.bf16.msra.mxu1 %v7863_v29 }
 0x812   : > { %v5776_v59 = vsel %vm399_vm0, %v13256_v13, %v5769_v63  ;;  %6735 = vmatprep.subr.bf16.mxu1 %v7860_v52  ;;  %vm13270_vm0 = vcmask 130048  }
 0x813   : > { %6797 = vmatpush2.bf16.msra.mxu0 %v13254_v32  ;;  %v5777_v26 = vsel %vm13258_vm11, %v11547_v19, %v5776_v59  ;;  %v13260_v19 = vmov 0   ;;  %vm13276_vm9 = vmmov %vm13270_vm0 }
 0x814   : > { %6798 = vmatprep.subr.bf16.mxu0 %v13255_v30  ;;  %v7919_v18 = vcombine.low %v5773_v40, %v5777_v26  ;;  %v7920_v2 = vcombine.high %v5773_v40, %v5777_v26  ;;  %vm13277_vm13 = vmmov %vm13270_vm0 }
 0x815   : > { %6736 = vmatpush2.bf16.msra.mxu1 %v7859_v14 }
 0x816   : > { %6737 = vmatprep.subr.bf16.mxu1 %v7856_v0 }
 0x817   : > { %6799 = vmatpush2.bf16.msra.mxu0 %v13259_v45 }
 0x818   : > { %6800 = vmatprep.subr.bf16.mxu0 %v7920_v2 }
 0x819   : > { %6738 = vmatpush2.bf16.msra.mxu1 %v7855_v10 }
 0x81b   : > { %6801 = vmatpush2.bf16.msra.mxu0 %v7919_v18 }
 0x81c   : > { %6740 = vmatmul.mubr.bf16.vlgmr.msra.gmra.mxu1 %v11769_v39 }
 0x81d   : > { %6749 = vmatprep.mubr.bf16.mxu1 %v11784_v34 }
 0x81e   : > { %6803 = vmatmul.mubr.bf16.vlgmr.msra.gmra.mxu0 %v11619_v28  ;;  %v11990_v28 = vpop.f32.mrf.mxu1 }
 0x81f   : > { %7933 = vmatprep.mubr.msk.bf16.mxu0 %vm1965_vm5, %v11653_v55 }
 0x820   : > { %v11992_v53 = vpop.f32.mrf.mxu1 }
 0x822   : > { %v11994_v55 = vpop.f32.mrf.mxu1 }
 0x824   : > { %6750 = vmatmul.mubr.bf16.gmra.mxu1 %v11821_v12  ;;  %v11996_v48 = vpop.f32.mrf.mxu1 }
 0x825   : > { %6759 = vmatprep.mubr.bf16.mxu1 %v11836_v62 }
 0x826   : > { %6813 = vmatmul.mubr.bf16.gmra.mxu0 %v11686_v54  ;;  %v11998_v54 = vpop.f32.mrf.mxu1 }
 0x827   : > { %7934 = vmatprep.mubr.msk.bf16.mxu0 %vm1965_vm5, %v11713_v21  ;;  %v12002_v21 = vpop.f32.mrf.mxu0 }
 0x828   : > { %v12000_v39 = vpop.f32.mrf.mxu1 }
 0x82a   : > { %v12004_v34 = vpop.f32.mrf.mxu1 }
 0x82c   : > { %6760 = vmatmul.mubr.bf16.gmra.mxu1 %v11867_v11  ;;  %v12008_v12 = vpop.f32.mrf.mxu1 }
 0x82d   : > { %6975 = vmatprep.mubr.bf16.mxu1 %v13260_v19  ;;  %13261 = vst [vmem:[#allocation29_spill] sm:$0xff] %v12008_v12 }
 0x82e   : > { %6823 = vmatmul.mubr.bf16.gmra.mxu0 %v11749_v35  ;;  %v12006_v35 = vpop.f32.mrf.mxu0  ;;  %v12012_v11 = vpop.f32.mrf.mxu1 }
 0x82f   : > { %6922 = vmatprep.mubr.bf16.mxu0 %v13260_v19  ;;  %13262 = vst [vmem:[#allocation15_spill] sm:$0xff] %v12012_v11 }
 0x830   : > { %v12010_v62 = vpop.f32.mrf.mxu0  ;;  %v12018_v60 = vpop.f32.mrf.mxu1 }
 0x831   : > { %13263 = vst [vmem:[#allocation100_spill] sm:$0xff] %v12018_v60 }
 0x832   : > { %v12014_v56 = vpop.f32.mrf.mxu0  ;;  %v12022_v61 = vpop.f32.mrf.mxu1 }
 0x833   : > { %13264 = vst [vmem:[#allocation71_spill] sm:$0xff] %v12022_v61 }
 0x834   : > { %v12016_v58 = vpop.f32.mrf.mxu0  ;;  %v12026_v7 = vpop.f32.mrf.mxu1 }
 0x835   : > { %13265 = vst [vmem:[#allocation90_spill] sm:$0xff] %v12026_v7 }
 0x836   : > { %v12020_v6 = vpop.f32.mrf.mxu0 }
 0x838   : > { %v12024_v31 = vpop.f32.mrf.mxu0 }
 0x83a   : > { %v12028_v20 = vpop.f32.mrf.mxu0 }
 0x83c   : > { %v12030_v15 = vpop.f32.mrf.mxu0 }
 0x83e   : > { %v12032_v57 = vpop.f32.mrf.mxu0 }
 0x840   : > { %v12034_v22 = vpop.f32.mrf.mxu0 }
 0x842   : > { %v12036_v41 = vpop.f32.mrf.mxu0 }
 0x898   : > { %v6678_v51 = vpop.f32.mrf.mxu1 }
 0x89a   : > { %v6680_v17 = vpop.f32.mrf.mxu1 }
 0x89c   : > { %v6682_v38 = vpop.f32.mrf.mxu1 }
 0x89e   : > { %v6684_v42 = vpop.f32.mrf.mxu1 }
 0x8a1   : > { %v6688_v1 = vpop.f32.mrf.mxu1 }
 0x8a3   : > { %v6690_v47 = vpop.f32.mrf.mxu1 }
 0x8a5   : > { %v6692_v4 = vpop.f32.mrf.mxu1 }
 0x8a7   : > { %v6694_v49 = vpop.f32.mrf.mxu1 }
 0x8aa   : > { %v6698_v43 = vpop.f32.mrf.mxu1 }
 0x8ac   : > { %v6700_v5 = vpop.f32.mrf.mxu1 }
 0x8ae   : > { %v6702_v33 = vpop.f32.mrf.mxu1 }
 0x8b0   : > { %v6615_v9 = vpop.f32.mrf.mxu0  ;;  %v6704_v32 = vpop.f32.mrf.mxu1 }
 0x8b2   : > { %v6617_v44 = vpop.f32.mrf.mxu0 }
 0x8b4   : > { %v6619_v25 = vpop.f32.mrf.mxu0 }
 0x8b6   : > { %v6621_v29 = vpop.f32.mrf.mxu0 }
 0x8b7   : > { %v6685_v2 = vadd.f32 %v6684_v42, %v6621_v29 }
 0x8b8   : > { %v6625_v24 = vpop.f32.mrf.mxu0 }
 0x8b9   : > { %v6689_v52 = vadd.f32 %v6688_v1, %v6625_v24  ;;  %v6679_v1 = vadd.f32 %v6678_v51, %v6615_v9 }
 0x8ba   : > { %v6627_v46 = vpop.f32.mrf.mxu0 }
 0x8bb   : > { %v6691_v23 = vadd.f32 %v6690_v47, %v6627_v46  ;;  %v6841_v7 = vmax.f32 %v6689_v52, 0.0  ;;  %v6681_v46 = vadd.f32 %v6680_v17, %v6617_v44  ;;  %v12041_v17 = vld [vmem:[%s12162_s3 + $0x20] sm:$0xff]  }
 0x8bc   : > { %v6629_v3 = vpop.f32.mrf.mxu0 }
 0x8bd   : > { %v6842_v30 = vmax.f32 %v6691_v23, 0.0  ;;  %v6693_v13 = vadd.f32 %v6692_v4, %v6629_v3  ;;  %v6834_v4 = vmax.f32 %v6681_v46, 0.0  ;;  %v6833_v23 = vmax.f32 %v6679_v1, 0.0 }
 0x8be   : > { %v6631_v37 = vpop.f32.mrf.mxu0 }
 0x8bf   : > { %v6695_v36 = vadd.f32 %v6694_v49, %v6631_v37  ;;  %v6845_v47 = vmax.f32 %v6693_v13, 0.0  ;;  %v6683_v37 = vadd.f32 %v6682_v38, %v6619_v25  ;;  %v12049_v38 = vld [vmem:[%s12162_s3 + $0x28] sm:$0xff]  }
 0x8c0   : > { %v6635_v50 = vpop.f32.mrf.mxu0 }
 0x8c1   : > { %v6699_v8 = vadd.f32 %v6698_v43, %v6635_v50  ;;  %v6846_v40 = vmax.f32 %v6695_v36, 0.0  ;;  %v6838_v50 = vmax.f32 %v6685_v2, 0.0  ;;  %v6861_v24 = vpack.c.bf16 %v6845_v47, %v6841_v7 }
 0x8c2   : > { %v6637_v27 = vpop.f32.mrf.mxu0  ;;  %v6837_v3 = vmax.f32 %v6683_v37, 0.0 }
 0x8c3   : > { %v6701_v16 = vadd.f32 %v6700_v5, %v6637_v27  ;;  %v6849_v59 = vmax.f32 %v6699_v8, 0.0  ;;  %v6862_v49 = vpack.c.bf16 %v6846_v40, %v6842_v30 }
 0x8c4   : > { %v6639_v63 = vpop.f32.mrf.mxu0  ;;  %v6857_v42 = vpack.c.bf16 %v6837_v3, %v6833_v23 }
 0x8c5   : > { %v6703_v14 = vadd.f32 %v6702_v33, %v6639_v63  ;;  %v6850_v26 = vmax.f32 %v6701_v16, 0.0  ;;  %v6858_v33 = vpack.c.bf16 %v6838_v50, %v6834_v4 }
 0x8c6   : > { %v6641_v0 = vpop.f32.mrf.mxu0 }
 0x8c7   : > { %v6853_v45 = vmax.f32 %v6703_v14, 0.0  ;;  %v6705_v18 = vadd.f32 %v6704_v32, %v6641_v0 }
 0x8c9   : > { %v6854_v10 = vmax.f32 %v6705_v18, 0.0  ;;  %v6865_v43 = vpack.c.bf16 %v6853_v45, %v6849_v59 }
 0x8cb   : > { %v6866_v5 = vpack.c.bf16 %v6854_v10, %v6850_v26 }
 0x8cd   : > { %6900 = vmatprep.subr.bf16.mxu0 %v6866_v5 }
 0x8ce   : > { %6901 = vmatpush1.bf16.msra.mxu0 %v6865_v43 }
 0x8cf   : > { %6902 = vmatprep.subr.bf16.mxu0 %v6862_v49 }
 0x8d2   : > { %6903 = vmatpush1.bf16.msra.mxu0 %v6861_v24 }
 0x8d3   : > { %6904 = vmatprep.subr.bf16.mxu0 %v6858_v33 }
 0x8d6   : > { %6905 = vmatpush1.bf16.msra.mxu0 %v6857_v42 }
 0x8d9   : > { %7941 = vmatmul.mubr.msk.bf16.vlgmr.msra.gmra.mxu0 %vm1965_vm5, %v12041_v17 }
 0x8da   : > { %6932 = vmatprep.mubr.bf16.mxu0 %v13260_v19 }
 0x8dc   : > { %v6741_v7 = vpop.f32.mrf.mxu1 }
 0x8de   : > { %v6804_v51 = vpop.f32.mrf.mxu0  ;;  %v6743_v9 = vpop.f32.mrf.mxu1 }
 0x8e0   : > { %v6806_v44 = vpop.f32.mrf.mxu0  ;;  %v6745_v25 = vpop.f32.mrf.mxu1 }
 0x8e1   : > { %7942 = vmatmul.mubr.msk.bf16.gmra.mxu0 %vm1965_vm5, %v12049_v38  ;;  %v6807_v61 = vadd.f32 %v6806_v44, %v6743_v9 }
 0x8e2   : > { %v6808_v29 = vpop.f32.mrf.mxu0  ;;  %v6747_v8 = vpop.f32.mrf.mxu1  ;;  %7059 = vmatprep.mubr.bf16.mxu0 %v13260_v19 }
 0x8e3   : > { %v6809_v12 = vadd.f32 %v6808_v29, %v6745_v25 }
 0x8e4   : > { %v6810_v27 = vpop.f32.mrf.mxu0  ;;  %v6751_v36 = vpop.f32.mrf.mxu1 }
 0x8e5   : > { %v6811_v24 = vadd.f32 %v6810_v27, %v6747_v8  ;;  %v6839_v8 = vmax.f32 %v6809_v12, 0.0 }
 0x8e6   : > { %v6814_v16 = vpop.f32.mrf.mxu0  ;;  %v6753_v63 = vpop.f32.mrf.mxu1 }
 0x8e7   : > { %v6815_v23 = vadd.f32 %v6814_v16, %v6751_v36  ;;  %v13266_v36 = vld [vmem:[#allocation63_spill] sm:$0xff] }
 0x8e8   : > { %v6816_v32 = vpop.f32.mrf.mxu0  ;;  %v6755_v14 = vpop.f32.mrf.mxu1 }
 0x8e9   : > { %v6817_v5 = vadd.f32 %v6816_v32, %v6753_v63  ;;  %v6843_v63 = vmax.f32 %v6815_v23, 0.0  ;;  %v6836_v32 = vmax.f32 %v6807_v61, 0.0  ;;  %v13272_v23 = vld [vmem:[#allocation57_spill] sm:$0xff] }
 0x8ea   : > { %v6818_v52 = vpop.f32.mrf.mxu0  ;;  %v6757_v30 = vpop.f32.mrf.mxu1 }
 0x8eb   : > { %v6819_v50 = vadd.f32 %v6818_v52, %v6755_v14  ;;  %v6844_v60 = vmax.f32 %v6817_v5, 0.0 }
 0x8ec   : > { %v6820_v13 = vpop.f32.mrf.mxu0  ;;  %v6761_v59 = vpop.f32.mrf.mxu1 }
 0x8ed   : > { %v6821_v2 = vadd.f32 %v6820_v13, %v6757_v30  ;;  %v6847_v30 = vmax.f32 %v6819_v50, 0.0 }
 0x8ee   : > { %v6824_v0 = vpop.f32.mrf.mxu0  ;;  %v6763_v40 = vpop.f32.mrf.mxu1 }
 0x8ef   : > { %v6825_v43 = vadd.f32 %v6824_v0, %v6761_v59  ;;  %v6848_v4 = vmax.f32 %v6821_v2, 0.0  ;;  %v6805_v0 = vadd.f32 %v6804_v51, %v6741_v7  ;;  %v6863_v27 = vpack.c.bf16 %v6847_v30, %v6843_v63  ;;  %v13273_v30 = vld [vmem:[#allocation87_spill] sm:$0xff] }
 0x8f0   : > { %v6826_v26 = vpop.f32.mrf.mxu0  ;;  %v6765_v45 = vpop.f32.mrf.mxu1 }
 0x8f1   : > { %v6827_v10 = vadd.f32 %v6826_v26, %v6763_v40  ;;  %v6851_v42 = vmax.f32 %v6825_v43, 0.0  ;;  %v6840_v40 = vmax.f32 %v6811_v24, 0.0  ;;  %v6864_v59 = vpack.c.bf16 %v6848_v4, %v6844_v60  ;;  %v13267_v26 = vld [vmem:[#allocation32_spill] sm:$0xff] }
 0x8f2   : > { %v6828_v18 = vpop.f32.mrf.mxu0  ;;  %v6767_v46 = vpop.f32.mrf.mxu1  ;;  %v6835_v52 = vmax.f32 %v6805_v0, 0.0 }
 0x8f3   : > { %v6829_v47 = vadd.f32 %v6828_v18, %v6765_v45  ;;  %v6852_v3 = vmax.f32 %v6827_v10, 0.0  ;;  %v6860_v14 = vpack.c.bf16 %v6840_v40, %v6836_v32  ;;  %v13268_v18 = vld [vmem:[#allocation33_spill] sm:$0xff]  ;;  %v8107_v10 = vld [vmem:[%s12163_s4 + $0x10] sm:$0xff]  }
 0x8f4   : > { %v6830_v49 = vpop.f32.mrf.mxu0  ;;  %v6859_v9 = vpack.c.bf16 %v6839_v8, %v6835_v52  ;;  %v13275_v8 = vld [vmem:[#allocation34_spill] sm:$0xff] }
 0x8f5   : > { %v6831_v37 = vadd.f32 %v6830_v49, %v6767_v46  ;;  %v6855_v1 = vmax.f32 %v6829_v47, 0.0  ;;  %v13269_v47 = vld [vmem:[#allocation86_spill] sm:$0xff]  ;;  %v8108_v49 = vld [vmem:[%s12164_s5 + $0x10] sm:$0xff]  }
 0x8f7   : > { %v6856_v33 = vmax.f32 %v6831_v37, 0.0  ;;  %v6867_v13 = vpack.c.bf16 %v6855_v1, %v6851_v42 }
 0x8f9   : > { %v6868_v11 = vpack.c.bf16 %v6856_v33, %v6852_v3 }
 0x8fb   : > { %6953 = vmatprep.subr.bf16.mxu1 %v6868_v11 }
 0x8fc   : > { %6954 = vmatpush1.bf16.msra.mxu1 %v6867_v13 }
 0x8fd   : > { %6955 = vmatprep.subr.bf16.mxu1 %v6864_v59  ;;  %v13274_v59 = vld [vmem:[#allocation18_spill] sm:$0xff] }
 0x900   : > { %6956 = vmatpush1.bf16.msra.mxu1 %v6863_v27 }
 0x901   : > { %6957 = vmatprep.subr.bf16.mxu1 %v6860_v14 }
 0x904   : > { %6958 = vmatpush1.bf16.msra.mxu1 %v6859_v9 }
 0x907   : > { %7943 = vmatmul.mubr.msk.bf16.vlgmr.msra.gmra.mxu1 %vm1965_vm5, %v12041_v17 }
 0x908   : > { %6985 = vmatprep.mubr.bf16.mxu1 %v13260_v19 }
 0x90f   : > { %7944 = vmatmul.mubr.msk.bf16.gmra.mxu1 %vm1965_vm5, %v12049_v38  ;;  %vm13271_vm5 = vmmov %vm13270_vm0 }
 0x910   : > { %7102 = vmatprep.mubr.bf16.mxu1 %v13260_v19 }
 0x999   : > { %v6924_v11 = vpop.f32.mrf.mxu0 }
 0x99a   : > { %v6996_v7 = vmax.f32 %v6924_v11, 0.0 }
 0x99b   : > { %v6926_v60 = vpop.f32.mrf.mxu0 }
 0x99c   : > { %v6997_v61 = vmax.f32 %v6926_v60, 0.0  ;;  %v7004_v43 = vadd.f32 %v6996_v7, %v13269_v47  ;;  %v13278_v60 = vld [vmem:[#allocation81_spill] sm:$0xff] }
 0x99d   : > { %v6928_v12 = vpop.f32.mrf.mxu0 }
 0x99e   : > { %v7000_v51 = vmax.f32 %v6928_v12, 0.0  ;;  %v7005_v16 = vadd.f32 %v6997_v61, %v13266_v36  ;;  %v4918_v12 = vadd.f32 %v12002_v21, %v13278_v60 }
 0x99f   : > { %v6930_v44 = vpop.f32.mrf.mxu0 }
 0x9a0   : > { %v7001_v25 = vmax.f32 %v6930_v44, 0.0  ;;  %v7015_v29 = vpack.c.bf16 %v7000_v51, %v6996_v7  ;;  %v7008_v2 = vadd.f32 %v7000_v51, %v13268_v18  ;;  %v13280_v44 = vld [vmem:[#allocation67_spill] sm:$0xff] }
 0x9a1   : > { %v6934_v52 = vpop.f32.mrf.mxu0 }
 0x9a2   : > { %v7009_v17 = vadd.f32 %v7001_v25, %v13267_v26  ;;  %v7016_v45 = vpack.c.bf16 %v7001_v25, %v6997_v61  ;;  %v7116_v46 = vpack.c.bf16 %v7008_v2, %v7004_v43  ;;  %v13279_v61 = vld [vmem:[#allocation42_spill] sm:$0xff]  ;;  %v4894_v25 = vadd.f32 %v12016_v58, %v13280_v44  ;;  %v13284_v2 = vld [vmem:[#allocation80_spill] sm:$0xff] }
 0x9a3   : > { %v6936_v9 = vpop.f32.mrf.mxu0  ;;  %v4919_v7 = vadd.f32 %v12006_v35, %v13279_v61  ;;  %v4923_v21 = vadd.f32 %v12014_v56, %v13284_v2 }
 0x9a4   : > { %7041 = vmatprep.subr.bf16.mxu0 %v7016_v45  ;;  %v7117_v38 = vpack.c.bf16 %v7009_v17, %v7005_v16  ;;  %v13283_v17 = vld [vmem:[#allocation45_spill] sm:$0xff] }
 0x9a5   : > { %7042 = vmatpush1.bf16.msra.mxu0 %v7015_v29  ;;  %v6938_v11 = vpop.f32.mrf.mxu0  ;;  %v7246_v29 = vadd.f32 %v6934_v52, %v4918_v12  ;;  %v7247_v36 = vadd.f32 %v6936_v9, %v4919_v7  ;;  %v4895_v45 = vadd.f32 %v12020_v6, %v13283_v17  ;;  %v13292_v9 = vld [vmem:[#allocation62_spill] sm:$0xff]  ;;  %v13293_v17 = vld [vmem:[#allocation17_spill] sm:$0xff] }
 0x9a6   : > { %7142 = vmatprep.subr.bf16.mxu0 %v7117_v38  ;;  %v13285_v38 = vld [vmem:[#allocation69_spill] sm:$0xff] }
 0x9a7   : > { %v6940_v51 = vpop.f32.mrf.mxu0  ;;  %v4898_v35 = vadd.f32 %v12024_v31, %v13285_v38  ;;  %v7310_v47 = vmax.f32 %v7246_v29, 0.0 }
 0x9a8   : > { %7948 = vmatmul.mubr.msk.bf16.vlgmr.msra.gmra.mxu0 %vm13270_vm0, %v8107_v10  ;;  %v7251_v56 = vadd.f32 %v6940_v51, %v4923_v21  ;;  %v13295_v21 = vld [vmem:[#allocation60_spill] sm:$0xff] }
 0x9a9   : > { %7143 = vmatpush1.bf16.msra.mxu0 %v7116_v46  ;;  %7160 = vmatprep.mubr.bf16.mxu0 %v13260_v19  ;;  %v4896_v38 = vadd.f32 %v11998_v54, %v13295_v21 }
 0x9b0   : > { %7953 = vmatmul.mubr.msk.bf16.vlgmr.msra.gmra.mxu0 %vm13271_vm5, %v8108_v49 }
 0x9c7   : > { %v6977_v5 = vpop.f32.mrf.mxu1 }
 0x9c8   : > { %v6998_v33 = vmax.f32 %v6977_v5, 0.0 }
 0x9c9   : > { %v6979_v37 = vpop.f32.mrf.mxu1 }
 0x9ca   : > { %v6999_v1 = vmax.f32 %v6979_v37, 0.0  ;;  %v7006_v27 = vadd.f32 %v6998_v33, %v13275_v8  ;;  %v7311_v37 = vmax.f32 %v7247_v36, 0.0 }
 0x9cb   : > { %v6981_v50 = vpop.f32.mrf.mxu1 }
 0x9cc   : > { %v7002_v24 = vmax.f32 %v6981_v50, 0.0  ;;  %v7007_v42 = vadd.f32 %v6999_v1, %v13272_v23 }
 0x9cd   : > { %v6983_v4 = vpop.f32.mrf.mxu1 }
 0x9ce   : > { %v7003_v3 = vmax.f32 %v6983_v4, 0.0  ;;  %v7010_v0 = vadd.f32 %v7002_v24, %v13274_v59  ;;  %v7017_v63 = vpack.c.bf16 %v7002_v24, %v6998_v33 }
 0x9d0   : > { %v7011_v13 = vadd.f32 %v7003_v3, %v13273_v30  ;;  %v7018_v40 = vpack.c.bf16 %v7003_v3, %v6999_v1  ;;  %v7118_v14 = vpack.c.bf16 %v7010_v0, %v7006_v27  ;;  %v13288_v1 = vld [vmem:[#allocation84_spill] sm:$0xff] }
 0x9d1   : > { %v4942_v24 = vadd.f32 %v12030_v15, %v13288_v1  ;;  %v13290_v15 = vld [vmem:[#allocation56_spill] sm:$0xff] }
 0x9d2   : > { %7084 = vmatprep.subr.bf16.mxu1 %v7018_v40  ;;  %v7119_v32 = vpack.c.bf16 %v7011_v13, %v7007_v42  ;;  %v13289_v42 = vld [vmem:[#allocation54_spill] sm:$0xff]  ;;  %v7315_v40 = vmax.f32 %v7251_v56, 0.0  ;;  %v4946_v8 = vadd.f32 %v12034_v22, %v13290_v15  ;;  %v13300_v1 = vld [vmem:[#allocation76_spill] sm:$0xff] }
 0x9d3   : > { %7085 = vmatpush1.bf16.msra.mxu1 %v7017_v63  ;;  %v4943_v30 = vadd.f32 %v12032_v57, %v13289_v42  ;;  %v13303_v42 = vld [vmem:[#allocation15_spill] sm:$0xff] }
 0x9d4   : > { %7185 = vmatprep.subr.bf16.mxu1 %v7119_v32 }
 0x9d6   : > { %7949 = vmatmul.mubr.msk.bf16.vlgmr.msra.gmra.mxu1 %vm13276_vm9, %v8107_v10 }
 0x9d7   : > { %7186 = vmatpush1.bf16.msra.mxu1 %v7118_v14  ;;  %7203 = vmatprep.mubr.bf16.mxu1 %v13260_v19  ;;  %v13282_v19 = vld [vmem:[#allocation82_spill] sm:$0xff] }
 0x9d8   : > { %v4922_v26 = vadd.f32 %v12010_v62, %v13282_v19 }
 0x9da   : > { %v7250_v58 = vadd.f32 %v6938_v11, %v4922_v26  ;;  %v4947_v11 = vadd.f32 %v12036_v41, %v13292_v9  ;;  %v4920_v41 = vadd.f32 %v11990_v28, %v13293_v17 }
 0x9dc   : > { %v7314_v3 = vmax.f32 %v7250_v58, 0.0  ;;  %v13296_v58 = vld [vmem:[#allocation31_spill] sm:$0xff] }
 0x9de   : > { %7954 = vmatmul.mubr.msk.bf16.vlgmr.msra.gmra.mxu1 %vm13277_vm13, %v8108_v49  ;;  %v13286_v49 = vld [vmem:[#allocation47_spill] sm:$0xff] }
 0x9df   : > { %v4899_v5 = vadd.f32 %v12028_v20, %v13286_v49 }
 0xa68   : > { %v7061_v16 = vpop.f32.mrf.mxu0 }
 0xa69   : > { %v7222_v18 = vadd.f32 %v7061_v16, %v4894_v25  ;;  %v6987_v16 = vpop.f32.mrf.mxu1 }
 0xa6a   : > { %v7063_v10 = vpop.f32.mrf.mxu0 }
 0xa6b   : > { %v7294_v43 = vmax.f32 %v7222_v18, 0.0  ;;  %v7223_v46 = vadd.f32 %v7063_v10, %v4895_v45  ;;  %v6989_v19 = vpop.f32.mrf.mxu1  ;;  %v13294_v45 = vld [vmem:[#allocation79_spill] sm:$0xff] }
 0xa6c   : > { %v7065_v62 = vpop.f32.mrf.mxu0  ;;  %v4921_v18 = vadd.f32 %v11992_v53, %v13294_v45 }
 0xa6d   : > { %v7334_v6 = vadd.f32 %v7310_v47, %v7294_v43  ;;  %v7295_v31 = vmax.f32 %v7223_v46, 0.0  ;;  %v7226_v50 = vadd.f32 %v7065_v62, %v4898_v35  ;;  %v6991_v26 = vpop.f32.mrf.mxu1  ;;  %v7248_v35 = vadd.f32 %v6987_v16, %v4920_v41  ;;  %v13297_v46 = vld [vmem:[#allocation78_spill] sm:$0xff]  ;;  %v13299_v62 = vld [vmem:[#allocation61_spill] sm:$0xff] }
 0xa6e   : > { %v7067_v4 = vpop.f32.mrf.mxu0  ;;  %v7249_v10 = vadd.f32 %v6989_v19, %v4921_v18  ;;  %v4924_v43 = vadd.f32 %v11994_v55, %v13296_v58  ;;  %v4897_v49 = vadd.f32 %v12000_v39, %v13297_v46  ;;  %v4900_v53 = vadd.f32 %v12004_v34, %v13299_v62 }
 0xa6f   : > { %7342 = vst [vmem:[%s12100_s15] sm:$0xff] %v7334_v6  ;;  %v7335_v20 = vadd.f32 %v7311_v37, %v7295_v31  ;;  %v7298_v33 = vmax.f32 %v7226_v50, 0.0  ;;  %v7227_v23 = vadd.f32 %v7067_v4, %v4899_v5  ;;  %v6993_v2 = vpop.f32.mrf.mxu1  ;;  %v13298_v37 = vld [vmem:[#allocation66_spill] sm:$0xff] }
 0xa70   : > { %v7162_v13 = vpop.f32.mrf.mxu0  ;;  %v4925_v28 = vadd.f32 %v11996_v48, %v13298_v37  ;;  %v7252_v54 = vadd.f32 %v6991_v26, %v4924_v43  ;;  %v7313_v55 = vmax.f32 %v7249_v10, 0.0  ;;  %v13302_v48 = vld [vmem:[#allocation43_spill] sm:$0xff] }
 0xa71   : > { %7343 = vst [vmem:[%s12100_s15 + $0x8] sm:$0xff] %v7335_v20  ;;  %v7338_v59 = vadd.f32 %v7314_v3, %v7298_v33  ;;  %v7299_v0 = vmax.f32 %v7227_v23, 0.0  ;;  %v7270_v63 = vadd.f32 %v7162_v13, %v4942_v24  ;;  %v13301_v24 = vld [vmem:[#allocation29_spill] sm:$0xff] }
 0xa72   : > { %v7164_v32 = vpop.f32.mrf.mxu0  ;;  %v4901_v4 = vadd.f32 %v13301_v24, %v13300_v1  ;;  %v7253_v39 = vadd.f32 %v6993_v2, %v4925_v28  ;;  %v7316_v13 = vmax.f32 %v7252_v54, 0.0 }
 0xa73   : > { %7346 = vst [vmem:[%s12100_s15 + $0x20] sm:$0xff] %v7338_v59  ;;  %v7339_v27 = vadd.f32 %v7315_v40, %v7299_v0  ;;  %v7326_v14 = vmax.f32 %v7270_v63, 0.0  ;;  %v7271_v52 = vadd.f32 %v7164_v32, %v4943_v30  ;;  %v4944_v30 = vadd.f32 %v13303_v42, %v13302_v48  ;;  %v13304_v63 = vld [vmem:[#allocation83_spill] sm:$0xff]  ;;  %v13305_v32 = vld [vmem:[#allocation100_spill] sm:$0xff] }
 0xa74   : > { %v7166_v57 = vpop.f32.mrf.mxu0  ;;  %v4945_v15 = vadd.f32 %v13305_v32, %v13304_v63 }
 0xa75   : > { %7347 = vst [vmem:[%s12100_s15 + $0x28] sm:$0xff] %v7339_v27  ;;  %v7350_v60 = vadd.f32 %v7334_v6, %v7326_v14  ;;  %v7327_v22 = vmax.f32 %v7271_v52, 0.0  ;;  %v7274_v12 = vadd.f32 %v7166_v57, %v4946_v8  ;;  %v7312_v6 = vmax.f32 %v7248_v35, 0.0 }
 0xa76   : > { %v7168_v61 = vpop.f32.mrf.mxu0 }
 0xa77   : > { %7358 = vst [vmem:[%s12115_s25] sm:$0xff] %v7350_v60  ;;  %v7351_v7 = vadd.f32 %v7335_v20, %v7327_v22  ;;  %v7330_v51 = vmax.f32 %v7274_v12, 0.0  ;;  %v7275_v44 = vadd.f32 %v7168_v61, %v4947_v11  ;;  %v13306_v11 = vld [vmem:[#allocation85_spill] sm:$0xff]  ;;  %v13307_v60 = vld [vmem:[#allocation71_spill] sm:$0xff] }
 0xa78   : > { %v4948_v22 = vadd.f32 %v13307_v60, %v13306_v11 }
 0xa79   : > { %7359 = vst [vmem:[%s12115_s25 + $0x8] sm:$0xff] %v7351_v7  ;;  %v7354_v25 = vadd.f32 %v7338_v59, %v7330_v51  ;;  %v7331_v29 = vmax.f32 %v7275_v44, 0.0  ;;  %v13308_v44 = vld [vmem:[#allocation88_spill] sm:$0xff] }
 0xa7b   : > { %7362 = vst [vmem:[%s12115_s25 + $0x20] sm:$0xff] %v7354_v25  ;;  %v7355_v36 = vadd.f32 %v7339_v27, %v7331_v29  ;;  %v7317_v27 = vmax.f32 %v7253_v39, 0.0  ;;  %v13309_v25 = vld [vmem:[#allocation90_spill] sm:$0xff] }
 0xa7c   : > { %v4949_v29 = vadd.f32 %v13309_v25, %v13308_v44 }
 0xa7d   : > { %7363 = vst [vmem:[%s12115_s25 + $0x28] sm:$0xff] %v7355_v36 }
 0xa96   : > { %v7104_v47 = vpop.f32.mrf.mxu1 }
 0xa97   : > { %v7224_v5 = vadd.f32 %v7104_v47, %v4896_v38 }
 0xa98   : > { %v7106_v56 = vpop.f32.mrf.mxu1 }
 0xa99   : > { %v7296_v31 = vmax.f32 %v7224_v5, 0.0  ;;  %v7225_v50 = vadd.f32 %v7106_v56, %v4897_v49 }
 0xa9a   : > { %v7108_v3 = vpop.f32.mrf.mxu1 }
 0xa9b   : > { %v7336_v20 = vadd.f32 %v7312_v6, %v7296_v31  ;;  %v7297_v33 = vmax.f32 %v7225_v50, 0.0  ;;  %v7228_v23 = vadd.f32 %v7108_v3, %v4900_v53 }
 0xa9c   : > { %v7110_v34 = vpop.f32.mrf.mxu1 }
 0xa9d   : > { %7344 = vst [vmem:[%s12100_s15 + $0x10] sm:$0xff] %v7336_v20  ;;  %v7337_v40 = vadd.f32 %v7313_v55, %v7297_v33  ;;  %v7300_v59 = vmax.f32 %v7228_v23, 0.0  ;;  %v7229_v0 = vadd.f32 %v7110_v34, %v4901_v4 }
 0xa9e   : > { %v7205_v8 = vpop.f32.mrf.mxu1 }
 0xa9f   : > { %7345 = vst [vmem:[%s12100_s15 + $0x18] sm:$0xff] %v7337_v40  ;;  %v7340_v14 = vadd.f32 %v7316_v13, %v7300_v59  ;;  %v7301_v52 = vmax.f32 %v7229_v0, 0.0  ;;  %v7272_v57 = vadd.f32 %v7205_v8, %v4944_v30 }
 0xaa0   : > { %v7207_v9 = vpop.f32.mrf.mxu1 }
 0xaa1   : > { %7348 = vst [vmem:[%s12100_s15 + $0x30] sm:$0xff] %v7340_v14  ;;  %v7341_v12 = vadd.f32 %v7317_v27, %v7301_v52  ;;  %v7328_v61 = vmax.f32 %v7272_v57, 0.0  ;;  %v7273_v7 = vadd.f32 %v7207_v9, %v4945_v15 }
 0xaa2   : > { %v7209_v51 = vpop.f32.mrf.mxu1 }
 0xaa3   : > { %7349 = vst [vmem:[%s12100_s15 + $0x38] sm:$0xff] %v7341_v12  ;;  %v7352_v36 = vadd.f32 %v7336_v20, %v7328_v61  ;;  %v7329_v16 = vmax.f32 %v7273_v7, 0.0  ;;  %v7276_v19 = vadd.f32 %v7209_v51, %v4948_v22 }
 0xaa4   : > { %v7211_v26 = vpop.f32.mrf.mxu1 }
 0xaa5   : > { %7360 = vst [vmem:[%s12115_s25 + $0x10] sm:$0xff] %v7352_v36  ;;  %v7353_v17 = vadd.f32 %v7337_v40, %v7329_v16  ;;  %v7332_v41 = vmax.f32 %v7276_v19, 0.0  ;;  %v7277_v45 = vadd.f32 %v7211_v26, %v4949_v29 }
 0xaa7   : > { %7361 = vst [vmem:[%s12115_s25 + $0x18] sm:$0xff] %v7353_v17  ;;  %v7356_v18 = vadd.f32 %v7340_v14, %v7332_v41  ;;  %v7333_v2 = vmax.f32 %v7277_v45, 0.0 }
 0xaa9   : > { %7364 = vst [vmem:[%s12115_s25 + $0x30] sm:$0xff] %v7356_v18  ;;  %v7357_v21 = vadd.f32 %v7341_v12, %v7333_v2 }
 0xaab   : > { %7365 = vst [vmem:[%s12115_s25 + $0x38] sm:$0xff] %v7357_v21 }
 0xaac PF: > { %s13310_s29 = sld [smem:[#allocation7_spill]] }
 0xab2   : > { %s18_s24 = sadd.s32 1, %s13310_s29  }
 0xab3   : > { %p15_p4 = scmp.ge.s32.totalorder %s18_s24, 4  }
 0xab5   :  { %17 = sbr.rel (!%p15_p4) target bundleno = 6 (0x6), region = 94 }

</bundles_post_ra>
